<compile_context>
chip_gen: v5e
topology: v5e:2x2
jax: 0.10.0
libtpu: 0.0.40
codegen_flags: <defaults>
</compile_context>

<pallas_src>
import jax
import jax.numpy as jnp
from jax.experimental import pallas as pl
from jax.experimental.pallas import tpu as pltpu

IMG_SIZE = 16
IN_FEATURES = 3 * IMG_SIZE * IMG_SIZE   # 768
NUM_F1 = 128
NUM_F2 = 32
NUM_F3 = 2                              # len(interest_num) == len([1, 7])
GIVEN_ANG = 10                          # given_ang in the reference (static int)
LANE = 128                              # lane-padding width for the small layers


# ---------------------------------------------------------------------------
# Math blocks (pure jnp; shared by the Pallas kernel body and the reference)
# ---------------------------------------------------------------------------
def _binary_linear(x, wb, length):
    """BinaryLinear.forward with bias=None, i.e. do_slp_via_th(x, binarize(W)).

    x:  (B, Lp)  probabilities (padded lanes, if any, must hold x == 0.5).
    wb: (Lp, Np) pre-binarized weights (+-1), bf16; padded rows/cols are 0.
    length: the REAL (unpadded) contraction length L.

    Identities (exact): with wb = +-1,
      d + e^2 = 4x(1-x) + (2x-1)^2 = 1          => sum_of_sq == L
      2*sum_of_cross = (sum_l wb*e)^2 - sum_l e^2
    so the layer is (L + t*t - sum(e^2)) / L^2 with a single MXU matmul.
    """
    e = 2.0 * x - 1.0                                             # f32
    sum_e2 = jnp.sum(e * e, axis=-1, keepdims=True)               # (B, 1), f32
    t = jnp.dot(e.astype(jnp.bfloat16), wb,
                preferred_element_type=jnp.float32)               # (B, Np), f32 acc
    inv_l2 = 1.0 / float(length * length)
    return (float(length) + t * t - sum_e2) * inv_l2


def _qc_norm_correction(x, inv_b):
    """QC_Norm_Correction forward, training branch (returned tensor only).

    cos(acos(z) + pi/2 - acos(zm)) = z*sqrt(1-zm^2) - sqrt(1-z^2)*zm,
    so no transcendental beyond sqrt is needed. Per-column batch mean.
    """
    # TODO(synk): x_running_rot running-statistic update is a module side
    # effect (does not affect the training-mode output) and is skipped.
    z = 2.0 * x - 1.0                                             # cos(x_ancle)
    sin_a = jnp.sqrt(jnp.maximum(0.0, 1.0 - z * z))               # sin(x_ancle)
    zm = 2.0 * (jnp.sum(x, axis=0, keepdims=True) * inv_b) - 1.0
    cos_r = jnp.sqrt(jnp.maximum(0.0, 1.0 - zm * zm))             # cos(pi/2-acos zm)
    return (z * cos_r - sin_a * zm + 1.0) * 0.5


def _rot_pow(c1, s1, n):
    """(cos(n*a), sin(n*a)) from (cos a, sin a) via exponentiation-by-squaring.

    n is a static Python int; for n=10 this is 3 squarings + 1 composition
    instead of 10 angle-addition steps.
    """
    cr = sr = None
    cb, sb = c1, s1
    while True:
        if n & 1:
            if cr is None:
                cr, sr = cb, sb
            else:
                cr, sr = cr * cb - sr * sb, sr * cb + cr * sb
        n >>= 1
        if n == 0:
            break
        cb, sb = cb * cb - sb * sb, 2.0 * sb * cb
    if cr is None:
        cr, sr = jnp.ones_like(c1), jnp.zeros_like(c1)
    return cr, sr


def _qc_norm(x, inv_b, ang_steps=GIVEN_ANG):
    """QC_Norm forward, training branch with given_ang != -1 (static integer).

    rote = given_ang * asin(zm), zm built from the leave-one-out batch mean;
    (cos(rote), sin(rote)) come from the rotation power of
    (cos(asin zm), sin(asin zm)) = (sqrt(1-zm^2), zm). VPU/EUP only.
    """
    # TODO(synk): x_running_rot buffer update skipped (side effect only).
    z = 2.0 * x - 1.0
    sin_a = jnp.sqrt(jnp.maximum(0.0, 1.0 - z * z))
    x_sum = jnp.sum(x, axis=0, keepdims=True)
    zm = 2.0 * ((x_sum - x) * inv_b) - 1.0          # leave-one-out mean per element
    c1 = jnp.sqrt(jnp.maximum(0.0, 1.0 - zm * zm))  # cos(asin zm)
    s1 = zm                                         # sin(asin zm)
    cr, sr = _rot_pow(c1, s1, ang_steps)
    return (z * cr - sin_a * sr + 1.0) * 0.5


# ---------------------------------------------------------------------------
# Pallas kernel: whole forward pass, one invocation (batch-coupled norms)
# ---------------------------------------------------------------------------
def net_kernel(x_ref, w1_ref, w2_ref, w3_ref, o_ref):
    B = x_ref.shape[0]
    inv_b = 1.0 / float(B)

    x = x_ref[...]                                                   # (B, 768)
    h = _binary_linear(x, w1_ref[...], IN_FEATURES)                  # (B, 128)
    h = _qc_norm(_qc_norm_correction(h, inv_b), inv_b)

    h = _binary_linear(h, w2_ref[...], NUM_F1)                       # (B, 128) pad
    h = _qc_norm(_qc_norm_correction(h, inv_b), inv_b)
    # Reset padded lanes to x=0.5 (=> e=0) so they contribute exactly nothing
    # to the next layer's contraction and sum(e^2).
    lane = jax.lax.broadcasted_iota(jnp.int32, h.shape, 1)
    h = jnp.where(lane < NUM_F2, h, 0.5)

    h = _binary_linear(h, w3_ref[...], NUM_F2)                       # (B, 128) pad
    h = _qc_norm(_qc_norm_correction(h, inv_b), inv_b)

    o_ref[...] = h.astype(o_ref.dtype)                               # lane-dense


def _prep_weight(w, pad_in=None, pad_out=None):
    """Binarize (+-1), transpose to (in, out), cast to bf16, zero-pad."""
    wb = jnp.where(w >= 0.0, 1.0, -1.0).astype(jnp.bfloat16).T       # (in, out)
    lin, lout = wb.shape
    pi = lin if pad_in is None else pad_in
    po = lout if pad_out is None else pad_out
    return jnp.pad(wb, ((0, pi - lin), (0, po - lout)))


def net_forward(x_nchw, w1, w2, w3):
    """x_nchw: (B, 3, 16, 16); w_i: PyTorch-layout (out_features, in_features).

    The whole batch must live in one kernel call (QC norms take batch means),
    so B per call is capped to keep resident VMEM comfortably inside the
    32 MiB scoped limit on every generation (v7x physical VMEM is 64 MiB).
    """
    B = x_nchw.shape[0]
    assert B <= 2048, "keep the resident batch within the VMEM budget"
    x = x_nchw.reshape(B, IN_FEATURES).astype(jnp.float32)

    wb1 = _prep_weight(w1)                                 # (768, 128)
    wb2 = _prep_weight(w2, pad_out=LANE)                   # (128, 128), cols 32.. = 0
    wb3 = _prep_weight(w3, pad_in=LANE, pad_out=LANE)      # (128, 128), rows 32../cols 2.. = 0

    full = lambda shape: pl.BlockSpec(shape, lambda i: (0, 0))
    out_pad = pl.pallas_call(
        net_kernel,
        out_shape=jax.ShapeDtypeStruct((B, LANE), jnp.float32),
        grid=(1,),
        in_specs=[full(x.shape), full(wb1.shape), full(wb2.shape), full(wb3.shape)],
        out_specs=full((B, LANE)),
        compiler_params=pltpu.CompilerParams(
            dimension_semantics=("arbitrary",),
            vmem_limit_bytes=32 * 1024 * 1024),
    )(x, wb1, wb2, wb3)
    return out_pad[:, :NUM_F3]


net_forward_jit = jax.jit(net_forward)


# ---------------------------------------------------------------------------
# Pure-JAX reference (same math, no lane padding) for a correctness check
# ---------------------------------------------------------------------------
def _net_reference(x_flat, w1, w2, w3):
    B = x_flat.shape[0]
    inv_b = 1.0 / float(B)
    wb1 = jnp.where(w1 >= 0.0, 1.0, -1.0).astype(jnp.bfloat16).T   # (768, 128)
    wb2 = jnp.where(w2 >= 0.0, 1.0, -1.0).astype(jnp.bfloat16).T   # (128, 32)
    wb3 = jnp.where(w3 >= 0.0, 1.0, -1.0).astype(jnp.bfloat16).T   # (32, 2)
    h = _qc_norm(_qc_norm_correction(_binary_linear(x_flat, wb1, IN_FEATURES), inv_b), inv_b)
    h = _qc_norm(_qc_norm_correction(_binary_linear(h, wb2, NUM_F1), inv_b), inv_b)
    h = _qc_norm(_qc_norm_correction(_binary_linear(h, wb3, NUM_F2), inv_b), inv_b)
    return h


# ---------------------------------------------------------------------------
# Driver
# ---------------------------------------------------------------------------
if __name__ == "__main__":
    key = jax.random.PRNGKey(0)
    kx, k1, k2, k3 = jax.random.split(key, 4)

    # Batch of 128 so the MXU sees a full M tile; the QC norms couple the
    # whole batch, so it all sits in a single kernel invocation anyway.
    B = 128
    # CIFAR-like probabilities in [0, 1], NCHW
    x = jax.random.uniform(kx, (B, 3, IMG_SIZE, IMG_SIZE), jnp.float32)

    def init_w(k, out_f, in_f):
        # BinaryLinear.reset_parameters: uniform(-stdv, stdv), stdv=sqrt(1.5/(in+out))
        stdv = (1.5 / (in_f + out_f)) ** 0.5
        return jax.random.uniform(k, (out_f, in_f), jnp.float32, -stdv, stdv)

    w1 = init_w(k1, NUM_F1, IN_FEATURES)
    w2 = init_w(k2, NUM_F2, NUM_F1)
    w3 = init_w(k3, NUM_F3, NUM_F2)

    out = net_forward_jit(x, w1, w2, w3)
    out = jax.block_until_ready(out)

    ref = _net_reference(x.reshape(B, IN_FEATURES), w1, w2, w3)

    assert out.shape == (B, NUM_F3)
    assert bool(jnp.all(jnp.isfinite(out)))
    assert bool(jnp.allclose(out, ref, atol=1e-3, rtol=1e-3))
    print("KERNEL_OK")
</pallas_src>

<mosaic_0001>
module attributes {stable_mosaic.version = 11 : i64} {
  func.func @net_kernel(%arg0: i32, %arg1: memref<128x768xf32, #tpu.memory_space<vmem>>, %arg2: memref<768x128xbf16, #tpu.memory_space<vmem>>, %arg3: memref<128x128xbf16, #tpu.memory_space<vmem>>, %arg4: memref<128x128xbf16, #tpu.memory_space<vmem>>, %arg5: memref<128x128xf32, #tpu.memory_space<vmem>>) attributes {dimension_semantics = [#tpu.dimension_semantics<arbitrary>], iteration_bounds = array<i64: 1>, scalar_prefetch = 0 : i64, scratch_operands = 0 : i64, tpu.core_type = #tpu.core_type<tc>, window_params = [{pipeline_mode = #tpu.pipeline_mode<synchronous>, transform_indices = @transform_0, window_bounds = array<i64: 128, 768>}, {pipeline_mode = #tpu.pipeline_mode<synchronous>, transform_indices = @transform_1, window_bounds = array<i64: 768, 128>}, {pipeline_mode = #tpu.pipeline_mode<synchronous>, transform_indices = @transform_2, window_bounds = array<i64: 128, 128>}, {pipeline_mode = #tpu.pipeline_mode<synchronous>, transform_indices = @transform_3, window_bounds = array<i64: 128, 128>}, {pipeline_mode = #tpu.pipeline_mode<synchronous>, transform_indices = @transform_4, window_bounds = array<i64: 128, 128>}]} {
    %c0 = arith.constant 0 : index
    %c0_0 = arith.constant 0 : index
    %0 = vector.load %arg1[%c0, %c0_0] : memref<128x768xf32, #tpu.memory_space<vmem>>, vector<128x768xf32>
    %c0_1 = arith.constant 0 : index
    %c0_2 = arith.constant 0 : index
    %1 = vector.load %arg2[%c0_1, %c0_2] : memref<768x128xbf16, #tpu.memory_space<vmem>>, vector<768x128xbf16>
    %cst = arith.constant 2.000000e+00 : f32
    %2 = vector.broadcast %cst : f32 to vector<128x768xf32>
    %3 = arith.mulf %2, %0 : vector<128x768xf32>
    %cst_3 = arith.constant 1.000000e+00 : f32
    %4 = vector.broadcast %cst_3 : f32 to vector<128x768xf32>
    %5 = arith.subf %3, %4 : vector<128x768xf32>
    %6 = arith.mulf %5, %5 : vector<128x768xf32>
    %cst_4 = arith.constant dense<0.000000e+00> : vector<128xf32>
    %7 = vector.multi_reduction <add>, %6, %cst_4 [1] : vector<128x768xf32> to vector<128xf32>
    %8 = vector.shape_cast %7 : vector<128xf32> to vector<128x1xf32>
    %9 = arith.truncf %5 : vector<128x768xf32> to vector<128x768xbf16>
    %cst_5 = arith.constant dense<0.000000e+00> : vector<128x128xf32>
    %10 = tpu.matmul %9, %1, %cst_5 {dimension_numbers = #tpu.dot_dimension_numbers<[1], [0], [0], [1], [0, 0, 1, 1], [], []>} : vector<128x768xbf16>, vector<768x128xbf16>, vector<128x128xf32> -> vector<128x128xf32>
    %11 = arith.mulf %10, %10 : vector<128x128xf32>
    %cst_6 = arith.constant 7.680000e+02 : f32
    %12 = vector.broadcast %cst_6 : f32 to vector<128x128xf32>
    %13 = arith.addf %12, %11 : vector<128x128xf32>
    %14 = vector.broadcast %8 : vector<128x1xf32> to vector<128x128xf32>
    %15 = arith.subf %13, %14 : vector<128x128xf32>
    %cst_7 = arith.constant 1.69542102E-6 : f32
    %16 = vector.broadcast %cst_7 : f32 to vector<128x128xf32>
    %17 = arith.mulf %15, %16 : vector<128x128xf32>
    %cst_8 = arith.constant 2.000000e+00 : f32
    %18 = vector.broadcast %cst_8 : f32 to vector<128x128xf32>
    %19 = arith.mulf %18, %17 : vector<128x128xf32>
    %cst_9 = arith.constant 1.000000e+00 : f32
    %20 = vector.broadcast %cst_9 : f32 to vector<128x128xf32>
    %21 = arith.subf %19, %20 : vector<128x128xf32>
    %22 = arith.mulf %21, %21 : vector<128x128xf32>
    %cst_10 = arith.constant 1.000000e+00 : f32
    %23 = vector.broadcast %cst_10 : f32 to vector<128x128xf32>
    %24 = arith.subf %23, %22 : vector<128x128xf32>
    %cst_11 = arith.constant 0.000000e+00 : f32
    %25 = vector.broadcast %cst_11 : f32 to vector<128x128xf32>
    %26 = arith.maximumf %25, %24 : vector<128x128xf32>
    %27 = math.sqrt %26 : vector<128x128xf32>
    %cst_12 = arith.constant dense<0.000000e+00> : vector<128xf32>
    %28 = vector.multi_reduction <add>, %17, %cst_12 [0] : vector<128x128xf32> to vector<128xf32>
    %29 = vector.shape_cast %28 : vector<128xf32> to vector<1x128xf32>
    %cst_13 = arith.constant 7.812500e-03 : f32
    %30 = vector.broadcast %cst_13 : f32 to vector<1x128xf32>
    %31 = arith.mulf %29, %30 : vector<1x128xf32>
    %cst_14 = arith.constant 2.000000e+00 : f32
    %32 = vector.broadcast %cst_14 : f32 to vector<1x128xf32>
    %33 = arith.mulf %32, %31 : vector<1x128xf32>
    %cst_15 = arith.constant 1.000000e+00 : f32
    %34 = vector.broadcast %cst_15 : f32 to vector<1x128xf32>
    %35 = arith.subf %33, %34 : vector<1x128xf32>
    %36 = arith.mulf %35, %35 : vector<1x128xf32>
    %cst_16 = arith.constant 1.000000e+00 : f32
    %37 = vector.broadcast %cst_16 : f32 to vector<1x128xf32>
    %38 = arith.subf %37, %36 : vector<1x128xf32>
    %cst_17 = arith.constant 0.000000e+00 : f32
    %39 = vector.broadcast %cst_17 : f32 to vector<1x128xf32>
    %40 = arith.maximumf %39, %38 : vector<1x128xf32>
    %41 = math.sqrt %40 : vector<1x128xf32>
    %42 = vector.broadcast %41 : vector<1x128xf32> to vector<128x128xf32>
    %43 = arith.mulf %21, %42 : vector<128x128xf32>
    %44 = vector.broadcast %35 : vector<1x128xf32> to vector<128x128xf32>
    %45 = arith.mulf %27, %44 : vector<128x128xf32>
    %46 = arith.subf %43, %45 : vector<128x128xf32>
    %cst_18 = arith.constant 1.000000e+00 : f32
    %47 = vector.broadcast %cst_18 : f32 to vector<128x128xf32>
    %48 = arith.addf %46, %47 : vector<128x128xf32>
    %cst_19 = arith.constant 5.000000e-01 : f32
    %49 = vector.broadcast %cst_19 : f32 to vector<128x128xf32>
    %50 = arith.mulf %48, %49 : vector<128x128xf32>
    %cst_20 = arith.constant 2.000000e+00 : f32
    %51 = vector.broadcast %cst_20 : f32 to vector<128x128xf32>
    %52 = arith.mulf %51, %50 : vector<128x128xf32>
    %cst_21 = arith.constant 1.000000e+00 : f32
    %53 = vector.broadcast %cst_21 : f32 to vector<128x128xf32>
    %54 = arith.subf %52, %53 : vector<128x128xf32>
    %55 = arith.mulf %54, %54 : vector<128x128xf32>
    %cst_22 = arith.constant 1.000000e+00 : f32
    %56 = vector.broadcast %cst_22 : f32 to vector<128x128xf32>
    %57 = arith.subf %56, %55 : vector<128x128xf32>
    %cst_23 = arith.constant 0.000000e+00 : f32
    %58 = vector.broadcast %cst_23 : f32 to vector<128x128xf32>
    %59 = arith.maximumf %58, %57 : vector<128x128xf32>
    %60 = math.sqrt %59 : vector<128x128xf32>
    %cst_24 = arith.constant dense<0.000000e+00> : vector<128xf32>
    %61 = vector.multi_reduction <add>, %50, %cst_24 [0] : vector<128x128xf32> to vector<128xf32>
    %62 = vector.shape_cast %61 : vector<128xf32> to vector<1x128xf32>
    %63 = vector.broadcast %62 : vector<1x128xf32> to vector<128x128xf32>
    %64 = arith.subf %63, %50 : vector<128x128xf32>
    %cst_25 = arith.constant 7.812500e-03 : f32
    %65 = vector.broadcast %cst_25 : f32 to vector<128x128xf32>
    %66 = arith.mulf %64, %65 : vector<128x128xf32>
    %cst_26 = arith.constant 2.000000e+00 : f32
    %67 = vector.broadcast %cst_26 : f32 to vector<128x128xf32>
    %68 = arith.mulf %67, %66 : vector<128x128xf32>
    %cst_27 = arith.constant 1.000000e+00 : f32
    %69 = vector.broadcast %cst_27 : f32 to vector<128x128xf32>
    %70 = arith.subf %68, %69 : vector<128x128xf32>
    %71 = arith.mulf %70, %70 : vector<128x128xf32>
    %cst_28 = arith.constant 1.000000e+00 : f32
    %72 = vector.broadcast %cst_28 : f32 to vector<128x128xf32>
    %73 = arith.subf %72, %71 : vector<128x128xf32>
    %cst_29 = arith.constant 0.000000e+00 : f32
    %74 = vector.broadcast %cst_29 : f32 to vector<128x128xf32>
    %75 = arith.maximumf %74, %73 : vector<128x128xf32>
    %76 = math.sqrt %75 : vector<128x128xf32>
    %77 = arith.mulf %76, %76 : vector<128x128xf32>
    %78 = arith.mulf %70, %70 : vector<128x128xf32>
    %79 = arith.subf %77, %78 : vector<128x128xf32>
    %cst_30 = arith.constant 2.000000e+00 : f32
    %80 = vector.broadcast %cst_30 : f32 to vector<128x128xf32>
    %81 = arith.mulf %80, %70 : vector<128x128xf32>
    %82 = arith.mulf %81, %76 : vector<128x128xf32>
    %83 = arith.mulf %79, %79 : vector<128x128xf32>
    %84 = arith.mulf %82, %82 : vector<128x128xf32>
    %85 = arith.subf %83, %84 : vector<128x128xf32>
    %cst_31 = arith.constant 2.000000e+00 : f32
    %86 = vector.broadcast %cst_31 : f32 to vector<128x128xf32>
    %87 = arith.mulf %86, %82 : vector<128x128xf32>
    %88 = arith.mulf %87, %79 : vector<128x128xf32>
    %89 = arith.mulf %85, %85 : vector<128x128xf32>
    %90 = arith.mulf %88, %88 : vector<128x128xf32>
    %91 = arith.subf %89, %90 : vector<128x128xf32>
    %cst_32 = arith.constant 2.000000e+00 : f32
    %92 = vector.broadcast %cst_32 : f32 to vector<128x128xf32>
    %93 = arith.mulf %92, %88 : vector<128x128xf32>
    %94 = arith.mulf %93, %85 : vector<128x128xf32>
    %95 = arith.mulf %79, %91 : vector<128x128xf32>
    %96 = arith.mulf %82, %94 : vector<128x128xf32>
    %97 = arith.subf %95, %96 : vector<128x128xf32>
    %98 = arith.mulf %82, %91 : vector<128x128xf32>
    %99 = arith.mulf %79, %94 : vector<128x128xf32>
    %100 = arith.addf %98, %99 : vector<128x128xf32>
    %101 = arith.mulf %54, %97 : vector<128x128xf32>
    %102 = arith.mulf %60, %100 : vector<128x128xf32>
    %103 = arith.subf %101, %102 : vector<128x128xf32>
    %cst_33 = arith.constant 1.000000e+00 : f32
    %104 = vector.broadcast %cst_33 : f32 to vector<128x128xf32>
    %105 = arith.addf %103, %104 : vector<128x128xf32>
    %cst_34 = arith.constant 5.000000e-01 : f32
    %106 = vector.broadcast %cst_34 : f32 to vector<128x128xf32>
    %107 = arith.mulf %105, %106 : vector<128x128xf32>
    %c0_35 = arith.constant 0 : index
    %c0_36 = arith.constant 0 : index
    %108 = vector.load %arg3[%c0_35, %c0_36] : memref<128x128xbf16, #tpu.memory_space<vmem>>, vector<128x128xbf16>
    %cst_37 = arith.constant 2.000000e+00 : f32
    %109 = vector.broadcast %cst_37 : f32 to vector<128x128xf32>
    %110 = arith.mulf %109, %107 : vector<128x128xf32>
    %cst_38 = arith.constant 1.000000e+00 : f32
    %111 = vector.broadcast %cst_38 : f32 to vector<128x128xf32>
    %112 = arith.subf %110, %111 : vector<128x128xf32>
    %113 = arith.mulf %112, %112 : vector<128x128xf32>
    %cst_39 = arith.constant dense<0.000000e+00> : vector<128xf32>
    %114 = vector.multi_reduction <add>, %113, %cst_39 [1] : vector<128x128xf32> to vector<128xf32>
    %115 = vector.shape_cast %114 : vector<128xf32> to vector<128x1xf32>
    %116 = arith.truncf %112 : vector<128x128xf32> to vector<128x128xbf16>
    %cst_40 = arith.constant dense<0.000000e+00> : vector<128x128xf32>
    %117 = tpu.matmul %116, %108, %cst_40 {dimension_numbers = #tpu.dot_dimension_numbers<[1], [0], [0], [1], [0, 0, 1, 1], [], []>} : vector<128x128xbf16>, vector<128x128xbf16>, vector<128x128xf32> -> vector<128x128xf32>
    %118 = arith.mulf %117, %117 : vector<128x128xf32>
    %cst_41 = arith.constant 1.280000e+02 : f32
    %119 = vector.broadcast %cst_41 : f32 to vector<128x128xf32>
    %120 = arith.addf %119, %118 : vector<128x128xf32>
    %121 = vector.broadcast %115 : vector<128x1xf32> to vector<128x128xf32>
    %122 = arith.subf %120, %121 : vector<128x128xf32>
    %cst_42 = arith.constant 6.10351563E-5 : f32
    %123 = vector.broadcast %cst_42 : f32 to vector<128x128xf32>
    %124 = arith.mulf %122, %123 : vector<128x128xf32>
    %cst_43 = arith.constant 2.000000e+00 : f32
    %125 = vector.broadcast %cst_43 : f32 to vector<128x128xf32>
    %126 = arith.mulf %125, %124 : vector<128x128xf32>
    %cst_44 = arith.constant 1.000000e+00 : f32
    %127 = vector.broadcast %cst_44 : f32 to vector<128x128xf32>
    %128 = arith.subf %126, %127 : vector<128x128xf32>
    %129 = arith.mulf %128, %128 : vector<128x128xf32>
    %cst_45 = arith.constant 1.000000e+00 : f32
    %130 = vector.broadcast %cst_45 : f32 to vector<128x128xf32>
    %131 = arith.subf %130, %129 : vector<128x128xf32>
    %cst_46 = arith.constant 0.000000e+00 : f32
    %132 = vector.broadcast %cst_46 : f32 to vector<128x128xf32>
    %133 = arith.maximumf %132, %131 : vector<128x128xf32>
    %134 = math.sqrt %133 : vector<128x128xf32>
    %cst_47 = arith.constant dense<0.000000e+00> : vector<128xf32>
    %135 = vector.multi_reduction <add>, %124, %cst_47 [0] : vector<128x128xf32> to vector<128xf32>
    %136 = vector.shape_cast %135 : vector<128xf32> to vector<1x128xf32>
    %cst_48 = arith.constant 7.812500e-03 : f32
    %137 = vector.broadcast %cst_48 : f32 to vector<1x128xf32>
    %138 = arith.mulf %136, %137 : vector<1x128xf32>
    %cst_49 = arith.constant 2.000000e+00 : f32
    %139 = vector.broadcast %cst_49 : f32 to vector<1x128xf32>
    %140 = arith.mulf %139, %138 : vector<1x128xf32>
    %cst_50 = arith.constant 1.000000e+00 : f32
    %141 = vector.broadcast %cst_50 : f32 to vector<1x128xf32>
    %142 = arith.subf %140, %141 : vector<1x128xf32>
    %143 = arith.mulf %142, %142 : vector<1x128xf32>
    %cst_51 = arith.constant 1.000000e+00 : f32
    %144 = vector.broadcast %cst_51 : f32 to vector<1x128xf32>
    %145 = arith.subf %144, %143 : vector<1x128xf32>
    %cst_52 = arith.constant 0.000000e+00 : f32
    %146 = vector.broadcast %cst_52 : f32 to vector<1x128xf32>
    %147 = arith.maximumf %146, %145 : vector<1x128xf32>
    %148 = math.sqrt %147 : vector<1x128xf32>
    %149 = vector.broadcast %148 : vector<1x128xf32> to vector<128x128xf32>
    %150 = arith.mulf %128, %149 : vector<128x128xf32>
    %151 = vector.broadcast %142 : vector<1x128xf32> to vector<128x128xf32>
    %152 = arith.mulf %134, %151 : vector<128x128xf32>
    %153 = arith.subf %150, %152 : vector<128x128xf32>
    %cst_53 = arith.constant 1.000000e+00 : f32
    %154 = vector.broadcast %cst_53 : f32 to vector<128x128xf32>
    %155 = arith.addf %153, %154 : vector<128x128xf32>
    %cst_54 = arith.constant 5.000000e-01 : f32
    %156 = vector.broadcast %cst_54 : f32 to vector<128x128xf32>
    %157 = arith.mulf %155, %156 : vector<128x128xf32>
    %cst_55 = arith.constant 2.000000e+00 : f32
    %158 = vector.broadcast %cst_55 : f32 to vector<128x128xf32>
    %159 = arith.mulf %158, %157 : vector<128x128xf32>
    %cst_56 = arith.constant 1.000000e+00 : f32
    %160 = vector.broadcast %cst_56 : f32 to vector<128x128xf32>
    %161 = arith.subf %159, %160 : vector<128x128xf32>
    %162 = arith.mulf %161, %161 : vector<128x128xf32>
    %cst_57 = arith.constant 1.000000e+00 : f32
    %163 = vector.broadcast %cst_57 : f32 to vector<128x128xf32>
    %164 = arith.subf %163, %162 : vector<128x128xf32>
    %cst_58 = arith.constant 0.000000e+00 : f32
    %165 = vector.broadcast %cst_58 : f32 to vector<128x128xf32>
    %166 = arith.maximumf %165, %164 : vector<128x128xf32>
    %167 = math.sqrt %166 : vector<128x128xf32>
    %cst_59 = arith.constant dense<0.000000e+00> : vector<128xf32>
    %168 = vector.multi_reduction <add>, %157, %cst_59 [0] : vector<128x128xf32> to vector<128xf32>
    %169 = vector.shape_cast %168 : vector<128xf32> to vector<1x128xf32>
    %170 = vector.broadcast %169 : vector<1x128xf32> to vector<128x128xf32>
    %171 = arith.subf %170, %157 : vector<128x128xf32>
    %cst_60 = arith.constant 7.812500e-03 : f32
    %172 = vector.broadcast %cst_60 : f32 to vector<128x128xf32>
    %173 = arith.mulf %171, %172 : vector<128x128xf32>
    %cst_61 = arith.constant 2.000000e+00 : f32
    %174 = vector.broadcast %cst_61 : f32 to vector<128x128xf32>
    %175 = arith.mulf %174, %173 : vector<128x128xf32>
    %cst_62 = arith.constant 1.000000e+00 : f32
    %176 = vector.broadcast %cst_62 : f32 to vector<128x128xf32>
    %177 = arith.subf %175, %176 : vector<128x128xf32>
    %178 = arith.mulf %177, %177 : vector<128x128xf32>
    %cst_63 = arith.constant 1.000000e+00 : f32
    %179 = vector.broadcast %cst_63 : f32 to vector<128x128xf32>
    %180 = arith.subf %179, %178 : vector<128x128xf32>
    %cst_64 = arith.constant 0.000000e+00 : f32
    %181 = vector.broadcast %cst_64 : f32 to vector<128x128xf32>
    %182 = arith.maximumf %181, %180 : vector<128x128xf32>
    %183 = math.sqrt %182 : vector<128x128xf32>
    %184 = arith.mulf %183, %183 : vector<128x128xf32>
    %185 = arith.mulf %177, %177 : vector<128x128xf32>
    %186 = arith.subf %184, %185 : vector<128x128xf32>
    %cst_65 = arith.constant 2.000000e+00 : f32
    %187 = vector.broadcast %cst_65 : f32 to vector<128x128xf32>
    %188 = arith.mulf %187, %177 : vector<128x128xf32>
    %189 = arith.mulf %188, %183 : vector<128x128xf32>
    %190 = arith.mulf %186, %186 : vector<128x128xf32>
    %191 = arith.mulf %189, %189 : vector<128x128xf32>
    %192 = arith.subf %190, %191 : vector<128x128xf32>
    %cst_66 = arith.constant 2.000000e+00 : f32
    %193 = vector.broadcast %cst_66 : f32 to vector<128x128xf32>
    %194 = arith.mulf %193, %189 : vector<128x128xf32>
    %195 = arith.mulf %194, %186 : vector<128x128xf32>
    %196 = arith.mulf %192, %192 : vector<128x128xf32>
    %197 = arith.mulf %195, %195 : vector<128x128xf32>
    %198 = arith.subf %196, %197 : vector<128x128xf32>
    %cst_67 = arith.constant 2.000000e+00 : f32
    %199 = vector.broadcast %cst_67 : f32 to vector<128x128xf32>
    %200 = arith.mulf %199, %195 : vector<128x128xf32>
    %201 = arith.mulf %200, %192 : vector<128x128xf32>
    %202 = arith.mulf %186, %198 : vector<128x128xf32>
    %203 = arith.mulf %189, %201 : vector<128x128xf32>
    %204 = arith.subf %202, %203 : vector<128x128xf32>
    %205 = arith.mulf %189, %198 : vector<128x128xf32>
    %206 = arith.mulf %186, %201 : vector<128x128xf32>
    %207 = arith.addf %205, %206 : vector<128x128xf32>
    %208 = arith.mulf %161, %204 : vector<128x128xf32>
    %209 = arith.mulf %167, %207 : vector<128x128xf32>
    %210 = arith.subf %208, %209 : vector<128x128xf32>
    %cst_68 = arith.constant 1.000000e+00 : f32
    %211 = vector.broadcast %cst_68 : f32 to vector<128x128xf32>
    %212 = arith.addf %210, %211 : vector<128x128xf32>
    %cst_69 = arith.constant 5.000000e-01 : f32
    %213 = vector.broadcast %cst_69 : f32 to vector<128x128xf32>
    %214 = arith.mulf %212, %213 : vector<128x128xf32>
    %215 = tpu.iota {dimensions = array<i32: 1>} : vector<128x128xi32>
    %c32_i32 = arith.constant 32 : i32
    %216 = vector.broadcast %c32_i32 : i32 to vector<128x128xi32>
    %217 = arith.cmpi slt, %215, %216 : vector<128x128xi32>
    %cst_70 = arith.constant 5.000000e-01 : f32
    %218 = vector.broadcast %cst_70 : f32 to vector<128x128xf32>
    %219 = arith.select %217, %214, %218 : vector<128x128xi1>, vector<128x128xf32>
    %c0_71 = arith.constant 0 : index
    %c0_72 = arith.constant 0 : index
    %220 = vector.load %arg4[%c0_71, %c0_72] : memref<128x128xbf16, #tpu.memory_space<vmem>>, vector<128x128xbf16>
    %cst_73 = arith.constant 2.000000e+00 : f32
    %221 = vector.broadcast %cst_73 : f32 to vector<128x128xf32>
    %222 = arith.mulf %221, %219 : vector<128x128xf32>
    %cst_74 = arith.constant 1.000000e+00 : f32
    %223 = vector.broadcast %cst_74 : f32 to vector<128x128xf32>
    %224 = arith.subf %222, %223 : vector<128x128xf32>
    %225 = arith.mulf %224, %224 : vector<128x128xf32>
    %cst_75 = arith.constant dense<0.000000e+00> : vector<128xf32>
    %226 = vector.multi_reduction <add>, %225, %cst_75 [1] : vector<128x128xf32> to vector<128xf32>
    %227 = vector.shape_cast %226 : vector<128xf32> to vector<128x1xf32>
    %228 = arith.truncf %224 : vector<128x128xf32> to vector<128x128xbf16>
    %cst_76 = arith.constant dense<0.000000e+00> : vector<128x128xf32>
    %229 = tpu.matmul %228, %220, %cst_76 {dimension_numbers = #tpu.dot_dimension_numbers<[1], [0], [0], [1], [0, 0, 1, 1], [], []>} : vector<128x128xbf16>, vector<128x128xbf16>, vector<128x128xf32> -> vector<128x128xf32>
    %230 = arith.mulf %229, %229 : vector<128x128xf32>
    %cst_77 = arith.constant 3.200000e+01 : f32
    %231 = vector.broadcast %cst_77 : f32 to vector<128x128xf32>
    %232 = arith.addf %231, %230 : vector<128x128xf32>
    %233 = vector.broadcast %227 : vector<128x1xf32> to vector<128x128xf32>
    %234 = arith.subf %232, %233 : vector<128x128xf32>
    %cst_78 = arith.constant 9.765625E-4 : f32
    %235 = vector.broadcast %cst_78 : f32 to vector<128x128xf32>
    %236 = arith.mulf %234, %235 : vector<128x128xf32>
    %cst_79 = arith.constant 2.000000e+00 : f32
    %237 = vector.broadcast %cst_79 : f32 to vector<128x128xf32>
    %238 = arith.mulf %237, %236 : vector<128x128xf32>
    %cst_80 = arith.constant 1.000000e+00 : f32
    %239 = vector.broadcast %cst_80 : f32 to vector<128x128xf32>
    %240 = arith.subf %238, %239 : vector<128x128xf32>
    %241 = arith.mulf %240, %240 : vector<128x128xf32>
    %cst_81 = arith.constant 1.000000e+00 : f32
    %242 = vector.broadcast %cst_81 : f32 to vector<128x128xf32>
    %243 = arith.subf %242, %241 : vector<128x128xf32>
    %cst_82 = arith.constant 0.000000e+00 : f32
    %244 = vector.broadcast %cst_82 : f32 to vector<128x128xf32>
    %245 = arith.maximumf %244, %243 : vector<128x128xf32>
    %246 = math.sqrt %245 : vector<128x128xf32>
    %cst_83 = arith.constant dense<0.000000e+00> : vector<128xf32>
    %247 = vector.multi_reduction <add>, %236, %cst_83 [0] : vector<128x128xf32> to vector<128xf32>
    %248 = vector.shape_cast %247 : vector<128xf32> to vector<1x128xf32>
    %cst_84 = arith.constant 7.812500e-03 : f32
    %249 = vector.broadcast %cst_84 : f32 to vector<1x128xf32>
    %250 = arith.mulf %248, %249 : vector<1x128xf32>
    %cst_85 = arith.constant 2.000000e+00 : f32
    %251 = vector.broadcast %cst_85 : f32 to vector<1x128xf32>
    %252 = arith.mulf %251, %250 : vector<1x128xf32>
    %cst_86 = arith.constant 1.000000e+00 : f32
    %253 = vector.broadcast %cst_86 : f32 to vector<1x128xf32>
    %254 = arith.subf %252, %253 : vector<1x128xf32>
    %255 = arith.mulf %254, %254 : vector<1x128xf32>
    %cst_87 = arith.constant 1.000000e+00 : f32
    %256 = vector.broadcast %cst_87 : f32 to vector<1x128xf32>
    %257 = arith.subf %256, %255 : vector<1x128xf32>
    %cst_88 = arith.constant 0.000000e+00 : f32
    %258 = vector.broadcast %cst_88 : f32 to vector<1x128xf32>
    %259 = arith.maximumf %258, %257 : vector<1x128xf32>
    %260 = math.sqrt %259 : vector<1x128xf32>
    %261 = vector.broadcast %260 : vector<1x128xf32> to vector<128x128xf32>
    %262 = arith.mulf %240, %261 : vector<128x128xf32>
    %263 = vector.broadcast %254 : vector<1x128xf32> to vector<128x128xf32>
    %264 = arith.mulf %246, %263 : vector<128x128xf32>
    %265 = arith.subf %262, %264 : vector<128x128xf32>
    %cst_89 = arith.constant 1.000000e+00 : f32
    %266 = vector.broadcast %cst_89 : f32 to vector<128x128xf32>
    %267 = arith.addf %265, %266 : vector<128x128xf32>
    %cst_90 = arith.constant 5.000000e-01 : f32
    %268 = vector.broadcast %cst_90 : f32 to vector<128x128xf32>
    %269 = arith.mulf %267, %268 : vector<128x128xf32>
    %cst_91 = arith.constant 2.000000e+00 : f32
    %270 = vector.broadcast %cst_91 : f32 to vector<128x128xf32>
    %271 = arith.mulf %270, %269 : vector<128x128xf32>
    %cst_92 = arith.constant 1.000000e+00 : f32
    %272 = vector.broadcast %cst_92 : f32 to vector<128x128xf32>
    %273 = arith.subf %271, %272 : vector<128x128xf32>
    %274 = arith.mulf %273, %273 : vector<128x128xf32>
    %cst_93 = arith.constant 1.000000e+00 : f32
    %275 = vector.broadcast %cst_93 : f32 to vector<128x128xf32>
    %276 = arith.subf %275, %274 : vector<128x128xf32>
    %cst_94 = arith.constant 0.000000e+00 : f32
    %277 = vector.broadcast %cst_94 : f32 to vector<128x128xf32>
    %278 = arith.maximumf %277, %276 : vector<128x128xf32>
    %279 = math.sqrt %278 : vector<128x128xf32>
    %cst_95 = arith.constant dense<0.000000e+00> : vector<128xf32>
    %280 = vector.multi_reduction <add>, %269, %cst_95 [0] : vector<128x128xf32> to vector<128xf32>
    %281 = vector.shape_cast %280 : vector<128xf32> to vector<1x128xf32>
    %282 = vector.broadcast %281 : vector<1x128xf32> to vector<128x128xf32>
    %283 = arith.subf %282, %269 : vector<128x128xf32>
    %cst_96 = arith.constant 7.812500e-03 : f32
    %284 = vector.broadcast %cst_96 : f32 to vector<128x128xf32>
    %285 = arith.mulf %283, %284 : vector<128x128xf32>
    %cst_97 = arith.constant 2.000000e+00 : f32
    %286 = vector.broadcast %cst_97 : f32 to vector<128x128xf32>
    %287 = arith.mulf %286, %285 : vector<128x128xf32>
    %cst_98 = arith.constant 1.000000e+00 : f32
    %288 = vector.broadcast %cst_98 : f32 to vector<128x128xf32>
    %289 = arith.subf %287, %288 : vector<128x128xf32>
    %290 = arith.mulf %289, %289 : vector<128x128xf32>
    %cst_99 = arith.constant 1.000000e+00 : f32
    %291 = vector.broadcast %cst_99 : f32 to vector<128x128xf32>
    %292 = arith.subf %291, %290 : vector<128x128xf32>
    %cst_100 = arith.constant 0.000000e+00 : f32
    %293 = vector.broadcast %cst_100 : f32 to vector<128x128xf32>
    %294 = arith.maximumf %293, %292 : vector<128x128xf32>
    %295 = math.sqrt %294 : vector<128x128xf32>
    %296 = arith.mulf %295, %295 : vector<128x128xf32>
    %297 = arith.mulf %289, %289 : vector<128x128xf32>
    %298 = arith.subf %296, %297 : vector<128x128xf32>
    %cst_101 = arith.constant 2.000000e+00 : f32
    %299 = vector.broadcast %cst_101 : f32 to vector<128x128xf32>
    %300 = arith.mulf %299, %289 : vector<128x128xf32>
    %301 = arith.mulf %300, %295 : vector<128x128xf32>
    %302 = arith.mulf %298, %298 : vector<128x128xf32>
    %303 = arith.mulf %301, %301 : vector<128x128xf32>
    %304 = arith.subf %302, %303 : vector<128x128xf32>
    %cst_102 = arith.constant 2.000000e+00 : f32
    %305 = vector.broadcast %cst_102 : f32 to vector<128x128xf32>
    %306 = arith.mulf %305, %301 : vector<128x128xf32>
    %307 = arith.mulf %306, %298 : vector<128x128xf32>
    %308 = arith.mulf %304, %304 : vector<128x128xf32>
    %309 = arith.mulf %307, %307 : vector<128x128xf32>
    %310 = arith.subf %308, %309 : vector<128x128xf32>
    %cst_103 = arith.constant 2.000000e+00 : f32
    %311 = vector.broadcast %cst_103 : f32 to vector<128x128xf32>
    %312 = arith.mulf %311, %307 : vector<128x128xf32>
    %313 = arith.mulf %312, %304 : vector<128x128xf32>
    %314 = arith.mulf %298, %310 : vector<128x128xf32>
    %315 = arith.mulf %301, %313 : vector<128x128xf32>
    %316 = arith.subf %314, %315 : vector<128x128xf32>
    %317 = arith.mulf %301, %310 : vector<128x128xf32>
    %318 = arith.mulf %298, %313 : vector<128x128xf32>
    %319 = arith.addf %317, %318 : vector<128x128xf32>
    %320 = arith.mulf %273, %316 : vector<128x128xf32>
    %321 = arith.mulf %279, %319 : vector<128x128xf32>
    %322 = arith.subf %320, %321 : vector<128x128xf32>
    %cst_104 = arith.constant 1.000000e+00 : f32
    %323 = vector.broadcast %cst_104 : f32 to vector<128x128xf32>
    %324 = arith.addf %322, %323 : vector<128x128xf32>
    %cst_105 = arith.constant 5.000000e-01 : f32
    %325 = vector.broadcast %cst_105 : f32 to vector<128x128xf32>
    %326 = arith.mulf %324, %325 : vector<128x128xf32>
    %c0_106 = arith.constant 0 : index
    %c0_107 = arith.constant 0 : index
    %327 = vector.load %arg5[%c0_106, %c0_107] : memref<128x128xf32, #tpu.memory_space<vmem>>, vector<128x128xf32>
    tpu.vector_store %arg5[%c0_106, %c0_107], %326 {strides = array<i32>} : memref<128x128xf32, #tpu.memory_space<vmem>>, vector<128x128xf32>,
    return
  }
  func.func @transform_0(%arg0: i32) -> (i32, i32) {
    %c0_i32 = arith.constant 0 : i32
    %c0_i32_0 = arith.constant 0 : i32
    %c0_i32_1 = arith.constant 0 : i32
    return %c0_i32, %c0_i32_0 : i32, i32
  }
  func.func @transform_1(%arg0: i32) -> (i32, i32) {
    %c0_i32 = arith.constant 0 : i32
    %c0_i32_0 = arith.constant 0 : i32
    %c0_i32_1 = arith.constant 0 : i32
    return %c0_i32, %c0_i32_0 : i32, i32
  }
  func.func @transform_2(%arg0: i32) -> (i32, i32) {
    %c0_i32 = arith.constant 0 : i32
    %c0_i32_0 = arith.constant 0 : i32
    %c0_i32_1 = arith.constant 0 : i32
    return %c0_i32, %c0_i32_0 : i32, i32
  }
  func.func @transform_3(%arg0: i32) -> (i32, i32) {
    %c0_i32 = arith.constant 0 : i32
    %c0_i32_0 = arith.constant 0 : i32
    %c0_i32_1 = arith.constant 0 : i32
    return %c0_i32, %c0_i32_0 : i32, i32
  }
  func.func @transform_4(%arg0: i32) -> (i32, i32) {
    %c0_i32 = arith.constant 0 : i32
    %c0_i32_0 = arith.constant 0 : i32
    %c0_i32_1 = arith.constant 0 : i32
    return %c0_i32, %c0_i32_0 : i32, i32
  }
}

</mosaic_0001>

<bundles_post_ra>
// kernel: net_forward.1
= control target key start
LH: loop header
LB: loop body
LE: loop exit
PB: predicated region body
PF: predicated region fallthrough
CT: control target
= control target key end

     0   :  { %s12750_s1 = inlined_call_operand.vmem [shape: bf16[768,128], index: 1, kind: input, shape index: {}]   ;;  %s12751_s0 = inlined_call_operand.vmem [shape: f32[128,768], index: 0, kind: input, shape index: {}]   ;;  %s12752_s2 = inlined_call_operand.vmem [shape: bf16[128,128], index: 2, kind: input, shape index: {}]   ;;  %s12753_s3 = inlined_call_operand.vmem [shape: bf16[128,128], index: 3, kind: input, shape index: {}]   ;;  %s12754_s4 = inlined_call_operand.vmem [shape: f32[128,128], index: 4, kind: output, shape index: {}]  }
   0x1   :  { %v6574_v0 = vld [vmem:[%s12750_s1 + $0x38] sm:$0xff]  ;;  %v6573_v4 = vld [vmem:[%s12750_s1 + $0x30] sm:$0xff]  ;;  %v6572_v8 = vld [vmem:[%s12750_s1 + $0x28] sm:$0xff] }
   0x2   :  { %v6582_v1 = vld [vmem:[%s12750_s1 + $0x78] sm:$0xff]  ;;  %945 = vmatpush.bf16.msra.mxu0 %v6574_v0  ;;  %v6581_v5 = vld [vmem:[%s12750_s1 + $0x70] sm:$0xff]  ;;  %v6580_v9 = vld [vmem:[%s12750_s1 + $0x68] sm:$0xff] }
   0x3   :  { %v6590_v2 = vld [vmem:[%s12750_s1 + $0xb8] sm:$0xff]  ;;  %994 = vmatpush.bf16.msra.mxu1 %v6582_v1  ;;  %v6589_v6 = vld [vmem:[%s12750_s1 + $0xb0] sm:$0xff]  ;;  %v6588_v10 = vld [vmem:[%s12750_s1 + $0xa8] sm:$0xff] }
   0x4   :  { %v6598_v3 = vld [vmem:[%s12750_s1 + $0xf8] sm:$0xff]  ;;  %1043 = vmatpush.bf16.msra.mxu2 %v6590_v2  ;;  %v6597_v7 = vld [vmem:[%s12750_s1 + $0xf0] sm:$0xff]  ;;  %v6596_v11 = vld [vmem:[%s12750_s1 + $0xe8] sm:$0xff] }
   0x5   :  { %1092 = vmatpush.bf16.msra.mxu3 %v6598_v3  ;;  %v6571_v12 = vld [vmem:[%s12750_s1 + $0x20] sm:$0xff]  ;;  %v23_v17 = vld [vmem:[%s12751_s0 + $0x30] sm:$0xff]  ;;  %v18_v19 = vld [vmem:[%s12751_s0 + $0x8] sm:$0xff] }
   0x6   :  { %946 = vmatpush.bf16.msra.mxu0 %v6573_v4  ;;  %v6579_v13 = vld [vmem:[%s12750_s1 + $0x60] sm:$0xff]  ;;  %v24_v20 = vld [vmem:[%s12751_s0 + $0x38] sm:$0xff]  ;;  %v215_v21 = vmul.f32 2.0, %v23_v17  ;;  %v210_v22 = vmul.f32 2.0, %v18_v19  ;;  %v35_v37 = vld [vmem:[%s12751_s0 + $0x90] sm:$0xff] }
   0x7   :  { %995 = vmatpush.bf16.msra.mxu1 %v6581_v5  ;;  %v6587_v14 = vld [vmem:[%s12750_s1 + $0xa0] sm:$0xff]  ;;  %v216_v23 = vmul.f32 2.0, %v24_v20  ;;  %v6570_v25 = vld [vmem:[%s12750_s1 + $0x18] sm:$0xff]  ;;  %v30_v38 = vld [vmem:[%s12751_s0 + $0x68] sm:$0xff]  ;;  %v227_v51 = vmul.f32 2.0, %v35_v37 }
   0x8   :  { %1044 = vmatpush.bf16.msra.mxu2 %v6589_v6  ;;  %v6595_v15 = vld [vmem:[%s12750_s1 + $0xe0] sm:$0xff]  ;;  %v6578_v26 = vld [vmem:[%s12750_s1 + $0x58] sm:$0xff]  ;;  %v7018_v27 = vadd.f32 -1.0, %v215_v21  ;;  %v7020_v28 = vadd.f32 -1.0, %v210_v22  ;;  %v6569_v40 = vld [vmem:[%s12750_s1 + $0x10] sm:$0xff]  ;;  %v222_v52 = vmul.f32 2.0, %v30_v38 }
   0x9   :  { %1093 = vmatpush.bf16.msra.mxu3 %v6597_v7  ;;  %v17_v16 = vld [vmem:[%s12751_s0] sm:$0xff]  ;;  %v7022_v29 = vadd.f32 -1.0, %v216_v23  ;;  %v6586_v30 = vld [vmem:[%s12750_s1 + $0x98] sm:$0xff]  ;;  %v6577_v41 = vld [vmem:[%s12750_s1 + $0x50] sm:$0xff]  ;;  %v7086_v59 = vadd.f32 -1.0, %v227_v51 }
   0xa   :  { %947 = vmatpush.bf16.msra.mxu0 %v6572_v8  ;;  %v209_v18 = vmul.f32 2.0, %v17_v16  ;;  %v6594_v31 = vld [vmem:[%s12750_s1 + $0xd8] sm:$0xff]  ;;  %v29_v33 = vld [vmem:[%s12751_s0 + $0x60] sm:$0xff]  ;;  %v407_v34 = vmul.f32 %v7018_v27, %v7018_v27  ;;  %v402_v35 = vmul.f32 %v7020_v28, %v7020_v28  ;;  %v6585_v42 = vld [vmem:[%s12750_s1 + $0x90] sm:$0xff]  ;;  %v7088_v62 = vadd.f32 -1.0, %v222_v52 }
   0xb   :  { %996 = vmatpush.bf16.msra.mxu1 %v6580_v9  ;;  %v408_v36 = vmul.f32 %v7022_v29, %v7022_v29  ;;  %v36_v39 = vld [vmem:[%s12751_s0 + $0x98] sm:$0xff]  ;;  %v6593_v43 = vld [vmem:[%s12750_s1 + $0xd0] sm:$0xff]  ;;  %v25_v47 = vld [vmem:[%s12751_s0 + $0x40] sm:$0xff]  ;;  %v221_v50 = vmul.f32 2.0, %v29_v33  ;;  %v419_v5 = vmul.f32 %v7086_v59, %v7086_v59 }
   0xc   :  { %1045 = vmatpush.bf16.msra.mxu2 %v6588_v10  ;;  %v7010_v24 = vadd.f32 -1.0, %v209_v18  ;;  %v19_v46 = vld [vmem:[%s12751_s0 + $0x10] sm:$0xff]  ;;  %v20_v48 = vld [vmem:[%s12751_s0 + $0x18] sm:$0xff]  ;;  %v26_v49 = vld [vmem:[%s12751_s0 + $0x48] sm:$0xff]  ;;  %v228_v53 = vmul.f32 2.0, %v36_v39  ;;  %v217_v57 = vmul.f32 2.0, %v25_v47  ;;  %v414_v6 = vmul.f32 %v7088_v62, %v7088_v62 }
   0xd   :  { %1094 = vmatpush.bf16.msra.mxu3 %v6596_v11  ;;  %v7064_v45 = vadd.f32 %v408_v36, %v407_v34  ;;  %v6568_v54 = vld [vmem:[%s12750_s1 + $0x8] sm:$0xff]  ;;  %v211_v56 = vmul.f32 2.0, %v19_v46  ;;  %v7084_v58 = vadd.f32 -1.0, %v221_v50  ;;  %v212_v60 = vmul.f32 2.0, %v20_v48  ;;  %v41_v0 = vld [vmem:[%s12751_s0 + $0xc0] sm:$0xff]  ;;  %v47_v1 = vld [vmem:[%s12751_s0 + $0xf0] sm:$0xff] }
   0xe   :  { %948 = vmatpush.bf16.msra.mxu0 %v6571_v12  ;;  %v401_v32 = vmul.f32 %v7010_v24, %v7010_v24  ;;  %v6576_v55 = vld [vmem:[%s12750_s1 + $0x48] sm:$0xff]  ;;  %v218_v61 = vmul.f32 2.0, %v26_v49  ;;  %v7090_v63 = vadd.f32 -1.0, %v228_v53  ;;  %v7114_v9 = vadd.f32 -1.0, %v217_v57  ;;  %v6567_v12 = vld [vmem:[%s12750_s1] sm:$0xff]  ;;  %v48_v21 = vld [vmem:[%s12751_s0 + $0xf8] sm:$0xff] }
   0xf   :  { %997 = vmatpush.bf16.msra.mxu1 %v6579_v13  ;;  %v6584_v2 = vld [vmem:[%s12750_s1 + $0x88] sm:$0xff]  ;;  %v413_v4 = vmul.f32 %v7084_v58, %v7084_v58  ;;  %v7112_v8 = vadd.f32 -1.0, %v211_v56  ;;  %v233_v10 = vmul.f32 2.0, %v41_v0  ;;  %v239_v11 = vmul.f32 2.0, %v47_v1  ;;  %v6575_v13 = vld [vmem:[%s12750_s1 + $0x40] sm:$0xff]  ;;  %v6606_v22 = vld [vmem:[%s12750_s1 + $0x138] sm:$0xff] }
  0x10   :  { %1046 = vmatpush.bf16.msra.mxu2 %v6587_v14  ;;  %v7062_v44 = vadd.f32 %v402_v35, %v401_v32  ;;  %v6592_v3 = vld [vmem:[%s12750_s1 + $0xc8] sm:$0xff]  ;;  %v420_v7 = vmul.f32 %v7090_v63, %v7090_v63  ;;  %v6583_v14 = vld [vmem:[%s12750_s1 + $0x80] sm:$0xff]  ;;  %v7127_v16 = vadd.f32 -1.0, %v218_v61  ;;  %v6614_v23 = vld [vmem:[%s12750_s1 + $0x178] sm:$0xff] }
  0x11   :  { %1095 = vmatpush.bf16.msra.mxu3 %v6595_v15  ;;  %v7125_v15 = vadd.f32 -1.0, %v212_v60  ;;  %v7129_v17 = vadd.f32 %v414_v6, %v413_v4  ;;  %v6591_v19 = vld [vmem:[%s12750_s1 + $0xc0] sm:$0xff]  ;;  %v42_v20 = vld [vmem:[%s12751_s0 + $0xc8] sm:$0xff]  ;;  %v7152_v32 = vadd.f32 -1.0, %v233_v10  ;;  %v7154_v33 = vadd.f32 -1.0, %v239_v11  ;;  %v6605_v36 = vld [vmem:[%s12750_s1 + $0x130] sm:$0xff] }
  0x12   :  { %949 = vmatpush.bf16.msra.mxu0 %v6570_v25  ;;  %v7131_v18 = vadd.f32 %v420_v7, %v419_v5  ;;  %v234_v25 = vmul.f32 2.0, %v42_v20  ;;  %v611_v34 = vpack.c.bf16 %v7114_v9, %v7112_v8  ;;  %v6613_v37 = vld [vmem:[%s12750_s1 + $0x170] sm:$0xff]  ;;  %v6604_v48 = vld [vmem:[%s12750_s1 + $0x128] sm:$0xff]  ;;  %v615_v6 = vpack.c.bf16 %v7086_v59, %v7084_v58 }
  0x13   :  { %998 = vmatpush.bf16.msra.mxu1 %v6578_v26  ;;  %v240_v26 = vmul.f32 2.0, %v48_v21  ;;  %v612_v35 = vpack.c.bf16 %v7127_v16, %v7125_v15  ;;  %v6612_v49 = vld [vmem:[%s12750_s1 + $0x168] sm:$0xff]  ;;  %v616_v7 = vpack.c.bf16 %v7090_v63, %v7088_v62  ;;  %v43_v20 = vld [vmem:[%s12751_s0 + $0xd0] sm:$0xff]  ;;  %v6603_v21 = vld [vmem:[%s12750_s1 + $0x120] sm:$0xff] }
  0x14   :  { %1047 = vmatpush.bf16.msra.mxu2 %v6586_v30  ;;  %v609_v30 = vpack.c.bf16 %v7018_v27, %v7010_v24  ;;  %v425_v24 = vmul.f32 %v7152_v32, %v7152_v32  ;;  %v431_v27 = vmul.f32 %v7154_v33, %v7154_v33 }
  0x15   :  { %1096 = vmatpush.bf16.msra.mxu3 %v6594_v31  ;;  %v610_v31 = vpack.c.bf16 %v7022_v29, %v7020_v28  ;;  %v7164_v28 = vadd.f32 -1.0, %v234_v25  ;;  %v7166_v29 = vadd.f32 -1.0, %v240_v26  ;;  %v44_v25 = vld [vmem:[%s12751_s0 + $0xd8] sm:$0xff]  ;;  %v50_v26 = vld [vmem:[%s12751_s0 + $0x108] sm:$0xff] }
  0x16   :  { %950 = vmatpush.bf16.msra.mxu0 %v6569_v40  ;;  %v31_v40 = vld [vmem:[%s12751_s0 + $0x70] sm:$0xff] }
  0x17   :  { %999 = vmatpush.bf16.msra.mxu1 %v6577_v41  ;;  %v426_v38 = vmul.f32 %v7164_v28, %v7164_v28  ;;  %v432_v39 = vmul.f32 %v7166_v29, %v7166_v29  ;;  %v37_v41 = vld [vmem:[%s12751_s0 + $0xa0] sm:$0xff]  ;;  %v223_v50 = vmul.f32 2.0, %v31_v40 }
  0x18   :  { %1048 = vmatpush.bf16.msra.mxu2 %v6585_v42  ;;  %v32_v42 = vld [vmem:[%s12751_s0 + $0x78] sm:$0xff]  ;;  %v229_v51 = vmul.f32 2.0, %v37_v41 }
  0x19   :  { %1097 = vmatpush.bf16.msra.mxu3 %v6593_v43  ;;  %v38_v43 = vld [vmem:[%s12751_s0 + $0xa8] sm:$0xff]  ;;  %v7190_v46 = vadd.f32 %v426_v38, %v425_v24  ;;  %v7192_v47 = vadd.f32 %v432_v39, %v431_v27  ;;  %v224_v52 = vmul.f32 2.0, %v32_v42  ;;  %v7206_v60 = vadd.f32 -1.0, %v223_v50 }
  0x1a   :  { %951 = vmatpush.bf16.msra.mxu0 %v6568_v54  ;;  %v230_v53 = vmul.f32 2.0, %v38_v43  ;;  %v53_v54 = vld [vmem:[%s12751_s0 + $0x120] sm:$0xff]  ;;  %v7208_v61 = vadd.f32 -1.0, %v229_v51  ;;  %v236_v24 = vmul.f32 2.0, %v44_v25  ;;  %v242_v27 = vmul.f32 2.0, %v50_v26 }
  0x1b   :  { %1000 = vmatpush.bf16.msra.mxu1 %v6576_v55  ;;  %v59_v55 = vld [vmem:[%s12751_s0 + $0x150] sm:$0xff]  ;;  %v245_v56 = vmul.f32 2.0, %v53_v54  ;;  %v7210_v0 = vadd.f32 -1.0, %v224_v52  ;;  %v621_v52 = vpack.c.bf16 %v7154_v33, %v7152_v32 }
  0x1c   :  { %1049 = vmatpush.bf16.msra.mxu2 %v6584_v2  ;;  %v251_v57 = vmul.f32 2.0, %v59_v55  ;;  %v7212_v1 = vadd.f32 -1.0, %v230_v53  ;;  %v54_v2 = vld [vmem:[%s12751_s0 + $0x128] sm:$0xff]  ;;  %v7276_v42 = vadd.f32 -1.0, %v236_v24  ;;  %v7278_v43 = vadd.f32 -1.0, %v242_v27 }
  0x1d   :  { %1098 = vmatpush.bf16.msra.mxu3 %v6592_v3  ;;  %v60_v3 = vld [vmem:[%s12751_s0 + $0x158] sm:$0xff]  ;;  %v246_v4 = vmul.f32 2.0, %v54_v2  ;;  %v7224_v10 = vadd.f32 -1.0, %v245_v56  ;;  %v622_v53 = vpack.c.bf16 %v7166_v29, %v7164_v28 }
  0x1e   :  { %952 = vmatpush.bf16.msra.mxu0 %v6567_v12  ;;  %v252_v5 = vmul.f32 2.0, %v60_v3  ;;  %v7226_v11 = vadd.f32 -1.0, %v251_v57  ;;  %v617_v12 = vpack.c.bf16 %v7208_v61, %v7206_v60  ;;  %v624_v57 = vpack.c.bf16 %v7278_v43, %v7276_v42 }
  0x1f   :  { %1001 = vmatpush.bf16.msra.mxu1 %v6575_v13  ;;  %v618_v13 = vpack.c.bf16 %v7212_v1, %v7210_v0  ;;  %v7236_v58 = vadd.f32 -1.0, %v246_v4  ;;  %v55_v4 = vld [vmem:[%s12751_s0 + $0x130] sm:$0xff] }
  0x20   :  { %1050 = vmatpush.bf16.msra.mxu2 %v6583_v14  ;;  %v437_v14 = vmul.f32 %v7224_v10, %v7224_v10  ;;  %v7238_v59 = vadd.f32 -1.0, %v252_v5  ;;  %v6602_v5 = vld [vmem:[%s12750_s1 + $0x118] sm:$0xff] }
  0x21   :  { %1099 = vmatpush.bf16.msra.mxu3 %v6591_v19  ;;  %953 = vmatmul.bf16.vlgmr.msra.gmra.mxu0 %v609_v30  ;;  %v443_v19 = vmul.f32 %v7226_v11, %v7226_v11  ;;  %v438_v62 = vmul.f32 %v7236_v58, %v7236_v58 }
  0x22   :  { %1141 = vmatpush.bf16.msrb.mxu0 %v6606_v22  ;;  %1002 = vmatmul.bf16.vlgmr.msra.gmra.mxu1 %v610_v31  ;;  %v444_v63 = vmul.f32 %v7238_v59, %v7238_v59  ;;  %v6611_v22 = vld [vmem:[%s12750_s1 + $0x160] sm:$0xff] }
  0x23   :  { %1190 = vmatpush.bf16.msrb.mxu1 %v6614_v23  ;;  %1051 = vmatmul.bf16.vlgmr.msra.gmra.mxu2 %v611_v34  ;;  %v49_v23 = vld [vmem:[%s12751_s0 + $0x100] sm:$0xff]  ;;  %v7262_v30 = vadd.f32 %v438_v62, %v437_v14  ;;  %v235_v34 = vmul.f32 2.0, %v43_v20  ;;  %v247_v62 = vmul.f32 2.0, %v55_v4  ;;  %v68_v4 = vld [vmem:[%s12751_s0 + $0x198] sm:$0xff] }
  0x24   :  { %1100 = vmatmul.bf16.vlgmr.msra.gmra.mxu3 %v612_v35  ;;  %v7264_v31 = vadd.f32 %v444_v63, %v443_v19  ;;  %v241_v35 = vmul.f32 2.0, %v49_v23  ;;  %v83_v23 = vld [vmem:[%s12751_s0 + $0x210] sm:$0xff] }
  0x25   :  { %v7272_v40 = vadd.f32 -1.0, %v235_v34  ;;  %v275_v26 = vmul.f32 2.0, %v83_v23  ;;  %v7338_v34 = vadd.f32 -1.0, %v247_v62  ;;  %v260_v62 = vmul.f32 2.0, %v68_v4  ;;  %v6608_v4 = vld [vmem:[%s12750_s1 + $0x148] sm:$0xff] }
  0x26   :  { %1142 = vmatpush.bf16.msrb.mxu0 %v6605_v36  ;;  %v65_v36 = vld [vmem:[%s12751_s0 + $0x180] sm:$0xff]  ;;  %v7274_v41 = vadd.f32 -1.0, %v241_v35 }
  0x27   :  { %1191 = vmatpush.bf16.msrb.mxu1 %v6613_v37  ;;  %v71_v37 = vld [vmem:[%s12751_s0 + $0x1b0] sm:$0xff]  ;;  %v257_v38 = vmul.f32 2.0, %v65_v36  ;;  %v78_v36 = vld [vmem:[%s12751_s0 + $0x1e8] sm:$0xff] }
  0x28   :  { %v263_v39 = vmul.f32 2.0, %v71_v37  ;;  %v623_v56 = vpack.c.bf16 %v7274_v41, %v7272_v40  ;;  %v84_v37 = vld [vmem:[%s12751_s0 + $0x218] sm:$0xff] }
  0x29   :  { %v7290_v54 = vadd.f32 -1.0, %v257_v38  ;;  %v270_v38 = vmul.f32 2.0, %v78_v36  ;;  %v7408_v36 = vadd.f32 -1.0, %v260_v62 }
  0x2a   :  { %1143 = vmatpush.bf16.msrb.mxu0 %v6604_v48  ;;  %v66_v48 = vld [vmem:[%s12751_s0 + $0x188] sm:$0xff]  ;;  %v7292_v55 = vadd.f32 -1.0, %v263_v39  ;;  %v276_v39 = vmul.f32 2.0, %v84_v37 }
  0x2b   :  { %1192 = vmatpush.bf16.msrb.mxu1 %v6612_v49  ;;  %v72_v49 = vld [vmem:[%s12751_s0 + $0x1b8] sm:$0xff]  ;;  %v258_v50 = vmul.f32 2.0, %v66_v48  ;;  %v449_v2 = vmul.f32 %v7290_v54, %v7290_v54  ;;  %v627_v48 = vpack.c.bf16 %v7226_v11, %v7224_v10  ;;  %v7368_v10 = vadd.f32 -1.0, %v270_v38  ;;  %v90_v38 = vld [vmem:[%s12751_s0 + $0x248] sm:$0xff] }
  0x2c   :  { %v264_v51 = vmul.f32 2.0, %v72_v49  ;;  %v455_v3 = vmul.f32 %v7292_v55, %v7292_v55  ;;  %v628_v49 = vpack.c.bf16 %v7238_v59, %v7236_v58  ;;  %v7370_v11 = vadd.f32 -1.0, %v276_v39  ;;  %v96_v39 = vld [vmem:[%s12751_s0 + $0x278] sm:$0xff] }
  0x2d   :  { %v7302_v32 = vadd.f32 -1.0, %v258_v50  ;;  %v462_v58 = vmul.f32 %v7368_v10, %v7368_v10 }
  0x2e   :  { %1144 = vmatpush.bf16.msrb.mxu0 %v6603_v21  ;;  %v7304_v33 = vadd.f32 -1.0, %v264_v51  ;;  %v7358_v51 = vadd.f32 -1.0, %v275_v26  ;;  %v468_v59 = vmul.f32 %v7370_v11, %v7370_v11 }
  0x2f   :  { %1193 = vmatpush.bf16.msrb.mxu1 %v6611_v22  ;;  %v450_v28 = vmul.f32 %v7302_v32, %v7302_v32  ;;  %v77_v22 = vld [vmem:[%s12751_s0 + $0x1e0] sm:$0xff] }
  0x30   :  { %v456_v29 = vmul.f32 %v7304_v33, %v7304_v33  ;;  %v269_v25 = vmul.f32 2.0, %v77_v22 }
  0x31   :  { %958 = vmatmul.bf16.gmra.mxu0 %v615_v6  ;;  %v6610_v6 = vld [vmem:[%s12750_s1 + $0x158] sm:$0xff]  ;;  %v7328_v14 = vadd.f32 %v450_v28, %v449_v2  ;;  %v67_v2 = vld [vmem:[%s12751_s0 + $0x190] sm:$0xff] }
  0x32   :  { %1007 = vmatmul.bf16.gmra.mxu1 %v616_v7  ;;  %v61_v7 = vld [vmem:[%s12751_s0 + $0x160] sm:$0xff]  ;;  %v7330_v19 = vadd.f32 %v456_v29, %v455_v3  ;;  %1145 = vmatpush.bf16.msrb.mxu0 %v6602_v5  ;;  %v7356_v50 = vadd.f32 -1.0, %v269_v25  ;;  %v6601_v3 = vld [vmem:[%s12750_s1 + $0x110] sm:$0xff]  ;;  %v74_v5 = vld [vmem:[%s12751_s0 + $0x1c8] sm:$0xff] }
  0x33   :  { %1056 = vmatmul.bf16.gmra.mxu2 %v617_v12  ;;  %v56_v12 = vld [vmem:[%s12751_s0 + $0x138] sm:$0xff]  ;;  %1194 = vmatpush.bf16.msrb.mxu1 %v6610_v6  ;;  %v253_v63 = vmul.f32 2.0, %v61_v7  ;;  %v6609_v28 = vld [vmem:[%s12750_s1 + $0x150] sm:$0xff]  ;;  %v73_v29 = vld [vmem:[%s12751_s0 + $0x1c0] sm:$0xff] }
  0x34   :  { %1105 = vmatmul.bf16.gmra.mxu3 %v618_v13  ;;  %v62_v13 = vld [vmem:[%s12751_s0 + $0x168] sm:$0xff]  ;;  %v248_v20 = vmul.f32 2.0, %v56_v12  ;;  %v259_v12 = vmul.f32 2.0, %v67_v2 }
  0x35   :  { %v254_v21 = vmul.f32 2.0, %v62_v13  ;;  %v7340_v35 = vadd.f32 -1.0, %v253_v63  ;;  %v265_v13 = vmul.f32 2.0, %v73_v29  ;;  %v266_v63 = vmul.f32 2.0, %v74_v5  ;;  %v6600_v29 = vld [vmem:[%s12750_s1 + $0x108] sm:$0xff]  ;;  %v85_v5 = vld [vmem:[%s12751_s0 + $0x220] sm:$0xff] }
  0x36   :  { %v7342_v24 = vadd.f32 -1.0, %v248_v20  ;;  %1146 = vmatpush.bf16.msrb.mxu0 %v6601_v3  ;;  %v89_v20 = vld [vmem:[%s12751_s0 + $0x240] sm:$0xff]  ;;  %v7404_v25 = vadd.f32 -1.0, %v259_v12  ;;  %v80_v12 = vld [vmem:[%s12751_s0 + $0x1f8] sm:$0xff] }
  0x37   :  { %v7344_v27 = vadd.f32 -1.0, %v254_v21  ;;  %1195 = vmatpush.bf16.msrb.mxu1 %v6609_v28  ;;  %v95_v21 = vld [vmem:[%s12751_s0 + $0x270] sm:$0xff]  ;;  %v281_v22 = vmul.f32 2.0, %v89_v20  ;;  %v7406_v26 = vadd.f32 -1.0, %v265_v13  ;;  %v7410_v37 = vadd.f32 -1.0, %v266_v63  ;;  %v86_v13 = vld [vmem:[%s12751_s0 + $0x228] sm:$0xff] }
  0x38   :  { %v287_v23 = vmul.f32 2.0, %v95_v21  ;;  %v79_v28 = vld [vmem:[%s12751_s0 + $0x1f0] sm:$0xff]  ;;  %v277_v21 = vmul.f32 2.0, %v85_v5 }
  0x39   :  { %v271_v20 = vmul.f32 2.0, %v79_v28  ;;  %v639_v28 = vpack.c.bf16 %v7358_v51, %v7356_v50 }
  0x3a   :  { %1147 = vmatpush.bf16.msrb.mxu0 %v6600_v29  ;;  %v640_v29 = vpack.c.bf16 %v7370_v11, %v7368_v10 }
  0x3b   :  { %1196 = vmatpush.bf16.msrb.mxu1 %v6608_v4 }
  0x41   :  { %963 = vmatmul.bf16.gmra.mxu0 %v621_v52  ;;  %v629_v52 = vpack.c.bf16 %v7340_v35, %v7338_v34 }
  0x42   :  { %1012 = vmatmul.bf16.gmra.mxu1 %v622_v53  ;;  %v630_v53 = vpack.c.bf16 %v7344_v27, %v7342_v24 }
  0x43   :  { %1061 = vmatmul.bf16.gmra.mxu2 %v623_v56  ;;  %v461_v56 = vmul.f32 %v7356_v50, %v7356_v50 }
  0x44   :  { %1110 = vmatmul.bf16.gmra.mxu3 %v624_v57  ;;  %v467_v57 = vmul.f32 %v7358_v51, %v7358_v51 }
  0x45   :  { %v7394_v6 = vadd.f32 %v462_v58, %v461_v56  ;;  %v7422_v56 = vadd.f32 -1.0, %v281_v22  ;;  %v635_v58 = vpack.c.bf16 %v7406_v26, %v7404_v25  ;;  %v272_v22 = vmul.f32 2.0, %v80_v12 }
  0x46   :  { %v7396_v7 = vadd.f32 %v468_v59, %v467_v57  ;;  %v7424_v57 = vadd.f32 -1.0, %v287_v23  ;;  %v636_v59 = vpack.c.bf16 %v7410_v37, %v7408_v36  ;;  %v278_v23 = vmul.f32 2.0, %v86_v13 }
  0x47   :  { %v473_v2 = vmul.f32 %v7422_v56, %v7422_v56 }
  0x48   :  { %v479_v3 = vmul.f32 %v7424_v57, %v7424_v57 }
  0x51   :  { %968 = vmatmul.bf16.gmra.mxu0 %v627_v48  ;;  %v282_v48 = vmul.f32 2.0, %v90_v38  ;;  %v101_v38 = vld [vmem:[%s12751_s0 + $0x2a0] sm:$0xff] }
  0x52   :  { %1017 = vmatmul.bf16.gmra.mxu1 %v628_v49  ;;  %v288_v49 = vmul.f32 2.0, %v96_v39  ;;  %v107_v39 = vld [vmem:[%s12751_s0 + $0x2d0] sm:$0xff] }
  0x53   :  { %1066 = vmatmul.bf16.gmra.mxu2 %v629_v52  ;;  %v633_v52 = vpack.c.bf16 %v7292_v55, %v7290_v54  ;;  %v7434_v54 = vadd.f32 -1.0, %v282_v48  ;;  %v293_v48 = vmul.f32 2.0, %v101_v38  ;;  %v6607_v38 = vld [vmem:[%s12750_s1 + $0x140] sm:$0xff] }
  0x54   :  { %1115 = vmatmul.bf16.gmra.mxu3 %v630_v53  ;;  %v634_v53 = vpack.c.bf16 %v7304_v33, %v7302_v32  ;;  %v7436_v55 = vadd.f32 -1.0, %v288_v49  ;;  %v299_v49 = vmul.f32 2.0, %v107_v39  ;;  %v97_v39 = vld [vmem:[%s12751_s0 + $0x280] sm:$0xff]  ;;  %1197 = vmatpush.bf16.msrb.mxu1 %v6607_v38 }
  0x55   :  { %v474_v32 = vmul.f32 %v7434_v54, %v7434_v54  ;;  %v7488_v4 = vadd.f32 -1.0, %v293_v48  ;;  %v92_v48 = vld [vmem:[%s12751_s0 + $0x258] sm:$0xff] }
  0x56   :  { %v480_v33 = vmul.f32 %v7436_v55, %v7436_v55  ;;  %v7490_v5 = vadd.f32 -1.0, %v299_v49  ;;  %v98_v49 = vld [vmem:[%s12751_s0 + $0x288] sm:$0xff] }
  0x57   :  { %v7460_v62 = vadd.f32 %v474_v32, %v473_v2  ;;  %v102_v2 = vld [vmem:[%s12751_s0 + $0x2a8] sm:$0xff] }
  0x58   :  { %v7462_v63 = vadd.f32 %v480_v33, %v479_v3  ;;  %v108_v3 = vld [vmem:[%s12751_s0 + $0x2d8] sm:$0xff]  ;;  %v294_v32 = vmul.f32 2.0, %v102_v2 }
  0x59   :  { %12942 = vst [vmem:[#allocation2_spill] sm:$0xff] %v7460_v62  ;;  %v300_v33 = vmul.f32 2.0, %v108_v3 }
  0x5a   :  { %12943 = vst [vmem:[#allocation3_spill] sm:$0xff] %v7462_v63  ;;  %v7500_v50 = vadd.f32 -1.0, %v294_v32 }
  0x5b   :  { %v7502_v51 = vadd.f32 -1.0, %v300_v33  ;;  %v289_v33 = vmul.f32 2.0, %v97_v39 }
  0x5c   :  { %v486_v10 = vmul.f32 %v7500_v50, %v7500_v50 }
  0x5d   :  { %v492_v11 = vmul.f32 %v7502_v51, %v7502_v51 }
  0x61   :  { %973 = vmatmul.bf16.gmra.mxu0 %v633_v52  ;;  %v7470_v52 = vadd.f32 -1.0, %v271_v20  ;;  %v485_v20 = vmul.f32 %v7488_v4, %v7488_v4 }
  0x62   :  { %1022 = vmatmul.bf16.gmra.mxu1 %v634_v53  ;;  %v7472_v53 = vadd.f32 -1.0, %v277_v21  ;;  %v491_v21 = vmul.f32 %v7490_v5, %v7490_v5 }
  0x63   :  { %1071 = vmatmul.bf16.gmra.mxu2 %v635_v58  ;;  %v7474_v58 = vadd.f32 -1.0, %v272_v22  ;;  %v91_v22 = vld [vmem:[%s12751_s0 + $0x250] sm:$0xff]  ;;  %v7526_v2 = vadd.f32 %v486_v10, %v485_v20  ;;  %v645_v20 = vpack.c.bf16 %v7424_v57, %v7422_v56  ;;  %v109_v56 = vld [vmem:[%s12751_s0 + $0x2e0] sm:$0xff]  ;;  %v104_v57 = vld [vmem:[%s12751_s0 + $0x2b8] sm:$0xff] }
  0x64   :  { %1120 = vmatmul.bf16.gmra.mxu3 %v636_v59  ;;  %v7476_v59 = vadd.f32 -1.0, %v278_v23  ;;  %v641_v12 = vpack.c.bf16 %v7472_v53, %v7470_v52  ;;  %v6599_v23 = vld [vmem:[%s12750_s1 + $0x100] sm:$0xff]  ;;  %v7528_v3 = vadd.f32 %v492_v11, %v491_v21  ;;  %v283_v32 = vmul.f32 2.0, %v91_v22  ;;  %v103_v22 = vld [vmem:[%s12751_s0 + $0x2b0] sm:$0xff] }
  0x65   :  { %1148 = vmatpush.bf16.msrb.mxu0 %v6599_v23  ;;  %v646_v21 = vpack.c.bf16 %v7436_v55, %v7434_v54  ;;  %v110_v54 = vld [vmem:[%s12751_s0 + $0x2e8] sm:$0xff]  ;;  %v295_v55 = vmul.f32 2.0, %v103_v22  ;;  %v21_v23 = vld [vmem:[%s12751_s0 + $0x20] sm:$0xff]  ;;  %v301_v38 = vmul.f32 2.0, %v109_v56  ;;  %v296_v39 = vmul.f32 2.0, %v104_v57 }
  0x66   :  { %v642_v13 = vpack.c.bf16 %v7476_v59, %v7474_v58  ;;  %v651_v57 = vpack.c.bf16 %v7490_v5, %v7488_v4  ;;  %v409_v5 = vmul.f32 %v7114_v9, %v7114_v9 }
  0x71   :  { %978 = vmatmul.bf16.gmra.mxu0 %v639_v28  ;;  %v284_v28 = vmul.f32 2.0, %v92_v48  ;;  %v302_v48 = vmul.f32 2.0, %v110_v54  ;;  %v27_v54 = vld [vmem:[%s12751_s0 + $0x50] sm:$0xff] }
  0x72   :  { %1027 = vmatmul.bf16.gmra.mxu1 %v640_v29  ;;  %v290_v29 = vmul.f32 2.0, %v98_v49  ;;  %v22_v49 = vld [vmem:[%s12751_s0 + $0x28] sm:$0xff] }
  0x73   :  { %1076 = vmatmul.bf16.gmra.mxu2 %v641_v12  ;;  %v7530_v12 = vadd.f32 -1.0, %v283_v32  ;;  %v7534_v63 = vadd.f32 -1.0, %v284_v28  ;;  %v403_v32 = vmul.f32 %v7112_v8, %v7112_v8  ;;  %v7566_v28 = vadd.f32 -1.0, %v295_v55 }
  0x74   :  { %1125 = vmatmul.bf16.gmra.mxu3 %v642_v13  ;;  %v7532_v13 = vadd.f32 -1.0, %v289_v33  ;;  %v7536_v62 = vadd.f32 -1.0, %v290_v29  ;;  %v213_v33 = vmul.f32 2.0, %v21_v23  ;;  %v7568_v29 = vadd.f32 -1.0, %v301_v38 }
  0x75   :  { %v498_v56 = vadd.f32 %v7062_v44, %v403_v32  ;;  %v652_v8 = vpack.c.bf16 %v7502_v51, %v7500_v50  ;;  %v28_v44 = vld [vmem:[%s12751_s0 + $0x58] sm:$0xff]  ;;  %v219_v50 = vmul.f32 2.0, %v27_v54 }
  0x76   :  { %v647_v10 = vpack.c.bf16 %v7532_v13, %v7530_v12  ;;  %v648_v11 = vpack.c.bf16 %v7536_v62, %v7534_v63  ;;  %v6040_v22 = vadd.f32 -1.0, %v213_v33  ;;  %v653_v55 = vpack.c.bf16 %v7568_v29, %v7566_v28 }
  0x77   :  { %v6046_v33 = vadd.f32 -1.0, %v219_v50 }
  0x78   :  { %v405_v38 = vmul.f32 %v6040_v22, %v6040_v22 }
  0x79   :  { %v613_v50 = vpack.c.bf16 %v6046_v33, %v6040_v22 }
  0x81   :  { %983 = vmatmul.bf16.gmra.mxu0 %v645_v20  ;;  %v7570_v20 = vadd.f32 -1.0, %v296_v39 }
  0x82   :  { %1032 = vmatmul.bf16.gmra.mxu1 %v646_v21  ;;  %v7572_v21 = vadd.f32 -1.0, %v302_v48  ;;  %v410_v48 = vmul.f32 %v7127_v16, %v7127_v16  ;;  %v415_v16 = vmul.f32 %v7206_v60, %v7206_v60 }
  0x83   :  { %1081 = vmatmul.bf16.gmra.mxu2 %v647_v10  ;;  %v214_v10 = vmul.f32 2.0, %v22_v49  ;;  %v220_v49 = vmul.f32 2.0, %v28_v44  ;;  %v416_v44 = vmul.f32 %v7210_v0, %v7210_v0 }
  0x84   :  { %1130 = vmatmul.bf16.gmra.mxu3 %v648_v11  ;;  %v404_v11 = vmul.f32 %v7125_v15, %v7125_v15  ;;  %v654_v23 = vpack.c.bf16 %v7572_v21, %v7570_v20 }
  0x85   :  { %v6041_v15 = vadd.f32 -1.0, %v214_v10  ;;  %v505_v10 = vadd.f32 %v7064_v45, %v409_v5  ;;  %v6047_v9 = vadd.f32 -1.0, %v220_v49  ;;  %v512_v5 = vadd.f32 %v7129_v17, %v415_v16 }
  0x86   :  { %v499_v4 = vadd.f32 %v498_v56, %v404_v11  ;;  %v33_v11 = vld [vmem:[%s12751_s0 + $0x80] sm:$0xff]  ;;  %v411_v56 = vmul.f32 %v6046_v33, %v6046_v33  ;;  %v421_v17 = vmul.f32 %v7208_v61, %v7208_v61 }
  0x87   :  { %v406_v51 = vmul.f32 %v6041_v15, %v6041_v15  ;;  %v225_v54 = vmul.f32 2.0, %v33_v11  ;;  %v40_v11 = vld [vmem:[%s12751_s0 + $0xb8] sm:$0xff]  ;;  %v513_v0 = vadd.f32 %v512_v5, %v416_v44  ;;  %v45_v44 = vld [vmem:[%s12751_s0 + $0xe0] sm:$0xff] }
  0x88   :  { %v500_v39 = vadd.f32 %v499_v4, %v405_v38  ;;  %v519_v16 = vadd.f32 %v7131_v18, %v421_v17  ;;  %v427_v18 = vmul.f32 %v7272_v40, %v7272_v40  ;;  %v51_v40 = vld [vmem:[%s12751_s0 + $0x110] sm:$0xff] }
  0x89   :  { %v6052_v4 = vadd.f32 -1.0, %v225_v54 }
  0x8a   :  { %v501_v32 = vadd.f32 %v500_v39, %v406_v51  ;;  %v614_v51 = vpack.c.bf16 %v6047_v9, %v6041_v15  ;;  %v39_v39 = vld [vmem:[%s12751_s0 + $0xb0] sm:$0xff]  ;;  %v526_v17 = vadd.f32 %v7190_v46, %v427_v18  ;;  %v52_v46 = vld [vmem:[%s12751_s0 + $0x118] sm:$0xff] }
  0x8b   :  { %v231_v22 = vmul.f32 2.0, %v39_v39 }
  0x8c   :  { %502 = vadd.xlane.f32.xlu0 %v501_v32  ;;  %v417_v32 = vmul.f32 %v6052_v4, %v6052_v4 }
  0x8e   :  { %v514_v33 = vadd.f32 %v513_v0, %v417_v32  ;;  %v237_v32 = vmul.f32 2.0, %v45_v44  ;;  %v428_v0 = vmul.f32 %v7276_v42, %v7276_v42 }
  0x91   :  { %988 = vmatmul.bf16.gmra.mxu0 %v651_v57  ;;  %v506_v57 = vadd.f32 %v505_v10, %v410_v48 }
  0x92   :  { %1037 = vmatmul.bf16.gmra.mxu1 %v652_v8  ;;  %v34_v8 = vld [vmem:[%s12751_s0 + $0x88] sm:$0xff] }
  0x93   :  { %1086 = vmatmul.bf16.gmra.mxu2 %v653_v55  ;;  %v412_v55 = vmul.f32 %v6047_v9, %v6047_v9  ;;  %v226_v38 = vmul.f32 2.0, %v34_v8  ;;  %v422_v9 = vmul.f32 %v7212_v1, %v7212_v1  ;;  %v6058_v8 = vadd.f32 -1.0, %v231_v22  ;;  %v46_v1 = vld [vmem:[%s12751_s0 + $0xe8] sm:$0xff] }
  0x94   :  { %1135 = vmatmul.bf16.gmra.mxu3 %v654_v23  ;;  %v507_v23 = vadd.f32 %v506_v57, %v411_v56  ;;  %v232_v56 = vmul.f32 2.0, %v40_v11 }
  0x95   :  { %v6053_v49 = vadd.f32 -1.0, %v226_v38  ;;  %v423_v5 = vmul.f32 %v6058_v8, %v6058_v8 }
  0x96   :  { %v508_v45 = vadd.f32 %v507_v23, %v412_v55  ;;  %v6059_v61 = vadd.f32 -1.0, %v232_v56  ;;  %v6064_v56 = vadd.f32 -1.0, %v237_v32 }
  0x97   :  { %v418_v15 = vmul.f32 %v6053_v49, %v6053_v49 }
  0x98   :  { %509 = vadd.xlane.f32.xlu0 %v508_v45  ;;  %v429_v42 = vmul.f32 %v6064_v56, %v6064_v56 }
  0x99   :  { %v515_v57 = vadd.f32 %v514_v33, %v418_v15  ;;  %v619_v33 = vpack.c.bf16 %v6058_v8, %v6052_v4  ;;  %v433_v4 = vmul.f32 %v7274_v41, %v7274_v41 }
  0x9b   :  { %516 = vadd.xlane.f32.xlu1 %v515_v57 }
  0x9e   :  { %v954_v48 = vpop.f32.mrf.mxu0 }
  0x9f   :  { %v1003_v60 = vpop.f32.mrf.mxu1 }
  0xa0   :  { %v1004_v10 = vadd.f32 %v1003_v60, %v954_v48  ;;  %v424_v48 = vmul.f32 %v6059_v61, %v6059_v61 }
  0xa1   :  { %1149 = vmatmul.bf16.vlgmr.msrb.gmra.mxu0 %v613_v50  ;;  %v520_v50 = vadd.f32 %v519_v16, %v422_v9  ;;  %v620_v9 = vpack.c.bf16 %v6059_v61, %v6053_v49  ;;  %v243_v49 = vmul.f32 2.0, %v51_v40  ;;  %v244_v61 = vmul.f32 2.0, %v52_v46 }
  0xa2   :  { %1198 = vmatmul.bf16.vlgmr.msrb.gmra.mxu1 %v614_v51  ;;  %v440_v46 = vmul.f32 %v7342_v24, %v7342_v24 }
  0xa3   :  { %v521_v60 = vadd.f32 %v520_v50, %v423_v5  ;;  %v6070_v5 = vadd.f32 -1.0, %v243_v49  ;;  %v533_v50 = vadd.f32 %v7192_v47, %v433_v4  ;;  %v6071_v41 = vadd.f32 -1.0, %v244_v61 }
  0xa4   :  { %v439_v47 = vmul.f32 %v7338_v34, %v7338_v34  ;;  %v63_v34 = vld [vmem:[%s12751_s0 + $0x170] sm:$0xff] }
  0xa5   :  { %v522_v11 = vadd.f32 %v521_v60, %v424_v48  ;;  %v625_v49 = vpack.c.bf16 %v6070_v5, %v6064_v56  ;;  %v445_v56 = vmul.f32 %v7340_v35, %v7340_v35 }
  0xa6   :  { %v1052_v54 = vpop.f32.mrf.mxu2  ;;  %v956_v38 = vpop.f32.mrf.mxu0 }
  0xa7   :  { %v1101_v55 = vpop.f32.mrf.mxu3  ;;  %v1053_v23 = vadd.f32 %v1052_v54, %v1004_v10  ;;  %v1005_v45 = vpop.f32.mrf.mxu1  ;;  %v238_v10 = vmul.f32 2.0, %v46_v1  ;;  %523 = vadd.xlane.f32.xlu1 %v522_v11  ;;  %v435_v11 = vmul.f32 %v6070_v5, %v6070_v5 }
  0xa8   :  { %v7621_v51 = vadd.f32 %v1005_v45, %v956_v38  ;;  %v434_v45 = vmul.f32 %v7278_v43, %v7278_v43  ;;  %v58_v43 = vld [vmem:[%s12751_s0 + $0x148] sm:$0xff] }
  0xa9   :  { %v7628_v39 = vadd.f32 %v1101_v55, %v1053_v23  ;;  %v6065_v54 = vadd.f32 -1.0, %v238_v10  ;;  %v527_v23 = vadd.f32 %v526_v17, %v428_v0  ;;  %v57_v10 = vld [vmem:[%s12751_s0 + $0x140] sm:$0xff] }
  0xaa   :  { %v534_v0 = vadd.f32 %v533_v50, %v434_v45 }
  0xab   :  { %v430_v8 = vmul.f32 %v6065_v54, %v6065_v54  ;;  %v528_v38 = vadd.f32 %v527_v23, %v429_v42  ;;  %v540_v42 = vadd.f32 %v7262_v30, %v439_v47  ;;  %v64_v30 = vld [vmem:[%s12751_s0 + $0x178] sm:$0xff] }
  0xac   :  { %v535_v40 = vadd.f32 %v534_v0, %v435_v11 }
  0xad   :  { %v529_v44 = vadd.f32 %v528_v38, %v430_v8  ;;  %v626_v8 = vpack.c.bf16 %v6071_v41, %v6065_v54  ;;  %v255_v54 = vmul.f32 2.0, %v63_v34 }
  0xae   :  { %v7633_v22 = vpop.f32.mrf.mxu2  ;;  %v959_v57 = vpop.f32.mrf.mxu0 }
  0xaf   :  { %v7635_v15 = vpop.f32.mrf.mxu3  ;;  %v1008_v16 = vpop.f32.mrf.mxu1  ;;  %530 = vadd.xlane.f32.xlu2 %v529_v44 }
  0xb0   :  { %v1009_v55 = vadd.f32 %v1008_v16, %v959_v57  ;;  %v249_v57 = vmul.f32 2.0, %v57_v10  ;;  %v250_v16 = vmul.f32 2.0, %v58_v43  ;;  %v547_v10 = vadd.f32 %v7264_v31, %v445_v56 }
  0xb1   :  { %1154 = vmatmul.bf16.gmra.mxu0 %v619_v33  ;;  %v451_v31 = vmul.f32 %v7404_v25, %v7404_v25 }
  0xb2   :  { %1203 = vmatmul.bf16.gmra.mxu1 %v620_v9  ;;  %v436_v9 = vmul.f32 %v6071_v41, %v6071_v41  ;;  %v6076_v38 = vadd.f32 -1.0, %v249_v57  ;;  %v6077_v44 = vadd.f32 -1.0, %v250_v16  ;;  %v6082_v41 = vadd.f32 -1.0, %v255_v54 }
  0xb4   :  { %v441_v24 = vmul.f32 %v6076_v38, %v6076_v38  ;;  %v442_v5 = vmul.f32 %v6077_v44, %v6077_v44  ;;  %v447_v57 = vmul.f32 %v6082_v41, %v6082_v41 }
  0xb6   :  { %v1057_v1 = vpop.f32.mrf.mxu2  ;;  %v961_v60 = vpop.f32.mrf.mxu0 }
  0xb7   :  { %v1106_v18 = vpop.f32.mrf.mxu3  ;;  %v1058_v48 = vadd.f32 %v1057_v1, %v1009_v55  ;;  %v1010_v32 = vpop.f32.mrf.mxu1  ;;  %v536_v55 = vadd.f32 %v535_v40, %v436_v9  ;;  %v541_v1 = vadd.f32 %v540_v42, %v440_v46  ;;  %v69_v40 = vld [vmem:[%s12751_s0 + $0x1a0] sm:$0xff] }
  0xb8   :  { %v7651_v17 = vadd.f32 %v1010_v32, %v961_v60  ;;  %v256_v60 = vmul.f32 2.0, %v64_v30  ;;  %v631_v30 = vpack.c.bf16 %v6082_v41, %v6076_v38  ;;  %v458_v41 = vmul.f32 %v7410_v37, %v7410_v37  ;;  %v82_v37 = vld [vmem:[%s12751_s0 + $0x208] sm:$0xff] }
  0xb9   :  { %v7658_v33 = vadd.f32 %v1106_v18, %v1058_v48  ;;  %537 = vadd.xlane.f32.xlu2 %v536_v55  ;;  %v542_v18 = vadd.f32 %v541_v1, %v441_v24  ;;  %v446_v48 = vmul.f32 %v7344_v27, %v7344_v27  ;;  %v70_v27 = vld [vmem:[%s12751_s0 + $0x1a8] sm:$0xff]  ;;  %v75_v1 = vld [vmem:[%s12751_s0 + $0x1d0] sm:$0xff] }
  0xba   :  { %v6083_v35 = vadd.f32 -1.0, %v256_v60  ;;  %v262_v34 = vmul.f32 2.0, %v70_v27  ;;  %v267_v38 = vmul.f32 2.0, %v75_v1  ;;  %v463_v27 = vmul.f32 %v7470_v52, %v7470_v52 }
  0xbb   :  { %v543_v32 = vadd.f32 %v542_v18, %v442_v5  ;;  %v548_v16 = vadd.f32 %v547_v10, %v446_v48  ;;  %v76_v48 = vld [vmem:[%s12751_s0 + $0x1d8] sm:$0xff] }
  0xbc   :  { %v448_v42 = vmul.f32 %v6083_v35, %v6083_v35  ;;  %v632_v24 = vpack.c.bf16 %v6083_v35, %v6077_v44  ;;  %v6089_v5 = vadd.f32 -1.0, %v262_v34  ;;  %v268_v10 = vmul.f32 2.0, %v76_v48  ;;  %v88_v48 = vld [vmem:[%s12751_s0 + $0x238] sm:$0xff] }
  0xbd   :  { %544 = vadd.xlane.f32.xlu0 %v543_v32  ;;  %v464_v34 = vmul.f32 %v7474_v58, %v7474_v58 }
  0xbe   :  { %v7663_v23 = vpop.f32.mrf.mxu2  ;;  %v964_v45 = vpop.f32.mrf.mxu0  ;;  %v454_v44 = vmul.f32 %v6089_v5, %v6089_v5  ;;  %v6095_v35 = vadd.f32 -1.0, %v268_v10 }
  0xbf   :  { %v7665_v4 = vpop.f32.mrf.mxu3  ;;  %v1013_v61 = vpop.f32.mrf.mxu1 }
  0xc0   :  { %v1014_v50 = vadd.f32 %v1013_v61, %v964_v45  ;;  %v452_v61 = vmul.f32 %v7408_v36, %v7408_v36 }
  0xc1   :  { %1159 = vmatmul.bf16.gmra.mxu0 %v625_v49  ;;  %v549_v49 = vadd.f32 %v548_v16, %v447_v57 }
  0xc2   :  { %1208 = vmatmul.bf16.gmra.mxu1 %v626_v8  ;;  %v261_v8 = vmul.f32 2.0, %v69_v40 }
  0xc3   :  { %v550_v45 = vadd.f32 %v549_v49, %v448_v42  ;;  %v274_v49 = vmul.f32 2.0, %v82_v37 }
  0xc4   :  { %v6088_v25 = vadd.f32 -1.0, %v261_v8 }
  0xc5   :  { %551 = vadd.xlane.f32.xlu1 %v550_v45  ;;  %v568_v45 = vadd.f32 %v7394_v6, %v463_v27  ;;  %v469_v6 = vmul.f32 %v7472_v53, %v7472_v53  ;;  %v93_v53 = vld [vmem:[%s12751_s0 + $0x260] sm:$0xff]  ;;  %v476_v27 = vmul.f32 %v7534_v63, %v7534_v63 }
  0xc6   :  { %v1062_v11 = vpop.f32.mrf.mxu2  ;;  %v966_v47 = vpop.f32.mrf.mxu0  ;;  %v453_v36 = vmul.f32 %v6088_v25, %v6088_v25 }
  0xc7   :  { %v1111_v0 = vpop.f32.mrf.mxu3  ;;  %v1063_v43 = vadd.f32 %v1062_v11, %v1014_v50  ;;  %v1015_v9 = vpop.f32.mrf.mxu1  ;;  %v554_v50 = vadd.f32 %v7328_v14, %v451_v31  ;;  %v457_v14 = vmul.f32 %v7406_v26, %v7406_v26  ;;  %v81_v26 = vld [vmem:[%s12751_s0 + $0x200] sm:$0xff] }
  0xc8   :  { %v7681_v55 = vadd.f32 %v1015_v9, %v966_v47  ;;  %v273_v42 = vmul.f32 2.0, %v81_v26 }
  0xc9   :  { %v7688_v46 = vadd.f32 %v1111_v0, %v1063_v43  ;;  %v555_v60 = vadd.f32 %v554_v50, %v452_v61  ;;  %v6094_v0 = vadd.f32 -1.0, %v267_v38  ;;  %v561_v43 = vadd.f32 %v7330_v19, %v457_v14 }
  0xca   :  { %v460_v19 = vmul.f32 %v6095_v35, %v6095_v35  ;;  %v638_v50 = vpack.c.bf16 %v6095_v35, %v6089_v5  ;;  %v470_v14 = vmul.f32 %v7476_v59, %v7476_v59  ;;  %v280_v38 = vmul.f32 2.0, %v88_v48  ;;  %v94_v59 = vld [vmem:[%s12751_s0 + $0x268] sm:$0xff] }
  0xcb   :  { %v556_v32 = vadd.f32 %v555_v60, %v453_v36  ;;  %v459_v40 = vmul.f32 %v6094_v0, %v6094_v0  ;;  %v562_v57 = vadd.f32 %v561_v43, %v458_v41  ;;  %v637_v61 = vpack.c.bf16 %v6094_v0, %v6088_v25 }
  0xcc   :  { %v569_v36 = vadd.f32 %v568_v45, %v464_v34  ;;  %v575_v41 = vadd.f32 %v7396_v7, %v469_v6  ;;  %v6107_v0 = vadd.f32 -1.0, %v280_v38  ;;  %v475_v35 = vmul.f32 %v7530_v12, %v7530_v12 }
  0xcd   :  { %v557_v11 = vadd.f32 %v556_v32, %v454_v44  ;;  %v563_v31 = vadd.f32 %v562_v57, %v459_v40  ;;  %v285_v40 = vmul.f32 2.0, %v93_v53  ;;  %v286_v57 = vmul.f32 2.0, %v94_v59 }
  0xce   :  { %v969_v56 = vpop.f32.mrf.mxu0  ;;  %v472_v7 = vmul.f32 %v6107_v0, %v6107_v0 }
  0xcf   :  { %v1018_v54 = vpop.f32.mrf.mxu1  ;;  %558 = vadd.xlane.f32.xlu2 %v557_v11  ;;  %v564_v8 = vadd.f32 %v563_v31, %v460_v19  ;;  %v12944_v19 = vld [vmem:[#allocation2_spill] sm:$0xff]  ;;  %v6112_v34 = vadd.f32 -1.0, %v285_v40 }
  0xd0   :  { %v7696_v18 = vadd.f32 %v1018_v54, %v969_v56  ;;  %v6101_v56 = vadd.f32 -1.0, %v274_v49  ;;  %v582_v31 = vadd.f32 %v12944_v19, %v475_v35 }
  0xd1   :  { %1164 = vmatmul.bf16.gmra.mxu0 %v631_v30  ;;  %565 = vadd.xlane.f32.xlu0 %v564_v8  ;;  %v87_v30 = vld [vmem:[%s12751_s0 + $0x230] sm:$0xff]  ;;  %v477_v63 = vmul.f32 %v6112_v34, %v6112_v34 }
  0xd2   :  { %1213 = vmatmul.bf16.gmra.mxu1 %v632_v24  ;;  %v6100_v24 = vadd.f32 -1.0, %v273_v42  ;;  %v279_v25 = vmul.f32 2.0, %v87_v30  ;;  %v466_v5 = vmul.f32 %v6101_v56, %v6101_v56  ;;  %v644_v49 = vpack.c.bf16 %v6107_v0, %v6101_v56  ;;  %v99_v8 = vld [vmem:[%s12751_s0 + $0x290] sm:$0xff]  ;;  %v100_v30 = vld [vmem:[%s12751_s0 + $0x298] sm:$0xff] }
  0xd4   :  { %v465_v58 = vmul.f32 %v6100_v24, %v6100_v24  ;;  %v6106_v32 = vadd.f32 -1.0, %v279_v25 }
  0xd6   :  { %v971_v47 = vpop.f32.mrf.mxu0  ;;  %v570_v60 = vadd.f32 %v569_v36, %v465_v58  ;;  %v471_v43 = vmul.f32 %v6106_v32, %v6106_v32  ;;  %v643_v42 = vpack.c.bf16 %v6106_v32, %v6100_v24  ;;  %v481_v24 = vmul.f32 %v7532_v13, %v7532_v13 }
  0xd7   :  { %v1020_v9 = vpop.f32.mrf.mxu1  ;;  %v482_v58 = vmul.f32 %v7536_v62, %v7536_v62  ;;  %v292_v36 = vmul.f32 2.0, %v100_v30  ;;  %v106_v62 = vld [vmem:[%s12751_s0 + $0x2c8] sm:$0xff] }
  0xd8   :  { %v7709_v16 = vadd.f32 %v1020_v9, %v971_v47  ;;  %v571_v44 = vadd.f32 %v570_v60, %v466_v5  ;;  %v576_v47 = vadd.f32 %v575_v41, %v470_v14  ;;  %v12945_v5 = vld [vmem:[#allocation3_spill] sm:$0xff]  ;;  %v105_v14 = vld [vmem:[%s12751_s0 + $0x2c0] sm:$0xff]  ;;  %v298_v59 = vmul.f32 2.0, %v106_v62 }
  0xd9   :  { %v589_v60 = vadd.f32 %v12945_v5, %v481_v24  ;;  %v297_v0 = vmul.f32 2.0, %v105_v14 }
  0xda   :  { %572 = vadd.xlane.f32.xlu1 %v571_v44  ;;  %v577_v26 = vadd.f32 %v576_v47, %v471_v43  ;;  %v6119_v44 = vadd.f32 -1.0, %v292_v36  ;;  %v488_v47 = vmul.f32 %v7570_v20, %v7570_v20  ;;  %v6125_v19 = vadd.f32 -1.0, %v298_v59  ;;  %v112_v20 = vld [vmem:[%s12751_s0 + $0x2f8] sm:$0xff] }
  0xdb   :  { %v590_v41 = vadd.f32 %v589_v60, %v482_v58 }
  0xdc   :  { %v578_v37 = vadd.f32 %v577_v26, %v472_v7  ;;  %v484_v53 = vmul.f32 %v6119_v44, %v6119_v44  ;;  %v6124_v7 = vadd.f32 -1.0, %v297_v0 }
  0xde   :  { %v974_v1 = vpop.f32.mrf.mxu0  ;;  %579 = vadd.xlane.f32.xlu2 %v578_v37  ;;  %v111_v37 = vld [vmem:[%s12751_s0 + $0x2f0] sm:$0xff] }
  0xdf   :  { %v1023_v52 = vpop.f32.mrf.mxu1 }
  0xe0   :  { %v7722_v54 = vadd.f32 %v1023_v52, %v974_v1  ;;  %v583_v1 = vadd.f32 %v582_v31, %v476_v27  ;;  %v291_v52 = vmul.f32 2.0, %v99_v8  ;;  %v489_v31 = vmul.f32 %v6124_v7, %v6124_v7 }
  0xe1   :  { %1169 = vmatmul.bf16.gmra.mxu0 %v637_v61  ;;  %v6113_v61 = vadd.f32 -1.0, %v286_v57  ;;  %v303_v8 = vmul.f32 2.0, %v111_v37 }
  0xe2   :  { %1218 = vmatmul.bf16.gmra.mxu1 %v638_v50  ;;  %v584_v48 = vadd.f32 %v583_v1, %v477_v63  ;;  %v6118_v25 = vadd.f32 -1.0, %v291_v52 }
  0xe3   :  { %v478_v56 = vmul.f32 %v6113_v61, %v6113_v61  ;;  %v650_v57 = vpack.c.bf16 %v6119_v44, %v6113_v61  ;;  %v304_v61 = vmul.f32 2.0, %v112_v20  ;;  %v6130_v63 = vadd.f32 -1.0, %v303_v8 }
  0xe4   :  { %v483_v32 = vmul.f32 %v6118_v25, %v6118_v25  ;;  %v649_v40 = vpack.c.bf16 %v6118_v25, %v6112_v34  ;;  %v490_v34 = vmul.f32 %v6125_v19, %v6125_v19 }
  0xe5   :  { %v585_v6 = vadd.f32 %v584_v48, %v478_v56  ;;  %v6131_v56 = vadd.f32 -1.0, %v304_v61  ;;  %v495_v48 = vmul.f32 %v6130_v63, %v6130_v63  ;;  %v655_v5 = vpack.c.bf16 %v6130_v63, %v6124_v7 }
  0xe6   :  { %v976_v10 = vpop.f32.mrf.mxu0  ;;  %v591_v43 = vadd.f32 %v590_v41, %v483_v32  ;;  %v7790_v41 = vpop.f32.mrf.mxu3 }
  0xe7   :  { %v1025_v11 = vpop.f32.mrf.mxu1  ;;  %586 = vadd.xlane.f32.xlu0 %v585_v6  ;;  %v496_v36 = vmul.f32 %v6131_v56, %v6131_v56  ;;  %v656_v60 = vpack.c.bf16 %v6131_v56, %v6125_v19 }
  0xe8   :  { %v7735_v9 = vadd.f32 %v1025_v11, %v976_v10  ;;  %v487_v11 = vmul.f32 %v7566_v28, %v7566_v28  ;;  %v592_v35 = vadd.f32 %v591_v43, %v484_v53  ;;  %v1055_v43 = vadd.f32 %v7633_v22, %v7621_v51 }
  0xea   :  { %593 = vadd.xlane.f32.xlu1 %v592_v35  ;;  %v596_v26 = vadd.f32 %v7526_v2, %v487_v11  ;;  %v493_v2 = vmul.f32 %v7568_v29, %v7568_v29  ;;  %v1104_v7 = vadd.f32 %v7635_v15, %v1055_v43  ;;  %v1060_v15 = vadd.f32 %v7663_v23, %v7651_v17 }
  0xec   :  { %v603_v1 = vadd.f32 %v7528_v3, %v493_v2  ;;  %v1064_v3 = vpop.f32.mrf.mxu2 }
  0xee   :  { %v979_v45 = vpop.f32.mrf.mxu0  ;;  %v7797_v35 = vpop.f32.mrf.mxu3 }
  0xef   :  { %v1028_v12 = vpop.f32.mrf.mxu1 }
  0xf0   :  { %v7748_v50 = vadd.f32 %v1028_v12, %v979_v45  ;;  %v494_v12 = vmul.f32 %v7572_v21, %v7572_v21 }
  0xf1   :  { %1174 = vmatmul.bf16.gmra.mxu0 %v643_v42  ;;  %v597_v42 = vadd.f32 %v596_v26, %v488_v47 }
  0xf2   :  { %1223 = vmatmul.bf16.gmra.mxu1 %v644_v49  ;;  %v604_v58 = vadd.f32 %v603_v1, %v494_v12 }
  0xf3   :  { %v598_v45 = vadd.f32 %v597_v42, %v489_v31 }
  0xf4   :  { %v605_v6 = vadd.f32 %v604_v58, %v495_v48  ;;  %v7792_v62 = vpop.f32.mrf.mxu2 }
  0xf5   :  { %v599_v30 = vadd.f32 %v598_v45, %v490_v34 }
  0xf6   :  { %v981_v38 = vpop.f32.mrf.mxu0  ;;  %v606_v25 = vadd.f32 %v605_v6, %v496_v36 }
  0xf7   :  { %v1030_v13 = vpop.f32.mrf.mxu1  ;;  %600 = vadd.xlane.f32.xlu2 %v599_v30 }
  0xf8   :  { %v7761_v10 = vadd.f32 %v1030_v13, %v981_v38  ;;  %607 = vadd.xlane.f32.xlu0 %v606_v25 }
  0xfc   :  { %v7800_v37 = vpop.f32.mrf.mxu2 }
  0xfe   :  { %v984_v27 = vpop.f32.mrf.mxu0 }
  0xff   :  { %v1033_v28 = vpop.f32.mrf.mxu1  ;;  %v503_v59 = vpop.xlane.xlu0 %502 }
 0x100   :  { %v7774_v49 = vadd.f32 %v1033_v28, %v984_v27 }
 0x101   :  { %1179 = vmatmul.bf16.gmra.mxu0 %v649_v40 }
 0x102   :  { %1228 = vmatmul.bf16.gmra.mxu1 %v650_v57 }
 0x104   :  { %v7807_v45 = vpop.f32.mrf.mxu2 }
 0x106   :  { %v986_v24 = vpop.f32.mrf.mxu0 }
 0x107   :  { %v1035_v52 = vpop.f32.mrf.mxu1 }
 0x108   :  { %v7784_v29 = vadd.f32 %v1035_v52, %v986_v24  ;;  %v1109_v52 = vadd.f32 %v7665_v4, %v1060_v15 }
 0x10b   :  { %v510_v42 = vpop.xlane.xlu0 %509 }
 0x10c   :  { %v7812_v17 = vpop.f32.mrf.mxu2 }
 0x10e   :  { %v989_v21 = vpop.f32.mrf.mxu0  ;;  %v517_v63 = vpop.xlane.xlu1 %516 }
 0x10f   :  { %v1038_v14 = vpop.f32.mrf.mxu1 }
 0x110   :  { %v7786_v38 = vadd.f32 %v1038_v14, %v989_v21 }
 0x111   :  { %1184 = vmatmul.bf16.gmra.mxu0 %v655_v5 }
 0x112   :  { %1233 = vmatmul.bf16.gmra.mxu1 %v656_v60 }
 0x116   :  { %v991_v13 = vpop.f32.mrf.mxu0 }
 0x117   :  { %v1040_v44 = vpop.f32.mrf.mxu1 }
 0x118   :  { %v7788_v32 = vadd.f32 %v1040_v44, %v991_v13 }
 0x11a   :  { %v524_v21 = vpop.xlane.xlu1 %523 }
 0x11e   :  { %v1150_v11 = vpop.f32.mrf.mxu0 }
 0x11f   :  { %v1199_v0 = vpop.f32.mrf.mxu1  ;;  %v1151_v53 = vadd.f32 %v1150_v11, %v7628_v39  ;;  %v7802_v39 = vpop.f32.mrf.mxu3 }
 0x121   :  { %v1200_v47 = vadd.f32 %v1199_v0, %v1151_v53 }
 0x123   :  { %v1239_v26 = vmul.f32 %v1200_v47, %v1200_v47  ;;  %v1065_v47 = vadd.f32 %v1064_v3, %v7681_v55 }
 0x125   :  { %v1255_v28 = vadd.f32 768.0, %v1239_v26  ;;  %v531_v26 = vpop.xlane.xlu2 %530 }
 0x126   :  { %v1152_v40 = vpop.f32.mrf.mxu0 }
 0x127   :  { %v1201_v57 = vpop.f32.mrf.mxu1  ;;  %v1153_v27 = vadd.f32 %v1152_v40, %v1104_v7  ;;  %v1271_v51 = vsub.f32 %v1255_v28, %v503_v59  ;;  %v7810_v36 = vpop.f32.mrf.mxu3 }
 0x128   :  { %v7818_v40 = vpop.f32.mrf.mxu2 }
 0x129   :  { %v1202_v19 = vadd.f32 %v1201_v57, %v1153_v27  ;;  %v1287_v12 = vmul.f32 1.695421e-06, %v1271_v51 }
 0x12b   :  { %v1240_v31 = vmul.f32 %v1202_v19, %v1202_v19  ;;  %v1114_v19 = vadd.f32 %v7790_v41, %v1065_v47 }
 0x12d   :  { %v1256_v20 = vadd.f32 768.0, %v1240_v31 }
 0x12e   :  { %v1155_v22 = vpop.f32.mrf.mxu0 }
 0x12f   :  { %v1204_v2 = vpop.f32.mrf.mxu1  ;;  %v1156_v8 = vadd.f32 %v1155_v22, %v7658_v33  ;;  %v1272_v34 = vsub.f32 %v1256_v20, %v510_v42  ;;  %v7815_v0 = vpop.f32.mrf.mxu3 }
 0x131   :  { %v1205_v61 = vadd.f32 %v1204_v2, %v1156_v8  ;;  %v1288_v30 = vmul.f32 1.695421e-06, %v1272_v34  ;;  %v538_v2 = vpop.xlane.xlu2 %537 }
 0x133   :  { %v1241_v1 = vmul.f32 %v1205_v61, %v1205_v61  ;;  %v1575_v24 = vadd.f32 %v1288_v30, %v1287_v12  ;;  %v7826_v61 = vpop.f32.mrf.mxu2 }
 0x135   :  { %v1257_v56 = vadd.f32 768.0, %v1241_v1 }
 0x136   :  { %v1157_v48 = vpop.f32.mrf.mxu0 }
 0x137   :  { %v1206_v58 = vpop.f32.mrf.mxu1  ;;  %v1158_v33 = vadd.f32 %v1157_v48, %v1109_v52  ;;  %v1273_v6 = vsub.f32 %v1257_v56, %v517_v63  ;;  %v7823_v51 = vpop.f32.mrf.mxu3 }
 0x139   :  { %v1207_v25 = vadd.f32 %v1206_v58, %v1158_v33  ;;  %v1289_v5 = vmul.f32 1.695421e-06, %v1273_v6  ;;  %v545_v33 = vpop.xlane.xlu0 %544 }
 0x13b   :  { %v1242_v23 = vmul.f32 %v1207_v25, %v1207_v25  ;;  %v1576_v60 = vadd.f32 %v1575_v24, %v1289_v5  ;;  %v1070_v24 = vadd.f32 %v7800_v37, %v7709_v16  ;;  %v1073_v16 = vadd.f32 %v7807_v45, %v7722_v54  ;;  %v7837_v37 = vpop.f32.mrf.mxu2 }
 0x13d   :  { %v1258_v14 = vadd.f32 768.0, %v1242_v23  ;;  %v1122_v47 = vadd.f32 %v7810_v36, %v1073_v16  ;;  %v1075_v36 = vadd.f32 %v7812_v17, %v7735_v9 }
 0x13e   :  { %v1160_v13 = vpop.f32.mrf.mxu0 }
 0x13f   :  { %v1209_v44 = vpop.f32.mrf.mxu1  ;;  %v1274_v11 = vsub.f32 %v1258_v14, %v524_v21  ;;  %v1161_v4 = vadd.f32 %v1160_v13, %v7688_v46  ;;  %v1068_v46 = vadd.f32 %v7792_v62, %v7696_v18  ;;  %v1303_v18 = vmul.f32 2.0, %v1287_v12  ;;  %v7830_v48 = vpop.f32.mrf.mxu3 }
 0x140   :  { %v1304_v21 = vmul.f32 2.0, %v1288_v30  ;;  %v552_v30 = vpop.xlane.xlu1 %551  ;;  %v1124_v9 = vadd.f32 %v7815_v0, %v1075_v36 }
 0x141   :  { %v1290_v53 = vmul.f32 1.695421e-06, %v1274_v11  ;;  %v1210_v43 = vadd.f32 %v1209_v44, %v1161_v4  ;;  %v1117_v8 = vadd.f32 %v7797_v35, %v1068_v46  ;;  %v1119_v35 = vadd.f32 %v7802_v39, %v1070_v24 }
 0x142   :  { %v7833_v6 = vadd.f32 -1.0, %v1303_v18  ;;  %v7841_v11 = vadd.f32 -1.0, %v1304_v21  ;;  %v1305_v4 = vmul.f32 2.0, %v1289_v5 }
 0x143   :  { %v1577_v59 = vadd.f32 %v1576_v60, %v1290_v53  ;;  %v1243_v7 = vmul.f32 %v1210_v43, %v1210_v43 }
 0x144   :  { %v1335_v13 = vmul.f32 %v7833_v6, %v7833_v6 }
 0x145   :  { %v1259_v57 = vadd.f32 768.0, %v1243_v7 }
 0x146   :  { %v1162_v27 = vpop.f32.mrf.mxu0  ;;  %v1351_v7 = vsub.f32 1.0, %v1335_v13 }
 0x147   :  { %v1211_v28 = vpop.f32.mrf.mxu1  ;;  %v1275_v31 = vsub.f32 %v1259_v57, %v531_v26  ;;  %v1163_v42 = vadd.f32 %v1162_v27, %v1114_v19  ;;  %v7844_v45 = vpop.f32.mrf.mxu3  ;;  %v1336_v27 = vmul.f32 %v7841_v11, %v7841_v11  ;;  %v7848_v19 = vadd.f32 -1.0, %v1305_v4 }
 0x148   :  { %v7850_v5 = vmax.f32 %v1351_v7, 0.0  ;;  %v566_v7 = vpop.xlane.xlu0 %565 }
 0x149   :  { %v1291_v20 = vmul.f32 1.695421e-06, %v1275_v31  ;;  %v1212_v22 = vadd.f32 %v1211_v28, %v1163_v42  ;;  %v1306_v31 = vmul.f32 2.0, %v1290_v53  ;;  %v559_v53 = vpop.xlane.xlu2 %558 }
 0x14a   :  { %6631 = vrsqrt.f32 %v7850_v5  ;;  %vm1390_vm0 = vcmp.eq.f32.partialorder %v7850_v5, inf  ;;  %vm1392_vm1 = vcmp.eq.f32.partialorder %v7850_v5, 0.0 }
 0x14b   :  { %v1578_v55 = vadd.f32 %v1577_v59, %v1291_v20  ;;  %v1244_v3 = vmul.f32 %v1212_v22, %v1212_v22  ;;  %v7854_v22 = vpop.f32.mrf.mxu2 }
 0x14d   :  { %v1260_v63 = vadd.f32 768.0, %v1244_v3 }
 0x14e   :  { %v1165_v34 = vpop.f32.mrf.mxu0 }
 0x14f   :  { %v1214_v15 = vpop.f32.mrf.mxu1  ;;  %v1166_v41 = vadd.f32 %v1165_v34, %v1117_v8  ;;  %v1276_v1 = vsub.f32 %v1260_v63, %v538_v2  ;;  %v1337_v2 = vmul.f32 %v7848_v19, %v7848_v19  ;;  %v7858_v8 = vadd.f32 -1.0, %v1306_v31 }
 0x150   :  { %v1080_v31 = vadd.f32 %v7826_v61, %v7761_v10 }
 0x151   :  { %v1215_v62 = vadd.f32 %v1214_v15, %v1166_v41  ;;  %v1292_v52 = vmul.f32 1.695421e-06, %v1276_v1  ;;  %v1307_v15 = vmul.f32 2.0, %v1291_v20  ;;  %v1353_v18 = vsub.f32 1.0, %v1337_v2  ;;  %v7868_v20 = vpop.f32.mrf.mxu3 }
 0x153   :  { %v1245_v56 = vmul.f32 %v1215_v62, %v1215_v62  ;;  %v1579_v58 = vadd.f32 %v1578_v55, %v1292_v52  ;;  %v1352_v55 = vsub.f32 1.0, %v1336_v27  ;;  %v1338_v62 = vmul.f32 %v7858_v8, %v7858_v8  ;;  %v1087_v13 = vpop.f32.mrf.mxu2 }
 0x154   :  { %v7875_v21 = vmax.f32 %v1353_v18, 0.0 }
 0x155   :  { %v1261_v25 = vadd.f32 768.0, %v1245_v56  ;;  %v7862_v17 = vmax.f32 %v1352_v55, 0.0 }
 0x156   :  { %v1167_v23 = vpop.f32.mrf.mxu0  ;;  %vm1414_vm4 = vcmp.eq.f32.partialorder %v7875_v21, inf  ;;  %vm1416_vm5 = vcmp.eq.f32.partialorder %v7875_v21, 0.0 }
 0x157   :  { %v1216_v60 = vpop.f32.mrf.mxu1  ;;  %v1168_v14 = vadd.f32 %v1167_v23, %v1119_v35  ;;  %v1277_v12 = vsub.f32 %v1261_v25, %v545_v33  ;;  %v7870_v33 = vadd.f32 -1.0, %v1307_v15  ;;  %v1308_v35 = vmul.f32 2.0, %v1292_v52 }
 0x158   :  { %6633 = vrsqrt.f32 %v7862_v17  ;;  %vm1402_vm2 = vcmp.eq.f32.partialorder %v7862_v17, inf  ;;  %vm1404_vm3 = vcmp.eq.f32.partialorder %v7862_v17, 0.0 }
 0x159   :  { %v1217_v44 = vadd.f32 %v1216_v60, %v1168_v14  ;;  %v1293_v39 = vmul.f32 1.695421e-06, %v1277_v12  ;;  %v7873_v60 = vpop.eup %6631  ;;  %v1354_v14 = vsub.f32 1.0, %v1338_v62  ;;  %6635 = vrsqrt.f32 %v7875_v21 }
 0x15b   :  { %v1246_v43 = vmul.f32 %v1217_v44, %v1217_v44  ;;  %v1580_v59 = vadd.f32 %v1579_v58, %v1293_v39  ;;  %v1078_v58 = vadd.f32 %v7818_v40, %v7748_v50  ;;  %v1339_v50 = vmul.f32 %v7870_v33, %v7870_v33 }
 0x15c   :  { %v7880_v40 = vadd.f32 -1.0, %v1308_v35  ;;  %v1309_v44 = vmul.f32 2.0, %v1293_v39 }
 0x15d   :  { %v1262_v26 = vadd.f32 768.0, %v1246_v43  ;;  %v1127_v12 = vadd.f32 %v7823_v51, %v1078_v58  ;;  %v1089_v58 = vpop.f32.mrf.mxu2 }
 0x15e   :  { %v1170_v57 = vpop.f32.mrf.mxu0  ;;  %v7887_v51 = vpop.eup %6633  ;;  %v7891_v39 = vadd.f32 -1.0, %v1309_v44 }
 0x15f   :  { %v1219_v54 = vpop.f32.mrf.mxu1  ;;  %v1171_v28 = vadd.f32 %v1170_v57, %v1122_v47  ;;  %v1278_v42 = vsub.f32 %v1262_v26, %v552_v30  ;;  %v1384_v47 = vmul.f32 %v7873_v60, %v7850_v5  ;;  %v7885_v26 = vmax.f32 %v1354_v14, 0.0 }
 0x160   :  { %v1355_v57 = vsub.f32 1.0, %v1339_v50  ;;  %v1396_v2 = vmul.f32 %v7887_v51, %v7862_v17  ;;  %v1341_v10 = vmul.f32 %v7891_v39, %v7891_v39 }
 0x161   :  { %v1220_v46 = vadd.f32 %v1219_v54, %v1171_v28  ;;  %v1294_v3 = vmul.f32 1.695421e-06, %v1278_v42  ;;  %v1340_v54 = vmul.f32 %v7880_v40, %v7880_v40  ;;  %v1083_v42 = vadd.f32 %v7837_v37, %v7774_v49 }
 0x162   :  { %v1385_v36 = vmul.f32 %v7873_v60, %v1384_v47  ;;  %6637 = vrsqrt.f32 %v7885_v26  ;;  %v7901_v15 = vmax.f32 %v1355_v57, 0.0  ;;  %v1397_v35 = vmul.f32 %v7887_v51, %v1396_v2 }
 0x163   :  { %v1247_v34 = vmul.f32 %v1220_v46, %v1220_v46  ;;  %v1581_v63 = vadd.f32 %v1580_v59, %v1294_v3  ;;  %v1136_v46 = vpop.f32.mrf.mxu3  ;;  %v1310_v49 = vmul.f32 2.0, %v1294_v3  ;;  %v1132_v18 = vadd.f32 %v7844_v45, %v1083_v42 }
 0x164   :  { %v1386_v62 = vmul.f32 0.5, %v1385_v36  ;;  %6639 = vrsqrt.f32 %v7901_v15  ;;  %v1357_v45 = vsub.f32 1.0, %v1341_v10  ;;  %vm1426_vm6 = vcmp.eq.f32.partialorder %v7885_v26, inf }
 0x165   :  { %v1263_v41 = vadd.f32 768.0, %v1247_v34  ;;  %vm1428_vm7 = vcmp.eq.f32.partialorder %v7885_v26, 0.0  ;;  %vm1438_vm8 = vcmp.eq.f32.partialorder %v7901_v15, inf  ;;  %vm1440_vm9 = vcmp.eq.f32.partialorder %v7901_v15, 0.0 }
 0x166   :  { %v1172_v1 = vpop.f32.mrf.mxu0 }
 0x167   :  { %v1221_v24 = vpop.f32.mrf.mxu1  ;;  %v1279_v56 = vsub.f32 %v1263_v41, %v559_v53  ;;  %v1173_v25 = vadd.f32 %v1172_v1, %v1124_v9  ;;  %v573_v41 = vpop.xlane.xlu1 %572  ;;  %v1129_v9 = vadd.f32 %v7830_v48, %v1080_v31 }
 0x168   :  { %v7903_v1 = vpop.eup %6635 }
 0x169   :  { %v1295_v23 = vmul.f32 1.695421e-06, %v1279_v56  ;;  %v1222_v0 = vadd.f32 %v1221_v24, %v1173_v25  ;;  %v1085_v56 = vadd.f32 %v7854_v22, %v7784_v29  ;;  %v1408_v14 = vmul.f32 %v7903_v1, %v7875_v21  ;;  %v7917_v48 = vpop.eup %6637 }
 0x16a   :  { %v1088_v22 = vadd.f32 %v1087_v13, %v7786_v38  ;;  %v7930_v38 = vmax.f32 %v1357_v45, 0.0 }
 0x16b   :  { %v1582_v16 = vadd.f32 %v1581_v63, %v1295_v23  ;;  %v1248_v52 = vmul.f32 %v1222_v0, %v1222_v0  ;;  %v1356_v63 = vsub.f32 1.0, %v1340_v54  ;;  %v1311_v25 = vmul.f32 2.0, %v1295_v23 }
 0x16c   :  { %v1090_v23 = vadd.f32 %v1089_v58, %v7788_v32  ;;  %v1409_v57 = vmul.f32 %v7903_v1, %v1408_v14  ;;  %v1420_v54 = vmul.f32 %v7917_v48, %v7885_v26  ;;  %v7938_v36 = vadd.f32 %v1136_v46, %v1088_v22  ;;  %v587_v22 = vpop.xlane.xlu0 %586 }
 0x16d   :  { %v1264_v59 = vadd.f32 768.0, %v1248_v52  ;;  %v7915_v3 = vmax.f32 %v1356_v63, 0.0  ;;  %v1387_v52 = vsub.f32 1.5, %v1386_v62  ;;  %vm1462_vm12 = vcmp.eq.f32.partialorder %v7930_v38, inf }
 0x16e   :  { %v1175_v4 = vpop.f32.mrf.mxu0  ;;  %vm1464_vm13 = vcmp.eq.f32.partialorder %v7930_v38, 0.0 }
 0x16f   :  { %v1224_v43 = vpop.f32.mrf.mxu1  ;;  %v1176_v30 = vadd.f32 %v1175_v4, %v1127_v12  ;;  %v1280_v28 = vsub.f32 %v1264_v59, %v566_v7  ;;  %v7919_v12 = vadd.f32 -1.0, %v1310_v49  ;;  %v1398_v4 = vmul.f32 0.5, %v1397_v35  ;;  %v1138_v7 = vpop.f32.mrf.mxu3 }
 0x170   :  { %6641 = vrsqrt.f32 %v7915_v3  ;;  %v7941_v63 = vadd.f32 %v1138_v7, %v1090_v23  ;;  %v1410_v49 = vmul.f32 0.5, %v1409_v57  ;;  %v1405_v7 = vand.u32 2147483648, %v7862_v17 }
 0x171   :  { %v1225_v27 = vadd.f32 %v1224_v43, %v1176_v30  ;;  %v1296_v34 = vmul.f32 1.695421e-06, %v1280_v28  ;;  %v7923_v43 = vadd.f32 -1.0, %v1311_v25  ;;  %v1134_v30 = vadd.f32 %v7868_v20, %v1085_v56  ;;  %v580_v28 = vpop.xlane.xlu2 %579  ;;  %v7936_v20 = vpop.eup %6639 }
 0x172   :  { %v1342_v32 = vmul.f32 %v7919_v12, %v7919_v12  ;;  %6643 = vrsqrt.f32 %v7930_v38  ;;  %v1432_v62 = vmul.f32 %v7936_v20, %v7901_v15  ;;  %vm1450_vm10 = vcmp.eq.f32.partialorder %v7915_v3, inf }
 0x173   :  { %v1249_v55 = vmul.f32 %v1225_v27, %v1225_v27  ;;  %v1583_v61 = vadd.f32 %v1582_v16, %v1296_v34  ;;  %v1312_v50 = vmul.f32 2.0, %v1296_v34  ;;  %vm1452_vm11 = vcmp.eq.f32.partialorder %v7915_v3, 0.0 }
 0x174   :  { %v1358_v46 = vsub.f32 1.0, %v1342_v32  ;;  %v1433_v57 = vmul.f32 %v7936_v20, %v1432_v62  ;;  %v1417_v62 = vand.u32 2147483648, %v7875_v21 }
 0x175   :  { %v1265_v53 = vadd.f32 768.0, %v1249_v55  ;;  %v7934_v13 = vadd.f32 -1.0, %v1312_v50  ;;  %v1388_v55 = vmul.f32 %v7873_v60, %v1387_v52 }
 0x176   :  { %v1177_v37 = vpop.f32.mrf.mxu0  ;;  %v7956_v58 = vpop.eup %6641  ;;  %v7963_v23 = vmax.f32 %v1358_v46, 0.0 }
 0x177   :  { %v1226_v24 = vpop.f32.mrf.mxu1  ;;  %v1281_v0 = vsub.f32 %v1265_v53, %v573_v41  ;;  %v1178_v16 = vadd.f32 %v1177_v37, %v1129_v9  ;;  %v1399_v53 = vsub.f32 1.5, %v1398_v4  ;;  %v1343_v41 = vmul.f32 %v7923_v43, %v7923_v43 }
 0x178   :  { %v1344_v60 = vmul.f32 %v7934_v13, %v7934_v13  ;;  %v1389_v9 = vmul.f32 %v1388_v55, %v7850_v5  ;;  %6645 = vrsqrt.f32 %v7963_v23  ;;  %vm1474_vm14 = vcmp.eq.f32.partialorder %v7963_v23, inf }
 0x179   :  { %v1297_v29 = vmul.f32 1.695421e-06, %v1281_v0  ;;  %v1227_v44 = vadd.f32 %v1226_v24, %v1178_v16  ;;  %v1400_v35 = vmul.f32 %v7887_v51, %v1399_v53  ;;  %v1359_v25 = vsub.f32 1.0, %v1343_v41 }
 0x17a   :  { %v1411_v16 = vsub.f32 1.5, %v1410_v49  ;;  %v1360_v52 = vsub.f32 1.0, %v1344_v60  ;;  %v1391_v51 = vsel %vm1390_vm0, %v7850_v5, %v1389_v9  ;;  %vm1476_vm15 = vcmp.eq.f32.partialorder %v7963_v23, 0.0 }
 0x17b   :  { %v1313_v47 = vmul.f32 2.0, %v1297_v29  ;;  %v1584_v59 = vadd.f32 %v1583_v61, %v1297_v29  ;;  %v1250_v27 = vmul.f32 %v1227_v44, %v1227_v44  ;;  %v1421_v61 = vmul.f32 %v7917_v48, %v1420_v54  ;;  %v7972_v54 = vpop.eup %6643 }
 0x17c   :  { %v1412_v55 = vmul.f32 %v7903_v1, %v1411_v16  ;;  %v7983_v53 = vmax.f32 %v1360_v52, 0.0  ;;  %v594_v16 = vpop.xlane.xlu1 %593 }
 0x17d   :  { %v1266_v2 = vadd.f32 768.0, %v1250_v27  ;;  %v7945_v10 = vadd.f32 -1.0, %v1313_v47  ;;  %v1422_v45 = vmul.f32 0.5, %v1421_v61  ;;  %v7974_v27 = vmax.f32 %v1359_v25, 0.0 }
 0x17e   :  { %v1180_v31 = vpop.f32.mrf.mxu0  ;;  %v1434_v61 = vmul.f32 0.5, %v1433_v57  ;;  %v1413_v25 = vmul.f32 %v1412_v55, %v7875_v21 }
 0x17f   :  { %v1229_v42 = vpop.f32.mrf.mxu1  ;;  %v1181_v34 = vadd.f32 %v1180_v31, %v1132_v18  ;;  %v1282_v37 = vsub.f32 %v1266_v2, %v580_v28  ;;  %v1393_v18 = vand.u32 2147483648, %v7850_v5  ;;  %v1345_v0 = vmul.f32 %v7945_v10, %v7945_v10 }
 0x180   :  { %v1423_v2 = vsub.f32 1.5, %v1422_v45  ;;  %6647 = vrsqrt.f32 %v7974_v27  ;;  %vm1486_vm0 = vcmp.eq.f32.partialorder %v7974_v27, inf }
 0x181   :  { %v1230_v24 = vadd.f32 %v1229_v42, %v1181_v34  ;;  %v1298_v56 = vmul.f32 1.695421e-06, %v1282_v37  ;;  %v1361_v28 = vsub.f32 1.0, %v1345_v0  ;;  %v1401_v42 = vmul.f32 %v1400_v35, %v7862_v17 }
 0x182   :  { %v1456_v37 = vmul.f32 %v7972_v54, %v7930_v38  ;;  %v7995_v9 = vsel %vm1392_vm1, %v1393_v18, %v1391_v51  ;;  %6649 = vrsqrt.f32 %v7983_v53  ;;  %v1435_v18 = vsub.f32 1.5, %v1434_v61 }
 0x183   :  { %v1251_v14 = vmul.f32 %v1230_v24, %v1230_v24  ;;  %v1314_v50 = vmul.f32 2.0, %v1298_v56  ;;  %v1585_v29 = vadd.f32 %v1584_v59, %v1298_v56  ;;  %v1444_v59 = vmul.f32 %v7956_v58, %v7915_v3 }
 0x184   :  { %v7991_v1 = vmax.f32 %v1361_v28, 0.0  ;;  %v1403_v5 = vsel %vm1402_vm2, %v7862_v17, %v1401_v42  ;;  %v1429_v51 = vand.u32 2147483648, %v7885_v26  ;;  %v1436_v42 = vmul.f32 %v7936_v20, %v1435_v18  ;;  %v601_v20 = vpop.xlane.xlu2 %600 }
 0x185   :  { %v1267_v44 = vadd.f32 768.0, %v1251_v14  ;;  %v7976_v32 = vadd.f32 -1.0, %v1314_v50  ;;  %vm1488_vm1 = vcmp.eq.f32.partialorder %v7974_v27, 0.0  ;;  %vm1498_vm2 = vcmp.eq.f32.partialorder %v7983_v53, inf }
 0x186   :  { %v1182_v4 = vpop.f32.mrf.mxu0  ;;  %6651 = vrsqrt.f32 %v7991_v1 }
 0x187   :  { %v1231_v47 = vpop.f32.mrf.mxu1  ;;  %v1183_v31 = vadd.f32 %v1182_v4, %v1134_v30  ;;  %v1283_v34 = vsub.f32 %v1267_v44, %v587_v22  ;;  %v1346_v41 = vmul.f32 %v7976_v32, %v7976_v32  ;;  %v1445_v30 = vmul.f32 %v7956_v58, %v1444_v59 }
 0x188   :  { %v1424_v44 = vmul.f32 %v7917_v48, %v1423_v2  ;;  %v1415_v48 = vsel %vm1414_vm4, %v7875_v21, %v1413_v25  ;;  %v1441_v25 = vand.u32 2147483648, %v7901_v15  ;;  %vm1510_vm4 = vcmp.eq.f32.partialorder %v7991_v1, inf }
 0x189   :  { %v1232_v49 = vadd.f32 %v1231_v47, %v1183_v31  ;;  %v1299_v46 = vmul.f32 1.695421e-06, %v1283_v34  ;;  %v1362_v60 = vsub.f32 1.0, %v1346_v41  ;;  %v1446_v4 = vmul.f32 0.5, %v1445_v30 }
 0x18a   :  { %v1457_v47 = vmul.f32 %v7972_v54, %v1456_v37  ;;  %v1425_v17 = vmul.f32 %v1424_v44, %v7885_v26 }
 0x18b   :  { %v1252_v24 = vmul.f32 %v1232_v49, %v1232_v49  ;;  %v1315_v56 = vmul.f32 2.0, %v1299_v46  ;;  %v1586_v35 = vadd.f32 %v1585_v29, %v1299_v46  ;;  %v8001_v0 = vmax.f32 %v1362_v60, 0.0  ;;  %v8009_v29 = vpop.eup %6645 }
 0x18c   :  { %v8018_v28 = vpop.eup %6647  ;;  %v1468_v55 = vmul.f32 %v8009_v29, %v7963_v23  ;;  %v1458_v49 = vmul.f32 0.5, %v1457_v47 }
 0x18d   :  { %v1268_v14 = vadd.f32 768.0, %v1252_v24  ;;  %v8006_v50 = vadd.f32 -1.0, %v1315_v56  ;;  %6653 = vrsqrt.f32 %v8001_v0  ;;  %v8031_v41 = vpop.eup %6649  ;;  %v1480_v30 = vmul.f32 %v8018_v28, %v7974_v27 }
 0x18e   :  { %v1185_v45 = vpop.f32.mrf.mxu0  ;;  %v8038_v24 = vpop.eup %6651  ;;  %v8042_v56 = vsel %vm1416_vm5, %v1417_v62, %v1415_v48  ;;  %v1427_v62 = vsel %vm1426_vm6, %v7885_v26, %v1425_v17  ;;  %v1453_v48 = vand.u32 2147483648, %v7915_v3  ;;  %vm1512_vm5 = vcmp.eq.f32.partialorder %v7991_v1, 0.0 }
 0x18f   :  { %v1186_v22 = vadd.f32 %v1185_v45, %v7938_v36  ;;  %v1234_v52 = vpop.f32.mrf.mxu1  ;;  %v1347_v57 = vmul.f32 %v8006_v50, %v8006_v50  ;;  %v1284_v59 = vsub.f32 %v1268_v14, %v594_v16  ;;  %v8022_v36 = vsel %vm1404_vm3, %v1405_v7, %v1403_v5 }
 0x190   :  { %v1447_v7 = vsub.f32 1.5, %v1446_v4  ;;  %v1437_v45 = vmul.f32 %v1436_v42, %v7901_v15  ;;  %v1469_v5 = vmul.f32 %v8009_v29, %v1468_v55  ;;  %v1459_v4 = vsub.f32 1.5, %v1458_v49 }
 0x191   :  { %v1235_v31 = vadd.f32 %v1234_v52, %v1186_v22  ;;  %v1363_v2 = vsub.f32 1.0, %v1347_v57  ;;  %v1300_v34 = vmul.f32 1.695421e-06, %v1284_v59  ;;  %v1481_v47 = vmul.f32 %v8018_v28, %v1480_v30 }
 0x192   :  { %v1448_v44 = vmul.f32 %v7956_v58, %v1447_v7  ;;  %v1504_v57 = vmul.f32 %v8038_v24, %v7991_v1  ;;  %v1470_v58 = vmul.f32 0.5, %v1469_v5  ;;  %vm1500_vm3 = vcmp.eq.f32.partialorder %v7983_v53, 0.0 }
 0x193   :  { %v1253_v61 = vmul.f32 %v1235_v31, %v1235_v31  ;;  %v8036_v37 = vmax.f32 %v1363_v2, 0.0  ;;  %v1316_v46 = vmul.f32 2.0, %v1300_v34  ;;  %v1587_v60 = vadd.f32 %v1586_v35, %v1300_v34  ;;  %v8052_v21 = vpop.eup %6653 }
 0x194   :  { %v1492_v35 = vmul.f32 %v8031_v41, %v7983_v53  ;;  %v1516_v34 = vmul.f32 %v8052_v21, %v8001_v0  ;;  %vm1522_vm6 = vcmp.eq.f32.partialorder %v8001_v0, inf }
 0x195   :  { %v1269_v14 = vadd.f32 768.0, %v1253_v61  ;;  %6655 = vrsqrt.f32 %v8036_v37  ;;  %v8059_v18 = vadd.f32 -1.0, %v1316_v46  ;;  %v1449_v46 = vmul.f32 %v1448_v44, %v7915_v3 }
 0x196   :  { %v1187_v16 = vpop.f32.mrf.mxu0  ;;  %v1493_v2 = vmul.f32 %v8031_v41, %v1492_v35  ;;  %v1471_v44 = vsub.f32 1.5, %v1470_v58 }
 0x197   :  { %v1285_v22 = vsub.f32 %v1269_v14, %v601_v20  ;;  %v1188_v52 = vadd.f32 %v1187_v16, %v7941_v63  ;;  %v1236_v59 = vpop.f32.mrf.mxu1  ;;  %v1348_v31 = vmul.f32 %v8059_v18, %v8059_v18  ;;  %v1439_v63 = vsel %vm1438_vm8, %v7901_v15, %v1437_v45 }
 0x198   :  { %v1460_v20 = vmul.f32 %v7972_v54, %v1459_v4  ;;  %v1482_v14 = vmul.f32 0.5, %v1481_v47  ;;  %v1505_v16 = vmul.f32 %v8038_v24, %v1504_v57  ;;  %v1465_v54 = vand.u32 2147483648, %v7930_v38 }
 0x199   :  { %v1301_v42 = vmul.f32 1.695421e-06, %v1285_v22  ;;  %v1237_v55 = vadd.f32 %v1236_v59, %v1188_v52  ;;  %v1364_v17 = vsub.f32 1.0, %v1348_v31  ;;  %v608_v52 = vpop.xlane.xlu0 %607  ;;  %v1494_v4 = vmul.f32 0.5, %v1493_v2 }
 0x19a   :  { %v1517_v47 = vmul.f32 %v8052_v21, %v1516_v34  ;;  %v8102_v26 = vsel %vm1440_vm9, %v1441_v25, %v1439_v63  ;;  %v1483_v31 = vsub.f32 1.5, %v1482_v14  ;;  %v1472_v2 = vmul.f32 %v8009_v29, %v1471_v44 }
 0x19b   :  { %v1317_v7 = vmul.f32 2.0, %v1301_v42  ;;  %v1588_v49 = vadd.f32 %v1587_v60, %v1301_v42  ;;  %v1254_v61 = vmul.f32 %v1237_v55, %v1237_v55  ;;  %v8076_v30 = vpop.eup %6655  ;;  %v8083_v5 = vmax.f32 %v1364_v17, 0.0 }
 0x19c   :  { %v1528_v45 = vmul.f32 %v8076_v30, %v8036_v37  ;;  %v8091_v60 = vsel %vm1428_vm7, %v1429_v51, %v1427_v62  ;;  %v1451_v51 = vsel %vm1450_vm10, %v7915_v3, %v1449_v46  ;;  %v1461_v62 = vmul.f32 %v1460_v20, %v7930_v38 }
 0x19d   :  { %v8085_v35 = vadd.f32 -1.0, %v1317_v7  ;;  %v1270_v22 = vadd.f32 768.0, %v1254_v61  ;;  %6657 = vrsqrt.f32 %v8083_v5  ;;  %v1506_v42 = vmul.f32 0.5, %v1505_v16 }
 0x19e   :  { %v1529_v55 = vmul.f32 %v8076_v30, %v1528_v45  ;;  %v1477_v15 = vand.u32 2147483648, %v7963_v23  ;;  %v8114_v63 = vsel %vm1452_vm11, %v1453_v48, %v1451_v51  ;;  %v1495_v34 = vsub.f32 1.5, %v1494_v4 }
 0x19f   :  { %v1349_v57 = vmul.f32 %v8085_v35, %v8085_v35  ;;  %v1286_v59 = vsub.f32 %v1270_v22, %v608_v52  ;;  %v1518_v17 = vmul.f32 0.5, %v1517_v47  ;;  %v1463_v61 = vsel %vm1462_vm12, %v7930_v38, %v1461_v62 }
 0x1a0   :  { %v1484_v14 = vmul.f32 %v8018_v28, %v1483_v31  ;;  %v1507_v3 = vsub.f32 1.5, %v1506_v42  ;;  %v1530_v48 = vmul.f32 0.5, %v1529_v55  ;;  %v1473_v16 = vmul.f32 %v1472_v2, %v7963_v23 }
 0x1a1   :  { %v1365_v58 = vsub.f32 1.0, %v1349_v57  ;;  %v1302_v25 = vmul.f32 1.695421e-06, %v1286_v59  ;;  %v1489_v44 = vand.u32 2147483648, %v7974_v27  ;;  %v1519_v4 = vsub.f32 1.5, %v1518_v17 }
 0x1a2   :  { %v8134_v28 = vsel %vm1464_vm13, %v1465_v54, %v1463_v61  ;;  %v1485_v62 = vmul.f32 %v1484_v14, %v7974_v27  ;;  %v1508_v59 = vmul.f32 %v8038_v24, %v1507_v3  ;;  %v1531_v31 = vsub.f32 1.5, %v1530_v48 }
 0x1a3   :  { %v8116_v7 = vmax.f32 %v1365_v58, 0.0  ;;  %v1318_v29 = vmul.f32 2.0, %v1302_v25  ;;  %v1589_v46 = vadd.f32 %v1588_v49, %v1302_v25  ;;  %v6658_v20 = vpop.eup %6657  ;;  %v1496_v49 = vmul.f32 %v8031_v41, %v1495_v34 }
 0x1a4   :  { %v1540_v45 = vmul.f32 %v6658_v20, %v8083_v5  ;;  %v1475_v41 = vsel %vm1474_vm14, %v7963_v23, %v1473_v16  ;;  %v1501_v2 = vand.u32 2147483648, %v7983_v53  ;;  %v1520_v25 = vmul.f32 %v8052_v21, %v1519_v4 }
 0x1a5   :  { %6659 = vrsqrt.f32 %v8116_v7  ;;  %v8127_v22 = vadd.f32 -1.0, %v1318_v29  ;;  %v1590_v52 = vrot.slane %v1589_v46, 4  ;;  %v1497_v58 = vmul.f32 %v1496_v49, %v7983_v53 }
 0x1a6   :  { %v1541_v47 = vmul.f32 %v6658_v20, %v1540_v45  ;;  %v1478_v29 = vsel %vm1476_vm15, %v1477_v15, %v1475_v41  ;;  %v1509_v14 = vmul.f32 %v1508_v59, %v7991_v1  ;;  %v1532_v3 = vmul.f32 %v8076_v30, %v1531_v31 }
 0x1a7   :  { %v1350_v57 = vmul.f32 %v8127_v22, %v8127_v22  ;;  %v1591_v51 = vadd.f32 %v1590_v52, %v1589_v46  ;;  %v1487_v46 = vsel %vm1486_vm0, %v7974_v27, %v1485_v62  ;;  %v1499_v16 = vsel %vm1498_vm2, %v7983_v53, %v1497_v58 }
 0x1a8   :  { %v1542_v42 = vmul.f32 0.5, %v1541_v47  ;;  %v1521_v23 = vmul.f32 %v1520_v25, %v8001_v0  ;;  %v1490_v45 = vsel %vm1488_vm1, %v1489_v44, %v1487_v46  ;;  %v1513_v30 = vand.u32 2147483648, %v7991_v1 }
 0x1a9   :  { %v1366_v38 = vsub.f32 1.0, %v1350_v57  ;;  %v1592_v54 = vrot.slane %v1591_v51, 2  ;;  %v1511_v52 = vsel %vm1510_vm4, %v7991_v1, %v1509_v14  ;;  %v1533_v49 = vmul.f32 %v1532_v3, %v8036_v37 }
 0x1aa   :  { %v1543_v34 = vsub.f32 1.5, %v1542_v42  ;;  %v1502_v57 = vsel %vm1500_vm3, %v1501_v2, %v1499_v16  ;;  %vm1524_vm7 = vcmp.eq.f32.partialorder %v8001_v0, 0.0  ;;  %v1525_v27 = vand.u32 2147483648, %v8001_v0 }
 0x1ab   :  { %v6660_v55 = vpop.eup %6659  ;;  %v8149_v17 = vmax.f32 %v1366_v38, 0.0  ;;  %v1593_v61 = vadd.f32 %v1592_v54, %v1591_v51  ;;  %v1523_v51 = vsel %vm1522_vm6, %v8001_v0, %v1521_v23  ;;  %vm1534_vm8 = vcmp.eq.f32.partialorder %v8036_v37, inf }
 0x1ac   :  { %v1552_v24 = vmul.f32 %v6660_v55, %v8116_v7  ;;  %v1544_v21 = vmul.f32 %v6658_v20, %v1543_v34  ;;  %v1537_v62 = vand.u32 2147483648, %v8036_v37  ;;  %v1514_v41 = vsel %vm1512_vm5, %v1513_v30, %v1511_v52 }
 0x1ad   :  { %6661 = vrsqrt.f32 %v8149_v17  ;;  %v1594_v15 = vrot.slane %v1593_v61, 1  ;;  %vm1536_vm9 = vcmp.eq.f32.partialorder %v8036_v37, 0.0  ;;  %vm1546_vm10 = vcmp.eq.f32.partialorder %v8083_v5, inf }
 0x1ae   :  { %v1553_v48 = vmul.f32 %v6660_v55, %v1552_v24  ;;  %v1545_v4 = vmul.f32 %v1544_v21, %v8083_v5  ;;  %v1535_v42 = vsel %vm1534_vm8, %v8036_v37, %v1533_v49  ;;  %v1526_v2 = vsel %vm1524_vm7, %v1525_v27, %v1523_v51 }
 0x1af   :  { %v1595_v47 = vadd.f32 %v1594_v15, %v1593_v61  ;;  %vm1548_vm11 = vcmp.eq.f32.partialorder %v8083_v5, 0.0  ;;  %v1549_v1 = vand.u32 2147483648, %v8083_v5  ;;  %vm1558_vm12 = vcmp.eq.f32.partialorder %v8116_v7, inf }
 0x1b0   :  { %v1554_v20 = vmul.f32 0.5, %v1553_v48  ;;  %v1547_v38 = vsel %vm1546_vm10, %v8083_v5, %v1545_v4  ;;  %v1538_v24 = vsel %vm1536_vm9, %v1537_v62, %v1535_v42  ;;  %vm1560_vm13 = vcmp.eq.f32.partialorder %v8116_v7, 0.0 }
 0x1b1   :  { %v1596_v59 = vmul.f32 0.0078125, %v1595_v47  ;;  %v1550_v61 = vsel %vm1548_vm11, %v1549_v1, %v1547_v38  ;;  %vm1570_vm14 = vcmp.eq.f32.partialorder %v8149_v17, inf  ;;  %vm1572_vm15 = vcmp.eq.f32.partialorder %v8149_v17, 0.0 }
 0x1b2   :  { %v1555_v44 = vsub.f32 1.5, %v1554_v20 }
 0x1b3   :  { %v6662_v31 = vpop.eup %6661  ;;  %v1597_v58 = vmul.f32 2.0, %v1596_v59 }
 0x1b4   :  { %v1556_v53 = vmul.f32 %v6660_v55, %v1555_v44  ;;  %v1564_v54 = vmul.f32 %v6662_v31, %v8149_v17  ;;  %v1561_v55 = vand.u32 2147483648, %v8116_v7 }
 0x1b5   :  { %v6340_v37 = vadd.f32 -1.0, %v1597_v58 }
 0x1b6   :  { %v1557_v25 = vmul.f32 %v1556_v53, %v8116_v7  ;;  %v1565_v34 = vmul.f32 %v6662_v31, %v1564_v54 }
 0x1b7   :  { %v1599_v3 = vmul.f32 %v6340_v37, %v6340_v37  ;;  %v8196_v21 = vmul.f32 %v6340_v37, %v7995_v9  ;;  %v8199_v5 = vmul.f32 %v6340_v37, %v8022_v36  ;;  %v8202_v48 = vmul.f32 %v6340_v37, %v8042_v56 }
 0x1b8   :  { %v1559_v46 = vsel %vm1558_vm12, %v8116_v7, %v1557_v25  ;;  %v1566_v14 = vmul.f32 0.5, %v1565_v34  ;;  %v8205_v16 = vmul.f32 %v6340_v37, %v8091_v60  ;;  %v8208_v23 = vmul.f32 %v6340_v37, %v8102_v26 }
 0x1b9   :  { %v1562_v0 = vsel %vm1560_vm13, %v1561_v55, %v1559_v46  ;;  %v1600_v7 = vsub.f32 1.0, %v1599_v3  ;;  %v8211_v30 = vmul.f32 %v6340_v37, %v8114_v63  ;;  %v8214_v9 = vmul.f32 %v6340_v37, %v8134_v28 }
 0x1ba   :  { %v1567_v15 = vsub.f32 1.5, %v1566_v14  ;;  %v8216_v20 = vmul.f32 %v6340_v37, %v1478_v29  ;;  %v8218_v36 = vmul.f32 %v6340_v37, %v1490_v45  ;;  %v8220_v56 = vmul.f32 %v6340_v37, %v1502_v57 }
 0x1bb   :  { %v8222_v52 = vmul.f32 %v6340_v37, %v1514_v41  ;;  %v1601_v49 = vmax.f32 %v1600_v7, 0.0  ;;  %v8224_v26 = vmul.f32 %v6340_v37, %v1526_v2  ;;  %v8226_v4 = vmul.f32 %v6340_v37, %v1538_v24 }
 0x1bc   :  { %v1568_v60 = vmul.f32 %v6662_v31, %v1567_v15  ;;  %v8228_v47 = vmul.f32 %v6340_v37, %v1550_v61  ;;  %v8230_v63 = vmul.f32 %v6340_v37, %v1562_v0  ;;  %v1573_v29 = vand.u32 2147483648, %v8149_v17 }
 0x1bd   :  { %6663 = vrsqrt.f32 %v1601_v49  ;;  %vm1609_vm0 = vcmp.eq.f32.partialorder %v1601_v49, inf  ;;  %v1612_v42 = vand.u32 2147483648, %v1601_v49  ;;  %vm1611_vm1 = vcmp.eq.f32.partialorder %v1601_v49, 0.0 }
 0x1be   :  { %v1569_v28 = vmul.f32 %v1568_v60, %v8149_v17 }
 0x1c0   :  { %v1571_v45 = vsel %vm1570_vm14, %v8149_v17, %v1569_v28 }
 0x1c1   :  { %v1574_v57 = vsel %vm1572_vm15, %v1573_v29, %v1571_v45 }
 0x1c2   :  { %v8237_v27 = vmul.f32 %v6340_v37, %v1574_v57 }
 0x1c3   :  { %v6664_v44 = vpop.eup %6663 }
 0x1c4   :  { %v1603_v51 = vmul.f32 %v6664_v44, %v1601_v49 }
 0x1c6   :  { %v1604_v62 = vmul.f32 %v6664_v44, %v1603_v51 }
 0x1c8   :  { %v1605_v59 = vmul.f32 0.5, %v1604_v62 }
 0x1ca   :  { %v1606_v31 = vsub.f32 1.5, %v1605_v59 }
 0x1cc   :  { %v1607_v41 = vmul.f32 %v6664_v44, %v1606_v31 }
 0x1ce   :  { %v1608_v53 = vmul.f32 %v1607_v41, %v1601_v49 }
 0x1d0   :  { %v1610_v38 = vsel %vm1609_vm0, %v1601_v49, %v1608_v53 }
 0x1d1   :  { %v1613_v54 = vsel %vm1611_vm1, %v1612_v42, %v1610_v38 }
 0x1d2   :  { %v1614_v58 = vmul.f32 %v7833_v6, %v1613_v54  ;;  %v1615_v2 = vmul.f32 %v7841_v11, %v1613_v54  ;;  %v1616_v17 = vmul.f32 %v7848_v19, %v1613_v54  ;;  %v1617_v1 = vmul.f32 %v7858_v8, %v1613_v54 }
 0x1d3   :  { %v1618_v25 = vmul.f32 %v7870_v33, %v1613_v54  ;;  %v1619_v55 = vmul.f32 %v7880_v40, %v1613_v54  ;;  %v1620_v34 = vmul.f32 %v7891_v39, %v1613_v54  ;;  %v1621_v37 = vmul.f32 %v7919_v12, %v1613_v54 }
 0x1d4   :  { %v1622_v24 = vmul.f32 %v7923_v43, %v1613_v54  ;;  %v1623_v61 = vmul.f32 %v7934_v13, %v1613_v54  ;;  %v1624_v6 = vmul.f32 %v7945_v10, %v1613_v54  ;;  %v8251_v11 = vmul.f32 %v7976_v32, %v1613_v54 }
 0x1d5   :  { %v8254_v19 = vmul.f32 %v8006_v50, %v1613_v54  ;;  %v8257_v8 = vmul.f32 %v8059_v18, %v1613_v54  ;;  %v8260_v33 = vmul.f32 %v8085_v35, %v1613_v54  ;;  %v8263_v40 = vmul.f32 %v8127_v22, %v1613_v54 }
 0x1d6   :  { %v1646_v39 = vsub.f32 %v1614_v58, %v8196_v21  ;;  %v1647_v12 = vsub.f32 %v1615_v2, %v8199_v5  ;;  %v1648_v43 = vsub.f32 %v1616_v17, %v8202_v48  ;;  %v1649_v13 = vsub.f32 %v1617_v1, %v8205_v16 }
 0x1d7   :  { %v1650_v10 = vsub.f32 %v1618_v25, %v8208_v23  ;;  %v1651_v32 = vsub.f32 %v1619_v55, %v8211_v30  ;;  %v1652_v50 = vsub.f32 %v1620_v34, %v8214_v9  ;;  %v1653_v18 = vsub.f32 %v1621_v37, %v8216_v20 }
 0x1d8   :  { %v1654_v35 = vsub.f32 %v1622_v24, %v8218_v36  ;;  %v1655_v22 = vsub.f32 %v1623_v61, %v8220_v56  ;;  %v1656_v46 = vsub.f32 %v1624_v6, %v8222_v52  ;;  %v1657_v0 = vsub.f32 %v8251_v11, %v8224_v26 }
 0x1d9   :  { %v1658_v14 = vsub.f32 %v8254_v19, %v8226_v4  ;;  %v1659_v3 = vsub.f32 %v8257_v8, %v8228_v47  ;;  %v1660_v21 = vsub.f32 %v8260_v33, %v8230_v63  ;;  %v1661_v5 = vsub.f32 %v8263_v40, %v8237_v27 }
 0x1da   :  { %v1662_v48 = vadd.f32 1.0, %v1646_v39  ;;  %v1663_v16 = vadd.f32 1.0, %v1647_v12  ;;  %v1664_v23 = vadd.f32 1.0, %v1648_v43  ;;  %v1667_v15 = vadd.f32 1.0, %v1651_v32 }
 0x1db   :  { %v1665_v20 = vadd.f32 1.0, %v1649_v13  ;;  %v1666_v36 = vadd.f32 1.0, %v1650_v10  ;;  %v1668_v45 = vadd.f32 1.0, %v1652_v50  ;;  %v1669_v59 = vadd.f32 1.0, %v1653_v18 }
 0x1dc   :  { %v8286_v7 = vmul.f32 0.5, %v1662_v48  ;;  %v8288_v30 = vmul.f32 0.5, %v1663_v16  ;;  %v8290_v9 = vmul.f32 0.5, %v1664_v23  ;;  %v8292_v56 = vmul.f32 0.5, %v1667_v15 }
 0x1dd   :  { %v8298_v26 = vmul.f32 0.5, %v1665_v20  ;;  %v8300_v4 = vmul.f32 0.5, %v1666_v36  ;;  %v1670_v53 = vadd.f32 1.0, %v1654_v35  ;;  %v8316_v38 = vmul.f32 0.5, %v1668_v45 }
 0x1de   :  { %v1966_v52 = vadd.f32 %v8288_v30, %v8286_v7  ;;  %v1696_v60 = vmul.f32 2.0, %v8290_v9  ;;  %v1695_v49 = vmul.f32 2.0, %v8288_v30  ;;  %v1694_v29 = vmul.f32 2.0, %v8286_v7 }
 0x1df   :  { %v1699_v51 = vmul.f32 2.0, %v8292_v56  ;;  %v1698_v41 = vmul.f32 2.0, %v8300_v4  ;;  %12946 = vst [vmem:[#allocation2_spill] sm:$0xff] %v8316_v38  ;;  %v1697_v1 = vmul.f32 2.0, %v8298_v26  ;;  %v1671_v25 = vadd.f32 1.0, %v1655_v22 }
 0x1e0   :  { %v1967_v47 = vadd.f32 %v1966_v52, %v8290_v9  ;;  %v8303_v28 = vadd.f32 -1.0, %v1696_v60  ;;  %v8307_v44 = vadd.f32 -1.0, %v1695_v49  ;;  %v8314_v42 = vadd.f32 -1.0, %v1694_v29 }
 0x1e1   :  { %v8321_v2 = vadd.f32 -1.0, %v1699_v51  ;;  %v8324_v55 = vmul.f32 0.5, %v1669_v59  ;;  %v8327_v37 = vadd.f32 -1.0, %v1698_v41  ;;  %v1672_v24 = vadd.f32 1.0, %v1656_v46 }
 0x1e2   :  { %v1968_v57 = vadd.f32 %v1967_v47, %v8298_v26  ;;  %v1728_v62 = vmul.f32 %v8303_v28, %v8303_v28  ;;  %v1727_v58 = vmul.f32 %v8307_v44, %v8307_v44  ;;  %v1726_v61 = vmul.f32 %v8314_v42, %v8314_v42 }
 0x1e3   :  { %12947 = vst [vmem:[#allocation3_spill] sm:$0xff] %v8327_v37  ;;  %v8331_v6 = vmul.f32 0.5, %v1670_v53  ;;  %v1731_v8 = vmul.f32 %v8321_v2, %v8321_v2  ;;  %v8338_v12 = vadd.f32 -1.0, %v1697_v1  ;;  %v1673_v43 = vadd.f32 1.0, %v1657_v0 }
 0x1e4   :  { %v1969_v31 = vadd.f32 %v1968_v57, %v8300_v4  ;;  %v1744_v17 = vsub.f32 1.0, %v1728_v62  ;;  %v1743_v19 = vsub.f32 1.0, %v1727_v58  ;;  %v8340_v13 = vmul.f32 0.5, %v1671_v25 }
 0x1e5   :  { %12948 = vst [vmem:[#allocation4_spill] sm:$0xff] %v8338_v12  ;;  %v1730_v32 = vmul.f32 %v8327_v37, %v8327_v37  ;;  %v1674_v50 = vadd.f32 1.0, %v1658_v14  ;;  %v1742_v18 = vsub.f32 1.0, %v1726_v61  ;;  %v8345_v35 = vmul.f32 0.5, %v1672_v24 }
 0x1e6   :  { %v1970_v54 = vadd.f32 %v1969_v31, %v8292_v56  ;;  %v8336_v39 = vmax.f32 %v1744_v17, 0.0  ;;  %12949 = vst [vmem:[#allocation5_spill] sm:$0xff] %v8340_v13  ;;  %v8348_v46 = vmax.f32 %v1743_v19, 0.0  ;;  %v1747_v48 = vsub.f32 1.0, %v1731_v8 }
 0x1e7   :  { %12950 = vst [vmem:[#allocation6_spill] sm:$0xff] %v8345_v35  ;;  %v1729_v0 = vmul.f32 %v8338_v12, %v8338_v12  ;;  %v1675_v16 = vadd.f32 1.0, %v1659_v3  ;;  %v8353_v23 = vmul.f32 0.5, %v1673_v43  ;;  %v1746_v20 = vsub.f32 1.0, %v1730_v32 }
 0x1e8   :  { %v1971_v34 = vadd.f32 %v1970_v54, %v8316_v38  ;;  %6665 = vrsqrt.f32 %v8336_v39  ;;  %v1676_v14 = vadd.f32 1.0, %v1660_v21  ;;  %v8359_v36 = vmax.f32 %v1742_v18, 0.0 }
 0x1e9   :  { %12951 = vst [vmem:[#allocation7_spill] sm:$0xff] %v8353_v23  ;;  %v8361_v52 = vmul.f32 0.5, %v1674_v50  ;;  %6667 = vrsqrt.f32 %v8348_v46  ;;  %v8365_v49 = vmax.f32 %v1747_v48, 0.0  ;;  %v1745_v3 = vsub.f32 1.0, %v1729_v0 }
 0x1ea   :  { %v1972_v11 = vadd.f32 %v1971_v34, %v8324_v55  ;;  %v1702_v47 = vmul.f32 2.0, %v8331_v6  ;;  %v1677_v29 = vadd.f32 1.0, %v1661_v5  ;;  %v8371_v45 = vmul.f32 0.5, %v1675_v16 }
 0x1eb   :  { %12952 = vst [vmem:[#allocation8_spill] sm:$0xff] %v8361_v52  ;;  %v8374_v33 = vmax.f32 %v1746_v20, 0.0  ;;  %6669 = vrsqrt.f32 %v8359_v36  ;;  %v8377_v57 = vmul.f32 0.5, %v1676_v14  ;;  %v8381_v62 = vmax.f32 %v1745_v3, 0.0 }
 0x1ec   :  { %v1973_v10 = vadd.f32 %v1972_v11, %v8331_v6  ;;  %12953 = vst [vmem:[#allocation9_spill] sm:$0xff] %v8371_v45  ;;  %6671 = vrsqrt.f32 %v8365_v49  ;;  %v8383_v59 = vadd.f32 -1.0, %v1702_v47  ;;  %v8387_v40 = vmul.f32 0.5, %v1677_v29 }
 0x1ed   :  { %12954 = vst [vmem:[#allocation10_spill] sm:$0xff] %v8377_v57  ;;  %6673 = vrsqrt.f32 %v8374_v33  ;;  %v1796_v3 = vand.u32 2147483648, %v8348_v46  ;;  %vm1805_vm2 = vcmp.eq.f32.partialorder %v8336_v39, inf  ;;  %vm1793_vm3 = vcmp.eq.f32.partialorder %v8348_v46, inf }
 0x1ee   :  { %v1974_v22 = vadd.f32 %v1973_v10, %v8340_v13  ;;  %v6666_v21 = vpop.eup %6665  ;;  %12955 = vst [vmem:[#allocation11_spill] sm:$0xff] %v8383_v59  ;;  %6675 = vrsqrt.f32 %v8381_v62  ;;  %v1734_v58 = vmul.f32 %v8383_v59, %v8383_v59  ;;  %vm1781_vm4 = vcmp.eq.f32.partialorder %v8359_v36, inf }
 0x1ef   :  { %v8385_v27 = vpop.eup %6667  ;;  %12956 = vst [vmem:[#allocation12_spill] sm:$0xff] %v8387_v40  ;;  %v1799_v31 = vmul.f32 %v6666_v21, %v8336_v39  ;;  %vm1841_vm5 = vcmp.eq.f32.partialorder %v8365_v49, inf  ;;  %vm1829_vm6 = vcmp.eq.f32.partialorder %v8374_v33, inf  ;;  %vm1807_vm7 = vcmp.eq.f32.partialorder %v8336_v39, 0.0 }
 0x1f0   :  { %v1975_v15 = vadd.f32 %v1974_v22, %v8345_v35  ;;  %v1787_v54 = vmul.f32 %v8385_v27, %v8348_v46  ;;  %v1750_v8 = vsub.f32 1.0, %v1734_v58  ;;  %vm1795_vm8 = vcmp.eq.f32.partialorder %v8348_v46, 0.0 }
 0x1f1   :  { %v8393_v53 = vpop.eup %6669  ;;  %v1800_v25 = vmul.f32 %v6666_v21, %v1799_v31  ;;  %vm1783_vm9 = vcmp.eq.f32.partialorder %v8359_v36, 0.0  ;;  %vm1843_vm10 = vcmp.eq.f32.partialorder %v8365_v49, 0.0  ;;  %vm1831_vm11 = vcmp.eq.f32.partialorder %v8374_v33, 0.0 }
 0x1f2   :  { %v1976_v60 = vadd.f32 %v1975_v15, %v8353_v23  ;;  %v8400_v17 = vpop.eup %6671  ;;  %v1775_v61 = vmul.f32 %v8393_v53, %v8359_v36  ;;  %v1788_v11 = vmul.f32 %v8385_v27, %v1787_v54  ;;  %v8415_v16 = vmax.f32 %v1750_v8, 0.0 }
 0x1f3   :  { %v8402_v34 = vpop.eup %6673  ;;  %v1835_v19 = vmul.f32 %v8400_v17, %v8365_v49  ;;  %v1801_v10 = vmul.f32 0.5, %v1800_v25  ;;  %vm1817_vm12 = vcmp.eq.f32.partialorder %v8381_v62, inf }
 0x1f4   :  { %v1977_v63 = vadd.f32 %v1976_v60, %v8361_v52  ;;  %v8409_v32 = vpop.eup %6675  ;;  %v1823_v50 = vmul.f32 %v8402_v34, %v8374_v33  ;;  %v1776_v22 = vmul.f32 %v8393_v53, %v1775_v61  ;;  %v1789_v48 = vmul.f32 0.5, %v1788_v11  ;;  %12957 = vst [vmem:[#allocation13_spill] sm:$0xff] %v8415_v16  ;;  %v6622_v61 = vld [vmem:[%s12752_s2 + $0x38] sm:$0xff] }
 0x1f5   :  { %v1836_v0 = vmul.f32 %v8400_v17, %v1835_v19  ;;  %v1802_v20 = vsub.f32 1.5, %v1801_v10  ;;  %v1811_v14 = vmul.f32 %v8409_v32, %v8381_v62  ;;  %v1808_v60 = vand.u32 2147483648, %v8336_v39  ;;  %2843 = vmatpush.bf16.msrb.mxu2 %v6622_v61 }
 0x1f6   :  { %v1978_v51 = vadd.f32 %v1977_v63, %v8371_v45  ;;  %v1824_v47 = vmul.f32 %v8402_v34, %v1823_v50  ;;  %v1777_v63 = vmul.f32 0.5, %v1776_v22  ;;  %v1790_v31 = vsub.f32 1.5, %v1789_v48 }
 0x1f7   :  { %6677 = vrsqrt.f32 %v8415_v16  ;;  %v1803_v58 = vmul.f32 %v6666_v21, %v1802_v20  ;;  %v1701_v48 = vmul.f32 2.0, %v8324_v55 }
 0x1f8   :  { %v1979_v5 = vadd.f32 %v1978_v51, %v8377_v57  ;;  %v1825_v8 = vmul.f32 0.5, %v1824_v47  ;;  %v1778_v10 = vsub.f32 1.5, %v1777_v63 }
 0x1fa   :  { %v1980_v41 = vadd.f32 %v1979_v5, %v8387_v40  ;;  %v1826_v63 = vsub.f32 1.5, %v1825_v8 }
 0x1fc   :  { %v1981_v1 = vrot.slane %v1980_v41, 4 }
 0x1fd   :  { %v8445_v20 = vpop.eup %6677 }
 0x1fe   :  { %v1982_v24 = vadd.f32 %v1981_v1, %v1980_v41  ;;  %v1837_v41 = vmul.f32 0.5, %v1836_v0 }
 0x200   :  { %v1983_v43 = vrot.slane %v1982_v24, 2 }
 0x202   :  { %v1984_v18 = vadd.f32 %v1983_v43, %v1982_v24  ;;  %v1812_v24 = vmul.f32 %v8409_v32, %v1811_v14 }
 0x204   :  { %v1985_v15 = vrot.slane %v1984_v18, 1 }
 0x206   :  { %v8422_v29 = vadd.f32 %v1985_v15, %v1984_v18  ;;  %v1838_v15 = vsub.f32 1.5, %v1837_v41  ;;  %v6620_v41 = vld [vmem:[%s12752_s2 + $0x28] sm:$0xff] }
 0x208   :  { %v1989_v1 = vsub.f32 %v8422_v29, %v8290_v9  ;;  %v1988_v25 = vsub.f32 %v8422_v29, %v8288_v30  ;;  %v1987_v11 = vsub.f32 %v8422_v29, %v8286_v7  ;;  %v1992_v19 = vsub.f32 %v8422_v29, %v8292_v56 }
 0x209   :  { %v1991_v21 = vsub.f32 %v8422_v29, %v8300_v4  ;;  %v1990_v30 = vsub.f32 %v8422_v29, %v8298_v26  ;;  %v1813_v56 = vmul.f32 0.5, %v1812_v24  ;;  %v6621_v4 = vld [vmem:[%s12752_s2 + $0x30] sm:$0xff]  ;;  %v2002_v54 = vsub.f32 %v8422_v29, %v8387_v40 }
 0x20a   :  { %v2005_v9 = vmul.f32 0.0078125, %v1989_v1  ;;  %v2004_v43 = vmul.f32 0.0078125, %v1988_v25  ;;  %v2003_v50 = vmul.f32 0.0078125, %v1987_v11  ;;  %v2008_v18 = vmul.f32 0.0078125, %v1992_v19  ;;  %2844 = vmatpush.bf16.msrb.mxu2 %v6621_v4 }
 0x20b   :  { %v2007_v22 = vmul.f32 0.0078125, %v1991_v21  ;;  %v1791_v25 = vmul.f32 %v8385_v27, %v1790_v31  ;;  %v2006_v11 = vmul.f32 0.0078125, %v1990_v30  ;;  %v8467_v27 = vadd.f32 -1.0, %v1701_v48  ;;  %v6619_v48 = vld [vmem:[%s12752_s2 + $0x20] sm:$0xff] }
 0x20c   :  { %v2021_v7 = vmul.f32 2.0, %v2005_v9  ;;  %v2020_v0 = vmul.f32 2.0, %v2004_v43  ;;  %v2019_v14 = vmul.f32 2.0, %v2003_v50  ;;  %v2024_v47 = vmul.f32 2.0, %v2008_v18 }
 0x20d   :  { %v2023_v26 = vmul.f32 2.0, %v2007_v22  ;;  %12958 = vst [vmem:[#allocation14_spill] sm:$0xff] %v8467_v27  ;;  %v1804_v31 = vmul.f32 %v1803_v58, %v8336_v39  ;;  %v1779_v9 = vmul.f32 %v8393_v53, %v1778_v10  ;;  %v1839_v43 = vmul.f32 %v8400_v17, %v1838_v15 }
 0x20e   :  { %v8450_v1 = vadd.f32 -1.0, %v2021_v7  ;;  %v8453_v61 = vadd.f32 -1.0, %v2020_v0  ;;  %v8461_v24 = vadd.f32 -1.0, %v2019_v14  ;;  %v8463_v19 = vadd.f32 -1.0, %v2024_v47  ;;  %2845 = vmatpush.bf16.msrb.mxu2 %v6620_v41 }
 0x20f   :  { %v8465_v8 = vadd.f32 -1.0, %v2023_v26  ;;  %v1827_v58 = vmul.f32 %v8402_v34, %v1826_v63  ;;  %v1814_v18 = vsub.f32 1.5, %v1813_v56  ;;  %v2022_v17 = vmul.f32 2.0, %v2006_v11 }
 0x210   :  { %v8472_v21 = vmul.f32 %v8450_v1, %v8450_v1  ;;  %v8480_v30 = vmul.f32 %v8453_v61, %v8453_v61  ;;  %v8484_v50 = vmul.f32 %v8461_v24, %v8461_v24  ;;  %v8490_v53 = vmul.f32 %v8463_v19, %v8463_v19 }
 0x211   :  { %v1871_v10 = vmul.f32 %v8445_v20, %v8415_v16  ;;  %v8504_v0 = vmul.f32 %v8465_v8, %v8465_v8  ;;  %v1733_v15 = vmul.f32 %v8467_v27, %v8467_v27  ;;  %v1792_v4 = vmul.f32 %v1791_v25, %v8348_v46 }
 0x212   :  { %v2069_v22 = vsub.f32 1.0, %v8472_v21  ;;  %v2068_v34 = vsub.f32 1.0, %v8480_v30  ;;  %v2067_v7 = vsub.f32 1.0, %v8484_v50  ;;  %v1780_v14 = vmul.f32 %v1779_v9, %v8359_v36  ;;  %2846 = vmatpush.bf16.msrb.mxu2 %v6619_v48 }
 0x213   :  { %v1840_v47 = vmul.f32 %v1839_v43, %v8365_v49  ;;  %v1828_v11 = vmul.f32 %v1827_v58, %v8374_v33  ;;  %v1815_v41 = vmul.f32 %v8409_v32, %v1814_v18  ;;  %v2072_v25 = vsub.f32 1.0, %v8490_v53 }
 0x214   :  { %v8508_v56 = vmax.f32 %v2069_v22, 0.0  ;;  %v8516_v63 = vmax.f32 %v2068_v34, 0.0  ;;  %v8518_v26 = vmax.f32 %v2067_v7, 0.0  ;;  %v2071_v9 = vsub.f32 1.0, %v8504_v0  ;;  %v6618_v34 = vld [vmem:[%s12752_s2 + $0x18] sm:$0xff] }
 0x215   :  { %v8524_v22 = vadd.f32 -1.0, %v2022_v17  ;;  %v1872_v43 = vmul.f32 %v8445_v20, %v1871_v10  ;;  %v1995_v32 = vsub.f32 %v8422_v29, %v8331_v6  ;;  %v1749_v58 = vsub.f32 1.0, %v1733_v15 }
 0x216   :  { %6679 = vrsqrt.f32 %v8508_v56  ;;  %v1806_v18 = vsel %vm1805_vm2, %v8336_v39, %v1804_v31  ;;  %v1794_v17 = vsel %vm1793_vm3, %v8348_v46, %v1792_v4  ;;  %v1782_v10 = vsel %vm1781_vm4, %v8359_v36, %v1780_v14  ;;  %2847 = vmatpush.bf16.msrb.mxu2 %v6618_v34 }
 0x217   :  { %6681 = vrsqrt.f32 %v8516_v63  ;;  %v1842_v6 = vsel %vm1841_vm5, %v8365_v49, %v1840_v47  ;;  %v1830_v31 = vsel %vm1829_vm6, %v8374_v33, %v1828_v11  ;;  %v1816_v48 = vmul.f32 %v1815_v41, %v8381_v62  ;;  %v6617_v47 = vld [vmem:[%s12752_s2 + $0x10] sm:$0xff] }
 0x218   :  { %6683 = vrsqrt.f32 %v8518_v26  ;;  %v8553_v7 = vmax.f32 %v2072_v25, 0.0  ;;  %v8555_v15 = vmax.f32 %v2071_v9, 0.0  ;;  %v8559_v4 = vmul.f32 %v8524_v22, %v8524_v22 }
 0x219   :  { %v8561_v14 = vmul.f32 0.5, %v1872_v43  ;;  %v2018_v5 = vmul.f32 0.0078125, %v2002_v54  ;;  %v2011_v51 = vmul.f32 0.0078125, %v1995_v32  ;;  %v8567_v41 = vmax.f32 %v1749_v58, 0.0 }
 0x21a   :  { %12959 = vst [vmem:[#allocation15_spill] sm:$0xff] %v8559_v4  ;;  %v8573_v25 = vsel %vm1807_vm7, %v1808_v60, %v1806_v18  ;;  %v8579_v54 = vsel %vm1795_vm8, %v1796_v3, %v1794_v17  ;;  %v12961_v9 = vand.u32 2147483648, %v8359_v36  ;;  %6685 = vrsqrt.f32 %v8553_v7  ;;  %2848 = vmatpush.bf16.msrb.mxu2 %v6617_v47 }
 0x21b   :  { %12960 = vst [vmem:[#allocation16_spill] sm:$0xff] %v8567_v41  ;;  %v12962_v32 = vand.u32 2147483648, %v8365_v49  ;;  %v12963_v60 = vand.u32 2147483648, %v8374_v33  ;;  %6687 = vrsqrt.f32 %v8555_v15  ;;  %v8604_v36 = vsel %vm1817_vm12, %v8381_v62, %v1816_v48  ;;  %v6616_v33 = vld [vmem:[%s12752_s2 + $0x8] sm:$0xff] }
 0x21c   :  { %v8585_v43 = vsel %vm1783_vm9, %v12961_v9, %v1782_v10  ;;  %v6680_v34 = vpop.eup %6679  ;;  %v2070_v49 = vsub.f32 1.0, %v8559_v4  ;;  %v2027_v17 = vmul.f32 2.0, %v2011_v51  ;;  %6689 = vrsqrt.f32 %v8567_v41 }
 0x21d   :  { %v8592_v39 = vsel %vm1843_vm10, %v12962_v32, %v1842_v6  ;;  %v8598_v46 = vsel %vm1831_vm11, %v12963_v60, %v1830_v31  ;;  %v6682_v3 = vpop.eup %6681  ;;  %v2124_v58 = vmul.f32 %v6680_v34, %v8508_v56  ;;  %v8609_v6 = vmul.f32 2.0, %v2018_v5 }
 0x21e   :  { %12964 = vst [vmem:[#allocation17_spill] sm:$0xff] %v8598_v46  ;;  %v6684_v10 = vpop.eup %6683  ;;  %v2325_v31 = vmul.f32 2.0, %v8450_v1  ;;  %v2112_v48 = vmul.f32 %v6682_v3, %v8516_v63  ;;  %v2324_v32 = vmul.f32 2.0, %v8453_v61  ;;  %v8619_v51 = vmax.f32 %v2070_v49, 0.0  ;;  %2849 = vmatpush.bf16.msrb.mxu2 %v6616_v33 }
 0x21f   :  { %v2125_v9 = vmul.f32 %v6680_v34, %v2124_v58  ;;  %v2100_v60 = vmul.f32 %v6684_v10, %v8518_v26  ;;  %v8622_v47 = vmul.f32 2.0, %v8461_v24  ;;  %v8625_v18 = vmul.f32 2.0, %v8463_v19  ;;  %v6615_v24 = vld [vmem:[%s12752_s2] sm:$0xff] }
 0x220   :  { %v2113_v5 = vmul.f32 %v6682_v3, %v2112_v48  ;;  %v8628_v1 = vmul.f32 2.0, %v8465_v8  ;;  %v8630_v11 = vpop.eup %6685  ;;  %6691 = vrsqrt.f32 %v8619_v51  ;;  %v8633_v61 = vadd.f32 -1.0, %v2027_v17 }
 0x221   :  { %v2126_v52 = vmul.f32 0.5, %v2125_v9  ;;  %v2101_v58 = vmul.f32 %v6684_v10, %v2100_v60  ;;  %v8635_v49 = vpop.eup %6687  ;;  %vm2130_vm13 = vcmp.eq.f32.partialorder %v8508_v56, inf  ;;  %vm2132_vm14 = vcmp.eq.f32.partialorder %v8508_v56, 0.0 }
 0x222   :  { %12965 = vst [vmem:[#allocation18_spill] sm:$0xff] %v8633_v61  ;;  %v2114_v19 = vmul.f32 0.5, %v2113_v5  ;;  %v2160_v8 = vmul.f32 %v8630_v11, %v8553_v7  ;;  %v2133_v9 = vand.u32 2147483648, %v8508_v56  ;;  %v2148_v60 = vmul.f32 %v8635_v49, %v8555_v15  ;;  %v8647_v33 = vpop.eup %6689  ;;  %2850 = vmatpush.bf16.msrb.mxu2 %v6615_v24 }
 0x223   :  { %v2127_v48 = vsub.f32 1.5, %v2126_v52  ;;  %v2102_v17 = vmul.f32 0.5, %v2101_v58  ;;  %12966 = vst [vmem:[#allocation19_spill] sm:$0xff] %v8647_v33  ;;  %vm2118_vm15 = vcmp.eq.f32.partialorder %v8516_v63, inf  ;;  %vm2120_vm0 = vcmp.eq.f32.partialorder %v8516_v63, 0.0 }
 0x224   :  { %v2115_v40 = vsub.f32 1.5, %v2114_v19  ;;  %v2161_v45 = vmul.f32 %v8630_v11, %v2160_v8  ;;  %v2149_v13 = vmul.f32 %v8635_v49, %v2148_v60  ;;  %v8655_v52 = vmul.f32 %v8633_v61, %v8633_v61 }
 0x225   :  { %v2128_v5 = vmul.f32 %v6680_v34, %v2127_v48  ;;  %v2103_v27 = vsub.f32 1.5, %v2102_v17  ;;  %v2121_v59 = vand.u32 2147483648, %v8516_v63  ;;  %vm2106_vm1 = vcmp.eq.f32.partialorder %v8518_v26, inf }
 0x226   :  { %v2116_v58 = vmul.f32 %v6682_v3, %v2115_v40  ;;  %v2162_v19 = vmul.f32 0.5, %v2161_v45  ;;  %v8659_v35 = vpop.eup %6691  ;;  %vm2108_vm2 = vcmp.eq.f32.partialorder %v8518_v26, 0.0  ;;  %v2109_v34 = vand.u32 2147483648, %v8518_v26 }
 0x227   :  { %v2129_v57 = vmul.f32 %v2128_v5, %v8508_v56  ;;  %v2104_v8 = vmul.f32 %v6684_v10, %v2103_v27  ;;  %v8666_v24 = vmul.f32 0.5, %v2149_v13  ;;  %v8669_v40 = vmul.f32 2.0, %v8316_v38 }
 0x228   :  { %v2117_v48 = vmul.f32 %v2116_v58, %v8516_v63  ;;  %v2163_v5 = vsub.f32 1.5, %v2162_v19  ;;  %v8684_v58 = vmul.f32 %v8659_v35, %v8619_v51  ;;  %vm2166_vm3 = vcmp.eq.f32.partialorder %v8553_v7, inf }
 0x229   :  { %v2131_v45 = vsel %vm2130_vm13, %v8508_v56, %v2129_v57  ;;  %v2105_v3 = vmul.f32 %v2104_v8, %v8518_v26  ;;  %v2151_v19 = vsub.f32 1.5, %v8666_v24  ;;  %vm2168_vm4 = vcmp.eq.f32.partialorder %v8553_v7, 0.0 }
 0x22a   :  { %v2134_v60 = vsel %vm2132_vm14, %v2133_v9, %v2131_v45  ;;  %v2119_v13 = vsel %vm2118_vm15, %v8516_v63, %v2117_v48  ;;  %vm2154_vm5 = vcmp.eq.f32.partialorder %v8555_v15, inf  ;;  %vm2156_vm6 = vcmp.eq.f32.partialorder %v8555_v15, 0.0 }
 0x22b   :  { %v2293_v17 = vmul.f32 %v2134_v60, %v2134_v60  ;;  %v2341_v57 = vmul.f32 %v2325_v31, %v2134_v60  ;;  %v2122_v8 = vsel %vm2120_vm0, %v2121_v59, %v2119_v13  ;;  %v2107_v10 = vsel %vm2106_vm1, %v8518_v26, %v2105_v3 }
 0x22c   :  { %v2292_v56 = vmul.f32 %v2122_v8, %v2122_v8  ;;  %v2340_v9 = vmul.f32 %v2324_v32, %v2122_v8  ;;  %v2110_v45 = vsel %vm2108_vm2, %v2109_v34, %v2107_v10  ;;  %v2164_v34 = vmul.f32 %v8630_v11, %v2163_v5 }
 0x22d   :  { %v2309_v48 = vsub.f32 %v2293_v17, %v8472_v21  ;;  %v2373_v27 = vmul.f32 %v2341_v57, %v2341_v57  ;;  %v2405_v12 = vmul.f32 2.0, %v2341_v57  ;;  %v2291_v23 = vmul.f32 %v2110_v45, %v2110_v45 }
 0x22e   :  { %v2308_v31 = vsub.f32 %v2292_v56, %v8480_v30  ;;  %v2372_v63 = vmul.f32 %v2340_v9, %v2340_v9  ;;  %v2404_v59 = vmul.f32 2.0, %v2340_v9  ;;  %v2339_v60 = vmul.f32 %v8622_v47, %v2110_v45 }
 0x22f   :  { %v2357_v3 = vmul.f32 %v2309_v48, %v2309_v48  ;;  %v2421_v32 = vmul.f32 %v2405_v12, %v2309_v48  ;;  %v2307_v26 = vsub.f32 %v2291_v23, %v8484_v50  ;;  %v2165_v23 = vmul.f32 %v2164_v34, %v8553_v7 }
 0x230   :  { %v2356_v24 = vmul.f32 %v2308_v31, %v2308_v31  ;;  %v2420_v10 = vmul.f32 %v2404_v59, %v2308_v31  ;;  %v2371_v21 = vmul.f32 %v2339_v60, %v2339_v60  ;;  %v2403_v17 = vmul.f32 2.0, %v2339_v60 }
 0x231   :  { %v2389_v13 = vsub.f32 %v2357_v3, %v2373_v27  ;;  %v2453_v8 = vmul.f32 %v2421_v32, %v2421_v32  ;;  %v2485_v38 = vmul.f32 2.0, %v2421_v32  ;;  %v2355_v30 = vmul.f32 %v2307_v26, %v2307_v26 }
 0x232   :  { %v2388_v56 = vsub.f32 %v2356_v24, %v2372_v63  ;;  %v2452_v47 = vmul.f32 %v2420_v10, %v2420_v10  ;;  %v2484_v45 = vmul.f32 2.0, %v2420_v10  ;;  %v2419_v61 = vmul.f32 %v2403_v17, %v2307_v26 }
 0x233   :  { %v2437_v16 = vmul.f32 %v2389_v13, %v2389_v13  ;;  %v2501_v12 = vmul.f32 %v2485_v38, %v2389_v13  ;;  %v2387_v33 = vsub.f32 %v2355_v30, %v2371_v21  ;;  %v2167_v34 = vsel %vm2166_vm3, %v8553_v7, %v2165_v23 }
 0x234   :  { %v2436_v50 = vmul.f32 %v2388_v56, %v2388_v56  ;;  %v2500_v11 = vmul.f32 %v2484_v45, %v2388_v56  ;;  %v2451_v5 = vmul.f32 %v2419_v61, %v2419_v61  ;;  %v2483_v59 = vmul.f32 2.0, %v2419_v61 }
 0x235   :  { %v2469_v41 = vsub.f32 %v2437_v16, %v2453_v8  ;;  %v2533_v27 = vmul.f32 %v2501_v12, %v2341_v57  ;;  %v2581_v3 = vmul.f32 %v2501_v12, %v2309_v48  ;;  %v2435_v32 = vmul.f32 %v2387_v33, %v2387_v33 }
 0x236   :  { %v2468_v4 = vsub.f32 %v2436_v50, %v2452_v47  ;;  %v2532_v46 = vmul.f32 %v2500_v11, %v2340_v9  ;;  %v2580_v37 = vmul.f32 %v2500_v11, %v2308_v31  ;;  %v2499_v63 = vmul.f32 %v2483_v59, %v2387_v33 }
 0x237   :  { %v2517_v24 = vmul.f32 %v2469_v41, %v2309_v48  ;;  %v2565_v10 = vmul.f32 %v2469_v41, %v2341_v57  ;;  %v2467_v38 = vsub.f32 %v2435_v32, %v2451_v5  ;;  %v12967_v48 = vand.u32 2147483648, %v8553_v7 }
 0x238   :  { %v2516_v61 = vmul.f32 %v2468_v4, %v2308_v31  ;;  %v2564_v16 = vmul.f32 %v2468_v4, %v2340_v9  ;;  %v2531_v21 = vmul.f32 %v2499_v63, %v2339_v60  ;;  %v2579_v17 = vmul.f32 %v2499_v63, %v2307_v26 }
 0x239   :  { %v2549_v13 = vsub.f32 %v2517_v24, %v2533_v27  ;;  %v2597_v8 = vadd.f32 %v2581_v3, %v2565_v10  ;;  %v2515_v30 = vmul.f32 %v2467_v38, %v2307_v26  ;;  %v2563_v56 = vmul.f32 %v2467_v38, %v2339_v60 }
 0x23a   :  { %v2548_v33 = vsub.f32 %v2516_v61, %v2532_v46  ;;  %v2596_v47 = vadd.f32 %v2580_v37, %v2564_v16  ;;  %v2170_v41 = vsel %vm2168_vm4, %v12967_v48, %v2167_v34  ;;  %v2152_v57 = vmul.f32 %v8635_v49, %v2151_v19 }
 0x23b   :  { %v2613_v45 = vmul.f32 %v8303_v28, %v2549_v13  ;;  %v2629_v31 = vmul.f32 %v2597_v8, %v8573_v25  ;;  %v2547_v4 = vsub.f32 %v2515_v30, %v2531_v21  ;;  %v2595_v9 = vadd.f32 %v2579_v17, %v2563_v56 }
 0x23c   :  { %v2612_v12 = vmul.f32 %v8307_v44, %v2548_v33  ;;  %v2628_v26 = vmul.f32 %v2596_v47, %v8579_v54  ;;  %v2296_v60 = vmul.f32 %v2170_v41, %v2170_v41  ;;  %v2344_v37 = vmul.f32 %v8625_v18, %v2170_v41 }
 0x23d   :  { %v2645_v46 = vsub.f32 %v2613_v45, %v2629_v31  ;;  %v2611_v23 = vmul.f32 %v8314_v42, %v2547_v4  ;;  %v2627_v7 = vmul.f32 %v2595_v9, %v8585_v43  ;;  %v2153_v49 = vmul.f32 %v2152_v57, %v8555_v15 }
 0x23e   :  { %v2644_v19 = vsub.f32 %v2612_v12, %v2628_v26  ;;  %v2312_v28 = vsub.f32 %v2296_v60, %v8490_v53  ;;  %v2376_v25 = vmul.f32 %v2344_v37, %v2344_v37  ;;  %v2408_v50 = vmul.f32 2.0, %v2344_v37 }
 0x23f   :  { %v2661_v11 = vadd.f32 1.0, %v2645_v46  ;;  %v2643_v5 = vsub.f32 %v2611_v23, %v2627_v7  ;;  %v2155_v44 = vsel %vm2154_vm5, %v8555_v15, %v2153_v49  ;;  %v2137_v54 = vmul.f32 %v8659_v35, %v8684_v58 }
 0x240   :  { %v2660_v18 = vadd.f32 1.0, %v2644_v19  ;;  %v2360_v42 = vmul.f32 %v2312_v28, %v2312_v28  ;;  %v2424_v59 = vmul.f32 %v2408_v50, %v2312_v28  ;;  %v12968_v43 = vand.u32 2147483648, %v8555_v15 }
 0x241   :  { %v2677_v53 = vmul.f32 0.5, %v2661_v11  ;;  %v2659_v3 = vadd.f32 1.0, %v2643_v5  ;;  %v2138_v47 = vmul.f32 0.5, %v2137_v54  ;;  %vm1819_vm7 = vcmp.eq.f32.partialorder %v8381_v62, 0.0 }
 0x242   :  { %v2158_v27 = vsel %vm2156_vm6, %v12968_v43, %v2155_v44  ;;  %v2676_v24 = vmul.f32 0.5, %v2660_v18  ;;  %v2392_v10 = vsub.f32 %v2360_v42, %v2376_v25  ;;  %v2456_v38 = vmul.f32 %v2424_v59, %v2424_v59 }
 0x243   :  { %v2295_v32 = vmul.f32 %v2158_v27, %v2158_v27  ;;  %v2343_v63 = vmul.f32 %v8628_v1, %v2158_v27  ;;  %v2488_v34 = vmul.f32 2.0, %v2424_v59  ;;  %v2709_v61 = vmul.f32 2.0, %v2677_v53 }
 0x244   :  { %v2675_v16 = vmul.f32 0.5, %v2659_v3  ;;  %v2708_v17 = vmul.f32 2.0, %v2676_v24  ;;  %v2440_v13 = vmul.f32 %v2392_v10, %v2392_v10  ;;  %v2139_v60 = vsub.f32 1.5, %v2138_v47 }
 0x245   :  { %v2311_v58 = vsub.f32 %v2295_v32, %v8504_v0  ;;  %v2375_v21 = vmul.f32 %v2343_v63, %v2343_v63  ;;  %v2504_v8 = vmul.f32 %v2488_v34, %v2392_v10  ;;  %v2407_v30 = vmul.f32 2.0, %v2343_v63 }
 0x246   :  { %v8732_v15 = vadd.f32 -1.0, %v2709_v61  ;;  %v2707_v56 = vmul.f32 2.0, %v2675_v16  ;;  %v6374_v48 = vadd.f32 -1.0, %v2708_v17  ;;  %v2472_v1 = vsub.f32 %v2440_v13, %v2456_v38 }
 0x247   :  { %v2359_v33 = vmul.f32 %v2311_v58, %v2311_v58  ;;  %v2536_v41 = vmul.f32 %v2504_v8, %v2344_v37  ;;  %v2584_v57 = vmul.f32 %v2504_v8, %v2312_v28  ;;  %v2423_v4 = vmul.f32 %v2407_v30, %v2311_v58 }
 0x248   :  { %v2741_v45 = vmul.f32 %v8732_v15, %v8732_v15  ;;  %v6373_v0 = vadd.f32 -1.0, %v2707_v56  ;;  %v2740_v9 = vmul.f32 %v6374_v48, %v6374_v48  ;;  %v2520_v12 = vmul.f32 %v2472_v1, %v2312_v28 }
 0x249   :  { %v2391_v31 = vsub.f32 %v2359_v33, %v2375_v21  ;;  %v2568_v26 = vmul.f32 %v2472_v1, %v2344_v37  ;;  %v2455_v49 = vmul.f32 %v2423_v4, %v2423_v4  ;;  %v2487_v50 = vmul.f32 2.0, %v2423_v4 }
 0x24a   :  { %2759 = vadd.xlane.f32.xlu0 %v2741_v45  ;;  %v2787_v46 = vpack.c.bf16 %v6374_v48, %v6373_v0  ;;  %v2739_v23 = vmul.f32 %v6373_v0, %v6373_v0  ;;  %2757 = vadd.xlane.f32.xlu2 %v2740_v9  ;;  %v2552_v19 = vsub.f32 %v2520_v12, %v2536_v41  ;;  %vm2142_vm8 = vcmp.eq.f32.partialorder %v8619_v51, inf  ;;  %v12975_v0 = vld [vmem:[#allocation16_spill] sm:$0xff] }
 0x24b   :  { %v2439_v7 = vmul.f32 %v2391_v31, %v2391_v31  ;;  %v2600_v25 = vadd.f32 %v2584_v57, %v2568_v26  ;;  %v2140_v11 = vmul.f32 %v8659_v35, %v2139_v60  ;;  %vm2144_vm9 = vcmp.eq.f32.partialorder %v8619_v51, 0.0 }
 0x24c   :  { %2851 = vmatmul.bf16.vlgmr.msrb.gmra.mxu2 %v2787_v46  ;;  %2755 = vadd.xlane.f32.xlu1 %v2739_v23  ;;  %v12969_v37 = vsub.f32 1.0, %v8655_v52  ;;  %v2616_v44 = vmul.f32 %v8321_v2, %v2552_v19  ;;  %v2503_v18 = vmul.f32 %v2487_v50, %v2391_v31  ;;  %v2145_v43 = vand.u32 2147483648, %v8619_v51  ;;  %v12976_v31 = vld [vmem:[#allocation19_spill] sm:$0xff] }
 0x24d   :  { %v2471_v5 = vsub.f32 %v2439_v7, %v2455_v49  ;;  %v2632_v54 = vmul.f32 %v2600_v25, %v8592_v39  ;;  %v2141_v42 = vmul.f32 %v2140_v11, %v8619_v51  ;;  %v12970_v24 = vand.u32 2147483648, %v8381_v62 }
 0x24e   :  { %v8742_v28 = vmax.f32 %v12969_v37, 0.0  ;;  %v2535_v53 = vmul.f32 %v2503_v18, %v2343_v63  ;;  %v2583_v3 = vmul.f32 %v2503_v18, %v2311_v58  ;;  %v2326_v10 = vmul.f32 2.0, %v8524_v22  ;;  %v12972_v22 = vld [vmem:[#allocation3_spill] sm:$0xff] }
 0x24f   :  { %v2519_v59 = vmul.f32 %v2471_v5, %v2311_v58  ;;  %v2567_v35 = vmul.f32 %v2471_v5, %v2343_v63  ;;  %v2648_v27 = vsub.f32 %v2616_v44, %v2632_v54  ;;  %v2143_v32 = vsel %vm2142_vm8, %v8619_v51, %v2141_v42  ;;  %v12977_v54 = vld [vmem:[#allocation13_spill] sm:$0xff] }
 0x250   :  { %6693 = vrsqrt.f32 %v8742_v28  ;;  %v8755_v2 = vsel %vm1819_vm7, %v12970_v24, %v8604_v36  ;;  %v2146_v39 = vsel %vm2144_vm9, %v2145_v43, %v2143_v32  ;;  %v12971_v38 = vsub.f32 1.5, %v8561_v14  ;;  %v12973_v14 = vld [vmem:[#allocation17_spill] sm:$0xff] }
 0x251   :  { %v2664_v61 = vadd.f32 1.0, %v2648_v27  ;;  %v2551_v16 = vsub.f32 %v2519_v59, %v2535_v53  ;;  %v2599_v63 = vadd.f32 %v2583_v3, %v2567_v35  ;;  %v2294_v58 = vmul.f32 %v2146_v39, %v2146_v39 }
 0x252   :  { %v1875_v34 = vmul.f32 %v8445_v20, %v12971_v38  ;;  %v8762_v51 = vadd.f32 -1.0, %v8609_v6  ;;  %v2342_v21 = vmul.f32 %v2326_v10, %v2146_v39  ;;  %v1994_v62 = vsub.f32 %v8422_v29, %v8324_v55  ;;  %v12974_v20 = vld [vmem:[#allocation15_spill] sm:$0xff] }
 0x253   :  { %v8767_v36 = vadd.f32 -1.0, %v8669_v40  ;;  %v2680_v17 = vmul.f32 0.5, %v2664_v61  ;;  %v2615_v13 = vmul.f32 %v12972_v22, %v2551_v16  ;;  %v2631_v8 = vmul.f32 %v2599_v63, %v12973_v14  ;;  %v12978_v61 = vld [vmem:[#allocation18_spill] sm:$0xff] }
 0x254   :  { %v2310_v30 = vsub.f32 %v2294_v58, %v12974_v20  ;;  %v2374_v33 = vmul.f32 %v2342_v21, %v2342_v21  ;;  %v2406_v47 = vmul.f32 2.0, %v2342_v21  ;;  %v2010_v48 = vmul.f32 0.0078125, %v1994_v62  ;;  %v12979_v58 = vld [vmem:[#allocation2_spill] sm:$0xff] }
 0x255   :  { %v1732_v6 = vmul.f32 %v8767_v36, %v8767_v36  ;;  %v2712_v1 = vmul.f32 2.0, %v2680_v17  ;;  %v2647_v41 = vsub.f32 %v2615_v13, %v2631_v8  ;;  %v8777_v57 = vmul.f32 %v8762_v51, %v8762_v51  ;;  %v12980_v8 = vld [vmem:[#allocation7_spill] sm:$0xff] }
 0x256   :  { %v6694_v56 = vpop.eup %6693  ;;  %v2358_v55 = vmul.f32 %v2310_v30, %v2310_v30  ;;  %v2422_v45 = vmul.f32 %v2406_v47, %v2310_v30  ;;  %v1859_v4 = vmul.f32 %v12976_v31, %v12975_v0  ;;  %v2026_v9 = vmul.f32 2.0, %v2010_v48 }
 0x257   :  { %v2196_v40 = vmul.f32 %v6694_v56, %v8742_v28  ;;  %v8781_v12 = vadd.f32 -1.0, %v2712_v1  ;;  %v2663_v26 = vadd.f32 1.0, %v2647_v41  ;;  %v1748_v19 = vsub.f32 1.0, %v1732_v6 }
 0x258   :  { %v2390_v60 = vsub.f32 %v2358_v55, %v2374_v33  ;;  %v2454_v23 = vmul.f32 %v2422_v45, %v2422_v45  ;;  %v2486_v7 = vmul.f32 2.0, %v2422_v45  ;;  %v8783_v49 = vadd.f32 -1.0, %v2026_v9 }
 0x259   :  { %v2197_v46 = vmul.f32 %v6694_v56, %v2196_v40  ;;  %v2744_v25 = vmul.f32 %v8781_v12, %v8781_v12  ;;  %v2679_v50 = vmul.f32 0.5, %v2663_v26  ;;  %v2082_v37 = vsub.f32 1.0, %v8777_v57 }
 0x25a   :  { %v2438_v11 = vmul.f32 %v2390_v60, %v2390_v60  ;;  %v2502_v44 = vmul.f32 %v2486_v7, %v2390_v60  ;;  %v1876_v18 = vmul.f32 %v1875_v34, %v12977_v54  ;;  %v8791_v42 = vmul.f32 %v8783_v49, %v8783_v49 }
 0x25b   :  { %v2198_v5 = vmul.f32 0.5, %v2197_v46  ;;  %2765 = vadd.xlane.f32.xlu0 %v2744_v25  ;;  %v2711_v59 = vmul.f32 2.0, %v2679_v50  ;;  %v1860_v27 = vmul.f32 %v12976_v31, %v1859_v4  ;;  %v8795_v24 = vmax.f32 %v1748_v19, 0.0 }
 0x25c   :  { %v2470_v35 = vsub.f32 %v2438_v11, %v2454_v23  ;;  %v2534_v53 = vmul.f32 %v2502_v44, %v2342_v21  ;;  %v2582_v3 = vmul.f32 %v2502_v44, %v2310_v30  ;;  %v2074_v32 = vsub.f32 1.0, %v8791_v42  ;;  %v12982_v23 = vld [vmem:[#allocation10_spill] sm:$0xff] }
 0x25d   :  { %v2199_v43 = vsub.f32 1.5, %v2198_v5  ;;  %v8797_v39 = vadd.f32 -1.0, %v2711_v59  ;;  %vm2202_vm10 = vcmp.eq.f32.partialorder %v8742_v28, inf  ;;  %v2331_v16 = vmul.f32 2.0, %v12978_v61 }
 0x25e   :  { %v2518_v10 = vmul.f32 %v2470_v35, %v2310_v30  ;;  %v2566_v38 = vmul.f32 %v2470_v35, %v2342_v21  ;;  %v8801_v63 = vmax.f32 %v2074_v32, 0.0  ;;  %v1993_v62 = vsub.f32 %v8422_v29, %v12979_v58  ;;  %v12981_v30 = vld [vmem:[#allocation4_spill] sm:$0xff] }
 0x25f   :  { %v2200_v34 = vmul.f32 %v6694_v56, %v2199_v43  ;;  %v2743_v17 = vmul.f32 %v8797_v39, %v8797_v39  ;;  %vm2204_vm11 = vcmp.eq.f32.partialorder %v8742_v28, 0.0  ;;  %v2205_v21 = vand.u32 2147483648, %v8742_v28 }
 0x260   :  { %v2550_v22 = vsub.f32 %v2518_v10, %v2534_v53  ;;  %v2598_v13 = vadd.f32 %v2582_v3, %v2566_v38  ;;  %6695 = vrsqrt.f32 %v8801_v63  ;;  %v1705_v20 = vmul.f32 2.0, %v12980_v8  ;;  %v12983_v38 = vld [vmem:[#allocation6_spill] sm:$0xff] }
 0x261   :  { %v2201_v14 = vmul.f32 %v2200_v34, %v8742_v28  ;;  %2763 = vadd.xlane.f32.xlu2 %v2743_v17  ;;  %6697 = vrsqrt.f32 %v8795_v24  ;;  %vm1877_vm12 = vcmp.eq.f32.partialorder %v12977_v54, inf  ;;  %v2009_v6 = vmul.f32 0.0078125, %v1993_v62 }
 0x262   :  { %v2614_v56 = vmul.f32 %v12981_v30, %v2550_v22  ;;  %v2630_v33 = vmul.f32 %v2598_v13, %v8755_v2  ;;  %vm1879_vm13 = vcmp.eq.f32.partialorder %v12977_v54, 0.0  ;;  %v1878_v40 = vsel %vm1877_vm12, %v12977_v54, %v1876_v18 }
 0x263   :  { %v2203_v47 = vsel %vm2202_vm10, %v8742_v28, %v2201_v14  ;;  %v1861_v45 = vmul.f32 0.5, %v1860_v27  ;;  %v2025_v4 = vmul.f32 2.0, %v2009_v6  ;;  %v8819_v9 = vadd.f32 -1.0, %v1705_v20 }
 0x264   :  { %v2206_v48 = vsel %vm2204_vm11, %v2205_v21, %v2203_v47  ;;  %v2646_v1 = vsub.f32 %v2614_v56, %v2630_v33  ;;  %v8821_v2 = vmax.f32 %v2082_v37, 0.0  ;;  %v2001_v7 = vsub.f32 %v8422_v29, %v12982_v23 }
 0x265   :  { %v2299_v41 = vmul.f32 %v2206_v48, %v2206_v48  ;;  %v2347_v55 = vmul.f32 %v2331_v16, %v2206_v48  ;;  %v1880_v19 = vand.u32 2147483648, %v12977_v54  ;;  %v8827_v50 = vadd.f32 -1.0, %v2025_v4 }
 0x266   :  { %v2662_v28 = vadd.f32 1.0, %v2646_v1  ;;  %v6696_v46 = vpop.eup %6695  ;;  %v1862_v59 = vsub.f32 1.5, %v1861_v45  ;;  %v1737_v43 = vmul.f32 %v8819_v9, %v8819_v9  ;;  %6699 = vrsqrt.f32 %v8821_v2 }
 0x267   :  { %v2315_v26 = vsub.f32 %v2299_v41, %v8655_v52  ;;  %v2411_v60 = vmul.f32 2.0, %v2347_v55  ;;  %v2379_v25 = vmul.f32 %v2347_v55, %v2347_v55  ;;  %v8829_v11 = vpop.eup %6697  ;;  %v2184_v37 = vmul.f32 %v6696_v46, %v8801_v63 }
 0x268   :  { %v2678_v5 = vmul.f32 0.5, %v2662_v28  ;;  %v1881_v52 = vsel %vm1879_vm13, %v1880_v19, %v1878_v40  ;;  %v8836_v35 = vmul.f32 %v8827_v50, %v8827_v50  ;;  %v1847_v10 = vmul.f32 %v8829_v11, %v8795_v24 }
 0x269   :  { %v2363_v44 = vmul.f32 %v2315_v26, %v2315_v26  ;;  %v2427_v18 = vmul.f32 %v2411_v60, %v2315_v26  ;;  %v2185_v32 = vmul.f32 %v6696_v46, %v2184_v37  ;;  %v1704_v34 = vmul.f32 2.0, %v12983_v38 }
 0x26a   :  { %v2710_v27 = vmul.f32 2.0, %v2678_v5  ;;  %v2073_v54 = vsub.f32 1.0, %v8836_v35  ;;  %v1863_v17 = vmul.f32 %v12976_v31, %v1862_v59  ;;  %v1753_v14 = vsub.f32 1.0, %v1737_v43 }
 0x26b   :  { %v2395_v53 = vsub.f32 %v2363_v44, %v2379_v25  ;;  %v2491_v3 = vmul.f32 2.0, %v2427_v18  ;;  %v2459_v58 = vmul.f32 %v2427_v18, %v2427_v18  ;;  %v2186_v22 = vmul.f32 0.5, %v2185_v32  ;;  %v12984_v44 = vld [vmem:[#allocation11_spill] sm:$0xff] }
 0x26c   :  { %v6376_v61 = vadd.f32 -1.0, %v2710_v27  ;;  %v8846_v13 = vmax.f32 %v2073_v54, 0.0  ;;  %v2289_v21 = vand.u32 2147483648, %v8821_v2  ;;  %vm1865_vm14 = vcmp.eq.f32.partialorder %v12975_v0, inf  ;;  %v8854_v48 = vpop.eup %6699 }
 0x26d   :  { %v2443_v16 = vmul.f32 %v2395_v53, %v2395_v53  ;;  %v2507_v62 = vmul.f32 %v2491_v3, %v2395_v53  ;;  %v2187_v56 = vsub.f32 1.5, %v2186_v22  ;;  %v1848_v33 = vmul.f32 %v8829_v11, %v1847_v10 }
 0x26e   :  { %v2742_v20 = vmul.f32 %v6376_v61, %v6376_v61  ;;  %6701 = vrsqrt.f32 %v8846_v13  ;;  %v8852_v47 = vadd.f32 -1.0, %v1704_v34  ;;  %v1864_v40 = vmul.f32 %v1863_v17, %v12975_v0 }
 0x26f   :  { %v2475_v30 = vsub.f32 %v2443_v16, %v2459_v58  ;;  %v2539_v6 = vmul.f32 %v2507_v62, %v2347_v55  ;;  %v2587_v41 = vmul.f32 %v2507_v62, %v2315_v26  ;;  %v2188_v45 = vmul.f32 %v6696_v46, %v2187_v56 }
 0x270   :  { %2761 = vadd.xlane.f32.xlu1 %v2742_v20  ;;  %v8857_v4 = vmax.f32 %v1753_v14, 0.0  ;;  %v1998_v28 = vsub.f32 %v8422_v29, %v12980_v8  ;;  %vm2190_vm15 = vcmp.eq.f32.partialorder %v8801_v63, inf  ;;  %v2330_v25 = vmul.f32 2.0, %v8783_v49 }
 0x271   :  { %v2523_v31 = vmul.f32 %v2475_v30, %v2315_v26  ;;  %v2571_v1 = vmul.f32 %v2475_v30, %v2347_v55  ;;  %v2189_v5 = vmul.f32 %v2188_v45, %v8801_v63  ;;  %vm2192_vm0 = vcmp.eq.f32.partialorder %v8801_v63, 0.0 }
 0x272   :  { %v2193_v55 = vand.u32 2147483648, %v8801_v63  ;;  %v2014_v26 = vmul.f32 0.0078125, %v1998_v28  ;;  %v1849_v37 = vmul.f32 0.5, %v1848_v33  ;;  %v1736_v8 = vmul.f32 %v8852_v47, %v8852_v47 }
 0x273   :  { %v2555_v60 = vsub.f32 %v2523_v31, %v2539_v6  ;;  %v2603_v19 = vadd.f32 %v2587_v41, %v2571_v1  ;;  %v2191_v43 = vsel %vm2190_vm15, %v8801_v63, %v2189_v5  ;;  %v2788_v27 = vpack.c.bf16 %v6376_v61, %v8732_v15 }
 0x274   :  { %v6702_v59 = vpop.eup %6701  ;;  %6703 = vrsqrt.f32 %v8857_v4  ;;  %v2030_v49 = vmul.f32 2.0, %v2014_v26  ;;  %v8874_v53 = vmul.f32 %v8854_v48, %v8821_v2  ;;  %v2194_v32 = vsel %vm2192_vm0, %v2193_v55, %v2191_v43 }
 0x275   :  { %v2619_v46 = vmul.f32 %v12984_v44, %v2555_v60  ;;  %v2635_v18 = vmul.f32 %v2603_v19, %v1881_v52  ;;  %v2172_v52 = vmul.f32 %v6702_v59, %v8846_v13  ;;  %v1866_v10 = vsel %vm1865_vm14, %v12975_v0, %v1864_v40  ;;  %2856 = vmatmul.bf16.gmra.mxu2 %v2788_v27 }
 0x276   :  { %v2298_v54 = vmul.f32 %v2194_v32, %v2194_v32  ;;  %v2346_v34 = vmul.f32 %v2330_v25, %v2194_v32  ;;  %v8880_v63 = vadd.f32 -1.0, %v2030_v49  ;;  %vm1867_vm1 = vcmp.eq.f32.partialorder %v12975_v0, 0.0 }
 0x277   :  { %v2651_v3 = vsub.f32 %v2619_v46, %v2635_v18  ;;  %v1868_v61 = vand.u32 2147483648, %v12975_v0  ;;  %v2173_v16 = vmul.f32 %v6702_v59, %v2172_v52  ;;  %v1850_v17 = vsub.f32 1.5, %v1849_v37 }
 0x278   :  { %v2314_v58 = vsub.f32 %v2298_v54, %v8791_v42  ;;  %v2410_v62 = vmul.f32 2.0, %v2346_v34  ;;  %v1752_v22 = vsub.f32 1.0, %v1736_v8  ;;  %v8887_v56 = vmul.f32 %v8880_v63, %v8880_v63 }
 0x279   :  { %v2667_v15 = vadd.f32 1.0, %v2651_v3  ;;  %v1869_v20 = vsel %vm1867_vm1, %v1868_v61, %v1866_v10  ;;  %v2174_v30 = vmul.f32 0.5, %v2173_v16  ;;  %v2378_v6 = vmul.f32 %v2346_v34, %v2346_v34 }
 0x27a   :  { %v8889_v33 = vpop.eup %6703  ;;  %v2362_v31 = vmul.f32 %v2314_v58, %v2314_v58  ;;  %v2426_v1 = vmul.f32 %v2410_v62, %v2314_v58  ;;  %v2329_v0 = vmul.f32 2.0, %v8827_v50  ;;  %v2078_v42 = vsub.f32 1.0, %v8887_v56 }
 0x27b   :  { %v2683_v14 = vmul.f32 0.5, %v2667_v15  ;;  %v2175_v40 = vsub.f32 1.5, %v2174_v30  ;;  %v1997_v45 = vsub.f32 %v8422_v29, %v12983_v38  ;;  %v1851_v19 = vmul.f32 %v8829_v11, %v1850_v17 }
 0x27c   :  { %v2394_v28 = vsub.f32 %v2362_v31, %v2378_v6  ;;  %v2490_v60 = vmul.f32 2.0, %v2426_v1  ;;  %v8896_v25 = vmax.f32 %v1752_v22, 0.0  ;;  %v1907_v26 = vmul.f32 %v8889_v33, %v8857_v4 }
 0x27d   :  { %v2715_v41 = vmul.f32 2.0, %v2683_v14  ;;  %v2176_v55 = vmul.f32 %v6702_v59, %v2175_v40  ;;  %v8902_v50 = vmax.f32 %v2078_v42, 0.0  ;;  %v2458_v46 = vmul.f32 %v2426_v1, %v2426_v1  ;;  %v12985_v14 = vld [vmem:[#allocation5_spill] sm:$0xff] }
 0x27e   :  { %v2442_v44 = vmul.f32 %v2394_v28, %v2394_v28  ;;  %v2506_v18 = vmul.f32 %v2490_v60, %v2394_v28  ;;  %vm1853_vm2 = vcmp.eq.f32.partialorder %v8795_v24, inf  ;;  %v2013_v38 = vmul.f32 0.0078125, %v1997_v45 }
 0x27f   :  { %v8898_v5 = vadd.f32 -1.0, %v2715_v41  ;;  %v2177_v11 = vmul.f32 %v2176_v55, %v8846_v13  ;;  %vm2178_vm3 = vcmp.eq.f32.partialorder %v8846_v13, inf  ;;  %6705 = vrsqrt.f32 %v8902_v50  ;;  %v12986_v41 = vld [vmem:[#allocation14_spill] sm:$0xff] }
 0x280   :  { %v2474_v8 = vsub.f32 %v2442_v44, %v2458_v46  ;;  %vm2180_vm4 = vcmp.eq.f32.partialorder %v8846_v13, 0.0  ;;  %v2181_v59 = vand.u32 2147483648, %v8846_v13  ;;  %6707 = vrsqrt.f32 %v8896_v25 }
 0x281   :  { %v2747_v37 = vmul.f32 %v8898_v5, %v8898_v5  ;;  %v2538_v43 = vmul.f32 %v2506_v18, %v2346_v34  ;;  %v2179_v27 = vsel %vm2178_vm3, %v8846_v13, %v2177_v11  ;;  %v1908_v49 = vmul.f32 %v8889_v33, %v1907_v26 }
 0x282   :  { %v2029_v3 = vmul.f32 2.0, %v2013_v38  ;;  %v2522_v32 = vmul.f32 %v2474_v8, %v2314_v58  ;;  %v2570_v52 = vmul.f32 %v2474_v8, %v2346_v34  ;;  %v2586_v10 = vmul.f32 %v2506_v18, %v2314_v58 }
 0x283   :  { %2771 = vadd.xlane.f32.xlu0 %v2747_v37  ;;  %v2182_v54 = vsel %vm2180_vm4, %v2181_v59, %v2179_v27  ;;  %v1852_v15 = vmul.f32 %v1851_v19, %v8795_v24  ;;  %vm1855_vm5 = vcmp.eq.f32.partialorder %v8795_v24, 0.0  ;;  %v1703_v30 = vmul.f32 2.0, %v12985_v14 }
 0x284   :  { %v2297_v61 = vmul.f32 %v2182_v54, %v2182_v54  ;;  %v2345_v16 = vmul.f32 %v2329_v0, %v2182_v54  ;;  %v8916_v62 = vadd.f32 -1.0, %v2029_v3  ;;  %v2554_v17 = vsub.f32 %v2522_v32, %v2538_v43 }
 0x285   :  { %v2602_v22 = vadd.f32 %v2586_v10, %v2570_v52  ;;  %v6706_v13 = vpop.eup %6705  ;;  %v1856_v31 = vand.u32 2147483648, %v8795_v24  ;;  %v1909_v58 = vmul.f32 0.5, %v1908_v49  ;;  %v1854_v28 = vsel %vm1853_vm2, %v8795_v24, %v1852_v15 }
 0x286   :  { %v2313_v6 = vsub.f32 %v2297_v61, %v8836_v35  ;;  %v2409_v34 = vmul.f32 2.0, %v2345_v16  ;;  %v8922_v1 = vpop.eup %6707  ;;  %v2618_v40 = vmul.f32 %v12986_v41, %v2554_v17  ;;  %v2232_v42 = vmul.f32 %v6706_v13, %v8902_v50 }
 0x287   :  { %v2634_v0 = vmul.f32 %v2602_v22, %v1869_v20  ;;  %v8928_v45 = vmul.f32 %v8916_v62, %v8916_v62  ;;  %v2377_v19 = vmul.f32 %v2345_v16, %v2345_v16  ;;  %v8934_v46 = vadd.f32 -1.0, %v1703_v30 }
 0x288   :  { %v2361_v60 = vmul.f32 %v2313_v6, %v2313_v6  ;;  %v2425_v35 = vmul.f32 %v2409_v34, %v2313_v6  ;;  %v2233_v26 = vmul.f32 %v6706_v13, %v2232_v42  ;;  %v1910_v38 = vsub.f32 1.5, %v1909_v58 }
 0x289   :  { %v2650_v55 = vsub.f32 %v2618_v40, %v2634_v0  ;;  %v2077_v44 = vsub.f32 1.0, %v8928_v45  ;;  %v1895_v37 = vmul.f32 %v8922_v1, %v8896_v25  ;;  %v1857_v8 = vsel %vm1855_vm5, %v1856_v31, %v1854_v28 }
 0x28a   :  { %v2393_v20 = vsub.f32 %v2361_v60, %v2377_v19  ;;  %v2489_v18 = vmul.f32 2.0, %v2425_v35  ;;  %v2234_v59 = vmul.f32 0.5, %v2233_v26  ;;  %v2457_v49 = vmul.f32 %v2425_v35, %v2425_v35 }
 0x28b   :  { %v2666_v11 = vadd.f32 1.0, %v2650_v55  ;;  %v8940_v43 = vmax.f32 %v2077_v44, 0.0  ;;  %v1708_v32 = vmul.f32 2.0, %v12982_v23  ;;  %v1735_v54 = vmul.f32 %v8934_v46, %v8934_v46 }
 0x28c   :  { %v2441_v27 = vmul.f32 %v2393_v20, %v2393_v20  ;;  %v2505_v3 = vmul.f32 %v2489_v18, %v2393_v20  ;;  %v2235_v10 = vsub.f32 1.5, %v2234_v59  ;;  %v1911_v61 = vmul.f32 %v8889_v33, %v1910_v38 }
 0x28d   :  { %v2682_v52 = vmul.f32 0.5, %v2666_v11  ;;  %6709 = vrsqrt.f32 %v8940_v43  ;;  %v2334_v24 = vmul.f32 2.0, %v8880_v63  ;;  %v1896_v17 = vmul.f32 %v8922_v1, %v1895_v37 }
 0x28e   :  { %v2473_v15 = vsub.f32 %v2441_v27, %v2457_v49  ;;  %v2236_v30 = vmul.f32 %v6706_v13, %v2235_v10  ;;  %vm2238_vm6 = vcmp.eq.f32.partialorder %v8902_v50, inf  ;;  %vm2240_vm7 = vcmp.eq.f32.partialorder %v8902_v50, 0.0 }
 0x28f   :  { %v2714_v22 = vmul.f32 2.0, %v2682_v52  ;;  %v2537_v34 = vmul.f32 %v2505_v3, %v2345_v16  ;;  %v2585_v41 = vmul.f32 %v2505_v3, %v2313_v6  ;;  %v2241_v33 = vand.u32 2147483648, %v8902_v50 }
 0x290   :  { %v2521_v31 = vmul.f32 %v2473_v15, %v2313_v6  ;;  %v2569_v58 = vmul.f32 %v2473_v15, %v2345_v16  ;;  %v2237_v0 = vmul.f32 %v2236_v30, %v8902_v50  ;;  %v1996_v63 = vsub.f32 %v8422_v29, %v12985_v14 }
 0x291   :  { %v8951_v40 = vadd.f32 -1.0, %v2714_v22  ;;  %v1897_v13 = vmul.f32 0.5, %v1896_v17  ;;  %v1751_v60 = vsub.f32 1.0, %v1735_v54  ;;  %v8962_v55 = vadd.f32 -1.0, %v1708_v32 }
 0x292   :  { %v2553_v42 = vsub.f32 %v2521_v31, %v2537_v34  ;;  %v2601_v28 = vadd.f32 %v2585_v41, %v2569_v58  ;;  %v2239_v16 = vsel %vm2238_vm6, %v8902_v50, %v2237_v0  ;;  %v2012_v6 = vmul.f32 0.0078125, %v1996_v63 }
 0x293   :  { %v6710_v19 = vpop.eup %6709  ;;  %v2746_v35 = vmul.f32 %v8951_v40, %v8951_v40  ;;  %v2242_v14 = vsel %vm2240_vm7, %v2241_v33, %v2239_v16  ;;  %v2281_v18 = vmul.f32 %v8854_v48, %v8874_v53  ;;  %v1912_v27 = vmul.f32 %v1911_v61, %v8857_v4 }
 0x294   :  { %v2617_v26 = vmul.f32 %v8767_v36, %v2553_v42  ;;  %v2633_v44 = vmul.f32 %v2601_v28, %v1857_v8  ;;  %v2220_v20 = vmul.f32 %v6710_v19, %v8940_v43  ;;  %v2302_v38 = vmul.f32 %v2242_v14, %v2242_v14 }
 0x295   :  { %2769 = vadd.xlane.f32.xlu2 %v2746_v35  ;;  %v2350_v37 = vmul.f32 %v2334_v24, %v2242_v14  ;;  %v2028_v11 = vmul.f32 2.0, %v2012_v6  ;;  %vm1913_vm8 = vcmp.eq.f32.partialorder %v8857_v4, inf  ;;  %v8973_v50 = vmax.f32 %v1751_v60, 0.0 }
 0x296   :  { %v2649_v59 = vsub.f32 %v2617_v26, %v2633_v44  ;;  %v2221_v49 = vmul.f32 %v6710_v19, %v2220_v20  ;;  %v2318_v36 = vsub.f32 %v2302_v38, %v8887_v56  ;;  %v1740_v3 = vmul.f32 %v8962_v55, %v8962_v55 }
 0x297   :  { %v2414_v8 = vmul.f32 2.0, %v2350_v37  ;;  %v1898_v53 = vsub.f32 1.5, %v1897_v13  ;;  %v8977_v10 = vadd.f32 -1.0, %v2028_v11  ;;  %v1916_v54 = vand.u32 2147483648, %v8857_v4 }
 0x298   :  { %v2665_v32 = vadd.f32 1.0, %v2649_v59  ;;  %v2222_v52 = vmul.f32 0.5, %v2221_v49  ;;  %v2366_v15 = vmul.f32 %v2318_v36, %v2318_v36  ;;  %v2382_v61 = vmul.f32 %v2350_v37, %v2350_v37 }
 0x299   :  { %v2430_v24 = vmul.f32 %v2414_v8, %v2318_v36  ;;  %v1914_v22 = vsel %vm1913_vm8, %v8857_v4, %v1912_v27  ;;  %v8983_v30 = vmul.f32 %v8977_v10, %v8977_v10  ;;  %6711 = vrsqrt.f32 %v8973_v50 }
 0x29a   :  { %v2681_v17 = vmul.f32 0.5, %v2665_v32  ;;  %v2223_v56 = vsub.f32 1.5, %v2222_v52  ;;  %v2398_v31 = vsub.f32 %v2366_v15, %v2382_v61  ;;  %v1756_v58 = vsub.f32 1.0, %v1740_v3 }
 0x29b   :  { %v2494_v34 = vmul.f32 2.0, %v2430_v24  ;;  %v1899_v0 = vmul.f32 %v8922_v1, %v1898_v53  ;;  %v2076_v63 = vsub.f32 1.0, %v8983_v30  ;;  %v2462_v28 = vmul.f32 %v2430_v24, %v2430_v24 }
 0x29c   :  { %v2713_v41 = vmul.f32 2.0, %v2681_v17  ;;  %v2224_v33 = vmul.f32 %v6710_v19, %v2223_v56  ;;  %v2446_v42 = vmul.f32 %v2398_v31, %v2398_v31  ;;  %v2333_v60 = vmul.f32 2.0, %v8916_v62 }
 0x29d   :  { %v2510_v13 = vmul.f32 %v2494_v34, %v2398_v31  ;;  %vm2226_vm9 = vcmp.eq.f32.partialorder %v8940_v43, inf  ;;  %v8993_v6 = vmax.f32 %v2076_v63, 0.0  ;;  %vm2228_vm10 = vcmp.eq.f32.partialorder %v8940_v43, 0.0  ;;  %v12987_v31 = vld [vmem:[#allocation9_spill] sm:$0xff] }
 0x29e   :  { %v8989_v35 = vadd.f32 -1.0, %v2713_v41  ;;  %v2225_v16 = vmul.f32 %v2224_v33, %v8940_v43  ;;  %v2478_v26 = vsub.f32 %v2446_v42, %v2462_v28  ;;  %v2229_v1 = vand.u32 2147483648, %v8940_v43 }
 0x29f   :  { %v8997_v19 = vmax.f32 %v1756_v58, 0.0  ;;  %v2542_v14 = vmul.f32 %v2510_v13, %v2350_v37  ;;  %6713 = vrsqrt.f32 %v8993_v6  ;;  %v9003_v20 = vpop.eup %6711  ;;  %v2590_v59 = vmul.f32 %v2510_v13, %v2318_v36 }
 0x2a0   :  { %v2745_v44 = vmul.f32 %v8989_v35, %v8989_v35  ;;  %v2227_v62 = vsel %vm2226_vm9, %v8940_v43, %v2225_v16  ;;  %v2526_v38 = vmul.f32 %v2478_v26, %v2318_v36  ;;  %v2574_v11 = vmul.f32 %v2478_v26, %v2350_v37 }
 0x2a1   :  { %v2230_v27 = vsel %vm2228_vm10, %v2229_v1, %v2227_v62  ;;  %v9005_v49 = vmul.f32 0.5, %v2281_v18  ;;  %vm1915_vm11 = vcmp.eq.f32.partialorder %v8857_v4, 0.0  ;;  %v2017_v43 = vmul.f32 0.0078125, %v2001_v7 }
 0x2a2   :  { %2767 = vadd.xlane.f32.xlu1 %v2745_v44  ;;  %v2301_v8 = vmul.f32 %v2230_v27, %v2230_v27  ;;  %v2349_v3 = vmul.f32 %v2333_v60, %v2230_v27  ;;  %v1917_v32 = vsel %vm1915_vm11, %v1916_v54, %v1914_v22  ;;  %v2558_v53 = vsub.f32 %v2526_v38, %v2542_v14 }
 0x2a3   :  { %v2606_v52 = vadd.f32 %v2590_v59, %v2574_v11  ;;  %v1883_v37 = vmul.f32 %v9003_v20, %v8973_v50  ;;  %6715 = vrsqrt.f32 %v8997_v19  ;;  %v1900_v36 = vmul.f32 %v1899_v0, %v8896_v25 }
 0x2a4   :  { %v2317_v15 = vsub.f32 %v2301_v8, %v8928_v45  ;;  %v2413_v61 = vmul.f32 2.0, %v2349_v3  ;;  %v2622_v18 = vmul.f32 %v8819_v9, %v2558_v53  ;;  %v2033_v54 = vmul.f32 2.0, %v2017_v43 }
 0x2a5   :  { %v2638_v4 = vmul.f32 %v2606_v52, %v1917_v32  ;;  %v6714_v24 = vpop.eup %6713  ;;  %vm1901_vm12 = vcmp.eq.f32.partialorder %v8896_v25, inf  ;;  %v2381_v23 = vmul.f32 %v2349_v3, %v2349_v3  ;;  %v1707_v34 = vmul.f32 2.0, %v12987_v31 }
 0x2a6   :  { %v2365_v17 = vmul.f32 %v2317_v15, %v2317_v15  ;;  %v2429_v7 = vmul.f32 %v2413_v61, %v2317_v15  ;;  %v2208_v45 = vmul.f32 %v6714_v24, %v8993_v6  ;;  %v9019_v56 = vadd.f32 -1.0, %v2033_v54 }
 0x2a7   :  { %v2654_v22 = vsub.f32 %v2622_v18, %v2638_v4  ;;  %vm1903_vm13 = vcmp.eq.f32.partialorder %v8896_v25, 0.0  ;;  %v1884_v41 = vmul.f32 %v9003_v20, %v1883_v37  ;;  %v1902_v33 = vsel %vm1901_vm12, %v8896_v25, %v1900_v36 }
 0x2a8   :  { %v2397_v9 = vsub.f32 %v2365_v17, %v2381_v23  ;;  %v2493_v58 = vmul.f32 2.0, %v2429_v7  ;;  %v2209_v63 = vmul.f32 %v6714_v24, %v2208_v45  ;;  %v9027_v42 = vmul.f32 %v9019_v56, %v9019_v56 }
 0x2a9   :  { %v2670_v0 = vadd.f32 1.0, %v2654_v22  ;;  %v9029_v28 = vpop.eup %6715  ;;  %v1904_v13 = vand.u32 2147483648, %v8896_v25  ;;  %v2461_v16 = vmul.f32 %v2429_v7, %v2429_v7  ;;  %v9033_v62 = vadd.f32 -1.0, %v1707_v34 }
 0x2aa   :  { %v2445_v60 = vmul.f32 %v2397_v9, %v2397_v9  ;;  %v2509_v26 = vmul.f32 %v2493_v58, %v2397_v9  ;;  %v2210_v44 = vmul.f32 0.5, %v2209_v63  ;;  %v2081_v14 = vsub.f32 1.0, %v9027_v42 }
 0x2ab   :  { %v2686_v1 = vmul.f32 0.5, %v2670_v0  ;;  %v2283_v38 = vsub.f32 1.5, %v9005_v49  ;;  %v1905_v11 = vsel %vm1903_vm13, %v1904_v13, %v1902_v33  ;;  %v1885_v27 = vmul.f32 0.5, %v1884_v41 }
 0x2ac   :  { %v2477_v59 = vsub.f32 %v2445_v60, %v2461_v16  ;;  %v2211_v32 = vsub.f32 1.5, %v2210_v44  ;;  %v1943_v53 = vmul.f32 %v9029_v28, %v8997_v19  ;;  %v9040_v52 = vmax.f32 %v2081_v14, 0.0 }
 0x2ad   :  { %v2718_v8 = vmul.f32 2.0, %v2686_v1  ;;  %v2541_v61 = vmul.f32 %v2509_v26, %v2349_v3  ;;  %v2589_v18 = vmul.f32 %v2509_v26, %v2317_v15  ;;  %v1739_v25 = vmul.f32 %v9033_v62, %v9033_v62 }
 0x2ae   :  { %v2525_v43 = vmul.f32 %v2477_v59, %v2317_v15  ;;  %v2573_v37 = vmul.f32 %v2477_v59, %v2349_v3  ;;  %v2212_v36 = vmul.f32 %v6714_v24, %v2211_v32  ;;  %6717 = vrsqrt.f32 %v9040_v52 }
 0x2af   :  { %v9042_v4 = vadd.f32 -1.0, %v2718_v8  ;;  %v1886_v17 = vsub.f32 1.5, %v1885_v27  ;;  %v2332_v23 = vmul.f32 2.0, %v8977_v10  ;;  %vm2214_vm14 = vcmp.eq.f32.partialorder %v8993_v6, inf }
 0x2b0   :  { %v2557_v49 = vsub.f32 %v2525_v43, %v2541_v61  ;;  %v2605_v54 = vadd.f32 %v2589_v18, %v2573_v37  ;;  %v2213_v22 = vmul.f32 %v2212_v36, %v8993_v6  ;;  %v2000_v3 = vsub.f32 %v8422_v29, %v12987_v31  ;;  %v12988_v31 = vld [vmem:[#allocation12_spill] sm:$0xff] }
 0x2b1   :  { %v2750_v7 = vmul.f32 %v9042_v4, %v9042_v4  ;;  %v2217_v45 = vand.u32 2147483648, %v8993_v6  ;;  %v1944_v34 = vmul.f32 %v9029_v28, %v1943_v53  ;;  %vm2216_vm15 = vcmp.eq.f32.partialorder %v8993_v6, 0.0 }
 0x2b2   :  { %v2621_v15 = vmul.f32 %v8852_v47, %v2557_v49  ;;  %v2637_v24 = vmul.f32 %v2605_v54, %v1905_v11  ;;  %v2215_v10 = vsel %vm2214_vm14, %v8993_v6, %v2213_v22  ;;  %v1755_v9 = vsub.f32 1.0, %v1739_v25  ;;  %v12989_v11 = vld [vmem:[#allocation8_spill] sm:$0xff] }
 0x2b3   :  { %2777 = vadd.xlane.f32.xlu0 %v2750_v7  ;;  %v2016_v58 = vmul.f32 0.0078125, %v2000_v3  ;;  %v9060_v41 = vmul.f32 %v8854_v48, %v2283_v38  ;;  %v2218_v33 = vsel %vm2216_vm15, %v2217_v45, %v2215_v10  ;;  %v1709_v63 = vmul.f32 2.0, %v12988_v31 }
 0x2b4   :  { %v2653_v0 = vsub.f32 %v2621_v15, %v2637_v24  ;;  %v6718_v47 = vpop.eup %6717  ;;  %v1887_v13 = vmul.f32 %v9003_v20, %v1886_v17  ;;  %v2300_v60 = vmul.f32 %v2218_v33, %v2218_v33  ;;  %v2348_v16 = vmul.f32 %v2332_v23, %v2218_v33 }
 0x2b5   :  { %v2032_v26 = vmul.f32 2.0, %v2016_v58  ;;  %vm1889_vm0 = vcmp.eq.f32.partialorder %v8973_v50, inf  ;;  %v1945_v44 = vmul.f32 0.5, %v1944_v34  ;;  %v2268_v6 = vmul.f32 %v6718_v47, %v9040_v52 }
 0x2b6   :  { %v2669_v1 = vadd.f32 1.0, %v2653_v0  ;;  %v2316_v14 = vsub.f32 %v2300_v60, %v8983_v30  ;;  %v2412_v48 = vmul.f32 2.0, %v2348_v16  ;;  %v9067_v38 = vmax.f32 %v1755_v9, 0.0 }
 0x2b7   :  { %v1706_v59 = vmul.f32 2.0, %v12989_v11  ;;  %v2269_v8 = vmul.f32 %v6718_v47, %v2268_v6  ;;  %v9070_v32 = vadd.f32 -1.0, %v2032_v26  ;;  %v9072_v20 = vadd.f32 -1.0, %v1709_v63 }
 0x2b8   :  { %v2685_v27 = vmul.f32 0.5, %v2669_v1  ;;  %v1888_v53 = vmul.f32 %v1887_v13, %v8973_v50  ;;  %v2364_v43 = vmul.f32 %v2316_v14, %v2316_v14  ;;  %v2380_v61 = vmul.f32 %v2348_v16, %v2348_v16 }
 0x2b9   :  { %v2428_v37 = vmul.f32 %v2412_v48, %v2316_v14  ;;  %v1946_v36 = vsub.f32 1.5, %v1945_v44  ;;  %v2270_v25 = vmul.f32 0.5, %v2269_v8  ;;  %v9077_v30 = vmul.f32 %v9070_v32, %v9070_v32 }
 0x2ba   :  { %v2717_v18 = vmul.f32 2.0, %v2685_v27  ;;  %vm1891_vm1 = vcmp.eq.f32.partialorder %v8973_v50, 0.0  ;;  %v2396_v49 = vsub.f32 %v2364_v43, %v2380_v61  ;;  %6719 = vrsqrt.f32 %v9067_v38 }
 0x2bb   :  { %v2492_v54 = vmul.f32 2.0, %v2428_v37  ;;  %v9081_v17 = vadd.f32 -1.0, %v1706_v59  ;;  %v2271_v7 = vsub.f32 1.5, %v2270_v25  ;;  %v2080_v22 = vsub.f32 1.0, %v9077_v30 }
 0x2bc   :  { %v9083_v23 = vadd.f32 -1.0, %v2717_v18  ;;  %v1741_v3 = vmul.f32 %v9072_v20, %v9072_v20  ;;  %v1892_v15 = vand.u32 2147483648, %v8973_v50  ;;  %v2444_v24 = vmul.f32 %v2396_v49, %v2396_v49 }
 0x2bd   :  { %v2460_v45 = vmul.f32 %v2428_v37, %v2428_v37  ;;  %v2508_v34 = vmul.f32 %v2492_v54, %v2396_v49  ;;  %v1890_v9 = vsel %vm1889_vm0, %v8973_v50, %v1888_v53  ;;  %v2272_v58 = vmul.f32 %v6718_v47, %v2271_v7 }
 0x2be   :  { %v2749_v10 = vmul.f32 %v9083_v23, %v9083_v23  ;;  %v9094_v0 = vmax.f32 %v2080_v22, 0.0  ;;  %v1947_v31 = vmul.f32 %v9029_v28, %v1946_v36  ;;  %vm2274_vm2 = vcmp.eq.f32.partialorder %v9040_v52, inf }
 0x2bf   :  { %v2476_v33 = vsub.f32 %v2444_v24, %v2460_v45  ;;  %v1738_v63 = vmul.f32 %v9081_v17, %v9081_v17  ;;  %v2273_v13 = vmul.f32 %v2272_v58, %v9040_v52  ;;  %v2277_v60 = vand.u32 2147483648, %v9040_v52 }
 0x2c0   :  { %2775 = vadd.xlane.f32.xlu2 %v2749_v10  ;;  %6721 = vrsqrt.f32 %v9094_v0  ;;  %v1757_v26 = vsub.f32 1.0, %v1741_v3  ;;  %v9103_v1 = vpop.eup %6719  ;;  %v2540_v44 = vmul.f32 %v2508_v34, %v2348_v16  ;;  %v2588_v48 = vmul.f32 %v2508_v34, %v2316_v14 }
 0x2c1   :  { %v2524_v47 = vmul.f32 %v2476_v33, %v2316_v14  ;;  %v2572_v6 = vmul.f32 %v2476_v33, %v2348_v16  ;;  %v2275_v28 = vsel %vm2274_vm2, %v9040_v52, %v2273_v13  ;;  %vm2276_vm3 = vcmp.eq.f32.partialorder %v9040_v52, 0.0 }
 0x2c2   :  { %v2337_v59 = vmul.f32 2.0, %v9019_v56  ;;  %v1999_v27 = vsub.f32 %v8422_v29, %v12989_v11  ;;  %v2278_v43 = vsel %vm2276_vm3, %v2277_v60, %v2275_v28  ;;  %v1754_v61 = vsub.f32 1.0, %v1738_v63 }
 0x2c3   :  { %v2556_v8 = vsub.f32 %v2524_v47, %v2540_v44  ;;  %v2604_v53 = vadd.f32 %v2588_v48, %v2572_v6  ;;  %v1893_v37 = vsel %vm1891_vm1, %v1892_v15, %v1890_v9  ;;  %v2305_v18 = vmul.f32 %v2278_v43, %v2278_v43 }
 0x2c4   :  { %v2353_v36 = vmul.f32 %v2337_v59, %v2278_v43  ;;  %v2015_v16 = vmul.f32 0.0078125, %v1999_v27  ;;  %vm2286_vm4 = vcmp.eq.f32.partialorder %v8821_v2, inf  ;;  %v1931_v56 = vmul.f32 %v9103_v1, %v9067_v38 }
 0x2c5   :  { %v2620_v14 = vmul.f32 %v8934_v46, %v2556_v8  ;;  %v2636_v52 = vmul.f32 %v2604_v53, %v1893_v37  ;;  %v9116_v25 = vmax.f32 %v1757_v26, 0.0  ;;  %v2285_v11 = vmul.f32 %v9060_v41, %v8821_v2 }
 0x2c6   :  { %v6722_v29 = vpop.eup %6721  ;;  %v2321_v50 = vsub.f32 %v2305_v18, %v9027_v42  ;;  %v2417_v49 = vmul.f32 2.0, %v2353_v36  ;;  %v2031_v54 = vmul.f32 2.0, %v2015_v16  ;;  %v1948_v22 = vmul.f32 %v1947_v31, %v8997_v19 }
 0x2c7   :  { %v2652_v7 = vsub.f32 %v2620_v14, %v2636_v52  ;;  %v2256_v3 = vmul.f32 %v6722_v29, %v9094_v0  ;;  %v9123_v46 = vmax.f32 %v1754_v61, 0.0  ;;  %v2385_v24 = vmul.f32 %v2353_v36, %v2353_v36 }
 0x2c8   :  { %v2369_v15 = vmul.f32 %v2321_v50, %v2321_v50  ;;  %v2433_v45 = vmul.f32 %v2417_v49, %v2321_v50  ;;  %v9125_v34 = vadd.f32 -1.0, %v2031_v54  ;;  %v1932_v9 = vmul.f32 %v9103_v1, %v1931_v56 }
 0x2c9   :  { %v2668_v10 = vadd.f32 1.0, %v2652_v7  ;;  %v2257_v41 = vmul.f32 %v6722_v29, %v2256_v3  ;;  %6723 = vrsqrt.f32 %v9116_v25  ;;  %vm1949_vm5 = vcmp.eq.f32.partialorder %v8997_v19, inf }
 0x2ca   :  { %v2401_v42 = vsub.f32 %v2369_v15, %v2385_v24  ;;  %v2497_v58 = vmul.f32 2.0, %v2433_v45  ;;  %v9132_v33 = vmul.f32 %v9125_v34, %v9125_v34  ;;  %v1950_v63 = vsel %vm1949_vm5, %v8997_v19, %v1948_v22 }
 0x2cb   :  { %v2684_v31 = vmul.f32 0.5, %v2668_v10  ;;  %v2258_v13 = vmul.f32 0.5, %v2257_v41  ;;  %6725 = vrsqrt.f32 %v9123_v46  ;;  %vm2288_vm6 = vcmp.eq.f32.partialorder %v8821_v2, 0.0 }
 0x2cc   :  { %v2449_v60 = vmul.f32 %v2401_v42, %v2401_v42  ;;  %v2465_v26 = vmul.f32 %v2433_v45, %v2433_v45  ;;  %v2513_v47 = vmul.f32 %v2497_v58, %v2401_v42  ;;  %v2079_v44 = vsub.f32 1.0, %v9132_v33 }
 0x2cd   :  { %v2716_v6 = vmul.f32 2.0, %v2684_v31  ;;  %v1952_v48 = vand.u32 2147483648, %v8997_v19  ;;  %v1933_v28 = vmul.f32 0.5, %v1932_v9  ;;  %v2259_v59 = vsub.f32 1.5, %v2258_v13 }
 0x2ce   :  { %v2287_v27 = vsel %vm2286_vm4, %v8821_v2, %v2285_v11  ;;  %vm1951_vm7 = vcmp.eq.f32.partialorder %v8997_v19, 0.0  ;;  %v2481_v8 = vsub.f32 %v2449_v60, %v2465_v26  ;;  %v9143_v53 = vmax.f32 %v2079_v44, 0.0 }
 0x2cf   :  { %v9145_v43 = vpop.eup %6723  ;;  %v9147_v61 = vadd.f32 -1.0, %v2716_v6  ;;  %v1953_v37 = vsel %vm1951_vm7, %v1952_v48, %v1950_v63  ;;  %v2545_v18 = vmul.f32 %v2513_v47, %v2353_v36  ;;  %v2260_v16 = vmul.f32 %v6722_v29, %v2259_v59 }
 0x2d0   :  { %v2529_v14 = vmul.f32 %v2481_v8, %v2321_v50  ;;  %v2577_v52 = vmul.f32 %v2481_v8, %v2353_v36  ;;  %v2593_v56 = vmul.f32 %v2513_v47, %v2321_v50  ;;  %6727 = vrsqrt.f32 %v9143_v53 }
 0x2d1   :  { %v9150_v49 = vpop.eup %6725  ;;  %v2748_v19 = vmul.f32 %v9147_v61, %v9147_v61  ;;  %v1934_v11 = vsub.f32 1.5, %v1933_v28  ;;  %v2261_v54 = vmul.f32 %v2260_v16, %v9094_v0  ;;  %vm2262_vm8 = vcmp.eq.f32.partialorder %v9094_v0, inf }
 0x2d2   :  { %v2561_v7 = vsub.f32 %v2529_v14, %v2545_v18  ;;  %v2609_v22 = vadd.f32 %v2593_v56, %v2577_v52  ;;  %v2265_v3 = vand.u32 2147483648, %v9094_v0  ;;  %v1955_v36 = vmul.f32 %v9145_v43, %v9116_v25 }
 0x2d3   :  { %2773 = vadd.xlane.f32.xlu1 %v2748_v19  ;;  %v2263_v29 = vsel %vm2262_vm8, %v9094_v0, %v2261_v54  ;;  %vm2264_vm9 = vcmp.eq.f32.partialorder %v9094_v0, 0.0  ;;  %v2336_v50 = vmul.f32 2.0, %v9070_v32  ;;  %v2789_v15 = vpack.c.bf16 %v8781_v12, %v8797_v39 }
 0x2d4   :  { %v2625_v24 = vmul.f32 %v8962_v55, %v2561_v7  ;;  %v2641_v45 = vmul.f32 %v2609_v22, %v1953_v37  ;;  %v2266_v10 = vsel %vm2264_vm9, %v2265_v3, %v2263_v29  ;;  %v1919_v9 = vmul.f32 %v9150_v49, %v9123_v46 }
 0x2d5   :  { %v2290_v41 = vsel %vm2288_vm6, %v2289_v21, %v2287_v27  ;;  %v2304_v42 = vmul.f32 %v2266_v10, %v2266_v10  ;;  %v2352_v58 = vmul.f32 %v2336_v50, %v2266_v10  ;;  %2861 = vmatmul.bf16.gmra.mxu2 %v2789_v15  ;;  %v1956_v31 = vmul.f32 %v9145_v43, %v1955_v36 }
 0x2d6   :  { %v6728_v0 = vpop.eup %6727  ;;  %v2657_v32 = vsub.f32 %v2625_v24, %v2641_v45  ;;  %v1935_v12 = vmul.f32 %v9103_v1, %v1934_v11  ;;  %v2306_v13 = vmul.f32 %v2290_v41, %v2290_v41  ;;  %v1920_v26 = vmul.f32 %v9150_v49, %v1919_v9 }
 0x2d7   :  { %v2320_v39 = vsub.f32 %v2304_v42, %v9077_v30  ;;  %v2416_v55 = vmul.f32 2.0, %v2352_v58  ;;  %v2244_v63 = vmul.f32 %v6728_v0, %v9143_v53  ;;  %v2384_v21 = vmul.f32 %v2352_v58, %v2352_v58 }
 0x2d8   :  { %v2673_v60 = vadd.f32 1.0, %v2657_v32  ;;  %v2338_v6 = vmul.f32 2.0, %v8762_v51  ;;  %v1957_v28 = vmul.f32 0.5, %v1956_v31  ;;  %v1936_v59 = vmul.f32 %v1935_v12, %v9067_v38 }
 0x2d9   :  { %v2368_v2 = vmul.f32 %v2320_v39, %v2320_v39  ;;  %v2432_v47 = vmul.f32 %v2416_v55, %v2320_v39  ;;  %v2245_v44 = vmul.f32 %v6728_v0, %v2244_v63  ;;  %v9179_v8 = vsub.f32 %v2306_v13, %v8777_v57 }
 0x2da   :  { %v2689_v48 = vmul.f32 0.5, %v2673_v60  ;;  %v9181_v37 = vmul.f32 %v2338_v6, %v2290_v41  ;;  %v1921_v16 = vmul.f32 0.5, %v1920_v26  ;;  %vm1937_vm10 = vcmp.eq.f32.partialorder %v9067_v38, inf }
 0x2db   :  { %v2400_v1 = vsub.f32 %v2368_v2, %v2384_v21  ;;  %v2496_v27 = vmul.f32 2.0, %v2432_v47  ;;  %v2246_v30 = vmul.f32 0.5, %v2245_v44  ;;  %v2464_v52 = vmul.f32 %v2432_v47, %v2432_v47 }
 0x2dc   :  { %v2721_v18 = vmul.f32 2.0, %v2689_v48  ;;  %vm1939_vm11 = vcmp.eq.f32.partialorder %v9067_v38, 0.0  ;;  %v1958_v51 = vsub.f32 1.5, %v1957_v28  ;;  %v1938_v54 = vsel %vm1937_vm10, %v9067_v38, %v1936_v59 }
 0x2dd   :  { %v2448_v14 = vmul.f32 %v2400_v1, %v2400_v1  ;;  %v2512_v56 = vmul.f32 %v2496_v27, %v2400_v1  ;;  %v2247_v19 = vsub.f32 1.5, %v2246_v30  ;;  %v1940_v57 = vand.u32 2147483648, %v9067_v38 }
 0x2de   :  { %v9183_v11 = vadd.f32 -1.0, %v2721_v18  ;;  %v1922_v29 = vsub.f32 1.5, %v1921_v16  ;;  %v2335_v50 = vmul.f32 2.0, %v9125_v34  ;;  %vm2250_vm12 = vcmp.eq.f32.partialorder %v9143_v53, inf }
 0x2df   :  { %v2480_v7 = vsub.f32 %v2448_v14, %v2464_v52  ;;  %v2248_v22 = vmul.f32 %v6728_v0, %v2247_v19  ;;  %v2544_v36 = vmul.f32 %v2512_v56, %v2352_v58  ;;  %v2592_v45 = vmul.f32 %v2512_v56, %v2320_v39 }
 0x2e0   :  { %v2753_v3 = vmul.f32 %v9183_v11, %v9183_v11  ;;  %vm2252_vm13 = vcmp.eq.f32.partialorder %v9143_v53, 0.0  ;;  %v2253_v9 = vand.u32 2147483648, %v9143_v53  ;;  %v1959_v41 = vmul.f32 %v9145_v43, %v1958_v51 }
 0x2e1   :  { %v2528_v15 = vmul.f32 %v2480_v7, %v2320_v39  ;;  %v2576_v24 = vmul.f32 %v2480_v7, %v2352_v58  ;;  %v2249_v10 = vmul.f32 %v2248_v22, %v9143_v53  ;;  %v2370_v34 = vmul.f32 %v9179_v8, %v9179_v8 }
 0x2e2   :  { %2783 = vadd.xlane.f32.xlu0 %v2753_v3  ;;  %v1941_v58 = vsel %vm1939_vm11, %v1940_v57, %v1938_v54  ;;  %v2386_v12 = vmul.f32 %v9181_v37, %v9181_v37  ;;  %v2418_v39 = vmul.f32 2.0, %v9181_v37  ;;  %v1923_v60 = vmul.f32 %v9150_v49, %v1922_v29 }
 0x2e3   :  { %v2560_v42 = vsub.f32 %v2528_v15, %v2544_v36  ;;  %v2608_v0 = vadd.f32 %v2592_v45, %v2576_v24  ;;  %v2251_v32 = vsel %vm2250_vm12, %v9143_v53, %v2249_v10  ;;  %v1960_v53 = vmul.f32 %v1959_v41, %v9116_v25 }
 0x2e4   :  { %v2254_v31 = vsel %vm2252_vm13, %v2253_v9, %v2251_v32  ;;  %v2402_v26 = vsub.f32 %v2370_v34, %v2386_v12  ;;  %v2434_v2 = vmul.f32 %v2418_v39, %v9179_v8  ;;  %vm1925_vm14 = vcmp.eq.f32.partialorder %v9123_v46, inf }
 0x2e5   :  { %v2624_v55 = vmul.f32 %v9033_v62, %v2560_v42  ;;  %v2640_v63 = vmul.f32 %v2608_v0, %v1941_v58  ;;  %v2303_v43 = vmul.f32 %v2254_v31, %v2254_v31  ;;  %v2351_v13 = vmul.f32 %v2335_v50, %v2254_v31 }
 0x2e6   :  { %vm1961_vm15 = vcmp.eq.f32.partialorder %v9116_v25, inf  ;;  %v2450_v44 = vmul.f32 %v2402_v26, %v2402_v26  ;;  %v2466_v62 = vmul.f32 %v2434_v2, %v2434_v2  ;;  %v2498_v6 = vmul.f32 2.0, %v2434_v2 }
 0x2e7   :  { %v2656_v38 = vsub.f32 %v2624_v55, %v2640_v63  ;;  %v2319_v21 = vsub.f32 %v2303_v43, %v9132_v33  ;;  %v2415_v47 = vmul.f32 2.0, %v2351_v13  ;;  %v2383_v59 = vmul.f32 %v2351_v13, %v2351_v13 }
 0x2e8   :  { %v1924_v1 = vmul.f32 %v1923_v60, %v9123_v46  ;;  %v1962_v27 = vsel %vm1961_vm15, %v9116_v25, %v1960_v53  ;;  %v2482_v30 = vsub.f32 %v2450_v44, %v2466_v62  ;;  %v2514_v18 = vmul.f32 %v2498_v6, %v2402_v26  ;;  %v2756_v62 = vpop.xlane.xlu1 %2755 }
 0x2e9   :  { %v2672_v48 = vadd.f32 1.0, %v2656_v38  ;;  %v2367_v28 = vmul.f32 %v2319_v21, %v2319_v21  ;;  %v2431_v49 = vmul.f32 %v2415_v47, %v2319_v21  ;;  %v2790_v3 = vpack.c.bf16 %v8951_v40, %v8989_v35 }
 0x2ea   :  { %v2530_v56 = vmul.f32 %v2482_v30, %v9179_v8  ;;  %v2546_v19 = vmul.f32 %v2514_v18, %v9181_v37  ;;  %v2578_v51 = vmul.f32 %v2482_v30, %v9181_v37  ;;  %v2594_v54 = vmul.f32 %v2514_v18, %v9179_v8 }
 0x2eb   :  { %v2688_v16 = vmul.f32 0.5, %v2672_v48  ;;  %v2399_v14 = vsub.f32 %v2367_v28, %v2383_v59  ;;  %v2463_v52 = vmul.f32 %v2431_v49, %v2431_v49  ;;  %v2495_v33 = vmul.f32 2.0, %v2431_v49  ;;  %2866 = vmatmul.bf16.gmra.mxu2 %v2790_v3  ;;  %v2758_v28 = vpop.xlane.xlu2 %2757 }
 0x2ec   :  { %v1964_v36 = vand.u32 2147483648, %v9116_v25  ;;  %v2562_v29 = vsub.f32 %v2530_v56, %v2546_v19  ;;  %v2610_v50 = vadd.f32 %v2594_v54, %v2578_v51  ;;  %v2792_v15 = vpack.c.bf16 %v9042_v4, %v9083_v23 }
 0x2ed   :  { %v2720_v57 = vmul.f32 2.0, %v2688_v16  ;;  %v2447_v7 = vmul.f32 %v2399_v14, %v2399_v14  ;;  %v2511_v22 = vmul.f32 %v2495_v33, %v2399_v14  ;;  %v1926_v37 = vsel %vm1925_vm14, %v9123_v46, %v1924_v1  ;;  %v2760_v14 = vpop.xlane.xlu0 %2759 }
 0x2ee   :  { %vm1963_vm0 = vcmp.eq.f32.partialorder %v9116_v25, 0.0  ;;  %v2626_v40 = vmul.f32 %v9072_v20, %v2562_v29  ;;  %v1928_v4 = vand.u32 2147483648, %v9123_v46  ;;  %vm1927_vm1 = vcmp.eq.f32.partialorder %v9123_v46, 0.0 }
 0x2ef   :  { %v6386_v24 = vadd.f32 -1.0, %v2720_v57  ;;  %v2479_v45 = vsub.f32 %v2447_v7, %v2463_v52  ;;  %v2543_v8 = vmul.f32 %v2511_v22, %v2351_v13  ;;  %v2591_v10 = vmul.f32 %v2511_v22, %v2319_v21 }
 0x2f0   :  { %v1965_v9 = vsel %vm1963_vm0, %v1964_v36, %v1962_v27  ;;  %v1929_v34 = vsel %vm1927_vm1, %v1928_v4, %v1926_v37  ;;  %v2762_v57 = vpop.xlane.xlu1 %2761 }
 0x2f1   :  { %v2752_v35 = vmul.f32 %v6386_v24, %v6386_v24  ;;  %v2527_v41 = vmul.f32 %v2479_v45, %v2319_v21  ;;  %v2575_v42 = vmul.f32 %v2479_v45, %v2351_v13  ;;  %v2642_v0 = vmul.f32 %v2610_v50, %v1965_v9 }
 0x2f2   :  { %v2791_v13 = vpack.c.bf16 %v9147_v61, %v8898_v5 }
 0x2f3   :  { %2781 = vadd.xlane.f32.xlu2 %v2752_v35  ;;  %v2559_v23 = vsub.f32 %v2527_v41, %v2543_v8  ;;  %v2607_v32 = vadd.f32 %v2591_v10, %v2575_v42  ;;  %v2658_v31 = vsub.f32 %v2626_v40, %v2642_v0 }
 0x2f5   :  { %v2623_v25 = vmul.f32 %v9081_v17, %v2559_v23  ;;  %v2639_v58 = vmul.f32 %v2607_v32, %v1929_v34  ;;  %v2674_v55 = vadd.f32 1.0, %v2658_v31  ;;  %v2852_v17 = vpop.f32.mrf.mxu2  ;;  %v2766_v31 = vpop.xlane.xlu0 %2765 }
 0x2f6   :  { %v2892_v38 = vmul.f32 %v2852_v17, %v2852_v17 }
 0x2f7   :  { %v2655_v12 = vsub.f32 %v2623_v25, %v2639_v58  ;;  %v2690_v43 = vmul.f32 0.5, %v2674_v55 }
 0x2f8   :  { %v2908_v21 = vadd.f32 128.0, %v2892_v38 }
 0x2f9   :  { %v2671_v39 = vadd.f32 1.0, %v2655_v12  ;;  %v2722_v46 = vmul.f32 2.0, %v2690_v43 }
 0x2fa   :  { %v2924_v6 = vsub.f32 %v2908_v21, %v2756_v62 }
 0x2fb   :  { %v2687_v20 = vmul.f32 0.5, %v2671_v39  ;;  %2871 = vmatmul.bf16.gmra.mxu2 %v2791_v13  ;;  %v6388_v26 = vadd.f32 -1.0, %v2722_v46 }
 0x2fc   :  { %v2940_v61 = vmul.f32 6.1035156e-05, %v2924_v6 }
 0x2fd   :  { %v2719_v63 = vmul.f32 2.0, %v2687_v20  ;;  %v2754_v2 = vmul.f32 %v6388_v26, %v6388_v26  ;;  %v2854_v47 = vpop.f32.mrf.mxu2  ;;  %v2794_v27 = vpack.c.bf16 %v6388_v26, %v9183_v11 }
 0x2fe   :  { %v2893_v44 = vmul.f32 %v2854_v47, %v2854_v47  ;;  %v2956_v35 = vmul.f32 2.0, %v2940_v61 }
 0x2ff   :  { %v6385_v60 = vadd.f32 -1.0, %v2719_v63 }
 0x300   :  { %v2909_v48 = vadd.f32 128.0, %v2893_v44  ;;  %v9236_v0 = vadd.f32 -1.0, %v2956_v35 }
 0x301   :  { %v2751_v53 = vmul.f32 %v6385_v60, %v6385_v60  ;;  %v2793_v59 = vpack.c.bf16 %v6386_v24, %v6385_v60 }
 0x302   :  { %v2925_v5 = vsub.f32 %v2909_v48, %v2758_v28  ;;  %v2988_v32 = vmul.f32 %v9236_v0, %v9236_v0  ;;  %v2772_v48 = vpop.xlane.xlu0 %2771 }
 0x303   :  { %2779 = vadd.xlane.f32.xlu1 %v2751_v53 }
 0x304   :  { %v2941_v49 = vmul.f32 6.1035156e-05, %v2925_v5  ;;  %v3004_v55 = vsub.f32 1.0, %v2988_v32 }
 0x305   :  { %v2857_v30 = vpop.f32.mrf.mxu2 }
 0x306   :  { %v3228_v1 = vadd.f32 %v2941_v49, %v2940_v61  ;;  %v2894_v18 = vmul.f32 %v2857_v30, %v2857_v30  ;;  %v2957_v41 = vmul.f32 2.0, %v2941_v49  ;;  %v9252_v46 = vmax.f32 %v3004_v55, 0.0 }
 0x308   :  { %v2910_v16 = vadd.f32 128.0, %v2894_v18  ;;  %v9238_v4 = vadd.f32 -1.0, %v2957_v41  ;;  %6729 = vrsqrt.f32 %v9252_v46  ;;  %vm3043_vm2 = vcmp.eq.f32.partialorder %v9252_v46, inf }
 0x309   :  { %vm3045_vm3 = vcmp.eq.f32.partialorder %v9252_v46, 0.0 }
 0x30a   :  { %v2926_v52 = vsub.f32 %v2910_v16, %v2760_v14  ;;  %v2989_v25 = vmul.f32 %v9238_v4, %v9238_v4 }
 0x30b   :  { %2785 = vadd.xlane.f32.xlu1 %v2754_v2  ;;  %2876 = vmatmul.bf16.gmra.mxu2 %v2792_v15  ;;  %v2764_v15 = vpop.xlane.xlu2 %2763 }
 0x30c   :  { %v2942_v33 = vmul.f32 6.1035156e-05, %v2926_v52  ;;  %v3005_v63 = vsub.f32 1.0, %v2989_v25 }
 0x30d   :  { %v2859_v19 = vpop.f32.mrf.mxu2 }
 0x30e   :  { %v3229_v56 = vadd.f32 %v3228_v1, %v2942_v33  ;;  %v2895_v51 = vmul.f32 %v2859_v19, %v2859_v19  ;;  %v2958_v23 = vmul.f32 2.0, %v2942_v33  ;;  %v9256_v2 = vmax.f32 %v3005_v63, 0.0  ;;  %v9266_v19 = vpop.eup %6729 }
 0x310   :  { %v2911_v54 = vadd.f32 128.0, %v2895_v51  ;;  %v9244_v39 = vadd.f32 -1.0, %v2958_v23  ;;  %6731 = vrsqrt.f32 %v9256_v2  ;;  %vm3055_vm4 = vcmp.eq.f32.partialorder %v9256_v2, inf }
 0x311   :  { %vm3057_vm5 = vcmp.eq.f32.partialorder %v9256_v2, 0.0 }
 0x312   :  { %v2927_v7 = vsub.f32 %v2911_v54, %v2762_v57  ;;  %v2990_v53 = vmul.f32 %v9244_v39, %v9244_v39 }
 0x313   :  { %v2770_v21 = vpop.xlane.xlu2 %2769 }
 0x314   :  { %v2943_v22 = vmul.f32 6.1035156e-05, %v2927_v7  ;;  %v3006_v62 = vsub.f32 1.0, %v2990_v53 }
 0x315   :  { %v2768_v60 = vpop.xlane.xlu1 %2767 }
 0x316   :  { %v3230_v29 = vadd.f32 %v3229_v56, %v2943_v22  ;;  %v2959_v34 = vmul.f32 2.0, %v2943_v22  ;;  %v9262_v1 = vmax.f32 %v3006_v62, 0.0  ;;  %v9270_v57 = vpop.eup %6731 }
 0x318   :  { %v9246_v20 = vadd.f32 -1.0, %v2959_v34  ;;  %6733 = vrsqrt.f32 %v9262_v1  ;;  %vm3067_vm6 = vcmp.eq.f32.partialorder %v9262_v1, inf  ;;  %vm3069_vm7 = vcmp.eq.f32.partialorder %v9262_v1, 0.0 }
 0x31a   :  { %v2991_v26 = vmul.f32 %v9246_v20, %v9246_v20 }
 0x31b   :  { %2881 = vmatmul.bf16.gmra.mxu2 %v2793_v59 }
 0x31c   :  { %v3007_v28 = vsub.f32 1.0, %v2991_v26 }
 0x31e   :  { %v9264_v18 = vmax.f32 %v3007_v28, 0.0  ;;  %v9280_v23 = vpop.eup %6733 }
 0x320   :  { %6735 = vrsqrt.f32 %v9264_v18  ;;  %vm3079_vm8 = vcmp.eq.f32.partialorder %v9264_v18, inf  ;;  %vm3081_vm9 = vcmp.eq.f32.partialorder %v9264_v18, 0.0 }
 0x32b   :  { %2886 = vmatmul.bf16.gmra.mxu2 %v2794_v27 }
 0x346   :  { %v2774_v16 = vpop.xlane.xlu1 %2773 }
 0x358   :  { %v2862_v3 = vpop.f32.mrf.mxu2 }
 0x359   :  { %v2896_v36 = vmul.f32 %v2862_v3, %v2862_v3 }
 0x35b   :  { %v2912_v50 = vadd.f32 128.0, %v2896_v36  ;;  %v2776_v36 = vpop.xlane.xlu2 %2775 }
 0x35d   :  { %v2928_v11 = vsub.f32 %v2912_v50, %v2764_v15 }
 0x35f   :  { %v2944_v24 = vmul.f32 6.1035156e-05, %v2928_v11 }
 0x360   :  { %v2864_v45 = vpop.f32.mrf.mxu2 }
 0x361   :  { %v9234_v37 = vadd.f32 %v3230_v29, %v2944_v24  ;;  %v2960_v12 = vmul.f32 2.0, %v2944_v24  ;;  %v2897_v13 = vmul.f32 %v2864_v45, %v2864_v45  ;;  %v3037_v24 = vmul.f32 %v9266_v19, %v9252_v46  ;;  %v2778_v45 = vpop.xlane.xlu0 %2777 }
 0x363   :  { %v9248_v43 = vadd.f32 -1.0, %v2960_v12  ;;  %v2913_v44 = vadd.f32 128.0, %v2897_v13  ;;  %v9282_v12 = vpop.eup %6735  ;;  %v3038_v55 = vmul.f32 %v9266_v19, %v3037_v24 }
 0x365   :  { %v2992_v47 = vmul.f32 %v9248_v43, %v9248_v43  ;;  %v2929_v49 = vsub.f32 %v2913_v44, %v2766_v31  ;;  %v3039_v28 = vmul.f32 0.5, %v3038_v55 }
 0x367   :  { %v3008_v61 = vsub.f32 1.0, %v2992_v47  ;;  %v2945_v54 = vmul.f32 6.1035156e-05, %v2929_v49 }
 0x369   :  { %v9268_v51 = vmax.f32 %v3008_v61, 0.0  ;;  %v3061_v61 = vmul.f32 %v9280_v23, %v9262_v1 }
 0x36b   :  { %6737 = vrsqrt.f32 %v9268_v51  ;;  %vm3091_vm10 = vcmp.eq.f32.partialorder %v9268_v51, inf  ;;  %vm3093_vm11 = vcmp.eq.f32.partialorder %v9268_v51, 0.0 }
 0x36e   :  { %v2867_v8 = vpop.f32.mrf.mxu2 }
 0x36f   :  { %v2898_v17 = vmul.f32 %v2867_v8, %v2867_v8  ;;  %v3049_v8 = vmul.f32 %v9270_v57, %v9256_v2 }
 0x371   :  { %v2914_v59 = vadd.f32 128.0, %v2898_v17  ;;  %v3050_v63 = vmul.f32 %v9270_v57, %v3049_v8 }
 0x373   :  { %v2930_v14 = vsub.f32 %v2914_v59, %v2768_v60  ;;  %v3051_v59 = vmul.f32 0.5, %v3050_v63  ;;  %v3046_v63 = vand.u32 2147483648, %v9252_v46 }
 0x375   :  { %v2946_v29 = vmul.f32 6.1035156e-05, %v2930_v14  ;;  %v3073_v14 = vmul.f32 %v9282_v12, %v9264_v18 }
 0x376   :  { %v2869_v10 = vpop.f32.mrf.mxu2 }
 0x377   :  { %v2899_v6 = vmul.f32 %v2869_v10, %v2869_v10  ;;  %v3232_v10 = vadd.f32 %v9234_v37, %v2945_v54  ;;  %v2780_v37 = vpop.xlane.xlu1 %2779  ;;  %v2962_v47 = vmul.f32 2.0, %v2946_v29  ;;  %v3074_v8 = vmul.f32 %v9282_v12, %v3073_v14 }
 0x379   :  { %v2915_v27 = vadd.f32 128.0, %v2899_v6  ;;  %v3233_v32 = vadd.f32 %v3232_v10, %v2946_v29  ;;  %v3040_v29 = vsub.f32 1.5, %v3039_v28 }
 0x37b   :  { %v2931_v7 = vsub.f32 %v2915_v27, %v2770_v21 }
 0x37e   :  { %v2872_v9 = vpop.f32.mrf.mxu2 }
 0x37f   :  { %v2900_v5 = vmul.f32 %v2872_v9, %v2872_v9  ;;  %v2947_v9 = vmul.f32 6.1035156e-05, %v2931_v7 }
 0x381   :  { %v2916_v52 = vadd.f32 128.0, %v2900_v5  ;;  %v3234_v60 = vadd.f32 %v3233_v32, %v2947_v9  ;;  %v2782_v5 = vpop.xlane.xlu2 %2781 }
 0x383   :  { %v2932_v50 = vsub.f32 %v2916_v52, %v2772_v48 }
 0x385   :  { %v2948_v34 = vmul.f32 6.1035156e-05, %v2932_v50  ;;  %v3052_v50 = vsub.f32 1.5, %v3051_v59 }
 0x386   :  { %v2874_v40 = vpop.f32.mrf.mxu2 }
 0x387   :  { %v2901_v30 = vmul.f32 %v2874_v40, %v2874_v40  ;;  %v3235_v44 = vadd.f32 %v3234_v60, %v2948_v34 }
 0x389   :  { %v2917_v22 = vadd.f32 128.0, %v2901_v30 }
 0x38b   :  { %v2933_v40 = vsub.f32 %v2917_v22, %v2774_v16  ;;  %v2784_v16 = vpop.xlane.xlu0 %2783 }
 0x38d   :  { %v2949_v53 = vmul.f32 6.1035156e-05, %v2933_v40 }
 0x38e   :  { %v2877_v42 = vpop.f32.mrf.mxu2 }
 0x38f   :  { %v2902_v33 = vmul.f32 %v2877_v42, %v2877_v42  ;;  %v2961_v42 = vmul.f32 2.0, %v2945_v54  ;;  %v3236_v49 = vadd.f32 %v3235_v44, %v2949_v53  ;;  %v2963_v54 = vmul.f32 2.0, %v2947_v9 }
 0x391   :  { %v2918_v15 = vadd.f32 128.0, %v2902_v33  ;;  %v9288_v21 = vadd.f32 -1.0, %v2961_v42  ;;  %v9307_v42 = vadd.f32 -1.0, %v2963_v54 }
 0x393   :  { %v2934_v25 = vsub.f32 %v2918_v15, %v2776_v36  ;;  %v2993_v33 = vmul.f32 %v9288_v21, %v9288_v21 }
 0x395   :  { %v2950_v62 = vmul.f32 6.1035156e-05, %v2934_v25 }
 0x396   :  { %v2879_v58 = vpop.f32.mrf.mxu2 }
 0x397   :  { %v2903_v3 = vmul.f32 %v2879_v58, %v2879_v58  ;;  %v3237_v7 = vadd.f32 %v3236_v49, %v2950_v62  ;;  %v2966_v59 = vmul.f32 2.0, %v2950_v62 }
 0x399   :  { %v2919_v35 = vadd.f32 128.0, %v2903_v3 }
 0x39b   :  { %v2935_v26 = vsub.f32 %v2919_v35, %v2778_v45  ;;  %v2786_v35 = vpop.xlane.xlu1 %2785 }
 0x39d   :  { %v2951_v27 = vmul.f32 6.1035156e-05, %v2935_v26  ;;  %v3075_v26 = vmul.f32 0.5, %v3074_v8 }
 0x39e   :  { %v2882_v38 = vpop.f32.mrf.mxu2 }
 0x39f   :  { %v2904_v11 = vmul.f32 %v2882_v38, %v2882_v38  ;;  %v9286_v38 = vpop.eup %6737  ;;  %v3238_v24 = vadd.f32 %v3237_v7, %v2951_v27 }
 0x3a0   :  { %v3085_v52 = vmul.f32 %v9286_v38, %v9268_v51 }
 0x3a1   :  { %v2920_v58 = vadd.f32 128.0, %v2904_v11  ;;  %v3062_v11 = vmul.f32 %v9280_v23, %v3061_v61  ;;  %v2967_v61 = vmul.f32 2.0, %v2951_v27  ;;  %v3058_v27 = vand.u32 2147483648, %v9256_v2 }
 0x3a2   :  { %v3086_v10 = vmul.f32 %v9286_v38, %v3085_v52 }
 0x3a3   :  { %v2936_v6 = vsub.f32 %v2920_v58, %v2780_v37  ;;  %v3041_v58 = vmul.f32 %v9266_v19, %v3040_v29  ;;  %v2964_v37 = vmul.f32 2.0, %v2948_v34  ;;  %v2995_v19 = vmul.f32 %v9307_v42, %v9307_v42 }
 0x3a4   :  { %v9345_v29 = vadd.f32 -1.0, %v2967_v61 }
 0x3a5   :  { %v2952_v22 = vmul.f32 6.1035156e-05, %v2936_v6  ;;  %v3042_v28 = vmul.f32 %v3041_v58, %v9252_v46  ;;  %v3011_v52 = vsub.f32 1.0, %v2995_v19 }
 0x3a6   :  { %v2884_v56 = vpop.f32.mrf.mxu2 }
 0x3a7   :  { %v2905_v41 = vmul.f32 %v2884_v56, %v2884_v56  ;;  %v9298_v56 = vadd.f32 -1.0, %v2962_v47  ;;  %v3239_v32 = vadd.f32 %v3238_v24, %v2952_v22  ;;  %v3044_v62 = vsel %vm3043_vm2, %v9252_v46, %v3042_v28 }
 0x3a9   :  { %v2921_v17 = vadd.f32 128.0, %v2905_v41  ;;  %v2994_v40 = vmul.f32 %v9298_v56, %v9298_v56  ;;  %v3009_v41 = vsub.f32 1.0, %v2993_v33 }
 0x3ab   :  { %v2937_v30 = vsub.f32 %v2921_v17, %v2782_v5  ;;  %v3087_v17 = vmul.f32 0.5, %v3086_v10  ;;  %v3010_v47 = vsub.f32 1.0, %v2994_v40  ;;  %v9319_v6 = vmax.f32 %v3009_v41, 0.0 }
 0x3ac   :  { %v9328_v5 = vadd.f32 -1.0, %v2964_v37  ;;  %v9353_v10 = vsel %vm3045_vm3, %v3046_v63, %v3044_v62  ;;  %v9355_v40 = vmax.f32 %v3011_v52, 0.0  ;;  %v2999_v41 = vmul.f32 %v9345_v29, %v9345_v29 }
 0x3ad   :  { %v9301_v45 = vmul.f32 6.1035156e-05, %v2937_v30  ;;  %v3088_v14 = vsub.f32 1.5, %v3087_v17  ;;  %6739 = vrsqrt.f32 %v9319_v6  ;;  %vm3103_vm12 = vcmp.eq.f32.partialorder %v9319_v6, inf }
 0x3ae   :  { %v2887_v31 = vpop.f32.mrf.mxu2  ;;  %v3015_v19 = vsub.f32 1.0, %v2999_v41  ;;  %vm3105_vm13 = vcmp.eq.f32.partialorder %v9319_v6, 0.0  ;;  %vm3127_vm0 = vcmp.eq.f32.partialorder %v9355_v40, inf  ;;  %vm3129_vm1 = vcmp.eq.f32.partialorder %v9355_v40, 0.0 }
 0x3af   :  { %v2906_v13 = vmul.f32 %v2887_v31, %v2887_v31  ;;  %v3053_v31 = vmul.f32 %v9270_v57, %v3052_v50  ;;  %v3240_v60 = vadd.f32 %v3239_v32, %v9301_v45  ;;  %v2965_v57 = vmul.f32 2.0, %v2949_v53 }
 0x3b0   :  { %v9331_v53 = vmax.f32 %v3010_v47, 0.0  ;;  %v2968_v50 = vmul.f32 2.0, %v2952_v22  ;;  %v3089_v8 = vmul.f32 %v9286_v38, %v3088_v14  ;;  %v3094_v14 = vand.u32 2147483648, %v9268_v51 }
 0x3b1   :  { %v2922_v48 = vadd.f32 128.0, %v2906_v13  ;;  %v3063_v13 = vmul.f32 0.5, %v3062_v11  ;;  %v3054_v34 = vmul.f32 %v3053_v31, %v9256_v2  ;;  %v9334_v33 = vadd.f32 -1.0, %v2965_v57 }
 0x3b2   :  { %6741 = vrsqrt.f32 %v9331_v53  ;;  %v9370_v32 = vadd.f32 -1.0, %v2968_v50  ;;  %vm3115_vm14 = vcmp.eq.f32.partialorder %v9331_v53, inf  ;;  %vm3117_vm15 = vcmp.eq.f32.partialorder %v9331_v53, 0.0 }
 0x3b3   :  { %v2938_v3 = vsub.f32 %v2922_v48, %v2784_v16  ;;  %v3064_v30 = vsub.f32 1.5, %v3063_v13  ;;  %v3076_v16 = vsub.f32 1.5, %v3075_v26  ;;  %v3056_v7 = vsel %vm3055_vm4, %v9256_v2, %v3054_v34  ;;  %v9365_v38 = vpop.eup %6739 }
 0x3b4   :  { %v3059_v22 = vsel %vm3057_vm5, %v3058_v27, %v3056_v7  ;;  %6743 = vrsqrt.f32 %v9355_v40  ;;  %v3097_v26 = vmul.f32 %v9365_v38, %v9319_v6  ;;  %v3000_v57 = vmul.f32 %v9370_v32, %v9370_v32 }
 0x3b5   :  { %v9309_v25 = vmul.f32 6.1035156e-05, %v2938_v3  ;;  %v9341_v3 = vadd.f32 -1.0, %v2966_v59  ;;  %v3065_v11 = vmul.f32 %v9280_v23, %v3064_v30  ;;  %v3077_v24 = vmul.f32 %v9282_v12, %v3076_v16 }
 0x3b6   :  { %v2889_v36 = vpop.f32.mrf.mxu2  ;;  %v3070_v23 = vand.u32 2147483648, %v9262_v1  ;;  %v2969_v30 = vmul.f32 2.0, %v9301_v45  ;;  %v3098_v52 = vmul.f32 %v9365_v38, %v3097_v26  ;;  %v9409_v27 = vmax.f32 %v3015_v19, 0.0 }
 0x3b7   :  { %v2907_v15 = vmul.f32 %v2889_v36, %v2889_v36  ;;  %v3241_v48 = vadd.f32 %v3240_v60, %v9309_v25  ;;  %v2996_v36 = vmul.f32 %v9328_v5, %v9328_v5  ;;  %v2998_v12 = vmul.f32 %v9341_v3, %v9341_v3 }
 0x3b8   :  { %v3066_v2 = vmul.f32 %v3065_v11, %v9262_v1  ;;  %v3078_v31 = vmul.f32 %v3077_v24, %v9264_v18  ;;  %v9378_v37 = vpop.eup %6741  ;;  %v3082_v60 = vand.u32 2147483648, %v9264_v18  ;;  %v2970_v62 = vmul.f32 2.0, %v9309_v25 }
 0x3b9   :  { %v2923_v9 = vadd.f32 128.0, %v2907_v15  ;;  %v3012_v46 = vsub.f32 1.0, %v2996_v36  ;;  %v3014_v17 = vsub.f32 1.0, %v2998_v12  ;;  %v3109_v61 = vmul.f32 %v9378_v37, %v9331_v53 }
 0x3ba   :  { %v3068_v28 = vsel %vm3067_vm6, %v9262_v1, %v3066_v2  ;;  %v3080_v34 = vsel %vm3079_vm8, %v9264_v18, %v3078_v31  ;;  %v9406_v7 = vpop.eup %6743  ;;  %v3016_v36 = vsub.f32 1.0, %v3000_v57  ;;  %v9427_v18 = vadd.f32 -1.0, %v2970_v62 }
 0x3bb   :  { %v2939_v55 = vsub.f32 %v2923_v9, %v2786_v35  ;;  %v2997_v9 = vmul.f32 %v9334_v33, %v9334_v33  ;;  %v9384_v47 = vmax.f32 %v3012_v46, 0.0  ;;  %v3071_v45 = vsel %vm3069_vm7, %v3070_v23, %v3068_v28 }
 0x3bc   :  { %v3110_v25 = vmul.f32 %v9378_v37, %v3109_v61  ;;  %v3121_v1 = vmul.f32 %v9406_v7, %v9355_v40 }
 0x3bd   :  { %v9317_v44 = vmul.f32 6.1035156e-05, %v2939_v55  ;;  %v3090_v55 = vmul.f32 %v3089_v8, %v9268_v51  ;;  %v3013_v63 = vsub.f32 1.0, %v2997_v9  ;;  %6745 = vrsqrt.f32 %v9384_v47 }
 0x3be   :  { %v9420_v8 = vadd.f32 -1.0, %v2969_v30  ;;  %v3111_v31 = vmul.f32 0.5, %v3110_v25  ;;  %vm3139_vm2 = vcmp.eq.f32.partialorder %v9384_v47, inf  ;;  %vm3141_vm4 = vcmp.eq.f32.partialorder %v9384_v47, 0.0 }
 0x3bf   :  { %v3242_v49 = vadd.f32 %v3241_v48, %v9317_v44  ;;  %v3092_v59 = vsel %vm3091_vm10, %v9268_v51, %v3090_v55  ;;  %v2971_v24 = vmul.f32 2.0, %v9317_v44  ;;  %v9430_v51 = vmax.f32 %v3016_v36, 0.0 }
 0x3c0   :  { %v3095_v11 = vsel %vm3093_vm11, %v3094_v14, %v3092_v59  ;;  %v3001_v55 = vmul.f32 %v9420_v8, %v9420_v8  ;;  %vm3175_vm10 = vcmp.eq.f32.partialorder %v9409_v27, inf  ;;  %vm3177_vm11 = vcmp.eq.f32.partialorder %v9409_v27, 0.0 }
 0x3c1   :  { %v3243_v54 = vrot.slane %v3242_v49, 4  ;;  %v9438_v12 = vadd.f32 -1.0, %v2971_v24 }
 0x3c2   :  { %v3017_v59 = vsub.f32 1.0, %v3001_v55 }
 0x3c3   :  { %v3244_v15 = vadd.f32 %v3243_v54, %v3242_v49  ;;  %v9398_v49 = vmax.f32 %v3013_v63, 0.0  ;;  %v9403_v54 = vmax.f32 %v3014_v17, 0.0  ;;  %v9449_v2 = vpop.eup %6745 }
 0x3c4   :  { %v3133_v57 = vmul.f32 %v9449_v2, %v9384_v47 }
 0x3c5   :  { %v3245_v35 = vrot.slane %v3244_v15, 2  ;;  %6747 = vrsqrt.f32 %v9398_v49  ;;  %vm3151_vm3 = vcmp.eq.f32.partialorder %v9398_v49, inf  ;;  %vm3153_vm7 = vcmp.eq.f32.partialorder %v9398_v49, 0.0 }
 0x3c6   :  { %6749 = vrsqrt.f32 %v9403_v54  ;;  %vm3163_vm8 = vcmp.eq.f32.partialorder %v9403_v54, inf }
 0x3c7   :  { %v3246_v58 = vadd.f32 %v3245_v35, %v3244_v15  ;;  %v3083_v15 = vsel %vm3081_vm9, %v3082_v60, %v3080_v34  ;;  %v3099_v35 = vmul.f32 0.5, %v3098_v52  ;;  %6751 = vrsqrt.f32 %v9409_v27 }
 0x3c8   :  { %6753 = vrsqrt.f32 %v9430_v51  ;;  %v3112_v34 = vsub.f32 1.5, %v3111_v31  ;;  %v3134_v52 = vmul.f32 %v9449_v2, %v3133_v57  ;;  %vm3165_vm9 = vcmp.eq.f32.partialorder %v9403_v54, 0.0 }
 0x3c9   :  { %v3247_v13 = vrot.slane %v3246_v58, 1  ;;  %v3100_v26 = vsub.f32 1.5, %v3099_v35 }
 0x3cb   :  { %v3248_v48 = vadd.f32 %v3247_v13, %v3246_v58  ;;  %v3122_v13 = vmul.f32 %v9406_v7, %v3121_v1  ;;  %v9459_v60 = vpop.eup %6747  ;;  %v3101_v14 = vmul.f32 %v9365_v38, %v3100_v26 }
 0x3cc   :  { %v9464_v19 = vpop.eup %6749  ;;  %v3145_v30 = vmul.f32 %v9459_v60, %v9398_v49 }
 0x3cd   :  { %v3249_v16 = vmul.f32 0.0078125, %v3248_v48  ;;  %v3003_v48 = vmul.f32 %v9438_v12, %v9438_v12  ;;  %v9470_v28 = vpop.eup %6751  ;;  %v3123_v61 = vmul.f32 0.5, %v3122_v13  ;;  %v3102_v1 = vmul.f32 %v3101_v14, %v9319_v6 }
 0x3ce   :  { %v9477_v36 = vpop.eup %6753  ;;  %v3146_v25 = vmul.f32 %v9459_v60, %v3145_v30 }
 0x3cf   :  { %v3250_v50 = vmul.f32 2.0, %v3249_v16  ;;  %v3019_v62 = vsub.f32 1.0, %v3003_v48  ;;  %v3124_v24 = vsub.f32 1.5, %v3123_v61 }
 0x3d0   :  { %v3147_v57 = vmul.f32 0.5, %v3146_v25 }
 0x3d1   :  { %v9422_v9 = vadd.f32 -1.0, %v3250_v50  ;;  %v3113_v50 = vmul.f32 %v9378_v37, %v3112_v34  ;;  %v3181_v37 = vmul.f32 %v9477_v36, %v9430_v51  ;;  %v9493_v31 = vmax.f32 %v3019_v62, 0.0 }
 0x3d2   :  { %v3125_v26 = vmul.f32 %v9406_v7, %v3124_v24  ;;  %v3104_v34 = vsel %vm3103_vm12, %v9319_v6, %v3102_v1  ;;  %v3118_v7 = vand.u32 2147483648, %v9331_v53  ;;  %v3130_v1 = vand.u32 2147483648, %v9355_v40 }
 0x3d3   :  { %v3252_v44 = vmul.f32 %v9422_v9, %v9422_v9  ;;  %v9436_v23 = vmul.f32 %v9422_v9, %v9353_v10  ;;  %v9441_v46 = vmul.f32 %v9422_v9, %v3059_v22  ;;  %v9444_v41 = vmul.f32 %v9422_v9, %v3071_v45 }
 0x3d4   :  { %v9447_v58 = vmul.f32 %v9422_v9, %v3083_v15  ;;  %v9454_v10 = vmul.f32 %v9422_v9, %v3095_v11  ;;  %v3002_v22 = vmul.f32 %v9427_v18, %v9427_v18  ;;  %v3157_v45 = vmul.f32 %v9464_v19, %v9403_v54 }
 0x3d5   :  { %v3253_v63 = vsub.f32 1.0, %v3252_v44  ;;  %v3169_v15 = vmul.f32 %v9470_v28, %v9409_v27  ;;  %v9484_v11 = vmax.f32 %v3017_v59, 0.0  ;;  %v3135_v44 = vmul.f32 0.5, %v3134_v52 }
 0x3d6   :  { %v3018_v16 = vsub.f32 1.0, %v3002_v22  ;;  %v3158_v13 = vmul.f32 %v9464_v19, %v3157_v45  ;;  %v3106_v59 = vand.u32 2147483648, %v9319_v6  ;;  %v3182_v30 = vmul.f32 %v9477_v36, %v3181_v37 }
 0x3d7   :  { %v9462_v17 = vmax.f32 %v3253_v63, 0.0  ;;  %v3114_v63 = vmul.f32 %v3113_v50, %v9331_v53  ;;  %v3170_v22 = vmul.f32 %v9470_v28, %v3169_v15  ;;  %v3136_v61 = vsub.f32 1.5, %v3135_v44 }
 0x3d8   :  { %v9487_v35 = vmax.f32 %v3018_v16, 0.0  ;;  %v3159_v14 = vmul.f32 0.5, %v3158_v13  ;;  %v3126_v50 = vmul.f32 %v3125_v26, %v9355_v40  ;;  %v3148_v45 = vsub.f32 1.5, %v3147_v57 }
 0x3d9   :  { %6755 = vrsqrt.f32 %v9462_v17  ;;  %v3171_v52 = vmul.f32 0.5, %v3170_v22  ;;  %v3116_v62 = vsel %vm3115_vm14, %v9331_v53, %v3114_v63  ;;  %v9516_v25 = vsel %vm3105_vm13, %v3106_v59, %v3104_v34 }
 0x3da   :  { %6757 = vrsqrt.f32 %v9484_v11  ;;  %v3137_v37 = vmul.f32 %v9449_v2, %v3136_v61  ;;  %v9527_v13 = vsel %vm3117_vm15, %v3118_v7, %v3116_v62  ;;  %v3142_v6 = vand.u32 2147483648, %v9384_v47 }
 0x3db   :  { %6759 = vrsqrt.f32 %v9487_v35  ;;  %v3160_v22 = vsub.f32 1.5, %v3159_v14  ;;  %v3172_v26 = vsub.f32 1.5, %v3171_v52  ;;  %v3149_v34 = vmul.f32 %v9459_v60, %v3148_v45 }
 0x3dc   :  { %6761 = vrsqrt.f32 %v9493_v31  ;;  %v3154_v2 = vand.u32 2147483648, %v9398_v49  ;;  %vm3262_vm5 = vcmp.eq.f32.partialorder %v9462_v17, inf  ;;  %v3265_v61 = vand.u32 2147483648, %v9462_v17 }
 0x3dd   :  { %v3138_v60 = vmul.f32 %v3137_v37, %v9384_v47  ;;  %vm3264_vm6 = vcmp.eq.f32.partialorder %v9462_v17, 0.0  ;;  %v3161_v7 = vmul.f32 %v9464_v19, %v3160_v22  ;;  %v3173_v14 = vmul.f32 %v9470_v28, %v3172_v26 }
 0x3de   :  { %v3150_v19 = vmul.f32 %v3149_v34, %v9398_v49  ;;  %vm3187_vm12 = vcmp.eq.f32.partialorder %v9430_v51, inf  ;;  %vm3189_vm13 = vcmp.eq.f32.partialorder %v9430_v51, 0.0  ;;  %vm3199_vm14 = vcmp.eq.f32.partialorder %v9484_v11, inf }
 0x3df   :  { %v6756_v38 = vpop.eup %6755  ;;  %vm3211_vm15 = vcmp.eq.f32.partialorder %v9487_v35, inf }
 0x3e0   :  { %v3256_v55 = vmul.f32 %v6756_v38, %v9462_v17  ;;  %v9512_v24 = vpop.eup %6757 }
 0x3e1   :  { %v9521_v44 = vpop.eup %6759  ;;  %v3193_v53 = vmul.f32 %v9512_v24, %v9484_v11 }
 0x3e2   :  { %v3257_v48 = vmul.f32 %v6756_v38, %v3256_v55  ;;  %v3183_v55 = vmul.f32 0.5, %v3182_v30  ;;  %v9530_v57 = vpop.eup %6761  ;;  %v3205_v59 = vmul.f32 %v9521_v44, %v9487_v35 }
 0x3e3   :  { %v3217_v52 = vmul.f32 %v9530_v57, %v9493_v31  ;;  %v3194_v28 = vmul.f32 %v9512_v24, %v3193_v53 }
 0x3e4   :  { %v3258_v16 = vmul.f32 0.5, %v3257_v48  ;;  %v3128_v48 = vsel %vm3127_vm0, %v9355_v40, %v3126_v50  ;;  %v3184_v30 = vsub.f32 1.5, %v3183_v55  ;;  %v3206_v37 = vmul.f32 %v9521_v44, %v3205_v59 }
 0x3e5   :  { %v3218_v22 = vmul.f32 %v9530_v57, %v3217_v52  ;;  %v3166_v59 = vand.u32 2147483648, %v9403_v54  ;;  %vm3223_vm0 = vcmp.eq.f32.partialorder %v9493_v31, inf }
 0x3e6   :  { %v3259_v15 = vsub.f32 1.5, %v3258_v16  ;;  %v3207_v34 = vmul.f32 0.5, %v3206_v37  ;;  %v3289_v37 = vmul.f32 %v9422_v9, %v9527_v13 }
 0x3e8   :  { %v3260_v63 = vmul.f32 %v6756_v38, %v3259_v15 }
 0x3ea   :  { %v3261_v38 = vmul.f32 %v3260_v63, %v9462_v17  ;;  %v3174_v63 = vmul.f32 %v3173_v14, %v9409_v27 }
 0x3ec   :  { %v3263_v16 = vsel %vm3262_vm5, %v9462_v17, %v3261_v38 }
 0x3ed   :  { %v9552_v62 = vsel %vm3264_vm6, %v3265_v61, %v3263_v16  ;;  %v3208_v16 = vsub.f32 1.5, %v3207_v34 }
 0x3ee   :  { %v3267_v50 = vmul.f32 %v9236_v0, %v9552_v62  ;;  %v3268_v45 = vmul.f32 %v9238_v4, %v9552_v62  ;;  %v3269_v17 = vmul.f32 %v9244_v39, %v9552_v62  ;;  %v3270_v15 = vmul.f32 %v9246_v20, %v9552_v62 }
 0x3ef   :  { %v3271_v55 = vmul.f32 %v9248_v43, %v9552_v62  ;;  %v3131_v0 = vsel %vm3129_vm1, %v3130_v1, %v3128_v48  ;;  %v3185_v4 = vmul.f32 %v9477_v36, %v3184_v30  ;;  %v3140_v39 = vsel %vm3139_vm2, %v9384_v47, %v3138_v60 }
 0x3f0   :  { %v3162_v20 = vmul.f32 %v3161_v7, %v9403_v54  ;;  %v3299_v43 = vsub.f32 %v3267_v50, %v9436_v23  ;;  %v3300_v40 = vsub.f32 %v3268_v45, %v9441_v46  ;;  %v3301_v1 = vsub.f32 %v3269_v17, %v9444_v41 }
 0x3f1   :  { %v3302_v26 = vsub.f32 %v3270_v15, %v9447_v58  ;;  %v3152_v36 = vsel %vm3151_vm3, %v9398_v49, %v3150_v19  ;;  %v3195_v48 = vmul.f32 0.5, %v3194_v28  ;;  %v3303_v38 = vsub.f32 %v3271_v55, %v9454_v10 }
 0x3f2   :  { %v3143_v53 = vsel %vm3141_vm4, %v3142_v6, %v3140_v39  ;;  %v3186_v23 = vmul.f32 %v3185_v4, %v9430_v51  ;;  %v3164_v46 = vsel %vm3163_vm8, %v9403_v54, %v3162_v20  ;;  %v3178_v41 = vand.u32 2147483648, %v9409_v27 }
 0x3f3   :  { %v3219_v58 = vmul.f32 0.5, %v3218_v22  ;;  %v3155_v10 = vsel %vm3153_vm7, %v3154_v2, %v3152_v36  ;;  %v3176_v47 = vsel %vm3175_vm10, %v9409_v27, %v3174_v63  ;;  %v3315_v6 = vadd.f32 1.0, %v3299_v43 }
 0x3f4   :  { %v3316_v61 = vadd.f32 1.0, %v3300_v40  ;;  %v3190_v60 = vand.u32 2147483648, %v9430_v51  ;;  %v3196_v30 = vsub.f32 1.5, %v3195_v48  ;;  %v3167_v7 = vsel %vm3165_vm9, %v3166_v59, %v3164_v46 }
 0x3f5   :  { %v3188_v14 = vsel %vm3187_vm12, %v9430_v51, %v3186_v23  ;;  %v3272_v49 = vmul.f32 %v9288_v21, %v9552_v62  ;;  %v3179_v2 = vsel %vm3177_vm11, %v3178_v41, %v3176_v47  ;;  %v3202_v27 = vand.u32 2147483648, %v9484_v11 }
 0x3f6   :  { %v3220_v52 = vsub.f32 1.5, %v3219_v58  ;;  %v3288_v50 = vmul.f32 %v9422_v9, %v9516_v25  ;;  %v3273_v54 = vmul.f32 %v9298_v56, %v9552_v62  ;;  %v3317_v45 = vadd.f32 1.0, %v3301_v1 }
 0x3f7   :  { %v9614_v17 = vmul.f32 0.5, %v3315_v6  ;;  %v9616_v51 = vmul.f32 0.5, %v3316_v61  ;;  %v3197_v21 = vmul.f32 %v9512_v24, %v3196_v30  ;;  %v3191_v15 = vsel %vm3189_vm13, %v3190_v60, %v3188_v14 }
 0x3f8   :  { %v3209_v19 = vmul.f32 %v9521_v44, %v3208_v16  ;;  %v3214_v28 = vand.u32 2147483648, %v9487_v35  ;;  %v3274_v25 = vmul.f32 %v9307_v42, %v9552_v62  ;;  %v3304_v55 = vsub.f32 %v3272_v49, %v3288_v50 }
 0x3f9   :  { %v3318_v56 = vadd.f32 1.0, %v3302_v26  ;;  %v3221_v4 = vmul.f32 %v9530_v57, %v3220_v52  ;;  %v3275_v24 = vmul.f32 %v9328_v5, %v9552_v62  ;;  %v3290_v39 = vmul.f32 %v9422_v9, %v3131_v0 }
 0x3fa   :  { %vm3201_vm1 = vcmp.eq.f32.partialorder %v9484_v11, 0.0  ;;  %vm3213_vm2 = vcmp.eq.f32.partialorder %v9487_v35, 0.0  ;;  %v3305_v44 = vsub.f32 %v3273_v54, %v3289_v37  ;;  %v3319_v42 = vadd.f32 1.0, %v3303_v38 }
 0x3fb   :  { %v9632_v20 = vmul.f32 0.5, %v3317_v45  ;;  %v3619_v13 = vadd.f32 %v9616_v51, %v9614_v17  ;;  %v3198_v57 = vmul.f32 %v3197_v21, %v9484_v11  ;;  %v3210_v63 = vmul.f32 %v3209_v19, %v9487_v35 }
 0x3fc   :  { %v3276_v5 = vmul.f32 %v9334_v33, %v9552_v62  ;;  %v3291_v0 = vmul.f32 %v9422_v9, %v3143_v53  ;;  %v3306_v22 = vsub.f32 %v3274_v25, %v3290_v39  ;;  %v3320_v43 = vadd.f32 1.0, %v3304_v55 }
 0x3fd   :  { %v9641_v40 = vmul.f32 0.5, %v3318_v56  ;;  %v3620_v1 = vadd.f32 %v3619_v13, %v9632_v20  ;;  %v3222_v26 = vmul.f32 %v3221_v4, %v9493_v31  ;;  %vm3225_vm3 = vcmp.eq.f32.partialorder %v9493_v31, 0.0 }
 0x3fe   :  { %v3277_v36 = vmul.f32 %v9341_v3, %v9552_v62  ;;  %v3292_v48 = vmul.f32 %v9422_v9, %v3155_v10  ;;  %v3307_v34 = vsub.f32 %v3275_v24, %v3291_v0  ;;  %v3321_v38 = vadd.f32 1.0, %v3305_v44 }
 0x3ff   :  { %v9649_v33 = vmul.f32 0.5, %v3319_v42  ;;  %v3621_v53 = vadd.f32 %v3620_v1, %v9641_v40  ;;  %v3200_v59 = vsel %vm3199_vm14, %v9484_v11, %v3198_v57  ;;  %v3212_v23 = vsel %vm3211_vm15, %v9487_v35, %v3210_v63 }
 0x400   :  { %v3278_v46 = vmul.f32 %v9345_v29, %v9552_v62  ;;  %v3293_v3 = vmul.f32 %v9422_v9, %v3167_v7  ;;  %v3308_v41 = vsub.f32 %v3276_v5, %v3292_v48  ;;  %v3322_v58 = vadd.f32 1.0, %v3306_v22 }
 0x401   :  { %v9661_v10 = vmul.f32 0.5, %v3320_v43  ;;  %v3622_v47 = vadd.f32 %v3621_v53, %v9649_v33  ;;  %v3224_v6 = vsel %vm3223_vm0, %v9493_v31, %v3222_v26  ;;  %v3226_v61 = vand.u32 2147483648, %v9493_v31 }
 0x402   :  { %v3279_v60 = vmul.f32 %v9370_v32, %v9552_v62  ;;  %v3294_v30 = vmul.f32 %v9422_v9, %v3179_v2  ;;  %v3309_v29 = vsub.f32 %v3277_v36, %v3293_v3  ;;  %v3323_v16 = vadd.f32 1.0, %v3307_v34 }
 0x403   :  { %v9671_v7 = vmul.f32 0.5, %v3321_v38  ;;  %v3623_v14 = vadd.f32 %v3622_v47, %v9661_v10  ;;  %v3203_v49 = vsel %vm3201_vm1, %v3202_v27, %v3200_v59  ;;  %v3215_v52 = vsel %vm3213_vm2, %v3214_v28, %v3212_v23 }
 0x404   :  { %v3280_v50 = vmul.f32 %v9420_v8, %v9552_v62  ;;  %v3295_v54 = vmul.f32 %v9422_v9, %v3191_v15  ;;  %v3310_v32 = vsub.f32 %v3278_v46, %v3294_v30  ;;  %v3324_v45 = vadd.f32 1.0, %v3308_v41  ;;  %v6630_v41 = vld [vmem:[%s12753_s3 + $0x38] sm:$0xff] }
 0x405   :  { %v9681_v2 = vmul.f32 0.5, %v3322_v58  ;;  %v3624_v21 = vadd.f32 %v3623_v14, %v9671_v7  ;;  %v3227_v19 = vsel %vm3225_vm3, %v3226_v61, %v3224_v6  ;;  %v3281_v11 = vmul.f32 %v9427_v18, %v9552_v62  ;;  %4515 = vmatpush.bf16.msrb.mxu3 %v6630_v41  ;;  %v6629_v6 = vld [vmem:[%s12753_s3 + $0x30] sm:$0xff] }
 0x406   :  { %v3296_v35 = vmul.f32 %v9422_v9, %v3203_v49  ;;  %v3311_v27 = vsub.f32 %v3279_v60, %v3295_v54  ;;  %v3325_v28 = vadd.f32 1.0, %v3309_v29  ;;  %v9689_v25 = vmul.f32 0.5, %v3323_v16  ;;  %v6628_v16 = vld [vmem:[%s12753_s3 + $0x28] sm:$0xff] }
 0x407   :  { %v3625_v8 = vadd.f32 %v3624_v21, %v9681_v2  ;;  %v3282_v15 = vmul.f32 %v9438_v12, %v9552_v62  ;;  %v3297_v37 = vmul.f32 %v9422_v9, %v3215_v52  ;;  %v3326_v56 = vadd.f32 1.0, %v3310_v32  ;;  %v6627_v52 = vld [vmem:[%s12753_s3 + $0x20] sm:$0xff] }
 0x408   :  { %v3312_v55 = vsub.f32 %v3280_v50, %v3296_v35  ;;  %v9695_v31 = vmul.f32 0.5, %v3324_v45  ;;  %v3298_v18 = vmul.f32 %v9422_v9, %v3227_v19  ;;  %v3327_v39 = vadd.f32 1.0, %v3311_v27  ;;  %v6626_v45 = vld [vmem:[%s12753_s3 + $0x18] sm:$0xff]  ;;  %v6625_v35 = vld [vmem:[%s12753_s3 + $0x10] sm:$0xff] }
 0x409   :  { %v3626_v4 = vadd.f32 %v3625_v8, %v9689_v25  ;;  %v3313_v24 = vsub.f32 %v3281_v11, %v3297_v37  ;;  %v9699_v44 = vmul.f32 0.5, %v3325_v28  ;;  %v9702_v63 = vmul.f32 0.5, %v3326_v56  ;;  %4516 = vmatpush.bf16.msrb.mxu3 %v6629_v6 }
 0x40a   :  { %12990 = vst [vmem:[#allocation3_spill] sm:$0xff] %v9695_v31  ;;  %v3314_v13 = vsub.f32 %v3282_v15, %v3298_v18  ;;  %v3328_v57 = vadd.f32 1.0, %v3312_v55  ;;  %v9705_v5 = vmul.f32 0.5, %v3327_v39  ;;  %v3349_v58 = vmul.f32 2.0, %v9632_v20 }
 0x40b   :  { %v3627_v42 = vadd.f32 %v3626_v4, %v9695_v31  ;;  %v3329_v62 = vadd.f32 1.0, %v3313_v24  ;;  %v3348_v21 = vmul.f32 2.0, %v9616_v51  ;;  %v3347_v19 = vmul.f32 2.0, %v9614_v17 }
 0x40c   :  { %12991 = vst [vmem:[#allocation17_spill] sm:$0xff] %v9705_v5  ;;  %v3330_v22 = vadd.f32 1.0, %v3314_v13  ;;  %v9708_v43 = vmul.f32 0.5, %v3328_v57  ;;  %v9729_v61 = vadd.f32 -1.0, %v3349_v58  ;;  %v3352_v11 = vmul.f32 2.0, %v9661_v10 }
 0x40d   :  { %v3628_v12 = vadd.f32 %v3627_v42, %v9699_v44  ;;  %v9711_v1 = vmul.f32 0.5, %v3329_v62  ;;  %4517 = vmatpush.bf16.msrb.mxu3 %v6628_v16  ;;  %v3351_v27 = vmul.f32 2.0, %v9649_v33  ;;  %v3350_v28 = vmul.f32 2.0, %v9641_v40  ;;  %v6624_v42 = vld [vmem:[%s12753_s3 + $0x8] sm:$0xff] }
 0x40e   :  { %12992 = vst [vmem:[#allocation15_spill] sm:$0xff] %v9708_v43  ;;  %v9714_v36 = vmul.f32 0.5, %v3330_v22  ;;  %v3381_v30 = vmul.f32 %v9729_v61, %v9729_v61  ;;  %v9759_v8 = vadd.f32 -1.0, %v3348_v21  ;;  %v9761_v15 = vadd.f32 -1.0, %v3347_v19 }
 0x40f   :  { %v3629_v0 = vadd.f32 %v3628_v12, %v9702_v63  ;;  %12993 = vst [vmem:[#allocation16_spill] sm:$0xff] %v9711_v1  ;;  %v9763_v37 = vadd.f32 -1.0, %v3352_v11  ;;  %v9765_v56 = vadd.f32 -1.0, %v3351_v27  ;;  %v9779_v12 = vadd.f32 -1.0, %v3350_v28 }
 0x410   :  { %12994 = vst [vmem:[#allocation19_spill] sm:$0xff] %v9714_v36  ;;  %v3397_v14 = vsub.f32 1.0, %v3381_v30  ;;  %v3380_v18 = vmul.f32 %v9759_v8, %v9759_v8  ;;  %v3379_v24 = vmul.f32 %v9761_v15, %v9761_v15 }
 0x411   :  { %v3630_v9 = vadd.f32 %v3629_v0, %v9705_v5  ;;  %4518 = vmatpush.bf16.msrb.mxu3 %v6627_v52  ;;  %v3384_v39 = vmul.f32 %v9763_v37, %v9763_v37  ;;  %v3383_v57 = vmul.f32 %v9765_v56, %v9765_v56 }
 0x412   :  { %v9741_v50 = vmax.f32 %v3397_v14, 0.0  ;;  %v3396_v0 = vsub.f32 1.0, %v3380_v18  ;;  %v3395_v22 = vsub.f32 1.0, %v3379_v24 }
 0x413   :  { %v3631_v26 = vadd.f32 %v3630_v9, %v9708_v43  ;;  %v3400_v9 = vsub.f32 1.0, %v3384_v39 }
 0x414   :  { %6763 = vrsqrt.f32 %v9741_v50  ;;  %vm3458_vm6 = vcmp.eq.f32.partialorder %v9741_v50, inf  ;;  %vm3460_vm7 = vcmp.eq.f32.partialorder %v9741_v50, 0.0 }
 0x415   :  { %v3632_v48 = vadd.f32 %v3631_v26, %v9711_v1  ;;  %4519 = vmatpush.bf16.msrb.mxu3 %v6626_v45  ;;  %v9792_v41 = vmax.f32 %v3400_v9, 0.0 }
 0x417   :  { %v3633_v34 = vadd.f32 %v3632_v48, %v9714_v36  ;;  %v9782_v48 = vmax.f32 %v3396_v0, 0.0  ;;  %vm3494_vm11 = vcmp.eq.f32.partialorder %v9792_v41, inf  ;;  %vm3496_vm2 = vcmp.eq.f32.partialorder %v9792_v41, 0.0 }
 0x419   :  { %v3634_v38 = vrot.slane %v3633_v34, 4  ;;  %4520 = vmatpush.bf16.msrb.mxu3 %v6625_v35  ;;  %vm3446_vm8 = vcmp.eq.f32.partialorder %v9782_v48, inf  ;;  %vm3448_vm0 = vcmp.eq.f32.partialorder %v9782_v48, 0.0 }
 0x41a   :  { %v6764_v55 = vpop.eup %6763 }
 0x41b   :  { %v3635_v53 = vadd.f32 %v3634_v38, %v3633_v34  ;;  %v3452_v62 = vmul.f32 %v6764_v55, %v9741_v50  ;;  %v9784_v34 = vmax.f32 %v3395_v22, 0.0  ;;  %v6623_v38 = vld [vmem:[%s12753_s3] sm:$0xff] }
 0x41d   :  { %v3636_v59 = vrot.slane %v3635_v53, 2  ;;  %4521 = vmatpush.bf16.msrb.mxu3 %v6624_v42  ;;  %vm3434_vm10 = vcmp.eq.f32.partialorder %v9784_v34, inf  ;;  %vm3436_vm1 = vcmp.eq.f32.partialorder %v9784_v34, 0.0 }
 0x41f   :  { %v3637_v23 = vadd.f32 %v3636_v59, %v3635_v53  ;;  %v3399_v59 = vsub.f32 1.0, %v3383_v57 }
 0x421   :  { %v3638_v46 = vrot.slane %v3637_v23, 1  ;;  %4522 = vmatpush.bf16.msrb.mxu3 %v6623_v38  ;;  %v9795_v6 = vmax.f32 %v3399_v59, 0.0 }
 0x423   :  { %v9718_v3 = vadd.f32 %v3638_v46, %v3637_v23  ;;  %v3382_v23 = vmul.f32 %v9779_v12, %v9779_v12  ;;  %v3453_v46 = vmul.f32 %v6764_v55, %v3452_v62  ;;  %vm3482_vm14 = vcmp.eq.f32.partialorder %v9795_v6, inf }
 0x424   :  { %vm3484_vm3 = vcmp.eq.f32.partialorder %v9795_v6, 0.0 }
 0x425   :  { %v3642_v47 = vsub.f32 %v9718_v3, %v9632_v20  ;;  %v3454_v30 = vmul.f32 0.5, %v3453_v46  ;;  %v3641_v28 = vsub.f32 %v9718_v3, %v9616_v51 }
 0x427   :  { %v3658_v60 = vmul.f32 0.0078125, %v3642_v47  ;;  %v3455_v35 = vsub.f32 1.5, %v3454_v30  ;;  %v3657_v39 = vmul.f32 0.0078125, %v3641_v28 }
 0x429   :  { %v3674_v29 = vmul.f32 2.0, %v3658_v60  ;;  %v3398_v60 = vsub.f32 1.0, %v3382_v23  ;;  %v3456_v62 = vmul.f32 %v6764_v55, %v3455_v35  ;;  %v3673_v0 = vmul.f32 2.0, %v3657_v39 }
 0x42b   :  { %v6456_v49 = vadd.f32 -1.0, %v3674_v29  ;;  %v3655_v29 = vsub.f32 %v9718_v3, %v9714_v36  ;;  %v9810_v19 = vmax.f32 %v3398_v60, 0.0  ;;  %v9827_v23 = vadd.f32 -1.0, %v3673_v0 }
 0x42c   :  { %v3457_v30 = vmul.f32 %v3456_v62, %v9741_v50 }
 0x42d   :  { %v9736_v20 = vmul.f32 %v6456_v49, %v6456_v49  ;;  %vm3470_vm15 = vcmp.eq.f32.partialorder %v9810_v19, inf }
 0x42f   :  { %v3722_v54 = vsub.f32 1.0, %v9736_v20 }
 0x431   :  { %v9744_v32 = vmax.f32 %v3722_v54, 0.0  ;;  %v3978_v54 = vmul.f32 2.0, %v6456_v49 }
 0x433   :  { %6765 = vrsqrt.f32 %v9744_v32  ;;  %vm3783_vm4 = vcmp.eq.f32.partialorder %v9744_v32, inf  ;;  %vm3785_vm5 = vcmp.eq.f32.partialorder %v9744_v32, 0.0  ;;  %v3786_v52 = vand.u32 2147483648, %v9744_v32 }
 0x434   :  { %6767 = vrsqrt.f32 %v9782_v48 }
 0x435   :  { %6769 = vrsqrt.f32 %v9784_v34 }
 0x436   :  { %6771 = vrsqrt.f32 %v9792_v41 }
 0x437   :  { %6773 = vrsqrt.f32 %v9795_v6 }
 0x438   :  { %6775 = vrsqrt.f32 %v9810_v19 }
 0x439   :  { %v6766_v4 = vpop.eup %6765 }
 0x43a   :  { %v3777_v13 = vmul.f32 %v6766_v4, %v9744_v32  ;;  %v9801_v14 = vpop.eup %6767 }
 0x43b   :  { %v3440_v21 = vmul.f32 %v9801_v14, %v9782_v48  ;;  %v9812_v11 = vpop.eup %6769 }
 0x43c   :  { %v3778_v26 = vmul.f32 %v6766_v4, %v3777_v13  ;;  %v9816_v49 = vpop.eup %6771  ;;  %v3428_v42 = vmul.f32 %v9812_v11, %v9784_v34 }
 0x43d   :  { %v3488_v51 = vmul.f32 %v9816_v49, %v9792_v41  ;;  %v9825_v22 = vpop.eup %6773 }
 0x43e   :  { %v3779_v53 = vmul.f32 0.5, %v3778_v26  ;;  %v3429_v46 = vmul.f32 %v9812_v11, %v3428_v42  ;;  %v9833_v60 = vpop.eup %6775 }
 0x43f   :  { %v3464_v39 = vmul.f32 %v9833_v60, %v9810_v19 }
 0x440   :  { %v3780_v58 = vsub.f32 1.5, %v3779_v53  ;;  %v3430_v28 = vmul.f32 0.5, %v3429_v46 }
 0x442   :  { %v3781_v47 = vmul.f32 %v6766_v4, %v3780_v58  ;;  %v3671_v4 = vmul.f32 0.0078125, %v3655_v29  ;;  %v3489_v58 = vmul.f32 %v9816_v49, %v3488_v51  ;;  %v4344_v29 = vlaneseq }
 0x444   :  { %v3782_v16 = vmul.f32 %v3781_v47, %v9744_v32  ;;  %v3687_v9 = vmul.f32 2.0, %v3671_v4  ;;  %v3355_v47 = vmul.f32 2.0, %v9689_v25  ;;  %v3490_v4 = vmul.f32 0.5, %v3489_v58 }
 0x445   :  { %v9852_v62 = vand.u32 127, %v4344_v29  ;;  %v3431_v58 = vsub.f32 1.5, %v3430_v28 }
 0x446   :  { %v3784_v45 = vsel %vm3783_vm4, %v9744_v32, %v3782_v16  ;;  %v3441_v32 = vmul.f32 %v9801_v14, %v3440_v21  ;;  %v9838_v16 = vmul.f32 %v9827_v23, %v9827_v23  ;;  %v9847_v42 = vadd.f32 -1.0, %v3355_v47 }
 0x447   :  { %v3787_v27 = vsel %vm3785_vm5, %v3786_v52, %v3784_v45  ;;  %v3476_v52 = vmul.f32 %v9825_v22, %v9795_v6  ;;  %vm4346_vm9 = vcmp.lt.s32.totalorder %v9852_v62, 32  ;;  %vm3472_vm4 = vcmp.eq.f32.partialorder %v9810_v19, 0.0 }
 0x448   :  { %v3946_v18 = vmul.f32 %v3787_v27, %v3787_v27  ;;  %v3994_v24 = vmul.f32 %v3978_v54, %v3787_v27  ;;  %v3442_v59 = vmul.f32 0.5, %v3441_v32  ;;  %v3721_v27 = vsub.f32 1.0, %v9838_v16 }
 0x449   :  { %v3477_v51 = vmul.f32 %v9825_v22, %v3476_v52  ;;  %v3387_v29 = vmul.f32 %v9847_v42, %v9847_v42 }
 0x44a   :  { %v3962_v13 = vsub.f32 %v3946_v18, %v9736_v20  ;;  %v4058_v57 = vmul.f32 2.0, %v3994_v24  ;;  %v4026_v38 = vmul.f32 %v3994_v24, %v3994_v24  ;;  %v3443_v35 = vsub.f32 1.5, %v3442_v59 }
 0x44b   :  { %v3461_v18 = vand.u32 2147483648, %v9741_v50  ;;  %v9854_v0 = vmax.f32 %v3721_v27, 0.0 }
 0x44c   :  { %v4010_v26 = vmul.f32 %v3962_v13, %v3962_v13  ;;  %v4074_v53 = vmul.f32 %v4058_v57, %v3962_v13  ;;  %v3459_v57 = vsel %vm3458_vm6, %v9741_v50, %v3457_v30  ;;  %v3444_v46 = vmul.f32 %v9801_v14, %v3443_v35 }
 0x44d   :  { %6777 = vrsqrt.f32 %v9854_v0  ;;  %v3465_v30 = vmul.f32 %v9833_v60, %v3464_v39  ;;  %v3462_v52 = vsel %vm3460_vm7, %v3461_v18, %v3459_v57  ;;  %v3478_v14 = vmul.f32 0.5, %v3477_v51 }
 0x44e   :  { %v4042_v20 = vsub.f32 %v4010_v26, %v4026_v38  ;;  %v4138_v55 = vmul.f32 2.0, %v4074_v53  ;;  %v4106_v45 = vmul.f32 %v4074_v53, %v4074_v53  ;;  %v3432_v35 = vmul.f32 %v9812_v11, %v3431_v58 }
 0x44f   :  { %v3403_v50 = vsub.f32 1.0, %v3387_v29  ;;  %v3497_v18 = vand.u32 2147483648, %v9792_v41  ;;  %v3354_v39 = vmul.f32 2.0, %v9681_v2  ;;  %v3479_v11 = vsub.f32 1.5, %v3478_v14 }
 0x450   :  { %v4090_v54 = vmul.f32 %v4042_v20, %v4042_v20  ;;  %v4154_v21 = vmul.f32 %v4138_v55, %v4042_v20  ;;  %v3491_v20 = vsub.f32 1.5, %v3490_v4  ;;  %vm3771_vm12 = vcmp.eq.f32.partialorder %v9854_v0, inf }
 0x451   :  { %v9900_v29 = vadd.f32 -1.0, %v3354_v39  ;;  %vm3773_vm13 = vcmp.eq.f32.partialorder %v9854_v0, 0.0  ;;  %v3643_v14 = vsub.f32 %v9718_v3, %v9641_v40 }
 0x452   :  { %v4122_v32 = vsub.f32 %v4090_v54, %v4106_v45  ;;  %v4186_v38 = vmul.f32 %v4154_v21, %v3994_v24  ;;  %v4234_v59 = vmul.f32 %v4154_v21, %v3962_v13  ;;  %v9862_v54 = vadd.f32 -1.0, %v3687_v9 }
 0x453   :  { %v3445_v45 = vmul.f32 %v3444_v46, %v9782_v48  ;;  %v3449_v21 = vand.u32 2147483648, %v9782_v48  ;;  %v3492_v27 = vmul.f32 %v9816_v49, %v3491_v20  ;;  %v3466_v9 = vmul.f32 0.5, %v3465_v30  ;;  %v6778_v4 = vpop.eup %6777  ;;  %12995 = vst [vmem:[#allocation13_spill] sm:$0xff] %v9900_v29 }
 0x454   :  { %v4170_v26 = vmul.f32 %v4122_v32, %v3962_v13  ;;  %v4218_v53 = vmul.f32 %v4122_v32, %v3994_v24  ;;  %v3485_v32 = vand.u32 2147483648, %v9795_v6  ;;  %v3765_v51 = vmul.f32 %v6778_v4, %v9854_v0 }
 0x455   :  { %v3467_v20 = vsub.f32 1.5, %v3466_v9  ;;  %v3644_v30 = vsub.f32 %v9718_v3, %v9649_v33 }
 0x456   :  { %v4202_v55 = vsub.f32 %v4170_v26, %v4186_v38  ;;  %v4250_v47 = vadd.f32 %v4234_v59, %v4218_v53  ;;  %v9882_v26 = vsel %vm3446_vm8, %v9782_v48, %v3445_v45  ;;  %v9885_v38 = vmul.f32 2.0, %v9827_v23 }
 0x457   :  { %v3433_v53 = vmul.f32 %v3432_v35, %v9784_v34  ;;  %v3493_v59 = vmul.f32 %v3492_v27, %v9792_v41  ;;  %v3766_v58 = vmul.f32 %v6778_v4, %v3765_v51  ;;  %v3645_v23 = vsub.f32 %v9718_v3, %v9661_v10 }
 0x458   :  { %v4266_v24 = vmul.f32 %v9729_v61, %v4202_v55  ;;  %v4282_v13 = vmul.f32 %v4250_v47, %v3462_v52  ;;  %v3437_v61 = vand.u32 2147483648, %v9784_v34  ;;  %v9891_v55 = vmax.f32 %v3403_v50, 0.0 }
 0x459   :  { %v3640_v47 = vsub.f32 %v9718_v3, %v9614_v17  ;;  %v3661_v35 = vmul.f32 0.0078125, %v3645_v23  ;;  %v3660_v10 = vmul.f32 0.0078125, %v3644_v30  ;;  %v3468_v33 = vmul.f32 %v9833_v60, %v3467_v20 }
 0x45a   :  { %v4298_v28 = vsub.f32 %v4266_v24, %v4282_v13  ;;  %v3767_v24 = vmul.f32 0.5, %v3766_v58  ;;  %v3480_v13 = vmul.f32 %v9825_v22, %v3479_v11  ;;  %6779 = vrsqrt.f32 %v9891_v55 }
 0x45b   :  { %v3656_v45 = vmul.f32 0.0078125, %v3640_v47  ;;  %v3677_v39 = vmul.f32 2.0, %v3661_v35  ;;  %v3676_v22 = vmul.f32 2.0, %v3660_v10  ;;  %v3386_v11 = vmul.f32 %v9900_v29, %v9900_v29 }
 0x45c   :  { %v4314_v57 = vadd.f32 1.0, %v4298_v28  ;;  %v3768_v27 = vsub.f32 1.5, %v3767_v24  ;;  %v3659_v28 = vmul.f32 0.0078125, %v3643_v14  ;;  %v3495_v23 = vsel %vm3494_vm11, %v9792_v41, %v3493_v59 }
 0x45d   :  { %v3672_v50 = vmul.f32 2.0, %v3656_v45  ;;  %v6459_v58 = vadd.f32 -1.0, %v3677_v39  ;;  %v9919_v20 = vadd.f32 -1.0, %v3676_v22  ;;  %v3481_v14 = vmul.f32 %v3480_v13, %v9795_v6 }
 0x45e   :  { %v4330_v46 = vmul.f32 0.5, %v4314_v57  ;;  %v3769_v40 = vmul.f32 %v6778_v4, %v3768_v27  ;;  %v3774_v57 = vand.u32 2147483648, %v9854_v0  ;;  %v3675_v51 = vmul.f32 2.0, %v3659_v28 }
 0x45f   :  { %v3435_v4 = vsel %vm3434_vm10, %v9784_v34, %v3433_v53  ;;  %v9933_v24 = vmul.f32 %v6459_v58, %v6459_v58  ;;  %v9945_v59 = vmul.f32 %v9919_v20, %v9919_v20  ;;  %v3648_v35 = vsub.f32 %v9718_v3, %v9689_v25 }
 0x460   :  { %v4349_v52 = vsel %vm4346_vm9, %v4330_v46, 0.5  ;;  %v6454_v46 = vadd.f32 -1.0, %v3672_v50  ;;  %v3770_v47 = vmul.f32 %v3769_v40, %v9854_v0  ;;  %v6457_v30 = vadd.f32 -1.0, %v3675_v51  ;;  %v9937_v45 = vpop.eup %6779 }
 0x461   :  { %v4381_v17 = vmul.f32 2.0, %v4349_v52  ;;  %v3402_v13 = vsub.f32 1.0, %v3386_v11  ;;  %v3724_v22 = vsub.f32 1.0, %v9945_v59  ;;  %v3353_v40 = vmul.f32 2.0, %v9671_v7 }
 0x462   :  { %v9930_v52 = vmul.f32 %v6454_v46, %v6454_v46  ;;  %v3772_v53 = vsel %vm3771_vm12, %v9854_v0, %v3770_v47  ;;  %v9954_v28 = vmul.f32 %v6457_v30, %v6457_v30  ;;  %v3483_v0 = vsel %vm3482_vm14, %v9795_v6, %v3481_v14 }
 0x463   :  { %v9911_v9 = vadd.f32 -1.0, %v4381_v17  ;;  %v3469_v17 = vmul.f32 %v3468_v33, %v9810_v19  ;;  %v3775_v10 = vsel %vm3773_vm13, %v3774_v57, %v3772_v53  ;;  %v3725_v33 = vsub.f32 1.0, %v9933_v24 }
 0x464   :  { %v3720_v27 = vsub.f32 1.0, %v9930_v52  ;;  %v3945_v50 = vmul.f32 %v3775_v10, %v3775_v10  ;;  %v3993_v39 = vmul.f32 %v9885_v38, %v3775_v10  ;;  %v3524_v57 = vmul.f32 %v9937_v45, %v9891_v55 }
 0x465   :  { %12996 = vst [vmem:[#allocation18_spill] sm:$0xff] %v9911_v9  ;;  %v4413_v60 = vmul.f32 %v9911_v9, %v9911_v9  ;;  %v9961_v25 = vmax.f32 %v3725_v33, 0.0  ;;  %v9969_v47 = vmax.f32 %v3724_v22, 0.0  ;;  %v3471_v38 = vsel %vm3470_vm15, %v9810_v19, %v3469_v17 }
 0x466   :  { %v9959_v51 = vmax.f32 %v3720_v27, 0.0  ;;  %v3961_v11 = vsub.f32 %v3945_v50, %v9838_v16  ;;  %v3723_v53 = vsub.f32 1.0, %v9954_v28  ;;  %v3664_v10 = vmul.f32 0.0078125, %v3648_v35 }
 0x467   :  { %4431 = vadd.xlane.f32.xlu1 %v4413_v60  ;;  %v4057_v60 = vmul.f32 2.0, %v3993_v39  ;;  %v9976_v27 = vmax.f32 %v3402_v13, 0.0  ;;  %v4025_v33 = vmul.f32 %v3993_v39, %v3993_v39  ;;  %v3450_v16 = vsel %vm3448_vm0, %v3449_v21, %v9882_v26 }
 0x468   :  { %6781 = vrsqrt.f32 %v9959_v51  ;;  %v4009_v14 = vmul.f32 %v3961_v11, %v3961_v11  ;;  %v9988_v17 = vsel %vm3436_vm1, %v3437_v61, %v3435_v4  ;;  %v3525_v35 = vmul.f32 %v9937_v45, %v3524_v57 }
 0x469   :  { %v4073_v49 = vmul.f32 %v4057_v60, %v3961_v11  ;;  %6783 = vrsqrt.f32 %v9961_v25  ;;  %v9996_v22 = vsel %vm3496_vm2, %v3497_v18, %v3495_v23  ;;  %v9998_v48 = vadd.f32 -1.0, %v3353_v40 }
 0x46a   :  { %6785 = vrsqrt.f32 %v9969_v47  ;;  %v4041_v13 = vsub.f32 %v4009_v14, %v4025_v33  ;;  %v10004_v34 = vsel %vm3484_vm3, %v3485_v32, %v3483_v0  ;;  %v12997_v21 = vand.u32 2147483648, %v9810_v19 }
 0x46b   :  { %v4137_v50 = vmul.f32 2.0, %v4073_v49  ;;  %v10012_v26 = vmax.f32 %v3723_v53, 0.0  ;;  %v3680_v4 = vmul.f32 2.0, %v3664_v10  ;;  %v4105_v18 = vmul.f32 %v4073_v49, %v4073_v49 }
 0x46c   :  { %v10010_v61 = vsel %vm3472_vm4, %v12997_v21, %v3471_v38  ;;  %v4089_v41 = vmul.f32 %v4041_v13, %v4041_v13  ;;  %6787 = vrsqrt.f32 %v9976_v27  ;;  %v10015_v57 = vmul.f32 2.0, %v6454_v46 }
 0x46d   :  { %v4153_v23 = vmul.f32 %v4137_v50, %v4041_v13  ;;  %v10017_v6 = vmul.f32 2.0, %v6459_v58  ;;  %6789 = vrsqrt.f32 %v10012_v26  ;;  %v10020_v32 = vmul.f32 0.5, %v3525_v35 }
 0x46e   :  { %v6782_v40 = vpop.eup %6781  ;;  %v4121_v0 = vsub.f32 %v4089_v41, %v4105_v18  ;;  %v10024_v38 = vmul.f32 2.0, %v9919_v20  ;;  %v10026_v49 = vmul.f32 2.0, %v6457_v30  ;;  %v6462_v58 = vadd.f32 -1.0, %v3680_v4 }
 0x46f   :  { %v6784_v19 = vpop.eup %6783  ;;  %v3753_v60 = vmul.f32 %v6782_v40, %v9959_v51  ;;  %v4185_v10 = vmul.f32 %v4153_v23, %v3993_v39  ;;  %v4233_v14 = vmul.f32 %v4153_v23, %v3961_v11  ;;  %vm3759_vm5 = vcmp.eq.f32.partialorder %v9959_v51, inf }
 0x470   :  { %v6786_v53 = vpop.eup %6785  ;;  %v3813_v46 = vmul.f32 %v6784_v19, %v9961_v25  ;;  %v4169_v33 = vmul.f32 %v4121_v0, %v3961_v11  ;;  %v4217_v13 = vmul.f32 %v4121_v0, %v3993_v39  ;;  %v10032_v20 = vmul.f32 %v6462_v58, %v6462_v58 }
 0x471   :  { %v3754_v50 = vmul.f32 %v6782_v40, %v3753_v60  ;;  %v3801_v35 = vmul.f32 %v6786_v53, %v9969_v47  ;;  %vm3761_vm6 = vcmp.eq.f32.partialorder %v9959_v51, 0.0  ;;  %v3762_v39 = vand.u32 2147483648, %v9959_v51 }
 0x472   :  { %v3814_v21 = vmul.f32 %v6784_v19, %v3813_v46  ;;  %v10034_v30 = vpop.eup %6787  ;;  %v4201_v18 = vsub.f32 %v4169_v33, %v4185_v10  ;;  %v4249_v36 = vadd.f32 %v4233_v14, %v4217_v13  ;;  %v3728_v4 = vsub.f32 1.0, %v10032_v20 }
 0x473   :  { %v3755_v23 = vmul.f32 0.5, %v3754_v50  ;;  %v3802_v5 = vmul.f32 %v6786_v53, %v3801_v35  ;;  %v6790_v43 = vpop.eup %6789  ;;  %vm3819_vm7 = vcmp.eq.f32.partialorder %v9961_v25, inf  ;;  %vm3821_vm8 = vcmp.eq.f32.partialorder %v9961_v25, 0.0 }
 0x474   :  { %v3815_v11 = vmul.f32 0.5, %v3814_v21  ;;  %v4265_v0 = vmul.f32 %v9759_v8, %v4201_v18  ;;  %v4281_v60 = vmul.f32 %v4249_v36, %v3450_v16  ;;  %v3789_v10 = vmul.f32 %v6790_v43, %v10012_v26 }
 0x475   :  { %v3756_v46 = vsub.f32 1.5, %v3755_v23  ;;  %v3803_v41 = vmul.f32 0.5, %v3802_v5  ;;  %v3822_v13 = vand.u32 2147483648, %v9961_v25  ;;  %vm3807_vm10 = vcmp.eq.f32.partialorder %v9969_v47, inf }
 0x476   :  { %v3816_v29 = vsub.f32 1.5, %v3815_v11  ;;  %v4297_v14 = vsub.f32 %v4265_v0, %v4281_v60  ;;  %v3790_v21 = vmul.f32 %v6790_v43, %v3789_v10  ;;  %v10045_v8 = vmax.f32 %v3728_v4, 0.0 }
 0x477   :  { %v3757_v33 = vmul.f32 %v6782_v40, %v3756_v46  ;;  %v3804_v50 = vsub.f32 1.5, %v3803_v41  ;;  %vm3809_vm11 = vcmp.eq.f32.partialorder %v9969_v47, 0.0  ;;  %v3810_v23 = vand.u32 2147483648, %v9969_v47 }
 0x478   :  { %v3817_v35 = vmul.f32 %v6784_v19, %v3816_v29  ;;  %v4313_v36 = vadd.f32 1.0, %v4297_v14  ;;  %v3791_v40 = vmul.f32 0.5, %v3790_v21  ;;  %v10056_v4 = vmul.f32 2.0, %v6462_v58 }
 0x479   :  { %v3758_v5 = vmul.f32 %v3757_v33, %v9959_v51  ;;  %v3805_v16 = vmul.f32 %v6786_v53, %v3804_v50  ;;  %6791 = vrsqrt.f32 %v10045_v8  ;;  %vm3795_vm12 = vcmp.eq.f32.partialorder %v10012_v26, inf }
 0x47a   :  { %v3818_v18 = vmul.f32 %v3817_v35, %v9961_v25  ;;  %v4329_v41 = vmul.f32 0.5, %v4313_v36  ;;  %v3792_v60 = vsub.f32 1.5, %v3791_v40  ;;  %vm3797_vm13 = vcmp.eq.f32.partialorder %v10012_v26, 0.0 }
 0x47b   :  { %v3760_v29 = vsel %vm3759_vm5, %v9959_v51, %v3758_v5  ;;  %v3806_v19 = vmul.f32 %v3805_v16, %v9969_v47  ;;  %vm3855_vm14 = vcmp.eq.f32.partialorder %v10045_v8, inf  ;;  %vm3857_vm15 = vcmp.eq.f32.partialorder %v10045_v8, 0.0 }
 0x47c   :  { %v3763_v53 = vsel %vm3761_vm6, %v3762_v39, %v3760_v29  ;;  %v3820_v0 = vsel %vm3819_vm7, %v9961_v25, %v3818_v18  ;;  %v4348_v46 = vsel %vm4346_vm9, %v4329_v41, 0.5  ;;  %vm3530_vm0 = vcmp.eq.f32.partialorder %v9891_v55, inf }
 0x47d   :  { %v3944_v10 = vmul.f32 %v3763_v53, %v3763_v53  ;;  %v3992_v14 = vmul.f32 %v10015_v57, %v3763_v53  ;;  %v3823_v58 = vsel %vm3821_vm8, %v3822_v13, %v3820_v0  ;;  %v4380_v33 = vmul.f32 2.0, %v4348_v46 }
 0x47e   :  { %v3949_v50 = vmul.f32 %v3823_v58, %v3823_v58  ;;  %v3997_v51 = vmul.f32 %v10017_v6, %v3823_v58  ;;  %v3808_v39 = vsel %vm3807_vm10, %v9969_v47, %v3806_v19  ;;  %v3793_v19 = vmul.f32 %v6790_v43, %v3792_v60 }
 0x47f   :  { %v3960_v35 = vsub.f32 %v3944_v10, %v9930_v52  ;;  %v4024_v21 = vmul.f32 %v3992_v14, %v3992_v14  ;;  %v4056_v36 = vmul.f32 2.0, %v3992_v14  ;;  %v3811_v5 = vsel %vm3809_vm11, %v3810_v23, %v3808_v39  ;;  %v10081_v29 = vpop.eup %6791 }
 0x480   :  { %v10076_v16 = vadd.f32 -1.0, %v4380_v33  ;;  %v3965_v25 = vsub.f32 %v3949_v50, %v9933_v24  ;;  %v4029_v57 = vmul.f32 %v3997_v51, %v3997_v51  ;;  %v4061_v13 = vmul.f32 2.0, %v3997_v51 }
 0x481   :  { %v4008_v6 = vmul.f32 %v3960_v35, %v3960_v35  ;;  %v4072_v18 = vmul.f32 %v4056_v36, %v3960_v35  ;;  %v3948_v40 = vmul.f32 %v3811_v5, %v3811_v5  ;;  %v3996_v41 = vmul.f32 %v10024_v38, %v3811_v5 }
 0x482   :  { %v4412_v52 = vmul.f32 %v10076_v16, %v10076_v16  ;;  %v4013_v47 = vmul.f32 %v3965_v25, %v3965_v25  ;;  %v4077_v23 = vmul.f32 %v4061_v13, %v3965_v25  ;;  %v3794_v43 = vmul.f32 %v3793_v19, %v10012_v26 }
 0x483   :  { %v4040_v24 = vsub.f32 %v4008_v6, %v4024_v21  ;;  %v4104_v53 = vmul.f32 %v4072_v18, %v4072_v18  ;;  %v4136_v0 = vmul.f32 2.0, %v4072_v18  ;;  %v3964_v46 = vsub.f32 %v3948_v40, %v9945_v59 }
 0x484   :  { %4429 = vadd.xlane.f32.xlu0 %v4412_v52  ;;  %v4045_v10 = vsub.f32 %v4013_v47, %v4029_v57  ;;  %v4109_v58 = vmul.f32 %v4077_v23, %v4077_v23  ;;  %v4141_v33 = vmul.f32 2.0, %v4077_v23  ;;  %v4028_v38 = vmul.f32 %v3996_v41, %v3996_v41 }
 0x485   :  { %v4088_v50 = vmul.f32 %v4040_v24, %v4040_v24  ;;  %v4152_v39 = vmul.f32 %v4136_v0, %v4040_v24  ;;  %v4012_v36 = vmul.f32 %v3964_v46, %v3964_v46  ;;  %v4060_v5 = vmul.f32 2.0, %v3996_v41 }
 0x486   :  { %v4093_v11 = vmul.f32 %v4045_v10, %v4045_v10  ;;  %v4157_v9 = vmul.f32 %v4141_v33, %v4045_v10  ;;  %v3849_v60 = vmul.f32 %v10081_v29, %v10045_v8  ;;  %v3796_v0 = vsel %vm3795_vm12, %v10012_v26, %v3794_v43 }
 0x487   :  { %v4120_v21 = vsub.f32 %v4088_v50, %v4104_v53  ;;  %v4184_v13 = vmul.f32 %v4152_v39, %v3992_v14  ;;  %v4232_v6 = vmul.f32 %v4152_v39, %v3960_v35  ;;  %v4044_v59 = vsub.f32 %v4012_v36, %v4028_v38 }
 0x488   :  { %v4125_v18 = vsub.f32 %v4093_v11, %v4109_v58  ;;  %v4189_v57 = vmul.f32 %v4157_v9, %v3997_v51  ;;  %v4237_v40 = vmul.f32 %v4157_v9, %v3965_v25  ;;  %v4076_v52 = vmul.f32 %v4060_v5, %v3964_v46 }
 0x489   :  { %v4168_v47 = vmul.f32 %v4120_v21, %v3960_v35  ;;  %v4216_v23 = vmul.f32 %v4120_v21, %v3992_v14  ;;  %v4092_v24 = vmul.f32 %v4044_v59, %v4044_v59  ;;  %v12998_v50 = vand.u32 2147483648, %v10012_v26 }
 0x48a   :  { %v4173_v10 = vmul.f32 %v4125_v18, %v3965_v25  ;;  %v4221_v19 = vmul.f32 %v4125_v18, %v3997_v51  ;;  %v4108_v33 = vmul.f32 %v4076_v52, %v4076_v52  ;;  %v4140_v31 = vmul.f32 2.0, %v4076_v52 }
 0x48b   :  { %v4200_v1 = vsub.f32 %v4168_v47, %v4184_v13  ;;  %v4248_v53 = vadd.f32 %v4232_v6, %v4216_v23  ;;  %v3799_v11 = vsel %vm3797_vm13, %v12998_v50, %v3796_v0  ;;  %v3850_v9 = vmul.f32 %v10081_v29, %v3849_v60 }
 0x48c   :  { %v4205_v35 = vsub.f32 %v4173_v10, %v4189_v57  ;;  %v4253_v14 = vadd.f32 %v4237_v40, %v4221_v19  ;;  %v4124_v58 = vsub.f32 %v4092_v24, %v4108_v33  ;;  %v4156_v38 = vmul.f32 %v4140_v31, %v4044_v59 }
 0x48d   :  { %v4264_v39 = vmul.f32 %v9761_v15, %v4200_v1  ;;  %v4280_v25 = vmul.f32 %v4248_v53, %v9988_v17  ;;  %v3947_v51 = vmul.f32 %v3799_v11, %v3799_v11  ;;  %v3995_v36 = vmul.f32 %v10026_v49, %v3799_v11 }
 0x48e   :  { %v4269_v5 = vmul.f32 %v9763_v37, %v4205_v35  ;;  %v4285_v43 = vmul.f32 %v4253_v14, %v9996_v22  ;;  %v4172_v21 = vmul.f32 %v4124_v58, %v3964_v46  ;;  %v4188_v26 = vmul.f32 %v4156_v38, %v3996_v41 }
 0x48f   :  { %v4296_v13 = vsub.f32 %v4264_v39, %v4280_v25  ;;  %v4220_v6 = vmul.f32 %v4124_v58, %v3996_v41  ;;  %v4236_v60 = vmul.f32 %v4156_v38, %v3964_v46  ;;  %v3963_v18 = vsub.f32 %v3947_v51, %v9954_v28 }
 0x490   :  { %v4301_v57 = vsub.f32 %v4269_v5, %v4285_v43  ;;  %v4204_v31 = vsub.f32 %v4172_v21, %v4188_v26  ;;  %v4027_v59 = vmul.f32 %v3995_v36, %v3995_v36  ;;  %v4059_v1 = vmul.f32 2.0, %v3995_v36 }
 0x491   :  { %v4312_v15 = vadd.f32 1.0, %v4296_v13  ;;  %v4252_v17 = vadd.f32 %v4236_v60, %v4220_v6  ;;  %v4011_v40 = vmul.f32 %v3963_v18, %v3963_v18  ;;  %v3851_v52 = vmul.f32 0.5, %v3850_v9 }
 0x492   :  { %v4317_v49 = vadd.f32 1.0, %v4301_v57  ;;  %v4268_v37 = vmul.f32 %v9765_v56, %v4204_v31  ;;  %v4075_v47 = vmul.f32 %v4059_v1, %v3963_v18  ;;  %v3858_v10 = vand.u32 2147483648, %v10045_v8 }
 0x493   :  { %v4328_v22 = vmul.f32 0.5, %v4312_v15  ;;  %v4284_v41 = vmul.f32 %v4252_v17, %v10004_v34  ;;  %v4043_v46 = vsub.f32 %v4011_v40, %v4027_v59  ;;  %v3852_v23 = vsub.f32 1.5, %v3851_v52 }
 0x494   :  { %v4333_v28 = vmul.f32 0.5, %v4317_v49  ;;  %v4107_v24 = vmul.f32 %v4075_v47, %v4075_v47  ;;  %v4139_v0 = vmul.f32 2.0, %v4075_v47  ;;  %v3647_v9 = vsub.f32 %v9718_v3, %v9681_v2 }
 0x495   :  { %v4347_v19 = vsel %vm4346_vm9, %v4328_v22, 0.5  ;;  %v4300_v33 = vsub.f32 %v4268_v37, %v4284_v41  ;;  %v4091_v56 = vmul.f32 %v4043_v46, %v4043_v46  ;;  %v3853_v53 = vmul.f32 %v10081_v29, %v3852_v23 }
 0x496   :  { %v4379_v50 = vmul.f32 2.0, %v4347_v19  ;;  %v4352_v34 = vsel %vm4346_vm9, %v4333_v28, 0.5  ;;  %v4155_v11 = vmul.f32 %v4139_v0, %v4043_v46  ;;  %v3663_v5 = vmul.f32 0.0078125, %v3647_v9 }
 0x497   :  { %v4384_v35 = vmul.f32 2.0, %v4352_v34  ;;  %v4316_v14 = vadd.f32 1.0, %v4300_v33  ;;  %v4123_v58 = vsub.f32 %v4091_v56, %v4107_v24  ;;  %v3854_v38 = vmul.f32 %v3853_v53, %v10045_v8 }
 0x498   :  { %v6470_v39 = vadd.f32 -1.0, %v4379_v50  ;;  %v4187_v25 = vmul.f32 %v4155_v11, %v3995_v36  ;;  %v4235_v51 = vmul.f32 %v4155_v11, %v3963_v18  ;;  %v3679_v60 = vmul.f32 2.0, %v3663_v5 }
 0x499   :  { %v10117_v43 = vadd.f32 -1.0, %v4384_v35  ;;  %v4332_v29 = vmul.f32 0.5, %v4316_v14  ;;  %v4171_v21 = vmul.f32 %v4123_v58, %v3963_v18  ;;  %v4219_v26 = vmul.f32 %v4123_v58, %v3995_v36 }
 0x49a   :  { %v4459_v13 = vpack.c.bf16 %v10076_v16, %v6470_v39  ;;  %v4411_v6 = vmul.f32 %v6470_v39, %v6470_v39  ;;  %v3856_v2 = vsel %vm3855_vm14, %v10045_v8, %v3854_v38  ;;  %v10129_v36 = vadd.f32 -1.0, %v3679_v60 }
 0x49b   :  { %v4416_v57 = vmul.f32 %v10117_v43, %v10117_v43  ;;  %v4351_v31 = vsel %vm4346_vm9, %v4332_v29, 0.5  ;;  %v4203_v59 = vsub.f32 %v4171_v21, %v4187_v25  ;;  %v4251_v1 = vadd.f32 %v4235_v51, %v4219_v26 }
 0x49c   :  { %4523 = vmatmul.bf16.vlgmr.msrb.gmra.mxu3 %v4459_v13  ;;  %4427 = vadd.xlane.f32.xlu2 %v4411_v6  ;;  %v4383_v18 = vmul.f32 2.0, %v4351_v31  ;;  %v3859_v16 = vsel %vm3857_vm15, %v3858_v10, %v3856_v2  ;;  %v3385_v15 = vmul.f32 %v9998_v48, %v9998_v48  ;;  %v12999_v47 = vsub.f32 1.5, %v10020_v32 }
 0x49d   :  { %4437 = vadd.xlane.f32.xlu1 %v4416_v57  ;;  %v4267_v17 = vmul.f32 %v9779_v12, %v4203_v59  ;;  %v4283_v40 = vmul.f32 %v4251_v1, %v10010_v61  ;;  %v3952_v52 = vmul.f32 %v3859_v16, %v3859_v16  ;;  %v4000_v49 = vmul.f32 %v10056_v4, %v3859_v16 }
 0x49e   :  { %v10136_v37 = vadd.f32 -1.0, %v4383_v18  ;;  %v3528_v8 = vmul.f32 %v9937_v45, %v12999_v47  ;;  %v10143_v22 = vmul.f32 %v10129_v36, %v10129_v36  ;;  %v3401_v41 = vsub.f32 1.0, %v3385_v15 }
 0x49f   :  { %v4299_v46 = vsub.f32 %v4267_v17, %v4283_v40  ;;  %v3968_v23 = vsub.f32 %v3952_v52, %v10032_v20  ;;  %v4064_v12 = vmul.f32 2.0, %v4000_v49  ;;  %v3512_v61 = vmul.f32 %v10034_v30, %v9976_v27 }
 0x4a0   :  { %v10150_v4 = vmul.f32 %v9862_v54, %v9862_v54  ;;  %v4415_v32 = vmul.f32 %v10136_v37, %v10136_v37  ;;  %v3727_v45 = vsub.f32 1.0, %v10143_v22  ;;  %v4032_v0 = vmul.f32 %v4000_v49, %v4000_v49 }
 0x4a1   :  { %v4315_v28 = vadd.f32 1.0, %v4299_v46  ;;  %v4016_v24 = vmul.f32 %v3968_v23, %v3968_v23  ;;  %v4080_v10 = vmul.f32 %v4064_v12, %v3968_v23  ;;  %v3529_v20 = vmul.f32 %v3528_v8, %v9891_v55 }
 0x4a2   :  { %4435 = vadd.xlane.f32.xlu0 %v4415_v32  ;;  %v10156_v19 = vmax.f32 %v3727_v45, 0.0  ;;  %v10158_v33 = vmax.f32 %v3401_v41, 0.0  ;;  %v3358_v56 = vmul.f32 2.0, %v9702_v63  ;;  %v3513_v11 = vmul.f32 %v10034_v30, %v3512_v61 }
 0x4a3   :  { %v4331_v53 = vmul.f32 0.5, %v4315_v28  ;;  %v4048_v50 = vsub.f32 %v4016_v24, %v4032_v0  ;;  %v4144_v34 = vmul.f32 2.0, %v4080_v10  ;;  %v3357_v9 = vmul.f32 2.0, %v9699_v44 }
 0x4a4   :  { %6793 = vrsqrt.f32 %v10156_v19  ;;  %v4112_v58 = vmul.f32 %v4080_v10, %v4080_v10  ;;  %v3646_v25 = vsub.f32 %v9718_v3, %v9671_v7  ;;  %v10170_v51 = vadd.f32 -1.0, %v3358_v56 }
 0x4a5   :  { %v4350_v35 = vsel %vm4346_vm9, %v4331_v53, 0.5  ;;  %v4096_v14 = vmul.f32 %v4048_v50, %v4048_v50  ;;  %v4160_v38 = vmul.f32 %v4144_v34, %v4048_v50  ;;  %6795 = vrsqrt.f32 %v10158_v33 }
 0x4a6   :  { %v4382_v39 = vmul.f32 2.0, %v4350_v35  ;;  %v3735_v5 = vsub.f32 1.0, %v10150_v4  ;;  %v3531_v29 = vsel %vm3530_vm0, %v9891_v55, %v3529_v20  ;;  %v3514_v26 = vmul.f32 0.5, %v3513_v11  ;;  %v13000_v11 = vld [vmem:[#allocation16_spill] sm:$0xff] }
 0x4a7   :  { %v4128_v21 = vsub.f32 %v4096_v14, %v4112_v58  ;;  %v3662_v6 = vmul.f32 0.0078125, %v3646_v25  ;;  %v3390_v2 = vmul.f32 %v10170_v51, %v10170_v51  ;;  %v10178_v60 = vadd.f32 -1.0, %v3357_v9 }
 0x4a8   :  { %v10174_v13 = vadd.f32 -1.0, %v4382_v39  ;;  %v4192_v31 = vmul.f32 %v4160_v38, %v4000_v49  ;;  %v4240_v7 = vmul.f32 %v4160_v38, %v3968_v23  ;;  %v3533_v16 = vand.u32 2147483648, %v9891_v55 }
 0x4a9   :  { %v4176_v57 = vmul.f32 %v4128_v21, %v3968_v23  ;;  %v4224_v59 = vmul.f32 %v4128_v21, %v4000_v49  ;;  %v3678_v15 = vmul.f32 2.0, %v3662_v6  ;;  %v3406_v17 = vsub.f32 1.0, %v3390_v2 }
 0x4aa   :  { %v6794_v1 = vpop.eup %6793  ;;  %v4414_v18 = vmul.f32 %v10174_v13, %v10174_v13  ;;  %vm3532_vm1 = vcmp.eq.f32.partialorder %v9891_v55, 0.0  ;;  %v3515_v49 = vsub.f32 1.5, %v3514_v26  ;;  %v3389_v23 = vmul.f32 %v10178_v60, %v10178_v60 }
 0x4ab   :  { %v4208_v40 = vsub.f32 %v4176_v57, %v4192_v31  ;;  %v4256_v52 = vadd.f32 %v4240_v7, %v4224_v59  ;;  %v3837_v47 = vmul.f32 %v6794_v1, %v10156_v19  ;;  %v10185_v8 = vpop.eup %6795  ;;  %v3534_v41 = vsel %vm3532_vm1, %v3533_v16, %v3531_v29  ;;  %v13001_v29 = vld [vmem:[#allocation3_spill] sm:$0xff] }
 0x4ac   :  { %4433 = vadd.xlane.f32.xlu2 %v4414_v18  ;;  %v10187_v46 = vadd.f32 -1.0, %v3678_v15  ;;  %v10192_v45 = vmax.f32 %v3406_v17, 0.0  ;;  %v10198_v28 = vmax.f32 %v3735_v5, 0.0  ;;  %v3500_v10 = vmul.f32 %v10185_v8, %v10158_v33  ;;  %v13002_v15 = vld [vmem:[#allocation18_spill] sm:$0xff] }
 0x4ad   :  { %v4272_v12 = vmul.f32 %v9847_v42, %v4208_v40  ;;  %v4288_v61 = vmul.f32 %v4256_v52, %v3534_v41  ;;  %v3838_v32 = vmul.f32 %v6794_v1, %v3837_v47  ;;  %v3516_v20 = vmul.f32 %v10034_v30, %v3515_v49 }
 0x4ae   :  { %v10196_v55 = vmul.f32 %v10187_v46, %v10187_v46  ;;  %v3651_v42 = vsub.f32 %v9718_v3, %v9702_v63  ;;  %6797 = vrsqrt.f32 %v10192_v45  ;;  %v3405_v34 = vsub.f32 1.0, %v3389_v23 }
 0x4af   :  { %v4304_v24 = vsub.f32 %v4272_v12, %v4288_v61  ;;  %v3839_v0 = vmul.f32 0.5, %v3838_v32  ;;  %v3654_v9 = vsub.f32 %v9718_v3, %v13000_v11  ;;  %6799 = vrsqrt.f32 %v10198_v28 }
 0x4b0   :  { %v3726_v56 = vsub.f32 1.0, %v10196_v55  ;;  %v3667_v14 = vmul.f32 0.0078125, %v3651_v42  ;;  %v3501_v38 = vmul.f32 %v10185_v8, %v3500_v10  ;;  %v3517_v39 = vmul.f32 %v3516_v20, %v9976_v27 }
 0x4b1   :  { %v4320_v53 = vadd.f32 1.0, %v4304_v24  ;;  %v3840_v50 = vsub.f32 1.5, %v3839_v0  ;;  %vm3518_vm2 = vcmp.eq.f32.partialorder %v9976_v27, inf  ;;  %vm3843_vm3 = vcmp.eq.f32.partialorder %v10156_v19, inf }
 0x4b2   :  { %v10209_v35 = vmax.f32 %v3726_v56, 0.0  ;;  %v10220_v5 = vmax.f32 %v3405_v34, 0.0  ;;  %v3356_v21 = vmul.f32 2.0, %v13001_v29  ;;  %v3846_v6 = vand.u32 2147483648, %v10156_v19 }
 0x4b3   :  { %v4336_v58 = vmul.f32 0.5, %v4320_v53  ;;  %v3841_v30 = vmul.f32 %v6794_v1, %v3840_v50  ;;  %v3683_v2 = vmul.f32 2.0, %v3667_v14  ;;  %v3650_v57 = vsub.f32 %v9718_v3, %v9699_v44 }
 0x4b4   :  { %6801 = vrsqrt.f32 %v10209_v35  ;;  %v10226_v31 = vpop.eup %6797  ;;  %vm3520_vm4 = vcmp.eq.f32.partialorder %v9976_v27, 0.0  ;;  %vm3845_vm5 = vcmp.eq.f32.partialorder %v10156_v19, 0.0  ;;  %v3983_v7 = vmul.f32 2.0, %v10129_v36 }
 0x4b5   :  { %v4355_v63 = vsel %vm4346_vm9, %v4336_v58, 0.5  ;;  %v3842_v25 = vmul.f32 %v3841_v30, %v10156_v19  ;;  %v3502_v1 = vmul.f32 0.5, %v3501_v38  ;;  %v4460_v17 = vpack.c.bf16 %v10174_v13, %v13002_v15  ;;  %v10238_v44 = vpop.eup %6799 }
 0x4b6   :  { %v4387_v26 = vmul.f32 2.0, %v4355_v63  ;;  %v10236_v40 = vadd.f32 -1.0, %v3683_v2  ;;  %6803 = vrsqrt.f32 %v10220_v5  ;;  %v10241_v41 = vadd.f32 -1.0, %v3356_v21 }
 0x4b7   :  { %v3844_v59 = vsel %vm3843_vm3, %v10156_v19, %v3842_v25  ;;  %4528 = vmatmul.bf16.gmra.mxu3 %v4460_v17  ;;  %v3560_v49 = vmul.f32 %v10226_v31, %v10192_v45  ;;  %v3666_v23 = vmul.f32 0.0078125, %v3650_v57  ;;  %v3503_v32 = vsub.f32 1.5, %v3502_v1 }
 0x4b8   :  { %v10232_v18 = vadd.f32 -1.0, %v4387_v26  ;;  %v3847_v16 = vsel %vm3845_vm5, %v3846_v6, %v3844_v59  ;;  %v10249_v13 = vmul.f32 %v10236_v40, %v10236_v40  ;;  %v3519_v0 = vsel %vm3518_vm2, %v9976_v27, %v3517_v39 }
 0x4b9   :  { %v3951_v52 = vmul.f32 %v3847_v16, %v3847_v16  ;;  %v3999_v47 = vmul.f32 %v3983_v7, %v3847_v16  ;;  %v3521_v10 = vand.u32 2147483648, %v9976_v27  ;;  %v3682_v56 = vmul.f32 2.0, %v3666_v23 }
 0x4ba   :  { %v6802_v19 = vpop.eup %6801  ;;  %v4419_v36 = vmul.f32 %v10232_v18, %v10232_v18  ;;  %v3731_v20 = vsub.f32 1.0, %v10249_v13  ;;  %v3388_v30 = vmul.f32 %v10241_v41, %v10241_v41  ;;  %v3504_v25 = vmul.f32 %v10185_v8, %v3503_v32 }
 0x4bb   :  { %v3967_v12 = vsub.f32 %v3951_v52, %v10143_v22  ;;  %v4063_v61 = vmul.f32 2.0, %v3999_v47  ;;  %v3825_v24 = vmul.f32 %v6802_v19, %v10209_v35  ;;  %v4031_v53 = vmul.f32 %v3999_v47, %v3999_v47 }
 0x4bc   :  { %4443 = vadd.xlane.f32.xlu1 %v4419_v36  ;;  %v3561_v22 = vmul.f32 %v10226_v31, %v3560_v49  ;;  %v10259_v14 = vmax.f32 %v3731_v20, 0.0  ;;  %v10261_v58 = vadd.f32 -1.0, %v3682_v56  ;;  %v10265_v38 = vpop.eup %6803  ;;  %v10270_v26 = vmul.f32 %v10238_v44, %v10198_v28 }
 0x4bd   :  { %v4015_v42 = vmul.f32 %v3967_v12, %v3967_v12  ;;  %v4079_v50 = vmul.f32 %v4063_v61, %v3967_v12  ;;  %v3826_v34 = vmul.f32 %v6802_v19, %v3825_v24  ;;  %v3522_v6 = vsel %vm3520_vm4, %v3521_v10, %v3519_v0 }
 0x4be   :  { %vm3506_vm6 = vcmp.eq.f32.partialorder %v10158_v33, inf  ;;  %6805 = vrsqrt.f32 %v10259_v14  ;;  %v3982_v1 = vmul.f32 2.0, %v10187_v46  ;;  %v3562_v16 = vmul.f32 0.5, %v3561_v22 }
 0x4bf   :  { %v4047_v39 = vsub.f32 %v4015_v42, %v4031_v53  ;;  %v4143_v63 = vmul.f32 2.0, %v4079_v50  ;;  %v3827_v21 = vmul.f32 0.5, %v3826_v34  ;;  %v4111_v57 = vmul.f32 %v4079_v50, %v4079_v50 }
 0x4c0   :  { %v3548_v8 = vmul.f32 %v10265_v38, %v10220_v5  ;;  %v10281_v15 = vmul.f32 %v10261_v58, %v10261_v58  ;;  %v3505_v17 = vmul.f32 %v3504_v25, %v10158_v33  ;;  %vm3508_vm7 = vcmp.eq.f32.partialorder %v10158_v33, 0.0 }
 0x4c1   :  { %v4095_v2 = vmul.f32 %v4047_v39, %v4047_v39  ;;  %v4159_v59 = vmul.f32 %v4143_v63, %v4047_v39  ;;  %v3828_v7 = vsub.f32 1.5, %v3827_v21  ;;  %v3404_v36 = vsub.f32 1.0, %v3388_v30  ;;  %v13003_v30 = vld [vmem:[#allocation13_spill] sm:$0xff] }
 0x4c2   :  { %vm3831_vm8 = vcmp.eq.f32.partialorder %v10209_v35, inf  ;;  %vm3833_vm10 = vcmp.eq.f32.partialorder %v10209_v35, 0.0  ;;  %v3730_v46 = vsub.f32 1.0, %v10281_v15  ;;  %v3834_v10 = vand.u32 2147483648, %v10209_v35 }
 0x4c3   :  { %v4127_v27 = vsub.f32 %v4095_v2, %v4111_v57  ;;  %v3829_v52 = vmul.f32 %v6802_v19, %v3828_v7  ;;  %v4191_v49 = vmul.f32 %v4159_v59, %v3999_v47  ;;  %v4239_v32 = vmul.f32 %v4159_v59, %v3967_v12 }
 0x4c4   :  { %v6806_v0 = vpop.eup %6805  ;;  %v3563_v20 = vsub.f32 1.5, %v3562_v16  ;;  %v3549_v56 = vmul.f32 %v10265_v38, %v3548_v8  ;;  %v10291_v19 = vmax.f32 %v3730_v46, 0.0  ;;  %vm3566_vm11 = vcmp.eq.f32.partialorder %v10192_v45, inf }
 0x4c5   :  { %v4175_v23 = vmul.f32 %v4127_v27, %v3967_v12  ;;  %v4223_v61 = vmul.f32 %v4127_v27, %v3999_v47  ;;  %v3830_v24 = vmul.f32 %v3829_v52, %v10209_v35  ;;  %v3885_v34 = vmul.f32 %v6806_v0, %v10259_v14 }
 0x4c6   :  { %v3507_v47 = vsel %vm3506_vm6, %v10158_v33, %v3505_v17  ;;  %v3509_v12 = vand.u32 2147483648, %v10158_v33  ;;  %6807 = vrsqrt.f32 %v10291_v19  ;;  %v3569_v2 = vand.u32 2147483648, %v10192_v45 }
 0x4c7   :  { %v4207_v42 = vsub.f32 %v4175_v23, %v4191_v49  ;;  %v4255_v53 = vadd.f32 %v4239_v32, %v4223_v61  ;;  %v3832_v50 = vsel %vm3831_vm8, %v10209_v35, %v3830_v24  ;;  %v3886_v57 = vmul.f32 %v6806_v0, %v3885_v34 }
 0x4c8   :  { %v3835_v22 = vsel %vm3833_vm10, %v3834_v10, %v3832_v50  ;;  %v3550_v59 = vmul.f32 0.5, %v3549_v56  ;;  %v10305_v7 = vmax.f32 %v3404_v36, 0.0  ;;  %v3564_v27 = vmul.f32 %v10226_v31, %v3563_v20 }
 0x4c9   :  { %v4271_v39 = vmul.f32 %v13003_v30, %v4207_v42  ;;  %v4287_v63 = vmul.f32 %v4255_v53, %v3522_v6  ;;  %v3950_v25 = vmul.f32 %v3835_v22, %v3835_v22  ;;  %v3998_v21 = vmul.f32 %v3982_v1, %v3835_v22 }
 0x4ca   :  { %v3510_v17 = vsel %vm3508_vm7, %v3509_v12, %v3507_v47  ;;  %v3887_v6 = vmul.f32 0.5, %v3886_v57  ;;  %v3987_v1 = vmul.f32 2.0, %v10236_v40  ;;  %v3649_v52 = vsub.f32 %v9718_v3, %v13001_v29 }
 0x4cb   :  { %v4303_v16 = vsub.f32 %v4271_v39, %v4287_v63  ;;  %v3966_v8 = vsub.f32 %v3950_v25, %v10196_v55  ;;  %v4062_v35 = vmul.f32 2.0, %v3998_v21  ;;  %v4030_v23 = vmul.f32 %v3998_v21, %v3998_v21 }
 0x4cc   :  { %v6808_v61 = vpop.eup %6807  ;;  %v3888_v32 = vsub.f32 1.5, %v3887_v6  ;;  %v3551_v24 = vsub.f32 1.5, %v3550_v59  ;;  %6809 = vrsqrt.f32 %v10305_v7  ;;  %v3665_v55 = vmul.f32 0.0078125, %v3649_v52 }
 0x4cd   :  { %v4319_v49 = vadd.f32 1.0, %v4303_v16  ;;  %v4014_v46 = vmul.f32 %v3966_v8, %v3966_v8  ;;  %v4078_v36 = vmul.f32 %v4062_v35, %v3966_v8  ;;  %v3565_v20 = vmul.f32 %v3564_v27, %v10192_v45 }
 0x4ce   :  { %v3889_v56 = vmul.f32 %v6806_v0, %v3888_v32  ;;  %vm3891_vm12 = vcmp.eq.f32.partialorder %v10259_v14, inf  ;;  %v3873_v29 = vmul.f32 %v6808_v61, %v10291_v19  ;;  %v3681_v40 = vmul.f32 2.0, %v3665_v55 }
 0x4cf   :  { %v4335_v31 = vmul.f32 0.5, %v4319_v49  ;;  %v4046_v10 = vsub.f32 %v4014_v46, %v4030_v23  ;;  %v4142_v33 = vmul.f32 2.0, %v4078_v36  ;;  %v4110_v50 = vmul.f32 %v4078_v36, %v4078_v36 }
 0x4d0   :  { %v3890_v12 = vmul.f32 %v3889_v56, %v10259_v14  ;;  %vm3893_vm13 = vcmp.eq.f32.partialorder %v10259_v14, 0.0  ;;  %v3874_v22 = vmul.f32 %v6808_v61, %v3873_v29  ;;  %v3567_v0 = vsel %vm3566_vm11, %v10192_v45, %v3565_v20 }
 0x4d1   :  { %v4354_v42 = vsel %vm4346_vm9, %v4335_v31, 0.5  ;;  %v4094_v53 = vmul.f32 %v4046_v10, %v4046_v10  ;;  %v4158_v34 = vmul.f32 %v4142_v33, %v4046_v10  ;;  %v3894_v63 = vand.u32 2147483648, %v10259_v14 }
 0x4d2   :  { %v4386_v47 = vmul.f32 2.0, %v4354_v42  ;;  %v10326_v25 = vpop.eup %6809  ;;  %v3892_v59 = vsel %vm3891_vm12, %v10259_v14, %v3890_v12  ;;  %v3875_v16 = vmul.f32 0.5, %v3874_v22  ;;  %v10333_v35 = vadd.f32 -1.0, %v3681_v40 }
 0x4d3   :  { %v4126_v30 = vsub.f32 %v4094_v53, %v4110_v50  ;;  %v4190_v39 = vmul.f32 %v4158_v34, %v3998_v21  ;;  %v4238_v52 = vmul.f32 %v4158_v34, %v3966_v8  ;;  %v3895_v49 = vsel %vm3893_vm13, %v3894_v63, %v3892_v59 }
 0x4d4   :  { %v10328_v57 = vadd.f32 -1.0, %v4386_v47  ;;  %vm3568_vm14 = vcmp.eq.f32.partialorder %v10192_v45, 0.0  ;;  %v3955_v23 = vmul.f32 %v3895_v49, %v3895_v49  ;;  %v4003_v36 = vmul.f32 %v3987_v1, %v3895_v49 }
 0x4d5   :  { %v4174_v27 = vmul.f32 %v4126_v30, %v3966_v8  ;;  %v4222_v6 = vmul.f32 %v4126_v30, %v3998_v21  ;;  %v3876_v32 = vsub.f32 1.5, %v3875_v16  ;;  %v3552_v10 = vmul.f32 %v10265_v38, %v3551_v24 }
 0x4d6   :  { %v4418_v46 = vmul.f32 %v10328_v57, %v10328_v57  ;;  %v10341_v14 = vmul.f32 %v10333_v35, %v10333_v35  ;;  %v3971_v21 = vsub.f32 %v3955_v23, %v10249_v13  ;;  %v4067_v8 = vmul.f32 2.0, %v4003_v36 }
 0x4d7   :  { %v4206_v55 = vsub.f32 %v4174_v27, %v4190_v39  ;;  %v4254_v31 = vadd.f32 %v4238_v52, %v4222_v6  ;;  %v3877_v33 = vmul.f32 %v6808_v61, %v3876_v32  ;;  %v3986_v20 = vmul.f32 2.0, %v10261_v58 }
 0x4d8   :  { %4441 = vadd.xlane.f32.xlu0 %v4418_v46  ;;  %vm3879_vm15 = vcmp.eq.f32.partialorder %v10291_v19, inf  ;;  %v3729_v1 = vsub.f32 1.0, %v10341_v14  ;;  %v4019_v40 = vmul.f32 %v3971_v21, %v3971_v21  ;;  %v4035_v38 = vmul.f32 %v4003_v36, %v4003_v36 }
 0x4d9   :  { %v4270_v56 = vmul.f32 %v9998_v48, %v4206_v55  ;;  %v4286_v29 = vmul.f32 %v4254_v31, %v3510_v17  ;;  %v4083_v24 = vmul.f32 %v4067_v8, %v3971_v21  ;;  %v3878_v42 = vmul.f32 %v3877_v33, %v10291_v19 }
 0x4da   :  { %v3882_v50 = vand.u32 2147483648, %v10291_v19  ;;  %v10350_v13 = vmax.f32 %v3729_v1, 0.0  ;;  %v3361_v61 = vmul.f32 2.0, %v13000_v11  ;;  %v4051_v58 = vsub.f32 %v4019_v40, %v4035_v38 }
 0x4db   :  { %v4302_v53 = vsub.f32 %v4270_v56, %v4286_v29  ;;  %v4147_v34 = vmul.f32 2.0, %v4083_v24  ;;  %v3880_v48 = vsel %vm3879_vm15, %v10291_v19, %v3878_v42  ;;  %vm3881_vm0 = vcmp.eq.f32.partialorder %v10291_v19, 0.0 }
 0x4dc   :  { %v4115_v47 = vmul.f32 %v4083_v24, %v4083_v24  ;;  %v3883_v12 = vsel %vm3881_vm0, %v3882_v50, %v3880_v48  ;;  %6811 = vrsqrt.f32 %v10350_v13  ;;  %v4099_v22 = vmul.f32 %v4051_v58, %v4051_v58 }
 0x4dd   :  { %v4318_v17 = vadd.f32 1.0, %v4302_v53  ;;  %v4163_v30 = vmul.f32 %v4147_v34, %v4051_v58  ;;  %v3954_v39 = vmul.f32 %v3883_v12, %v3883_v12  ;;  %v4002_v63 = vmul.f32 %v3986_v20, %v3883_v12 }
 0x4de   :  { %v3570_v16 = vsel %vm3568_vm14, %v3569_v2, %v3567_v0  ;;  %vm3554_vm1 = vcmp.eq.f32.partialorder %v10220_v5, inf  ;;  %v3536_v19 = vmul.f32 %v10326_v25, %v10305_v7  ;;  %v10363_v27 = vadd.f32 -1.0, %v3361_v61 }
 0x4df   :  { %v4334_v59 = vmul.f32 0.5, %v4318_v17  ;;  %v4131_v6 = vsub.f32 %v4099_v22, %v4115_v47  ;;  %v4195_v52 = vmul.f32 %v4163_v30, %v4003_v36  ;;  %v3553_v49 = vmul.f32 %v3552_v10, %v10220_v5  ;;  %v13004_v10 = vld [vmem:[#allocation15_spill] sm:$0xff] }
 0x4e0   :  { %v3970_v46 = vsub.f32 %v3954_v39, %v10281_v15  ;;  %v4243_v32 = vmul.f32 %v4163_v30, %v3971_v21  ;;  %v4034_v55 = vmul.f32 %v4002_v63, %v4002_v63  ;;  %v4066_v45 = vmul.f32 2.0, %v4002_v63 }
 0x4e1   :  { %v4353_v23 = vsel %vm4346_vm9, %v4334_v59, 0.5  ;;  %v4179_v0 = vmul.f32 %v4131_v6, %v3971_v21  ;;  %v4227_v31 = vmul.f32 %v4131_v6, %v4003_v36  ;;  %v3537_v56 = vmul.f32 %v10326_v25, %v3536_v19 }
 0x4e2   :  { %v4385_v2 = vmul.f32 2.0, %v4353_v23  ;;  %v4018_v8 = vmul.f32 %v3970_v46, %v3970_v46  ;;  %v6812_v33 = vpop.eup %6811  ;;  %v4082_v20 = vmul.f32 %v4066_v45, %v3970_v46  ;;  %v3393_v29 = vmul.f32 %v10363_v27, %v10363_v27 }
 0x4e3   :  { %v3360_v1 = vmul.f32 2.0, %v13004_v10  ;;  %v4211_v40 = vsub.f32 %v4179_v0, %v4195_v52  ;;  %v4259_v38 = vadd.f32 %v4243_v32, %v4227_v31  ;;  %v3861_v21 = vmul.f32 %v6812_v33, %v10350_v13 }
 0x4e4   :  { %v10373_v15 = vadd.f32 -1.0, %v4385_v2  ;;  %v4050_v24 = vsub.f32 %v4018_v8, %v4034_v55  ;;  %v4114_v42 = vmul.f32 %v4082_v20, %v4082_v20  ;;  %v4146_v53 = vmul.f32 2.0, %v4082_v20 }
 0x4e5   :  { %v3670_v36 = vmul.f32 0.0078125, %v3654_v9  ;;  %v4275_v61 = vmul.f32 %v10170_v51, %v4211_v40  ;;  %v4291_v58 = vmul.f32 %v4259_v38, %v3570_v16  ;;  %v3862_v17 = vmul.f32 %v6812_v33, %v3861_v21 }
 0x4e6   :  { %v4417_v50 = vmul.f32 %v10373_v15, %v10373_v15  ;;  %v4098_v34 = vmul.f32 %v4050_v24, %v4050_v24  ;;  %v4162_v48 = vmul.f32 %v4146_v53, %v4050_v24  ;;  %v3409_v47 = vsub.f32 1.0, %v3393_v29 }
 0x4e7   :  { %v3686_v12 = vmul.f32 2.0, %v3670_v36  ;;  %v4307_v22 = vsub.f32 %v4275_v61, %v4291_v58  ;;  %v3555_v30 = vsel %vm3554_vm1, %v10220_v5, %v3553_v49  ;;  %vm3556_vm2 = vcmp.eq.f32.partialorder %v10220_v5, 0.0 }
 0x4e8   :  { %4439 = vadd.xlane.f32.xlu2 %v4417_v50  ;;  %v4130_v11 = vsub.f32 %v4098_v34, %v4114_v42  ;;  %v4194_v9 = vmul.f32 %v4162_v48, %v4002_v63  ;;  %v4242_v39 = vmul.f32 %v4162_v48, %v3970_v46  ;;  %v3538_v59 = vmul.f32 0.5, %v3537_v56 }
 0x4e9   :  { %v3863_v19 = vmul.f32 0.5, %v3862_v17  ;;  %v4323_v51 = vadd.f32 1.0, %v4307_v22  ;;  %v10386_v52 = vadd.f32 -1.0, %v3686_v12  ;;  %v3557_v23 = vand.u32 2147483648, %v10220_v5 }
 0x4ea   :  { %v4178_v16 = vmul.f32 %v4130_v11, %v3970_v46  ;;  %v4226_v6 = vmul.f32 %v4130_v11, %v4002_v63  ;;  %v10389_v55 = vmax.f32 %v3409_v47, 0.0  ;;  %v10391_v45 = vadd.f32 -1.0, %v3360_v1 }
 0x4eb   :  { %v3864_v32 = vsub.f32 1.5, %v3863_v19  ;;  %v4339_v49 = vmul.f32 0.5, %v4323_v51  ;;  %v10395_v31 = vmul.f32 %v10386_v52, %v10386_v52  ;;  %v3934_v46 = vmul.f32 %v10238_v44, %v10270_v26 }
 0x4ec   :  { %v4210_v2 = vsub.f32 %v4178_v16, %v4194_v9  ;;  %v4258_v0 = vadd.f32 %v4242_v39, %v4226_v6  ;;  %v3558_v63 = vsel %vm3556_vm2, %v3557_v23, %v3555_v30  ;;  %v3539_v8 = vsub.f32 1.5, %v3538_v59  ;;  %v13005_v30 = vld [vmem:[#allocation17_spill] sm:$0xff] }
 0x4ed   :  { %v3865_v20 = vmul.f32 %v6812_v33, %v3864_v32  ;;  %v4358_v56 = vsel %vm4346_vm9, %v4339_v49, 0.5  ;;  %v3734_v40 = vsub.f32 1.0, %v10395_v31  ;;  %vm3867_vm3 = vcmp.eq.f32.partialorder %v10350_v13, inf }
 0x4ee   :  { %v4274_v29 = vmul.f32 %v10178_v60, %v4210_v2  ;;  %v4290_v1 = vmul.f32 %v4258_v0, %v3558_v63  ;;  %v4390_v38 = vmul.f32 2.0, %v4358_v56  ;;  %6813 = vrsqrt.f32 %v10389_v55 }
 0x4ef   :  { %v3866_v24 = vmul.f32 %v3865_v20, %v10350_v13  ;;  %v3870_v5 = vand.u32 2147483648, %v10350_v13  ;;  %v10409_v42 = vmax.f32 %v3734_v40, 0.0  ;;  %v3392_v33 = vmul.f32 %v10391_v45, %v10391_v45  ;;  %v13006_v20 = vld [vmem:[#allocation19_spill] sm:$0xff] }
 0x4f0   :  { %v4306_v26 = vsub.f32 %v4274_v29, %v4290_v1  ;;  %v10413_v53 = vadd.f32 -1.0, %v4390_v38  ;;  %vm3869_vm4 = vcmp.eq.f32.partialorder %v10350_v13, 0.0  ;;  %v3985_v21 = vmul.f32 2.0, %v10333_v35 }
 0x4f1   :  { %v3868_v60 = vsel %vm3867_vm3, %v10350_v13, %v3866_v24  ;;  %6815 = vrsqrt.f32 %v10409_v42  ;;  %v3653_v61 = vsub.f32 %v9718_v3, %v13004_v10  ;;  %v3540_v47 = vmul.f32 %v10326_v25, %v3539_v8 }
 0x4f2   :  { %v4322_v36 = vadd.f32 1.0, %v4306_v26  ;;  %v3871_v50 = vsel %vm3869_vm4, %v3870_v5, %v3868_v60  ;;  %v4422_v58 = vmul.f32 %v10413_v53, %v10413_v53  ;;  %v3408_v12 = vsub.f32 1.0, %v3392_v33 }
 0x4f3   :  { %v3953_v34 = vmul.f32 %v3871_v50, %v3871_v50  ;;  %v4001_v48 = vmul.f32 %v3985_v21, %v3871_v50  ;;  %v3359_v11 = vmul.f32 2.0, %v13005_v30  ;;  %v3935_v9 = vmul.f32 0.5, %v3934_v46 }
 0x4f4   :  { %v4338_v17 = vmul.f32 0.5, %v4322_v36  ;;  %v10424_v22 = vpop.eup %6813  ;;  %4449 = vadd.xlane.f32.xlu1 %v4422_v58  ;;  %v3669_v39 = vmul.f32 0.0078125, %v3653_v61  ;;  %v3541_v25 = vmul.f32 %v3540_v47, %v10305_v7  ;;  %v10433_v32 = vmax.f32 %v3408_v12, 0.0 }
 0x4f5   :  { %v3969_v35 = vsub.f32 %v3953_v34, %v10341_v14  ;;  %v4065_v13 = vmul.f32 2.0, %v4001_v48  ;;  %v4033_v51 = vmul.f32 %v4001_v48, %v4001_v48  ;;  %v3596_v23 = vmul.f32 %v10424_v22, %v10389_v55 }
 0x4f6   :  { %v4357_v10 = vsel %vm4346_vm9, %v4338_v17, 0.5  ;;  %v3685_v14 = vmul.f32 2.0, %v3669_v39  ;;  %v10437_v46 = vadd.f32 -1.0, %v3359_v11  ;;  %vm3542_vm5 = vcmp.eq.f32.partialorder %v10305_v7, inf }
 0x4f7   :  { %v4389_v59 = vmul.f32 2.0, %v4357_v10  ;;  %v4017_v19 = vmul.f32 %v3969_v35, %v3969_v35  ;;  %v4081_v16 = vmul.f32 %v4065_v13, %v3969_v35  ;;  %v6816_v6 = vpop.eup %6815  ;;  %v3362_v56 = vmul.f32 2.0, %v13006_v20 }
 0x4f8   :  { %v3921_v63 = vmul.f32 %v6816_v6, %v10409_v42  ;;  %v10441_v8 = vadd.f32 -1.0, %v3685_v14  ;;  %v3597_v24 = vmul.f32 %v10424_v22, %v3596_v23  ;;  %6817 = vrsqrt.f32 %v10433_v32 }
 0x4f9   :  { %v10435_v49 = vadd.f32 -1.0, %v4389_v59  ;;  %v4049_v2 = vsub.f32 %v4017_v19, %v4033_v51  ;;  %v4145_v0 = vmul.f32 2.0, %v4081_v16  ;;  %v4113_v40 = vmul.f32 %v4081_v16, %v4081_v16 }
 0x4fa   :  { %v3922_v26 = vmul.f32 %v6816_v6, %v3921_v63  ;;  %v10450_v5 = vmul.f32 %v10441_v8, %v10441_v8  ;;  %v3936_v33 = vsub.f32 1.5, %v3935_v9  ;;  %v3543_v60 = vsel %vm3542_vm5, %v10305_v7, %v3541_v25 }
 0x4fb   :  { %v4421_v29 = vmul.f32 %v10435_v49, %v10435_v49  ;;  %v4097_v1 = vmul.f32 %v4049_v2, %v4049_v2  ;;  %v4161_v38 = vmul.f32 %v4145_v0, %v4049_v2  ;;  %v3391_v36 = vmul.f32 %v10437_v46, %v10437_v46 }
 0x4fc   :  { %v3923_v61 = vmul.f32 0.5, %v3922_v26  ;;  %v3733_v58 = vsub.f32 1.0, %v10450_v5  ;;  %v10456_v34 = vadd.f32 -1.0, %v3362_v56  ;;  %v3652_v13 = vsub.f32 %v9718_v3, %v13005_v30 }
 0x4fd   :  { %4447 = vadd.xlane.f32.xlu0 %v4421_v29  ;;  %v4129_v21 = vsub.f32 %v4097_v1, %v4113_v40  ;;  %v4193_v50 = vmul.f32 %v4161_v38, %v4001_v48  ;;  %v4241_v12 = vmul.f32 %v4161_v38, %v3969_v35  ;;  %v3545_v11 = vand.u32 2147483648, %v10305_v7 }
 0x4fe   :  { %v3598_v9 = vmul.f32 0.5, %v3597_v24  ;;  %v3924_v10 = vsub.f32 1.5, %v3923_v61  ;;  %v10461_v39 = vmax.f32 %v3733_v58, 0.0  ;;  %vm3544_vm6 = vcmp.eq.f32.partialorder %v10305_v7, 0.0  ;;  %v10464_v16 = vpop.eup %6817 }
 0x4ff   :  { %v4177_v17 = vmul.f32 %v4129_v21, %v3969_v35  ;;  %v4225_v47 = vmul.f32 %v4129_v21, %v4001_v48  ;;  %v3668_v51 = vmul.f32 0.0078125, %v3652_v13  ;;  %v3546_v25 = vsel %vm3544_vm6, %v3545_v11, %v3543_v60 }
 0x500   :  { %v3925_v23 = vmul.f32 %v6816_v6, %v3924_v10  ;;  %6819 = vrsqrt.f32 %v10461_v39  ;;  %v3394_v3 = vmul.f32 %v10456_v34, %v10456_v34  ;;  %v3937_v48 = vmul.f32 %v10238_v44, %v3936_v33 }
 0x501   :  { %v4209_v59 = vsub.f32 %v4177_v17, %v4193_v50  ;;  %v4257_v19 = vadd.f32 %v4241_v12, %v4225_v47  ;;  %v3407_v14 = vsub.f32 1.0, %v3391_v36  ;;  %v3599_v2 = vsub.f32 1.5, %v3598_v9 }
 0x502   :  { %v3926_v7 = vmul.f32 %v3925_v23, %v10409_v42  ;;  %v3990_v0 = vmul.f32 2.0, %v10386_v52  ;;  %v3684_v63 = vmul.f32 2.0, %v3668_v51  ;;  %vm3927_vm7 = vcmp.eq.f32.partialorder %v10409_v42, inf }
 0x503   :  { %v4273_v35 = vmul.f32 %v10241_v41, %v4209_v59  ;;  %v4289_v30 = vmul.f32 %v4257_v19, %v3546_v25  ;;  %v3930_v6 = vand.u32 2147483648, %v10409_v42  ;;  %v3584_v56 = vmul.f32 %v10464_v16, %v10433_v32 }
 0x504   :  { %v3928_v44 = vsel %vm3927_vm7, %v10409_v42, %v3926_v7  ;;  %vm3929_vm8 = vcmp.eq.f32.partialorder %v10409_v42, 0.0  ;;  %v10479_v41 = vadd.f32 -1.0, %v3684_v63  ;;  %v3410_v29 = vsub.f32 1.0, %v3394_v3 }
 0x505   :  { %v4305_v20 = vsub.f32 %v4273_v35, %v4289_v30  ;;  %v3931_v40 = vsel %vm3929_vm8, %v3930_v6, %v3928_v44  ;;  %v10481_v38 = vmax.f32 %v3407_v14, 0.0  ;;  %vm3939_vm10 = vcmp.eq.f32.partialorder %v10198_v28, inf }
 0x506   :  { %v6820_v52 = vpop.eup %6819  ;;  %v3958_v24 = vmul.f32 %v3931_v40, %v3931_v40  ;;  %v4006_v26 = vmul.f32 %v3990_v0, %v3931_v40  ;;  %v10486_v33 = vmul.f32 %v10479_v41, %v10479_v41  ;;  %v3600_v21 = vmul.f32 %v10424_v22, %v3599_v2 }
 0x507   :  { %v4321_v1 = vadd.f32 1.0, %v4305_v20  ;;  %v3585_v42 = vmul.f32 %v10464_v16, %v3584_v56  ;;  %v3909_v36 = vmul.f32 %v6820_v52, %v10461_v39  ;;  %v3938_v50 = vmul.f32 %v3937_v48, %v10198_v28 }
 0x508   :  { %v3974_v61 = vsub.f32 %v3958_v24, %v10395_v31  ;;  %v4070_v58 = vmul.f32 2.0, %v4006_v26  ;;  %v10493_v17 = vmax.f32 %v3410_v29, 0.0  ;;  %6821 = vrsqrt.f32 %v10481_v38 }
 0x509   :  { %v4337_v60 = vmul.f32 0.5, %v4321_v1  ;;  %v3910_v12 = vmul.f32 %v6820_v52, %v3909_v36  ;;  %v3732_v13 = vsub.f32 1.0, %v10486_v33  ;;  %v4038_v9 = vmul.f32 %v4006_v26, %v4006_v26 }
 0x50a   :  { %v4022_v11 = vmul.f32 %v3974_v61, %v3974_v61  ;;  %v4086_v10 = vmul.f32 %v4070_v58, %v3974_v61  ;;  %v3601_v59 = vmul.f32 %v3600_v21, %v10389_v55  ;;  %v3586_v19 = vmul.f32 0.5, %v3585_v42 }
 0x50b   :  { %v4356_v47 = vsel %vm4346_vm9, %v4337_v60, 0.5  ;;  %v3911_v51 = vmul.f32 0.5, %v3910_v12  ;;  %v10500_v31 = vmax.f32 %v3732_v13, 0.0  ;;  %6823 = vrsqrt.f32 %v10493_v17 }
 0x50c   :  { %v4388_v22 = vmul.f32 2.0, %v4356_v47  ;;  %v4054_v23 = vsub.f32 %v4022_v11, %v4038_v9  ;;  %v4150_v3 = vmul.f32 2.0, %v4086_v10  ;;  %vm3941_vm11 = vcmp.eq.f32.partialorder %v10198_v28, 0.0 }
 0x50d   :  { %v3942_v48 = vand.u32 2147483648, %v10198_v28  ;;  %v3912_v35 = vsub.f32 1.5, %v3911_v51  ;;  %6825 = vrsqrt.f32 %v10500_v31  ;;  %v4118_v2 = vmul.f32 %v4086_v10, %v4086_v10 }
 0x50e   :  { %v10502_v25 = vadd.f32 -1.0, %v4388_v22  ;;  %v4102_v14 = vmul.f32 %v4054_v23, %v4054_v23  ;;  %v4166_v7 = vmul.f32 %v4150_v3, %v4054_v23  ;;  %v10510_v0 = vpop.eup %6821  ;;  %v3940_v63 = vsel %vm3939_vm10, %v10198_v28, %v3938_v50 }
 0x50f   :  { %vm3602_vm12 = vcmp.eq.f32.partialorder %v10389_v55, inf  ;;  %v3587_v20 = vsub.f32 1.5, %v3586_v19  ;;  %v3913_v6 = vmul.f32 %v6820_v52, %v3912_v35  ;;  %vm3604_vm13 = vcmp.eq.f32.partialorder %v10389_v55, 0.0 }
 0x510   :  { %v4420_v30 = vmul.f32 %v10502_v25, %v10502_v25  ;;  %v3603_v56 = vsel %vm3602_vm12, %v10389_v55, %v3601_v59  ;;  %v3605_v44 = vand.u32 2147483648, %v10389_v55  ;;  %v4134_v29 = vsub.f32 %v4102_v14, %v4118_v2 }
 0x511   :  { %v3914_v1 = vmul.f32 %v3913_v6, %v10461_v39  ;;  %vm3915_vm14 = vcmp.eq.f32.partialorder %v10461_v39, inf  ;;  %v3918_v40 = vand.u32 2147483648, %v10461_v39  ;;  %v3989_v24 = vmul.f32 2.0, %v10441_v8  ;;  %v10523_v60 = vpop.eup %6823 }
 0x512   :  { %4445 = vadd.xlane.f32.xlu2 %v4420_v30  ;;  %v4182_v21 = vmul.f32 %v4134_v29, %v3974_v61  ;;  %v4198_v52 = vmul.f32 %v4166_v7, %v4006_v26  ;;  %v4230_v42 = vmul.f32 %v4134_v29, %v4006_v26  ;;  %v4246_v36 = vmul.f32 %v4166_v7, %v3974_v61 }
 0x513   :  { %v6826_v50 = vpop.eup %6825  ;;  %v3588_v58 = vmul.f32 %v10464_v16, %v3587_v20  ;;  %v3916_v47 = vsel %vm3915_vm14, %v10461_v39, %v3914_v1  ;;  %vm3917_vm15 = vcmp.eq.f32.partialorder %v10461_v39, 0.0  ;;  %v3572_v12 = vmul.f32 %v10510_v0, %v10481_v38 }
 0x514   :  { %v4214_v13 = vsub.f32 %v4182_v21, %v4198_v52  ;;  %v4262_v22 = vadd.f32 %v4246_v36, %v4230_v42  ;;  %v3919_v11 = vsel %vm3917_vm15, %v3918_v40, %v3916_v47  ;;  %v4461_v8 = vpack.c.bf16 %v10117_v43, %v10136_v37 }
 0x515   :  { %v3606_v26 = vsel %vm3604_vm13, %v3605_v44, %v3603_v56  ;;  %v3957_v61 = vmul.f32 %v3919_v11, %v3919_v11  ;;  %v4005_v9 = vmul.f32 %v3989_v24, %v3919_v11  ;;  %v3897_v16 = vmul.f32 %v6826_v50, %v10500_v31 }
 0x516   :  { %v3943_v10 = vsel %vm3941_vm11, %v3942_v48, %v3940_v63  ;;  %v4278_v39 = vmul.f32 %v10363_v27, %v4214_v13  ;;  %v4294_v59 = vmul.f32 %v4262_v22, %v3606_v26  ;;  %4533 = vmatmul.bf16.gmra.mxu3 %v4461_v8  ;;  %v3608_v19 = vmul.f32 %v10523_v60, %v10493_v17 }
 0x517   :  { %v3973_v51 = vsub.f32 %v3957_v61, %v10450_v5  ;;  %v4069_v43 = vmul.f32 2.0, %v4005_v9  ;;  %v3573_v37 = vmul.f32 %v10510_v0, %v3572_v12  ;;  %v3898_v55 = vmul.f32 %v6826_v50, %v3897_v16 }
 0x518   :  { %v3991_v23 = vmul.f32 2.0, %v9862_v54  ;;  %v4310_v3 = vsub.f32 %v4278_v39, %v4294_v59  ;;  %v3589_v35 = vmul.f32 %v3588_v58, %v10433_v32  ;;  %v4037_v48 = vmul.f32 %v4005_v9, %v4005_v9 }
 0x519   :  { %v4021_v28 = vmul.f32 %v3973_v51, %v3973_v51  ;;  %v4085_v30 = vmul.f32 %v4069_v43, %v3973_v51  ;;  %v3899_v27 = vmul.f32 0.5, %v3898_v55  ;;  %v3959_v14 = vmul.f32 %v3943_v10, %v3943_v10 }
 0x51a   :  { %v4326_v2 = vadd.f32 1.0, %v4310_v3  ;;  %vm3590_vm0 = vcmp.eq.f32.partialorder %v10433_v32, inf  ;;  %v3609_v7 = vmul.f32 %v10523_v60, %v3608_v19  ;;  %v3574_v20 = vmul.f32 0.5, %v3573_v37 }
 0x51b   :  { %v4053_v5 = vsub.f32 %v4021_v28, %v4037_v48  ;;  %v4149_v63 = vmul.f32 2.0, %v4085_v30  ;;  %v3900_v6 = vsub.f32 1.5, %v3899_v27  ;;  %v10546_v56 = vmul.f32 %v3991_v23, %v3943_v10 }
 0x51c   :  { %v4342_v54 = vmul.f32 0.5, %v4326_v2  ;;  %v3591_v44 = vsel %vm3590_vm0, %v10433_v32, %v3589_v35  ;;  %v3593_v29 = vand.u32 2147483648, %v10433_v32  ;;  %v4117_v40 = vmul.f32 %v4085_v30, %v4085_v30 }
 0x51d   :  { %v4101_v1 = vmul.f32 %v4053_v5, %v4053_v5  ;;  %v4165_v24 = vmul.f32 %v4149_v63, %v4053_v5  ;;  %v3901_v21 = vmul.f32 %v6826_v50, %v3900_v6  ;;  %v10551_v52 = vsub.f32 %v3959_v14, %v10150_v4 }
 0x51e   :  { %v4361_v42 = vsel %vm4346_vm9, %v4342_v54, 0.5  ;;  %vm3592_vm1 = vcmp.eq.f32.partialorder %v10433_v32, 0.0  ;;  %v3610_v36 = vmul.f32 0.5, %v3609_v7  ;;  %v3575_v13 = vsub.f32 1.5, %v3574_v20 }
 0x51f   :  { %v4393_v58 = vmul.f32 2.0, %v4361_v42  ;;  %v3594_v47 = vsel %vm3592_vm1, %v3593_v29, %v3591_v44  ;;  %v4133_v12 = vsub.f32 %v4101_v1, %v4117_v40  ;;  %v4197_v22 = vmul.f32 %v4165_v24, %v4005_v9 }
 0x520   :  { %v3902_v11 = vmul.f32 %v3901_v21, %v10500_v31  ;;  %vm3903_vm2 = vcmp.eq.f32.partialorder %v10500_v31, inf  ;;  %v3906_v50 = vand.u32 2147483648, %v10500_v31  ;;  %v4245_v61 = vmul.f32 %v4165_v24, %v3973_v51 }
 0x521   :  { %v10559_v8 = vadd.f32 -1.0, %v4393_v58  ;;  %v4181_v4 = vmul.f32 %v4133_v12, %v3973_v51  ;;  %v4229_v26 = vmul.f32 %v4133_v12, %v4005_v9  ;;  %vm3905_vm3 = vcmp.eq.f32.partialorder %v10500_v31, 0.0 }
 0x522   :  { %v3904_v16 = vsel %vm3903_vm2, %v10500_v31, %v3902_v11  ;;  %v3988_v32 = vmul.f32 2.0, %v10479_v41  ;;  %v3611_v10 = vsub.f32 1.5, %v3610_v36  ;;  %v4023_v23 = vmul.f32 %v10551_v52, %v10551_v52 }
 0x523   :  { %v4425_v39 = vmul.f32 %v10559_v8, %v10559_v8  ;;  %v4213_v59 = vsub.f32 %v4181_v4, %v4197_v22  ;;  %v4261_v19 = vadd.f32 %v4245_v61, %v4229_v26  ;;  %v3907_v43 = vsel %vm3905_vm3, %v3906_v50, %v3904_v16 }
 0x524   :  { %v3956_v37 = vmul.f32 %v3907_v43, %v3907_v43  ;;  %v4004_v55 = vmul.f32 %v3988_v32, %v3907_v43  ;;  %v4039_v9 = vmul.f32 %v10546_v56, %v10546_v56  ;;  %v3576_v41 = vmul.f32 %v10510_v0, %v3575_v13 }
 0x525   :  { %4455 = vadd.xlane.f32.xlu1 %v4425_v39  ;;  %v4277_v31 = vmul.f32 %v10391_v45, %v4213_v59  ;;  %v4293_v51 = vmul.f32 %v4261_v19, %v3594_v47  ;;  %v4071_v3 = vmul.f32 2.0, %v10546_v56  ;;  %v3612_v48 = vmul.f32 %v10523_v60, %v3611_v10 }
 0x526   :  { %v3972_v35 = vsub.f32 %v3956_v37, %v10486_v33  ;;  %v4068_v28 = vmul.f32 2.0, %v4004_v55  ;;  %v4055_v30 = vsub.f32 %v4023_v23, %v4039_v9  ;;  %vm3578_vm4 = vcmp.eq.f32.partialorder %v10481_v38, inf }
 0x527   :  { %v4309_v27 = vsub.f32 %v4277_v31, %v4293_v51  ;;  %v4087_v14 = vmul.f32 %v4071_v3, %v10551_v52  ;;  %v4036_v7 = vmul.f32 %v4004_v55, %v4004_v55  ;;  %vm3614_vm5 = vcmp.eq.f32.partialorder %v10493_v17, inf }
 0x528   :  { %v4020_v2 = vmul.f32 %v3972_v35, %v3972_v35  ;;  %v4084_v5 = vmul.f32 %v4068_v28, %v3972_v35  ;;  %v4103_v45 = vmul.f32 %v4055_v30, %v4055_v30  ;;  %v3577_v33 = vmul.f32 %v3576_v41, %v10481_v38 }
 0x529   :  { %v4325_v63 = vadd.f32 1.0, %v4309_v27  ;;  %v4119_v0 = vmul.f32 %v4087_v14, %v4087_v14  ;;  %v4151_v20 = vmul.f32 2.0, %v4087_v14  ;;  %vm3580_vm6 = vcmp.eq.f32.partialorder %v10481_v38, 0.0 }
 0x52a   :  { %v4052_v60 = vsub.f32 %v4020_v2, %v4036_v7  ;;  %v4148_v6 = vmul.f32 2.0, %v4084_v5  ;;  %v3613_v54 = vmul.f32 %v3612_v48, %v10493_v17  ;;  %v4462_v40 = vpack.c.bf16 %v10328_v57, %v10373_v15  ;;  %v4524_v7 = vpop.f32.mrf.mxu3 }
 0x52b   :  { %v4341_v44 = vmul.f32 0.5, %v4325_v63  ;;  %v4135_v29 = vsub.f32 %v4103_v45, %v4119_v0  ;;  %v4167_v1 = vmul.f32 %v4151_v20, %v4055_v30  ;;  %v4116_v21 = vmul.f32 %v4084_v5, %v4084_v5  ;;  %v4428_v63 = vpop.xlane.xlu2 %4427 }
 0x52c   :  { %v4100_v24 = vmul.f32 %v4052_v60, %v4052_v60  ;;  %v4164_v42 = vmul.f32 %v4148_v6, %v4052_v60  ;;  %v4464_v36 = vpack.c.bf16 %v10413_v53, %v10435_v49  ;;  %4538 = vmatmul.bf16.gmra.mxu3 %v4462_v40  ;;  %v3579_v57 = vsel %vm3578_vm4, %v10481_v38, %v3577_v33  ;;  %v4430_v33 = vpop.xlane.xlu0 %4429 }
 0x52d   :  { %v4360_v58 = vsel %vm4346_vm9, %v4341_v44, 0.5  ;;  %v4183_v47 = vmul.f32 %v4135_v29, %v10551_v52  ;;  %v4199_v12 = vmul.f32 %v4167_v1, %v10546_v56  ;;  %v4231_v13 = vmul.f32 %v4135_v29, %v10546_v56 }
 0x52e   :  { %v4392_v22 = vmul.f32 2.0, %v4360_v58  ;;  %v4132_v15 = vsub.f32 %v4100_v24, %v4116_v21  ;;  %v3617_v11 = vand.u32 2147483648, %v10493_v17  ;;  %v4196_v50 = vmul.f32 %v4164_v42, %v4004_v55  ;;  %v4432_v21 = vpop.xlane.xlu1 %4431 }
 0x52f   :  { %v3615_v53 = vsel %vm3614_vm5, %v10493_v17, %v3613_v54  ;;  %v4215_v49 = vsub.f32 %v4183_v47, %v4199_v12  ;;  %v4247_v4 = vmul.f32 %v4167_v1, %v10551_v52  ;;  %v4244_v16 = vmul.f32 %v4164_v42, %v3972_v35 }
 0x530   :  { %v6483_v26 = vadd.f32 -1.0, %v4392_v22  ;;  %v4180_v61 = vmul.f32 %v4132_v15, %v3972_v35  ;;  %v4228_v56 = vmul.f32 %v4132_v15, %v4004_v55  ;;  %v3581_v32 = vand.u32 2147483648, %v10481_v38 }
 0x531   :  { %vm3616_vm7 = vcmp.eq.f32.partialorder %v10493_v17, 0.0  ;;  %v4263_v10 = vadd.f32 %v4247_v4, %v4231_v13  ;;  %v4279_v39 = vmul.f32 %v10456_v34, %v4215_v49  ;;  %v4463_v34 = vpack.c.bf16 %v10502_v25, %v10232_v18 }
 0x532   :  { %v4424_v59 = vmul.f32 %v6483_v26, %v6483_v26  ;;  %v4212_v19 = vsub.f32 %v4180_v61, %v4196_v50  ;;  %v4260_v43 = vadd.f32 %v4244_v16, %v4228_v56  ;;  %v3618_v37 = vsel %vm3616_vm7, %v3617_v11, %v3615_v53  ;;  %v4526_v18 = vpop.f32.mrf.mxu3 }
 0x533   :  { %v3582_v23 = vsel %vm3580_vm6, %v3581_v32, %v3579_v57  ;;  %v4295_v9 = vmul.f32 %v4263_v10, %v3618_v37  ;;  %v4564_v5 = vmul.f32 %v4524_v7, %v4524_v7  ;;  %v4565_v25 = vmul.f32 %v4526_v18, %v4526_v18  ;;  %v4434_v22 = vpop.xlane.xlu2 %4433 }
 0x534   :  { %4453 = vadd.xlane.f32.xlu0 %v4424_v59  ;;  %v4276_v52 = vmul.f32 %v10437_v46, %v4212_v19  ;;  %v4292_v55 = vmul.f32 %v4260_v43, %v3582_v23  ;;  %v4436_v4 = vpop.xlane.xlu0 %4435 }
 0x535   :  { %v4311_v31 = vsub.f32 %v4279_v39, %v4295_v9  ;;  %v4580_v45 = vadd.f32 32.0, %v4564_v5  ;;  %v4581_v20 = vadd.f32 32.0, %v4565_v25 }
 0x536   :  { %v4308_v51 = vsub.f32 %v4276_v52, %v4292_v55  ;;  %v4438_v23 = vpop.xlane.xlu1 %4437 }
 0x537   :  { %v4327_v41 = vadd.f32 1.0, %v4311_v31  ;;  %v4596_v0 = vsub.f32 %v4580_v45, %v4428_v63  ;;  %v4597_v62 = vsub.f32 %v4581_v20, %v4430_v33 }
 0x538   :  { %v4324_v3 = vadd.f32 1.0, %v4308_v51 }
 0x539   :  { %v4343_v35 = vmul.f32 0.5, %v4327_v41  ;;  %v4612_v6 = vmul.f32 0.0009765625, %v4596_v0  ;;  %v4613_v54 = vmul.f32 0.0009765625, %v4597_v62 }
 0x53a   :  { %v4340_v17 = vmul.f32 0.5, %v4324_v3  ;;  %v4529_v1 = vpop.f32.mrf.mxu3 }
 0x53b   :  { %v4362_v38 = vsel %vm4346_vm9, %v4343_v35, 0.5  ;;  %v4900_v44 = vadd.f32 %v4613_v54, %v4612_v6  ;;  %v4566_v40 = vmul.f32 %v4529_v1, %v4529_v1  ;;  %v4628_v19 = vmul.f32 2.0, %v4612_v6 }
 0x53c   :  { %v4359_v28 = vsel %vm4346_vm9, %v4340_v17, 0.5  ;;  %4543 = vmatmul.bf16.gmra.mxu3 %v4463_v34  ;;  %v4394_v27 = vmul.f32 2.0, %v4362_v38  ;;  %v4629_v43 = vmul.f32 2.0, %v4613_v54 }
 0x53d   :  { %v4391_v48 = vmul.f32 2.0, %v4359_v28  ;;  %v4582_v24 = vadd.f32 32.0, %v4566_v40  ;;  %v10613_v52 = vadd.f32 -1.0, %v4628_v19 }
 0x53e   :  { %v6485_v14 = vadd.f32 -1.0, %v4394_v27  ;;  %v10615_v55 = vadd.f32 -1.0, %v4629_v43  ;;  %v4444_v5 = vpop.xlane.xlu1 %4443 }
 0x53f   :  { %v6482_v30 = vadd.f32 -1.0, %v4391_v48  ;;  %v4598_v42 = vsub.f32 %v4582_v24, %v4432_v21  ;;  %v4660_v17 = vmul.f32 %v10613_v52, %v10613_v52 }
 0x540   :  { %v4426_v2 = vmul.f32 %v6485_v14, %v6485_v14  ;;  %v4466_v29 = vpack.c.bf16 %v6485_v14, %v10559_v8  ;;  %v4661_v34 = vmul.f32 %v10615_v55, %v10615_v55 }
 0x541   :  { %v4423_v46 = vmul.f32 %v6482_v30, %v6482_v30  ;;  %v4465_v60 = vpack.c.bf16 %v6483_v26, %v6482_v30 }
 0x542   :  { %v4531_v47 = vpop.f32.mrf.mxu3  ;;  %v4677_v45 = vsub.f32 1.0, %v4661_v34 }
 0x543   :  { %4451 = vadd.xlane.f32.xlu2 %v4423_v46  ;;  %v4567_v12 = vmul.f32 %v4531_v47, %v4531_v47 }
 0x544   :  { %v10635_v54 = vmax.f32 %v4677_v45, 0.0 }
 0x545   :  { %v4583_v13 = vadd.f32 32.0, %v4567_v12 }
 0x546   :  { %vm4727_vm8 = vcmp.eq.f32.partialorder %v10635_v54, inf  ;;  %vm4729_vm11 = vcmp.eq.f32.partialorder %v10635_v54, 0.0 }
 0x547   :  { %v4599_v57 = vsub.f32 %v4583_v13, %v4434_v22 }
 0x549   :  { %v4615_v15 = vmul.f32 0.0009765625, %v4599_v57 }
 0x54b   :  { %4457 = vadd.xlane.f32.xlu2 %v4426_v2  ;;  %v4631_v31 = vmul.f32 2.0, %v4615_v15  ;;  %v4442_v30 = vpop.xlane.xlu0 %4441  ;;  %v4676_v2 = vsub.f32 1.0, %v4660_v17 }
 0x54c   :  { %4548 = vmatmul.bf16.gmra.mxu3 %v4464_v36  ;;  %v4614_v36 = vmul.f32 0.0009765625, %v4598_v42 }
 0x54d   :  { %v10623_v28 = vadd.f32 -1.0, %v4631_v31 }
 0x54e   :  { %v4901_v58 = vadd.f32 %v4900_v44, %v4614_v36  ;;  %v4630_v9 = vmul.f32 2.0, %v4614_v36 }
 0x54f   :  { %v4663_v18 = vmul.f32 %v10623_v28, %v10623_v28 }
 0x550   :  { %v4902_v50 = vadd.f32 %v4901_v58, %v4615_v15  ;;  %v10617_v51 = vadd.f32 -1.0, %v4630_v9 }
 0x551   :  { %v4679_v44 = vsub.f32 1.0, %v4663_v18 }
 0x552   :  { %v4662_v46 = vmul.f32 %v10617_v51, %v10617_v51 }
 0x553   :  { %v10643_v57 = vmax.f32 %v4679_v44, 0.0 }
 0x554   :  { %v4678_v0 = vsub.f32 1.0, %v4662_v46 }
 0x555   :  { %vm4751_vm13 = vcmp.eq.f32.partialorder %v10643_v57, inf  ;;  %vm4753_vm0 = vcmp.eq.f32.partialorder %v10643_v57, 0.0 }
 0x556   :  { %v10637_v42 = vmax.f32 %v4678_v0, 0.0 }
 0x558   :  { %vm4739_vm12 = vcmp.eq.f32.partialorder %v10637_v42, inf  ;;  %vm4741_vm15 = vcmp.eq.f32.partialorder %v10637_v42, 0.0 }
 0x55b   :  { %v4440_v35 = vpop.xlane.xlu2 %4439 }
 0x55c   :  { %4553 = vmatmul.bf16.gmra.mxu3 %v4465_v60  ;;  %v10633_v60 = vmax.f32 %v4676_v2, 0.0 }
 0x55e   :  { %6827 = vrsqrt.f32 %v10633_v60  ;;  %vm4715_vm9 = vcmp.eq.f32.partialorder %v10633_v60, inf  ;;  %vm4717_vm10 = vcmp.eq.f32.partialorder %v10633_v60, 0.0 }
 0x55f   :  { %6829 = vrsqrt.f32 %v10635_v54 }
 0x560   :  { %6831 = vrsqrt.f32 %v10637_v42 }
 0x561   :  { %6833 = vrsqrt.f32 %v10643_v57 }
 0x56c   :  { %4558 = vmatmul.bf16.gmra.mxu3 %v4466_v29 }
 0x570   :  { %v4448_v22 = vpop.xlane.xlu0 %4447 }
 0x585   :  { %v4446_v29 = vpop.xlane.xlu2 %4445 }
 0x599   :  { %v4534_v11 = vpop.f32.mrf.mxu3 }
 0x59a   :  { %v4568_v53 = vmul.f32 %v4534_v11, %v4534_v11 }
 0x59c   :  { %v4584_v49 = vadd.f32 32.0, %v4568_v53 }
 0x59e   :  { %v4600_v8 = vsub.f32 %v4584_v49, %v4436_v4  ;;  %v4450_v49 = vpop.xlane.xlu1 %4449 }
 0x5a0   :  { %v4616_v26 = vmul.f32 0.0009765625, %v4600_v8 }
 0x5a1   :  { %v4536_v61 = vpop.f32.mrf.mxu3 }
 0x5a2   :  { %v10611_v56 = vadd.f32 %v4902_v50, %v4616_v26  ;;  %v4632_v41 = vmul.f32 2.0, %v4616_v26  ;;  %v4569_v3 = vmul.f32 %v4536_v61, %v4536_v61 }
 0x5a4   :  { %v10627_v27 = vadd.f32 -1.0, %v4632_v41  ;;  %v4585_v14 = vadd.f32 32.0, %v4569_v3 }
 0x5a6   :  { %v4664_v20 = vmul.f32 %v10627_v27, %v10627_v27  ;;  %v4601_v33 = vsub.f32 %v4585_v14, %v4438_v23 }
 0x5a8   :  { %v4680_v36 = vsub.f32 1.0, %v4664_v20  ;;  %v10639_v58 = vmul.f32 0.0009765625, %v4601_v33 }
 0x5aa   :  { %v10648_v4 = vmax.f32 %v4680_v36, 0.0  ;;  %v4904_v8 = vadd.f32 %v10611_v56, %v10639_v58 }
 0x5ac   :  { %6835 = vrsqrt.f32 %v10648_v4  ;;  %vm4763_vm14 = vcmp.eq.f32.partialorder %v10648_v4, inf  ;;  %vm4765_vm1 = vcmp.eq.f32.partialorder %v10648_v4, 0.0 }
 0x5af   :  { %v4539_v16 = vpop.f32.mrf.mxu3 }
 0x5b0   :  { %v4570_v48 = vmul.f32 %v4539_v16, %v4539_v16 }
 0x5b2   :  { %v4586_v25 = vadd.f32 32.0, %v4570_v48 }
 0x5b4   :  { %v4602_v1 = vsub.f32 %v4586_v25, %v4440_v35 }
 0x5b6   :  { %v10645_v15 = vmul.f32 0.0009765625, %v4602_v1  ;;  %v4452_v56 = vpop.xlane.xlu2 %4451 }
 0x5b7   :  { %v4541_v32 = vpop.f32.mrf.mxu3 }
 0x5b8   :  { %v4571_v7 = vmul.f32 %v4541_v32, %v4541_v32 }
 0x5ba   :  { %v4587_v62 = vadd.f32 32.0, %v4571_v7  ;;  %v4454_v7 = vpop.xlane.xlu0 %4453 }
 0x5bc   :  { %v4603_v47 = vsub.f32 %v4587_v62, %v4442_v30 }
 0x5be   :  { %v10652_v26 = vmul.f32 0.0009765625, %v4603_v47 }
 0x5bf   :  { %v4544_v10 = vpop.f32.mrf.mxu3 }
 0x5c0   :  { %v4572_v63 = vmul.f32 %v4544_v10, %v4544_v10  ;;  %v6828_v10 = vpop.eup %6827 }
 0x5c1   :  { %v6830_v23 = vpop.eup %6829  ;;  %v4709_v14 = vmul.f32 %v6828_v10, %v10633_v60 }
 0x5c2   :  { %v4588_v40 = vadd.f32 32.0, %v4572_v63  ;;  %v6832_v35 = vpop.eup %6831  ;;  %v4721_v2 = vmul.f32 %v6830_v23, %v10635_v54  ;;  %v4456_v63 = vpop.xlane.xlu1 %4455 }
 0x5c3   :  { %v6834_v46 = vpop.eup %6833  ;;  %v4733_v1 = vmul.f32 %v6832_v35, %v10637_v42 }
 0x5c4   :  { %v4604_v11 = vsub.f32 %v4588_v40, %v4444_v5  ;;  %v6836_v25 = vpop.eup %6835  ;;  %v4722_v44 = vmul.f32 %v6830_v23, %v4721_v2  ;;  %v4745_v40 = vmul.f32 %v6834_v46, %v10643_v57 }
 0x5c5   :  { %v4757_v36 = vmul.f32 %v6836_v25, %v10648_v4 }
 0x5c7   :  { %v4546_v39 = vpop.f32.mrf.mxu3 }
 0x5c8   :  { %v4573_v6 = vmul.f32 %v4546_v39, %v4546_v39  ;;  %v4905_v39 = vadd.f32 %v4904_v8, %v10645_v15  ;;  %v4746_v8 = vmul.f32 %v6834_v46, %v4745_v40 }
 0x5ca   :  { %v4589_v12 = vadd.f32 32.0, %v4573_v6  ;;  %v4906_v31 = vadd.f32 %v4905_v39, %v10652_v26  ;;  %v4710_v6 = vmul.f32 %v6828_v10, %v4709_v14 }
 0x5cc   :  { %v4605_v61 = vsub.f32 %v4589_v12, %v4446_v29  ;;  %v4458_v12 = vpop.xlane.xlu2 %4457 }
 0x5ce   :  { %v10660_v41 = vmul.f32 0.0009765625, %v4605_v61 }
 0x5cf   :  { %v4549_v59 = vpop.f32.mrf.mxu3 }
 0x5d0   :  { %v4574_v24 = vmul.f32 %v4549_v59, %v4549_v59  ;;  %v10656_v59 = vmul.f32 0.0009765625, %v4604_v11  ;;  %v4711_v11 = vmul.f32 0.5, %v4710_v6  ;;  %v4633_v6 = vmul.f32 2.0, %v10639_v58 }
 0x5d2   :  { %v4590_v50 = vadd.f32 32.0, %v4574_v24  ;;  %v4907_v34 = vadd.f32 %v4906_v31, %v10656_v59 }
 0x5d4   :  { %v4606_v19 = vsub.f32 %v4590_v50, %v4448_v22  ;;  %v4908_v5 = vadd.f32 %v4907_v34, %v10660_v41 }
 0x5d6   :  { %v10663_v48 = vmul.f32 0.0009765625, %v4606_v19  ;;  %v4712_v19 = vsub.f32 1.5, %v4711_v11 }
 0x5d7   :  { %v4551_v37 = vpop.f32.mrf.mxu3 }
 0x5d8   :  { %v4575_v13 = vmul.f32 %v4551_v37, %v4551_v37  ;;  %v4909_v0 = vadd.f32 %v4908_v5, %v10663_v48 }
 0x5da   :  { %v4591_v16 = vadd.f32 32.0, %v4575_v13 }
 0x5dc   :  { %v4607_v3 = vsub.f32 %v4591_v16, %v4450_v49  ;;  %v4734_v49 = vmul.f32 %v6832_v35, %v4733_v1  ;;  %v4758_v16 = vmul.f32 %v6836_v25, %v4757_v36 }
 0x5de   :  { %v10668_v45 = vmul.f32 0.0009765625, %v4607_v3  ;;  %v4759_v31 = vmul.f32 0.5, %v4758_v16 }
 0x5df   :  { %v4554_v38 = vpop.f32.mrf.mxu3 }
 0x5e0   :  { %v4576_v53 = vmul.f32 %v4554_v38, %v4554_v38  ;;  %v4910_v24 = vadd.f32 %v4909_v0, %v10668_v45  ;;  %v4760_v2 = vsub.f32 1.5, %v4759_v31 }
 0x5e2   :  { %v4592_v43 = vadd.f32 32.0, %v4576_v53  ;;  %v4723_v53 = vmul.f32 0.5, %v4722_v44 }
 0x5e4   :  { %v4608_v38 = vsub.f32 %v4592_v43, %v4452_v56  ;;  %v4724_v43 = vsub.f32 1.5, %v4723_v53 }
 0x5e6   :  { %v10671_v20 = vmul.f32 0.0009765625, %v4608_v38  ;;  %v4725_v34 = vmul.f32 %v6830_v23, %v4724_v43  ;;  %v4718_v23 = vand.u32 2147483648, %v10633_v60 }
 0x5e7   :  { %v4556_v21 = vpop.f32.mrf.mxu3 }
 0x5e8   :  { %v4577_v32 = vmul.f32 %v4556_v21, %v4556_v21  ;;  %v4911_v13 = vadd.f32 %v4910_v24, %v10671_v20  ;;  %v10701_v24 = vadd.f32 -1.0, %v4633_v6 }
 0x5ea   :  { %v4593_v17 = vadd.f32 32.0, %v4577_v32 }
 0x5ec   :  { %v4609_v18 = vsub.f32 %v4593_v17, %v4454_v7  ;;  %v4713_v17 = vmul.f32 %v6828_v10, %v4712_v19  ;;  %v4635_v19 = vmul.f32 2.0, %v10652_v26 }
 0x5ee   :  { %v10676_v21 = vmul.f32 0.0009765625, %v4609_v18  ;;  %v4714_v5 = vmul.f32 %v4713_v17, %v10633_v60  ;;  %v4726_v18 = vmul.f32 %v4725_v34, %v10635_v54  ;;  %v4637_v17 = vmul.f32 2.0, %v10660_v41 }
 0x5ef   :  { %v4559_v37 = vpop.f32.mrf.mxu3 }
 0x5f0   :  { %v4578_v9 = vmul.f32 %v4559_v37, %v4559_v37  ;;  %v4912_v61 = vadd.f32 %v4911_v13, %v10676_v21  ;;  %v4735_v37 = vmul.f32 0.5, %v4734_v49  ;;  %v4716_v10 = vsel %vm4715_vm9, %v10633_v60, %v4714_v5 }
 0x5f1   :  { %v4719_v40 = vsel %vm4717_vm10, %v4718_v23, %v4716_v10  ;;  %v4766_v49 = vand.u32 2147483648, %v10648_v4  ;;  %v10755_v5 = vadd.f32 -1.0, %v4637_v17 }
 0x5f2   :  { %v4594_v30 = vadd.f32 32.0, %v4578_v9  ;;  %v4747_v9 = vmul.f32 0.5, %v4746_v8  ;;  %v4736_v38 = vsub.f32 1.5, %v4735_v37  ;;  %v4636_v37 = vmul.f32 2.0, %v10656_v59 }
 0x5f3   :  { %v10744_v59 = vadd.f32 -1.0, %v4635_v19  ;;  %v4669_v6 = vmul.f32 %v10755_v5, %v10755_v5 }
 0x5f4   :  { %v4610_v33 = vsub.f32 %v4594_v30, %v4456_v63  ;;  %v4748_v30 = vsub.f32 1.5, %v4747_v9  ;;  %v4737_v63 = vmul.f32 %v6832_v35, %v4736_v38 }
 0x5f6   :  { %v10680_v22 = vmul.f32 0.0009765625, %v4610_v33  ;;  %v4749_v0 = vmul.f32 %v6834_v46, %v4748_v30  ;;  %v4738_v1 = vmul.f32 %v4737_v63, %v10637_v42  ;;  %v10748_v30 = vadd.f32 -1.0, %v4636_v37 }
 0x5f7   :  { %v4561_v62 = vpop.f32.mrf.mxu3  ;;  %v4640_v63 = vmul.f32 2.0, %v10671_v20 }
 0x5f8   :  { %v4579_v29 = vmul.f32 %v4561_v62, %v4561_v62  ;;  %v4913_v39 = vadd.f32 %v4912_v61, %v10680_v22  ;;  %v4761_v62 = vmul.f32 %v6836_v25, %v4760_v2  ;;  %v4750_v35 = vmul.f32 %v4749_v0, %v10643_v57 }
 0x5f9   :  { %v4730_v25 = vand.u32 2147483648, %v10635_v54  ;;  %v4740_v13 = vsel %vm4739_vm12, %v10637_v42, %v4738_v1  ;;  %v4668_v0 = vmul.f32 %v10748_v30, %v10748_v30  ;;  %v10773_v23 = vadd.f32 -1.0, %v4640_v63 }
 0x5fa   :  { %v4595_v47 = vadd.f32 32.0, %v4579_v29  ;;  %v4728_v29 = vsel %vm4727_vm8, %v10635_v54, %v4726_v18  ;;  %v4762_v58 = vmul.f32 %v4761_v62, %v10648_v4  ;;  %v4752_v60 = vsel %vm4751_vm13, %v10643_v57, %v4750_v35 }
 0x5fb   :  { %v4742_v54 = vand.u32 2147483648, %v10637_v42  ;;  %v4667_v18 = vmul.f32 %v10744_v59, %v10744_v59  ;;  %v4642_v62 = vmul.f32 2.0, %v10680_v22 }
 0x5fc   :  { %v4611_v50 = vsub.f32 %v4595_v47, %v4458_v12  ;;  %v4731_v47 = vsel %vm4729_vm11, %v4730_v25, %v4728_v29  ;;  %v4634_v12 = vmul.f32 2.0, %v10645_v15  ;;  %v4764_v53 = vsel %vm4763_vm14, %v10648_v4, %v4762_v58 }
 0x5fd   :  { %v4665_v15 = vmul.f32 %v10701_v24, %v10701_v24  ;;  %v4743_v61 = vsel %vm4741_vm15, %v4742_v54, %v4740_v13  ;;  %v4767_v42 = vsel %vm4765_vm1, %v4766_v49, %v4764_v53  ;;  %v4683_v20 = vsub.f32 1.0, %v4667_v18 }
 0x5fe   :  { %v10683_v32 = vmul.f32 0.0009765625, %v4611_v50  ;;  %v4754_v50 = vand.u32 2147483648, %v10643_v57  ;;  %v4684_v29 = vsub.f32 1.0, %v4668_v0  ;;  %v4685_v25 = vsub.f32 1.0, %v4669_v6 }
 0x5ff   :  { %v4681_v31 = vsub.f32 1.0, %v4665_v15 }
 0x600   :  { %v4914_v56 = vadd.f32 %v4913_v39, %v10683_v32  ;;  %v4755_v16 = vsel %vm4753_vm0, %v4754_v50, %v4752_v60  ;;  %v10720_v39 = vadd.f32 -1.0, %v4634_v12  ;;  %v4643_v12 = vmul.f32 2.0, %v10683_v32 }
 0x601   :  { %v10751_v2 = vmax.f32 %v4681_v31, 0.0  ;;  %v10792_v13 = vmax.f32 %v4684_v29, 0.0  ;;  %v10800_v15 = vmax.f32 %v4685_v25, 0.0 }
 0x602   :  { %v4915_v3 = vrot.slane %v4914_v56, 4  ;;  %v4666_v34 = vmul.f32 %v10720_v39, %v10720_v39 }
 0x603   :  { %vm4775_vm4 = vcmp.eq.f32.partialorder %v10751_v2, inf  ;;  %vm4777_vm5 = vcmp.eq.f32.partialorder %v10751_v2, 0.0  ;;  %vm4811_vm10 = vcmp.eq.f32.partialorder %v10792_v13, inf  ;;  %vm4813_vm11 = vcmp.eq.f32.partialorder %v10792_v13, 0.0 }
 0x604   :  { %v4916_v14 = vadd.f32 %v4915_v3, %v4914_v56  ;;  %v4682_v41 = vsub.f32 1.0, %v4666_v34  ;;  %vm4823_vm12 = vcmp.eq.f32.partialorder %v10800_v15, inf  ;;  %vm4825_vm13 = vcmp.eq.f32.partialorder %v10800_v15, 0.0 }
 0x606   :  { %v4917_v7 = vrot.slane %v4916_v14, 2  ;;  %v10771_v10 = vmax.f32 %v4682_v41, 0.0 }
 0x608   :  { %v4918_v33 = vadd.f32 %v4917_v7, %v4916_v14  ;;  %v4638_v14 = vmul.f32 2.0, %v10663_v48  ;;  %v4639_v7 = vmul.f32 2.0, %v10668_v45  ;;  %v4641_v48 = vmul.f32 2.0, %v10676_v21 }
 0x609   :  { %vm4787_vm6 = vcmp.eq.f32.partialorder %v10771_v10, inf  ;;  %vm4789_vm7 = vcmp.eq.f32.partialorder %v10771_v10, 0.0 }
 0x60a   :  { %v4919_v44 = vrot.slane %v4918_v33, 1  ;;  %v10766_v45 = vadd.f32 -1.0, %v4639_v7  ;;  %v10777_v21 = vadd.f32 -1.0, %v4641_v48 }
 0x60c   :  { %v4920_v46 = vadd.f32 %v4919_v44, %v4918_v33  ;;  %v10762_v33 = vadd.f32 -1.0, %v4638_v14  ;;  %13007 = vst [vmem:[#allocation2_spill] sm:$0xff] %v10777_v21  ;;  %v4671_v22 = vmul.f32 %v10766_v45, %v10766_v45 }
 0x60e   :  { %v4921_v36 = vmul.f32 0.0078125, %v4920_v46  ;;  %v4670_v1 = vmul.f32 %v10762_v33, %v10762_v33  ;;  %v10782_v46 = vadd.f32 -1.0, %v4642_v62  ;;  %v4687_v50 = vsub.f32 1.0, %v4671_v22 }
 0x610   :  { %v4922_v11 = vmul.f32 2.0, %v4921_v36  ;;  %13008 = vst [vmem:[#allocation7_spill] sm:$0xff] %v10782_v46  ;;  %v10787_v36 = vmax.f32 %v4683_v20, 0.0  ;;  %v4686_v60 = vsub.f32 1.0, %v4670_v1  ;;  %v4674_v53 = vmul.f32 %v10782_v46, %v10782_v46 }
 0x611   :  { %v10810_v31 = vmax.f32 %v4687_v50, 0.0 }
 0x612   :  { %v10717_v8 = vadd.f32 -1.0, %v4922_v11  ;;  %v4673_v11 = vmul.f32 %v10777_v21, %v10777_v21  ;;  %vm4799_vm9 = vcmp.eq.f32.partialorder %v10787_v36, inf  ;;  %vm4801_vm8 = vcmp.eq.f32.partialorder %v10787_v36, 0.0 }
 0x613   :  { %vm4847_vm0 = vcmp.eq.f32.partialorder %v10810_v31, inf  ;;  %vm4849_vm1 = vcmp.eq.f32.partialorder %v10810_v31, 0.0 }
 0x614   :  { %v4924_v43 = vmul.f32 %v10717_v8, %v10717_v8  ;;  %v10726_v57 = vmul.f32 %v10717_v8, %v4719_v40  ;;  %v10730_v9 = vmul.f32 %v10717_v8, %v4731_v47  ;;  %v10733_v56 = vmul.f32 %v10717_v8, %v4743_v61 }
 0x615   :  { %v10736_v4 = vmul.f32 %v10717_v8, %v4755_v16  ;;  %v10739_v26 = vmul.f32 %v10717_v8, %v4767_v42  ;;  %v4672_v47 = vmul.f32 %v10773_v23, %v10773_v23  ;;  %v10803_v16 = vadd.f32 -1.0, %v4643_v12 }
 0x616   :  { %v4925_v3 = vsub.f32 1.0, %v4924_v43  ;;  %v10806_v42 = vmax.f32 %v4686_v60, 0.0  ;;  %v4689_v19 = vsub.f32 1.0, %v4673_v11 }
 0x617   :  { %v4688_v32 = vsub.f32 1.0, %v4672_v47  ;;  %13009 = vst [vmem:[#allocation4_spill] sm:$0xff] %v10803_v16  ;;  %v4675_v7 = vmul.f32 %v10803_v16, %v10803_v16 }
 0x618   :  { %v10746_v38 = vmax.f32 %v4925_v3, 0.0  ;;  %v4690_v3 = vsub.f32 1.0, %v4674_v53  ;;  %v10822_v18 = vmax.f32 %v4689_v19, 0.0  ;;  %vm4835_vm14 = vcmp.eq.f32.partialorder %v10806_v42, inf }
 0x619   :  { %v10815_v14 = vmax.f32 %v4688_v32, 0.0  ;;  %vm4837_vm15 = vcmp.eq.f32.partialorder %v10806_v42, 0.0 }
 0x61a   :  { %6837 = vrsqrt.f32 %v10746_v38  ;;  %vm4934_vm2 = vcmp.eq.f32.partialorder %v10746_v38, inf  ;;  %v4937_v41 = vand.u32 2147483648, %v10746_v38  ;;  %vm4936_vm3 = vcmp.eq.f32.partialorder %v10746_v38, 0.0 }
 0x61b   :  { %6839 = vrsqrt.f32 %v10751_v2  ;;  %v10831_v62 = vmax.f32 %v4690_v3, 0.0 }
 0x61c   :  { %6841 = vrsqrt.f32 %v10771_v10 }
 0x61d   :  { %6843 = vrsqrt.f32 %v10787_v36 }
 0x61e   :  { %6845 = vrsqrt.f32 %v10792_v13 }
 0x61f   :  { %6847 = vrsqrt.f32 %v10800_v15 }
 0x620   :  { %v6838_v44 = vpop.eup %6837  ;;  %6849 = vrsqrt.f32 %v10806_v42 }
 0x621   :  { %v4928_v35 = vmul.f32 %v6838_v44, %v10746_v38  ;;  %v10784_v40 = vpop.eup %6839  ;;  %6851 = vrsqrt.f32 %v10810_v31 }
 0x622   :  { %v4769_v49 = vmul.f32 %v10784_v40, %v10751_v2  ;;  %v10808_v37 = vpop.eup %6841  ;;  %6853 = vrsqrt.f32 %v10815_v14 }
 0x623   :  { %v4929_v58 = vmul.f32 %v6838_v44, %v4928_v35  ;;  %v10826_v0 = vpop.eup %6843  ;;  %v4781_v48 = vmul.f32 %v10808_v37, %v10771_v10  ;;  %v4691_v35 = vsub.f32 1.0, %v4675_v7  ;;  %6855 = vrsqrt.f32 %v10822_v18 }
 0x624   :  { %v4770_v17 = vmul.f32 %v10784_v40, %v4769_v49  ;;  %6857 = vrsqrt.f32 %v10831_v62 }
 0x625   :  { %v4930_v54 = vmul.f32 0.5, %v4929_v58  ;;  %v10878_v50 = vmax.f32 %v4691_v35, 0.0 }
 0x626   :  { %v4771_v25 = vmul.f32 0.5, %v4770_v17 }
 0x627   :  { %v4931_v61 = vsub.f32 1.5, %v4930_v54  ;;  %6859 = vrsqrt.f32 %v10878_v50 }
 0x628   :  { %v4772_v19 = vsub.f32 1.5, %v4771_v25 }
 0x629   :  { %v4932_v43 = vmul.f32 %v6838_v44, %v4931_v61  ;;  %v10835_v44 = vpop.eup %6845 }
 0x62a   :  { %v4773_v35 = vmul.f32 %v10784_v40, %v4772_v19 }
 0x62b   :  { %v4933_v34 = vmul.f32 %v4932_v43, %v10746_v38 }
 0x62c   :  { %v4774_v40 = vmul.f32 %v4773_v35, %v10751_v2 }
 0x62d   :  { %v4935_v63 = vsel %vm4934_vm2, %v10746_v38, %v4933_v34  ;;  %vm4859_vm2 = vcmp.eq.f32.partialorder %v10815_v14, inf }
 0x62e   :  { %v10833_v6 = vsel %vm4936_vm3, %v4937_v41, %v4935_v63  ;;  %vm4861_vm3 = vcmp.eq.f32.partialorder %v10815_v14, 0.0 }
 0x62f   :  { %v10839_v20 = vmul.f32 %v10613_v52, %v10833_v6  ;;  %v10843_v38 = vmul.f32 %v10615_v55, %v10833_v6  ;;  %v10847_v29 = vmul.f32 %v10617_v51, %v10833_v6  ;;  %v10851_v1 = vmul.f32 %v10623_v28, %v10833_v6  ;;  %v6848_v52 = vpop.eup %6847 }
 0x630   :  { %v10856_v22 = vmul.f32 %v10627_v27, %v10833_v6  ;;  %v4782_v55 = vmul.f32 %v10808_v37, %v4781_v48  ;;  %v4793_v51 = vmul.f32 %v10826_v0, %v10787_v36  ;;  %v4805_v28 = vmul.f32 %v10835_v44, %v10792_v13  ;;  %v10865_v58 = vpop.eup %6849 }
 0x631   :  { %v10875_v11 = vpop.eup %6851  ;;  %v4817_v54 = vmul.f32 %v6848_v52, %v10800_v15  ;;  %v4829_v17 = vmul.f32 %v10865_v58, %v10806_v42 }
 0x632   :  { %v10882_v49 = vpop.eup %6853  ;;  %v4794_v61 = vmul.f32 %v10826_v0, %v4793_v51  ;;  %v4783_v43 = vmul.f32 0.5, %v4782_v55  ;;  %v4806_v3 = vmul.f32 %v10835_v44, %v4805_v28  ;;  %v4841_v41 = vmul.f32 %v10875_v11, %v10810_v31 }
 0x633   :  { %v10885_v32 = vpop.eup %6855  ;;  %v4818_v7 = vmul.f32 %v6848_v52, %v4817_v54  ;;  %v4853_v63 = vmul.f32 %v10882_v49, %v10815_v14  ;;  %v4830_v51 = vmul.f32 %v10865_v58, %v4829_v17 }
 0x634   :  { %v10890_v34 = vpop.eup %6857  ;;  %v4795_v48 = vmul.f32 0.5, %v4794_v61  ;;  %v4784_v25 = vsub.f32 1.5, %v4783_v43  ;;  %v4807_v55 = vmul.f32 0.5, %v4806_v3  ;;  %v4842_v53 = vmul.f32 %v10875_v11, %v4841_v41 }
 0x635   :  { %v4819_v28 = vmul.f32 0.5, %v4818_v7  ;;  %v4865_v54 = vmul.f32 %v10885_v32, %v10822_v18  ;;  %v4877_v60 = vmul.f32 %v10890_v34, %v10831_v62  ;;  %v4854_v12 = vmul.f32 %v10882_v49, %v4853_v63  ;;  %v10905_v47 = vpop.eup %6859 }
 0x636   :  { %v4796_v61 = vsub.f32 1.5, %v4795_v48  ;;  %v4785_v19 = vmul.f32 %v10808_v37, %v4784_v25  ;;  %v4808_v43 = vsub.f32 1.5, %v4807_v55  ;;  %v4831_v3 = vmul.f32 0.5, %v4830_v51 }
 0x637   :  { %v4820_v17 = vsub.f32 1.5, %v4819_v28  ;;  %v4843_v7 = vmul.f32 0.5, %v4842_v53  ;;  %v4866_v41 = vmul.f32 %v10885_v32, %v4865_v54  ;;  %v4878_v27 = vmul.f32 %v10890_v34, %v4877_v60 }
 0x638   :  { %v4855_v16 = vmul.f32 0.5, %v4854_v12  ;;  %v4889_v63 = vmul.f32 %v10905_v47, %v10878_v50  ;;  %v4778_v48 = vand.u32 2147483648, %v10751_v2  ;;  %v4797_v37 = vmul.f32 %v10826_v0, %v4796_v61 }
 0x639   :  { %v4776_v53 = vsel %vm4775_vm4, %v10751_v2, %v4774_v40  ;;  %v4786_v35 = vmul.f32 %v4785_v19, %v10771_v10  ;;  %v4809_v60 = vmul.f32 %v10835_v44, %v4808_v43  ;;  %v4832_v25 = vsub.f32 1.5, %v4831_v3 }
 0x63a   :  { %v4821_v55 = vmul.f32 %v6848_v52, %v4820_v17  ;;  %v4844_v12 = vsub.f32 1.5, %v4843_v7  ;;  %v4867_v51 = vmul.f32 0.5, %v4866_v41  ;;  %v4879_v28 = vmul.f32 0.5, %v4878_v27 }
 0x63b   :  { %v4790_v54 = vand.u32 2147483648, %v10771_v10  ;;  %v4856_v46 = vsub.f32 1.5, %v4855_v16  ;;  %v4890_v21 = vmul.f32 %v10905_v47, %v4889_v63  ;;  %v4798_v0 = vmul.f32 %v4797_v37, %v10787_v36 }
 0x63c   :  { %v4802_v44 = vand.u32 2147483648, %v10787_v36  ;;  %v10930_v52 = vsel %vm4777_vm5, %v4778_v48, %v4776_v53  ;;  %v4788_v27 = vsel %vm4787_vm6, %v10771_v10, %v4786_v35  ;;  %v4810_v16 = vmul.f32 %v4809_v60, %v10792_v13 }
 0x63d   :  { %v4833_v61 = vmul.f32 %v10865_v58, %v4832_v25  ;;  %v4822_v40 = vmul.f32 %v4821_v55, %v10800_v15  ;;  %v4845_v19 = vmul.f32 %v10875_v11, %v4844_v12  ;;  %v4868_v43 = vsub.f32 1.5, %v4867_v51 }
 0x63e   :  { %v4880_v3 = vsub.f32 1.5, %v4879_v28  ;;  %v4857_v2 = vmul.f32 %v10882_v49, %v4856_v46  ;;  %v4891_v17 = vmul.f32 0.5, %v4890_v21  ;;  %v4791_v7 = vsel %vm4789_vm7, %v4790_v54, %v4788_v27 }
 0x63f   :  { %v4800_v58 = vsel %vm4799_vm9, %v10787_v36, %v4798_v0  ;;  %v4814_v41 = vand.u32 2147483648, %v10792_v13  ;;  %v4812_v11 = vsel %vm4811_vm10, %v10792_v13, %v4810_v16  ;;  %v4826_v63 = vand.u32 2147483648, %v10800_v15 }
 0x640   :  { %v4834_v46 = vmul.f32 %v4833_v61, %v10806_v42  ;;  %v4824_v21 = vsel %vm4823_vm12, %v10800_v15, %v4822_v40  ;;  %v4846_v10 = vmul.f32 %v4845_v19, %v10810_v31  ;;  %v4869_v49 = vmul.f32 %v10885_v32, %v4868_v43 }
 0x641   :  { %v4881_v48 = vmul.f32 %v10890_v34, %v4880_v3  ;;  %v4803_v37 = vsel %vm4801_vm8, %v4802_v44, %v4800_v58  ;;  %v4858_v53 = vmul.f32 %v4857_v2, %v10815_v14  ;;  %v4892_v35 = vsub.f32 1.5, %v4891_v17 }
 0x642   :  { %v4815_v60 = vsel %vm4813_vm11, %v4814_v41, %v4812_v11  ;;  %v4838_v25 = vand.u32 2147483648, %v10806_v42  ;;  %v4836_v32 = vsel %vm4835_vm14, %v10806_v42, %v4834_v46  ;;  %v4850_v34 = vand.u32 2147483648, %v10810_v31 }
 0x643   :  { %v4827_v36 = vsel %vm4825_vm13, %v4826_v63, %v4824_v21  ;;  %v4870_v13 = vmul.f32 %v4869_v49, %v10822_v18  ;;  %v4848_v55 = vsel %vm4847_vm0, %v10810_v31, %v4846_v10  ;;  %v4882_v12 = vmul.f32 %v4881_v48, %v10831_v62 }
 0x644   :  { %v4862_v51 = vand.u32 2147483648, %v10815_v14  ;;  %v4860_v28 = vsel %vm4859_vm2, %v10815_v14, %v4858_v53  ;;  %v4893_v42 = vmul.f32 %v10905_v47, %v4892_v35  ;;  %v4839_v15 = vsel %vm4837_vm15, %v4838_v25, %v4836_v32 }
 0x645   :  { %vm4871_vm4 = vcmp.eq.f32.partialorder %v10822_v18, inf  ;;  %vm4873_vm5 = vcmp.eq.f32.partialorder %v10822_v18, 0.0  ;;  %v13010_v54 = vsub.f32 %v10839_v20, %v10726_v57  ;;  %v4851_v31 = vsel %vm4849_vm1, %v4850_v34, %v4848_v55 }
 0x646   :  { %v4874_v44 = vand.u32 2147483648, %v10822_v18  ;;  %vm4883_vm6 = vcmp.eq.f32.partialorder %v10831_v62, inf  ;;  %vm4885_vm7 = vcmp.eq.f32.partialorder %v10831_v62, 0.0  ;;  %v4863_v27 = vsel %vm4861_vm3, %v4862_v51, %v4860_v28  ;;  %v13016_v51 = vld [vmem:[#allocation2_spill] sm:$0xff] }
 0x647   :  { %v4987_v0 = vadd.f32 1.0, %v13010_v54  ;;  %v4872_v14 = vsel %vm4871_vm4, %v10822_v18, %v4870_v13  ;;  %v4884_v47 = vsel %vm4883_vm6, %v10831_v62, %v4882_v12  ;;  %v4886_v16 = vand.u32 2147483648, %v10831_v62 }
 0x648   :  { %v4894_v61 = vmul.f32 %v4893_v42, %v10878_v50  ;;  %vm4895_vm9 = vcmp.eq.f32.partialorder %v10878_v50, inf  ;;  %v4944_v57 = vmul.f32 %v10701_v24, %v10833_v6  ;;  %v13011_v20 = vsub.f32 %v10843_v38, %v10730_v9 }
 0x649   :  { %vm4897_vm8 = vcmp.eq.f32.partialorder %v10878_v50, 0.0  ;;  %v4898_v19 = vand.u32 2147483648, %v10878_v50  ;;  %v4945_v43 = vmul.f32 %v10720_v39, %v10833_v6  ;;  %v11001_v3 = vmul.f32 0.5, %v4987_v0 }
 0x64a   :  { %v4988_v40 = vadd.f32 1.0, %v13011_v20  ;;  %v4875_v62 = vsel %vm4873_vm5, %v4874_v44, %v4872_v14  ;;  %v4887_v2 = vsel %vm4885_vm7, %v4886_v16, %v4884_v47  ;;  %v4946_v24 = vmul.f32 %v10744_v59, %v10833_v6  ;;  %v13019_v14 = vld [vmem:[#allocation4_spill] sm:$0xff] }
 0x64b   :  { %v4960_v9 = vmul.f32 %v10717_v8, %v10930_v52  ;;  %v4961_v38 = vmul.f32 %v10717_v8, %v4791_v7  ;;  %v4962_v17 = vmul.f32 %v10717_v8, %v4803_v37  ;;  %v4963_v58 = vmul.f32 %v10717_v8, %v4815_v60 }
 0x64c   :  { %v13012_v39 = vsub.f32 %v10847_v29, %v10733_v56  ;;  %v4896_v18 = vsel %vm4895_vm9, %v10878_v50, %v4894_v61  ;;  %v13013_v63 = vsub.f32 %v10851_v1, %v10736_v4  ;;  %v11019_v46 = vmul.f32 0.5, %v4988_v40 }
 0x64d   :  { %v4976_v11 = vsub.f32 %v4944_v57, %v4960_v9  ;;  %v4964_v52 = vmul.f32 %v10717_v8, %v4827_v36  ;;  %v4977_v7 = vsub.f32 %v4945_v43, %v4961_v38  ;;  %v13014_v21 = vsub.f32 %v10856_v22, %v10739_v26 }
 0x64e   :  { %v4989_v41 = vadd.f32 1.0, %v13012_v39  ;;  %v4990_v59 = vadd.f32 1.0, %v13013_v63  ;;  %v5019_v49 = vmul.f32 2.0, %v11001_v3  ;;  %v4965_v56 = vmul.f32 %v10717_v8, %v4839_v15 }
 0x64f   :  { %v4991_v10 = vadd.f32 1.0, %v13014_v21  ;;  %v4966_v29 = vmul.f32 %v10717_v8, %v4851_v31  ;;  %v4967_v48 = vmul.f32 %v10717_v8, %v4863_v27  ;;  %v4978_v37 = vsub.f32 %v4946_v24, %v4962_v17 }
 0x650   :  { %v4899_v4 = vsel %vm4897_vm8, %v4898_v19, %v4896_v18  ;;  %v4947_v1 = vmul.f32 %v10748_v30, %v10833_v6  ;;  %v4968_v53 = vmul.f32 %v10717_v8, %v4875_v62  ;;  %v11034_v35 = vmul.f32 0.5, %v4989_v41 }
 0x651   :  { %v4948_v26 = vmul.f32 %v10755_v5, %v10833_v6  ;;  %v4992_v22 = vadd.f32 1.0, %v4976_v11  ;;  %v11038_v60 = vmul.f32 0.5, %v4990_v59  ;;  %v5020_v25 = vmul.f32 2.0, %v11019_v46 }
 0x652   :  { %v4969_v32 = vmul.f32 %v10717_v8, %v4887_v2  ;;  %v4993_v34 = vadd.f32 1.0, %v4977_v7  ;;  %v11042_v50 = vmul.f32 0.5, %v4991_v10  ;;  %v11044_v36 = vadd.f32 -1.0, %v5019_v49 }
 0x653   :  { %v4949_v30 = vmul.f32 %v10762_v33, %v10833_v6  ;;  %v4950_v13 = vmul.f32 %v10766_v45, %v10833_v6  ;;  %v4970_v5 = vmul.f32 %v10717_v8, %v4899_v4  ;;  %v4994_v55 = vadd.f32 1.0, %v4978_v37  ;;  %v13018_v45 = vld [vmem:[#allocation7_spill] sm:$0xff] }
 0x654   :  { %13015 = vst [vmem:[#allocation10_spill] sm:$0xff] %v11044_v36  ;;  %v4951_v12 = vmul.f32 %v10773_v23, %v10833_v6  ;;  %v4952_v28 = vmul.f32 %v13016_v51, %v10833_v6  ;;  %v4979_v42 = vsub.f32 %v4947_v1, %v4963_v58  ;;  %v5021_v15 = vmul.f32 2.0, %v11034_v35 }
 0x655   :  { %v4980_v54 = vsub.f32 %v4948_v26, %v4964_v52  ;;  %v11056_v0 = vmul.f32 0.5, %v4992_v22  ;;  %v5022_v33 = vmul.f32 2.0, %v11038_v60  ;;  %v11059_v31 = vadd.f32 -1.0, %v5020_v25 }
 0x656   :  { %v4953_v8 = vmul.f32 %v13018_v45, %v10833_v6  ;;  %v11063_v44 = vmul.f32 0.5, %v4993_v34  ;;  %v5023_v23 = vmul.f32 2.0, %v11042_v50  ;;  %v5051_v27 = vmul.f32 %v11044_v36, %v11044_v36 }
 0x657   :  { %13017 = vst [vmem:[#allocation6_spill] sm:$0xff] %v11059_v31  ;;  %v4954_v47 = vmul.f32 %v13019_v14, %v10833_v6  ;;  %v4981_v16 = vsub.f32 %v4949_v30, %v4965_v56  ;;  %v4982_v61 = vsub.f32 %v4950_v13, %v4966_v29  ;;  %v11070_v57 = vmul.f32 0.5, %v4994_v55 }
 0x658   :  { %v4983_v20 = vsub.f32 %v4951_v12, %v4967_v48  ;;  %v4984_v40 = vsub.f32 %v4952_v28, %v4968_v53  ;;  %v4995_v19 = vadd.f32 1.0, %v4979_v42  ;;  %v11072_v43 = vadd.f32 -1.0, %v5021_v15 }
 0x659   :  { %v4996_v62 = vadd.f32 1.0, %v4980_v54  ;;  %v5024_v2 = vmul.f32 2.0, %v11056_v0  ;;  %v11075_v24 = vadd.f32 -1.0, %v5022_v33  ;;  %v5052_v9 = vmul.f32 %v11059_v31, %v11059_v31 }
 0x65a   :  { %13020 = vst [vmem:[#allocation11_spill] sm:$0xff] %v11072_v43  ;;  %v4985_v38 = vsub.f32 %v4953_v8, %v4969_v32  ;;  %v5025_v6 = vmul.f32 2.0, %v11063_v44  ;;  %v11080_v17 = vadd.f32 -1.0, %v5023_v23  ;;  %v5067_v58 = vsub.f32 1.0, %v5051_v27 }
 0x65b   :  { %13021 = vst [vmem:[#allocation5_spill] sm:$0xff] %v11075_v24  ;;  %v4986_v39 = vsub.f32 %v4954_v47, %v4970_v5  ;;  %v4997_v41 = vadd.f32 1.0, %v4981_v16  ;;  %v4998_v18 = vadd.f32 1.0, %v4982_v61  ;;  %v5026_v11 = vmul.f32 2.0, %v11070_v57 }
 0x65c   :  { %13022 = vst [vmem:[#allocation14_spill] sm:$0xff] %v11080_v17  ;;  %v4999_v63 = vadd.f32 1.0, %v4983_v20  ;;  %v5000_v59 = vadd.f32 1.0, %v4984_v40  ;;  %v11083_v52 = vmul.f32 0.5, %v4995_v19  ;;  %v5053_v7 = vmul.f32 %v11072_v43, %v11072_v43 }
 0x65d   :  { %v11087_v21 = vmul.f32 0.5, %v4996_v62  ;;  %v11089_v10 = vadd.f32 -1.0, %v5024_v2  ;;  %v5054_v49 = vmul.f32 %v11075_v24, %v11075_v24  ;;  %v5068_v56 = vsub.f32 1.0, %v5052_v9 }
 0x65e   :  { %v5001_v29 = vadd.f32 1.0, %v4985_v38  ;;  %v11093_v48 = vadd.f32 -1.0, %v5025_v6  ;;  %v5055_v37 = vmul.f32 %v11080_v17, %v11080_v17  ;;  %v11097_v4 = vmax.f32 %v5067_v58, 0.0 }
 0x65f   :  { %13023 = vst [vmem:[#allocation9_spill] sm:$0xff] %v11089_v10  ;;  %v5002_v1 = vadd.f32 1.0, %v4986_v39  ;;  %v11099_v53 = vmul.f32 0.5, %v4997_v41  ;;  %v11101_v26 = vmul.f32 0.5, %v4998_v18  ;;  %v11103_v22 = vadd.f32 -1.0, %v5026_v11 }
 0x660   :  { %13024 = vst [vmem:[#allocation12_spill] sm:$0xff] %v11093_v48  ;;  %v11105_v25 = vmul.f32 0.5, %v4999_v63  ;;  %v11107_v32 = vmul.f32 0.5, %v5000_v59  ;;  %v5027_v34 = vmul.f32 2.0, %v11083_v52  ;;  %v5069_v30 = vsub.f32 1.0, %v5053_v7 }
 0x661   :  { %13025 = vst [vmem:[#allocation8_spill] sm:$0xff] %v11103_v22  ;;  %v5028_v13 = vmul.f32 2.0, %v11087_v21  ;;  %v5056_v5 = vmul.f32 %v11089_v10, %v11089_v10  ;;  %v5070_v55 = vsub.f32 1.0, %v5054_v49  ;;  %v11113_v12 = vmax.f32 %v5068_v56, 0.0 }
 0x662   :  { %v11115_v51 = vmul.f32 0.5, %v5001_v29  ;;  %v5057_v28 = vmul.f32 %v11093_v48, %v11093_v48  ;;  %v5071_v42 = vsub.f32 1.0, %v5055_v37  ;;  %6861 = vrsqrt.f32 %v11097_v4 }
 0x663   :  { %v11120_v15 = vmul.f32 0.5, %v5002_v1  ;;  %v5029_v54 = vmul.f32 2.0, %v11099_v53  ;;  %v5030_v33 = vmul.f32 2.0, %v11101_v26  ;;  %v5058_v45 = vmul.f32 %v11103_v22, %v11103_v22 }
 0x664   :  { %v5031_v8 = vmul.f32 2.0, %v11105_v25  ;;  %v5032_v23 = vmul.f32 2.0, %v11107_v32  ;;  %v11128_v27 = vadd.f32 -1.0, %v5027_v34  ;;  %v11130_v14 = vmax.f32 %v5069_v30, 0.0 }
 0x665   :  { %v11132_v47 = vadd.f32 -1.0, %v5028_v13  ;;  %v5072_v16 = vsub.f32 1.0, %v5056_v5  ;;  %v11134_v61 = vmax.f32 %v5070_v55, 0.0  ;;  %6863 = vrsqrt.f32 %v11113_v12 }
 0x666   :  { %13026 = vst [vmem:[#allocation16_spill] sm:$0xff] %v11128_v27  ;;  %v5073_v20 = vsub.f32 1.0, %v5057_v28  ;;  %v11137_v40 = vmax.f32 %v5071_v42, 0.0  ;;  %v5033_v19 = vmul.f32 2.0, %v11115_v51  ;;  %v5034_v62 = vmul.f32 2.0, %v11120_v15 }
 0x667   :  { %13027 = vst [vmem:[#allocation3_spill] sm:$0xff] %v11132_v47  ;;  %v11141_v2 = vadd.f32 -1.0, %v5029_v54  ;;  %v5074_v9 = vsub.f32 1.0, %v5058_v45  ;;  %v11145_v6 = vadd.f32 -1.0, %v5030_v33  ;;  %v11147_v58 = vadd.f32 -1.0, %v5031_v8 }
 0x668   :  { %v11143_v38 = vpop.eup %6861  ;;  %v5059_v39 = vmul.f32 %v11128_v27, %v11128_v27  ;;  %6865 = vrsqrt.f32 %v11130_v14  ;;  %v11152_v41 = vadd.f32 -1.0, %v5032_v23  ;;  %v5060_v18 = vmul.f32 %v11132_v47, %v11132_v47 }
 0x669   :  { %13028 = vst [vmem:[#allocation18_spill] sm:$0xff] %v11141_v2  ;;  %v11156_v11 = vmax.f32 %v5072_v16, 0.0  ;;  %6867 = vrsqrt.f32 %v11134_v61  ;;  %v11159_v63 = vmax.f32 %v5073_v20, 0.0  ;;  %v11164_v7 = vadd.f32 -1.0, %v5033_v19 }
 0x66a   :  { %13029 = vst [vmem:[#allocation13_spill] sm:$0xff] %v11145_v6  ;;  %6869 = vrsqrt.f32 %v11137_v40  ;;  %v11166_v49 = vadd.f32 -1.0, %v5034_v62  ;;  %v11168_v56 = vmax.f32 %v5074_v9, 0.0  ;;  %v5100_v29 = vmul.f32 %v11143_v38, %v11097_v4 }
 0x66b   :  { %13030 = vst [vmem:[#allocation15_spill] sm:$0xff] %v11147_v58  ;;  %v11162_v59 = vpop.eup %6863  ;;  %v5061_v37 = vmul.f32 %v11141_v2, %v11141_v2  ;;  %v5062_v1 = vmul.f32 %v11145_v6, %v11145_v6  ;;  %v5075_v34 = vsub.f32 1.0, %v5059_v39  ;;  %v5291_v30 = vadd.f32 %v11019_v46, %v11001_v3 }
 0x66c   :  { %13031 = vst [vmem:[#allocation17_spill] sm:$0xff] %v11152_v41  ;;  %v5063_v13 = vmul.f32 %v11147_v58, %v11147_v58  ;;  %v5064_v5 = vmul.f32 %v11152_v41, %v11152_v41  ;;  %v5076_v55 = vsub.f32 1.0, %v5060_v18  ;;  %6871 = vrsqrt.f32 %v11156_v11 }
 0x66d   :  { %13032 = vst [vmem:[#allocation19_spill] sm:$0xff] %v11164_v7  ;;  %v5112_v42 = vmul.f32 %v11162_v59, %v11113_v12  ;;  %6873 = vrsqrt.f32 %v11159_v63  ;;  %v5292_v54 = vadd.f32 %v5291_v30, %v11034_v35  ;;  %v5065_v45 = vmul.f32 %v11164_v7, %v11164_v7 }
 0x66e   :  { %13033 = vst [vmem:[#allocation2_spill] sm:$0xff] %v11166_v49  ;;  %v11183_v28 = vpop.eup %6865  ;;  %v5066_v8 = vmul.f32 %v11166_v49, %v11166_v49  ;;  %v5101_v23 = vmul.f32 %v11143_v38, %v5100_v29  ;;  %6875 = vrsqrt.f32 %v11168_v56  ;;  %v5077_v20 = vsub.f32 1.0, %v5061_v37 }
 0x66f   :  { %v11189_v33 = vpop.eup %6867  ;;  %v5078_v19 = vsub.f32 1.0, %v5062_v1  ;;  %v11199_v62 = vmax.f32 %v5075_v34, 0.0  ;;  %v5293_v9 = vadd.f32 %v5292_v54, %v11038_v60  ;;  %v5079_v39 = vsub.f32 1.0, %v5063_v13 }
 0x670   :  { %v11197_v16 = vpop.eup %6869  ;;  %v5080_v18 = vsub.f32 1.0, %v5064_v5  ;;  %v11202_v30 = vmax.f32 %v5076_v55, 0.0  ;;  %v5113_v7 = vmul.f32 %v11162_v59, %v5112_v42  ;;  %v5124_v49 = vmul.f32 %v11183_v28, %v11130_v14 }
 0x671   :  { %v5136_v29 = vmul.f32 %v11189_v33, %v11134_v61  ;;  %v5294_v41 = vadd.f32 %v5293_v9, %v11042_v50  ;;  %v5081_v1 = vsub.f32 1.0, %v5065_v45  ;;  %v5102_v34 = vmul.f32 0.5, %v5101_v23 }
 0x672   :  { %v11210_v37 = vpop.eup %6871  ;;  %v5148_v13 = vmul.f32 %v11197_v16, %v11137_v40  ;;  %v5082_v55 = vsub.f32 1.0, %v5066_v8  ;;  %v11216_v54 = vmax.f32 %v5077_v20, 0.0  ;;  %v11218_v42 = vmax.f32 %v5078_v19, 0.0 }
 0x673   :  { %v11214_v5 = vpop.eup %6873  ;;  %6877 = vrsqrt.f32 %v11199_v62  ;;  %v11223_v6 = vmax.f32 %v5079_v39, 0.0  ;;  %v11225_v9 = vmax.f32 %v5080_v18, 0.0  ;;  %v5295_v45 = vadd.f32 %v5294_v41, %v11056_v0 }
 0x674   :  { %v11221_v58 = vpop.eup %6875  ;;  %6879 = vrsqrt.f32 %v11202_v30  ;;  %v5114_v23 = vmul.f32 0.5, %v5113_v7  ;;  %v5125_v2 = vmul.f32 %v11183_v28, %v5124_v49  ;;  %v5137_v8 = vmul.f32 %v11189_v33, %v5136_v29 }
 0x675   :  { %13034 = vst [vmem:[#allocation7_spill] sm:$0xff] %v11225_v9  ;;  %v5160_v20 = vmul.f32 %v11210_v37, %v11156_v11  ;;  %v5103_v19 = vsub.f32 1.5, %v5102_v34  ;;  %v5149_v47 = vmul.f32 %v11197_v16, %v5148_v13  ;;  %v5172_v39 = vmul.f32 %v11214_v5, %v11159_v63 }
 0x676   :  { %v5296_v18 = vadd.f32 %v5295_v45, %v11063_v44  ;;  %v11237_v27 = vmax.f32 %v5081_v1, 0.0  ;;  %v11239_v22 = vmax.f32 %v5082_v55, 0.0  ;;  %v5184_v41 = vmul.f32 %v11221_v58, %v11168_v56 }
 0x677   :  { %6881 = vrsqrt.f32 %v11216_v54  ;;  %vm5106_vm10 = vcmp.eq.f32.partialorder %v11097_v4, inf  ;;  %v5115_v1 = vsub.f32 1.5, %v5114_v23  ;;  %v5126_v55 = vmul.f32 0.5, %v5125_v2 }
 0x678   :  { %13035 = vst [vmem:[#allocation4_spill] sm:$0xff] %v11237_v27  ;;  %v5297_v34 = vadd.f32 %v5296_v18, %v11070_v57  ;;  %v5138_v45 = vmul.f32 0.5, %v5137_v8  ;;  %v5161_v48 = vmul.f32 %v11210_v37, %v5160_v20  ;;  %v5104_v17 = vmul.f32 %v11143_v38, %v5103_v19 }
 0x679   :  { %v11248_v13 = vpop.eup %6877  ;;  %v5150_v7 = vmul.f32 0.5, %v5149_v47  ;;  %v5173_v49 = vmul.f32 %v11214_v5, %v5172_v39  ;;  %v5185_v43 = vmul.f32 %v11221_v58, %v5184_v41  ;;  %6883 = vrsqrt.f32 %v11218_v42 }
 0x67a   :  { %v11252_v10 = vpop.eup %6879  ;;  %v5298_v29 = vadd.f32 %v5297_v34, %v11083_v52  ;;  %vm5108_vm11 = vcmp.eq.f32.partialorder %v11097_v4, 0.0  ;;  %6885 = vrsqrt.f32 %v11223_v6  ;;  %v5116_v8 = vmul.f32 %v11162_v59, %v5115_v1 }
 0x67b   :  { %vm5118_vm12 = vcmp.eq.f32.partialorder %v11113_v12, inf  ;;  %v5127_v20 = vsub.f32 1.5, %v5126_v55  ;;  %v5139_v19 = vsub.f32 1.5, %v5138_v45  ;;  %v5162_v39 = vmul.f32 0.5, %v5161_v48 }
 0x67c   :  { %v5299_v47 = vadd.f32 %v5298_v29, %v11087_v21  ;;  %v5105_v41 = vmul.f32 %v5104_v17, %v11097_v4  ;;  %v5151_v34 = vsub.f32 1.5, %v5150_v7  ;;  %v5174_v24 = vmul.f32 0.5, %v5173_v49 }
 0x67d   :  { %v11266_v38 = vpop.eup %6881  ;;  %v5186_v23 = vmul.f32 0.5, %v5185_v43  ;;  %v5196_v18 = vmul.f32 %v11248_v13, %v11199_v62  ;;  %v5208_v29 = vmul.f32 %v11252_v10, %v11202_v30  ;;  %6887 = vrsqrt.f32 %v11225_v9 }
 0x67e   :  { %v5300_v2 = vadd.f32 %v5299_v47, %v11099_v53  ;;  %vm5120_vm13 = vcmp.eq.f32.partialorder %v11113_v12, 0.0  ;;  %v5220_v17 = vmul.f32 %v11266_v38, %v11216_v54  ;;  %6889 = vrsqrt.f32 %v11237_v27 }
 0x67f   :  { %v11283_v43 = vpop.eup %6883  ;;  %v5117_v7 = vmul.f32 %v5116_v8, %v11113_v12  ;;  %v5128_v49 = vmul.f32 %v11183_v28, %v5127_v20  ;;  %vm5130_vm14 = vcmp.eq.f32.partialorder %v11130_v14, inf  ;;  %v5140_v1 = vmul.f32 %v11189_v33, %v5139_v19 }
 0x680   :  { %v5301_v48 = vadd.f32 %v5300_v2, %v11101_v26  ;;  %vm5142_vm15 = vcmp.eq.f32.partialorder %v11134_v61, inf  ;;  %v11291_v45 = vpop.eup %6885  ;;  %v5107_v2 = vsel %vm5106_vm10, %v11097_v4, %v5105_v41  ;;  %v5152_v47 = vmul.f32 %v11197_v16, %v5151_v34 }
 0x681   :  { %vm5154_vm0 = vcmp.eq.f32.partialorder %v11137_v40, inf  ;;  %v5163_v8 = vsub.f32 1.5, %v5162_v39  ;;  %v5175_v20 = vsub.f32 1.5, %v5174_v24  ;;  %v5187_v59 = vsub.f32 1.5, %v5186_v23 }
 0x682   :  { %v5302_v28 = vadd.f32 %v5301_v48, %v11105_v25  ;;  %v5197_v33 = vmul.f32 %v11248_v13, %v5196_v18  ;;  %v5209_v19 = vmul.f32 %v11252_v10, %v5208_v29  ;;  %v5221_v55 = vmul.f32 %v11266_v38, %v5220_v17 }
 0x683   :  { %v5232_v31 = vmul.f32 %v11283_v43, %v11218_v42  ;;  %6891 = vrsqrt.f32 %v11239_v22  ;;  %v11306_v41 = vpop.eup %6887  ;;  %v13036_v39 = vand.u32 2147483648, %v11097_v4  ;;  %v5129_v18 = vmul.f32 %v5128_v49, %v11130_v14 }
 0x684   :  { %v5303_v16 = vadd.f32 %v5302_v28, %v11107_v32  ;;  %vm5132_vm1 = vcmp.eq.f32.partialorder %v11130_v14, 0.0  ;;  %vm5144_vm2 = vcmp.eq.f32.partialorder %v11134_v61, 0.0  ;;  %vm5156_vm3 = vcmp.eq.f32.partialorder %v11137_v40, 0.0  ;;  %v11321_v29 = vpop.eup %6889 }
 0x685   :  { %v11312_v24 = vsel %vm5108_vm11, %v13036_v39, %v5107_v2  ;;  %v5244_v34 = vmul.f32 %v11291_v45, %v11223_v6  ;;  %v5119_v4 = vsel %vm5118_vm12, %v11113_v12, %v5117_v7  ;;  %v5141_v17 = vmul.f32 %v5140_v1, %v11134_v61 }
 0x686   :  { %13037 = vst [vmem:[#allocation20_spill] sm:$0xff] %v11312_v24  ;;  %v5164_v48 = vmul.f32 %v11210_v37, %v5163_v8  ;;  %vm5166_vm4 = vcmp.eq.f32.partialorder %v11156_v11, inf  ;;  %vm5178_vm5 = vcmp.eq.f32.partialorder %v11159_v63, inf  ;;  %vm5190_vm6 = vcmp.eq.f32.partialorder %v11168_v56, inf }
 0x687   :  { %v5304_v49 = vadd.f32 %v5303_v16, %v11115_v51  ;;  %v5153_v2 = vmul.f32 %v5152_v47, %v11137_v40  ;;  %v5176_v28 = vmul.f32 %v11214_v5, %v5175_v20  ;;  %v5188_v39 = vmul.f32 %v11221_v58, %v5187_v59 }
 0x688   :  { %v5198_v23 = vmul.f32 0.5, %v5197_v33  ;;  %v5210_v7 = vmul.f32 0.5, %v5209_v19  ;;  %v5222_v24 = vmul.f32 0.5, %v5221_v55  ;;  %v5233_v1 = vmul.f32 %v11283_v43, %v5232_v31 }
 0x689   :  { %v5305_v37 = vadd.f32 %v5304_v49, %v11120_v15  ;;  %v13038_v8 = vand.u32 2147483648, %v11113_v12  ;;  %vm5168_vm7 = vcmp.eq.f32.partialorder %v11156_v11, 0.0  ;;  %vm5180_vm9 = vcmp.eq.f32.partialorder %v11159_v63, 0.0  ;;  %v11350_v59 = vpop.eup %6891 }
 0x68a   :  { %v5245_v5 = vmul.f32 %v11291_v45, %v5244_v34  ;;  %v5256_v58 = vmul.f32 %v11306_v41, %v11225_v9  ;;  %v5268_v31 = vmul.f32 %v11321_v29, %v11237_v27  ;;  %v5131_v12 = vsel %vm5130_vm14, %v11130_v14, %v5129_v18 }
 0x68b   :  { %v11341_v36 = vsel %vm5120_vm13, %v13038_v8, %v5119_v4  ;;  %v5143_v55 = vsel %vm5142_vm15, %v11134_v61, %v5141_v17  ;;  %v5165_v47 = vmul.f32 %v5164_v48, %v11156_v11  ;;  %vm5192_vm8 = vcmp.eq.f32.partialorder %v11168_v56, 0.0 }
 0x68c   :  { %13039 = vst [vmem:[#allocation21_spill] sm:$0xff] %v11341_v36  ;;  %v5306_v20 = vrot.slane %v5305_v37, 4  ;;  %v5155_v33 = vsel %vm5154_vm0, %v11137_v40, %v5153_v2  ;;  %v5177_v19 = vmul.f32 %v5176_v28, %v11159_v63  ;;  %v5189_v16 = vmul.f32 %v5188_v39, %v11168_v56 }
 0x68d   :  { %v5199_v34 = vsub.f32 1.5, %v5198_v23  ;;  %v5211_v4 = vsub.f32 1.5, %v5210_v7  ;;  %v5223_v18 = vsub.f32 1.5, %v5222_v24  ;;  %v5234_v49 = vmul.f32 0.5, %v5233_v1 }
 0x68e   :  { %v5307_v8 = vadd.f32 %v5306_v20, %v5305_v37  ;;  %v5246_v36 = vmul.f32 0.5, %v5245_v5  ;;  %v5257_v17 = vmul.f32 %v11306_v41, %v5256_v58  ;;  %v5269_v48 = vmul.f32 %v11321_v29, %v5268_v31 }
 0x68f   :  { %v5280_v27 = vmul.f32 %v11350_v59, %v11239_v22  ;;  %v13040_v9 = vand.u32 2147483648, %v11130_v14  ;;  %v13042_v23 = vand.u32 2147483648, %v11134_v61  ;;  %v13044_v28 = vand.u32 2147483648, %v11137_v40 }
 0x690   :  { %v5308_v7 = vrot.slane %v5307_v8, 2  ;;  %v5167_v1 = vsel %vm5166_vm4, %v11156_v11, %v5165_v47  ;;  %v5179_v14 = vsel %vm5178_vm5, %v11159_v63, %v5177_v19  ;;  %v5191_v61 = vsel %vm5190_vm6, %v11168_v56, %v5189_v16 }
 0x691   :  { %v11373_v2 = vsel %vm5132_vm1, %v13040_v9, %v5131_v12  ;;  %v11379_v24 = vsel %vm5144_vm2, %v13042_v23, %v5143_v55  ;;  %v11385_v39 = vsel %vm5156_vm3, %v13044_v28, %v5155_v33  ;;  %v5200_v9 = vmul.f32 %v11248_v13, %v5199_v34 }
 0x692   :  { %13041 = vst [vmem:[#allocation22_spill] sm:$0xff] %v11373_v2  ;;  %v5212_v37 = vmul.f32 %v11252_v10, %v5211_v4  ;;  %v5224_v40 = vmul.f32 %v11266_v38, %v5223_v18  ;;  %v5235_v5 = vsub.f32 1.5, %v5234_v49  ;;  %v5309_v58 = vadd.f32 %v5308_v7, %v5307_v8 }
 0x693   :  { %13043 = vst [vmem:[#allocation23_spill] sm:$0xff] %v11379_v24  ;;  %v5247_v31 = vsub.f32 1.5, %v5246_v36  ;;  %v5258_v12 = vmul.f32 0.5, %v5257_v17  ;;  %v5270_v55 = vmul.f32 0.5, %v5269_v48  ;;  %v5281_v47 = vmul.f32 %v11350_v59, %v5280_v27 }
 0x694   :  { %13045 = vst [vmem:[#allocation24_spill] sm:$0xff] %v11385_v39  ;;  %v13046_v20 = vand.u32 2147483648, %v11156_v11  ;;  %v13048_v19 = vand.u32 2147483648, %v11159_v63  ;;  %v5229_v13 = vand.u32 2147483648, %v11216_v54  ;;  %v5310_v38 = vrot.slane %v5309_v58, 1 }
 0x695   :  { %v13050_v36 = vand.u32 2147483648, %v11168_v56  ;;  %v5201_v16 = vmul.f32 %v5200_v9, %v11199_v62  ;;  %vm5202_vm10 = vcmp.eq.f32.partialorder %v11199_v62, inf  ;;  %v5241_v11 = vand.u32 2147483648, %v11218_v42 }
 0x696   :  { %v11404_v33 = vsel %vm5168_vm7, %v13046_v20, %v5167_v1  ;;  %v11410_v10 = vsel %vm5180_vm9, %v13048_v19, %v5179_v14  ;;  %v5253_v34 = vand.u32 2147483648, %v11223_v6  ;;  %v5213_v63 = vmul.f32 %v5212_v37, %v11202_v30  ;;  %v13052_v14 = vld [vmem:[#allocation7_spill] sm:$0xff] }
 0x697   :  { %13047 = vst [vmem:[#allocation25_spill] sm:$0xff] %v11404_v33  ;;  %v11417_v27 = vsel %vm5192_vm8, %v13050_v36, %v5191_v61  ;;  %vm5214_vm11 = vcmp.eq.f32.partialorder %v11202_v30, inf  ;;  %v5225_v4 = vmul.f32 %v5224_v40, %v11216_v54  ;;  %vm5226_vm12 = vcmp.eq.f32.partialorder %v11216_v54, inf }
 0x698   :  { %13049 = vst [vmem:[#allocation26_spill] sm:$0xff] %v11410_v10  ;;  %v5236_v56 = vmul.f32 %v11283_v43, %v5235_v5  ;;  %v11428_v18 = vadd.f32 %v5310_v38, %v5309_v58  ;;  %vm5238_vm13 = vcmp.eq.f32.partialorder %v11218_v42, inf  ;;  %v5248_v49 = vmul.f32 %v11291_v45, %v5247_v31 }
 0x699   :  { %13051 = vst [vmem:[#allocation27_spill] sm:$0xff] %v11417_v27  ;;  %v5259_v8 = vsub.f32 1.5, %v5258_v12  ;;  %v5271_v17 = vsub.f32 1.5, %v5270_v55  ;;  %v5282_v48 = vmul.f32 0.5, %v5281_v47  ;;  %vm5250_vm14 = vcmp.eq.f32.partialorder %v11223_v6, inf }
 0x69a   :  { %v5312_v23 = vsub.f32 %v11428_v18, %v11001_v3  ;;  %v5313_v28 = vsub.f32 %v11428_v18, %v11019_v46  ;;  %v5314_v43 = vsub.f32 %v11428_v18, %v11034_v35  ;;  %v5315_v7 = vsub.f32 %v11428_v18, %v11038_v60 }
 0x69b   :  { %vm5204_vm15 = vcmp.eq.f32.partialorder %v11199_v62, 0.0  ;;  %v5316_v45 = vsub.f32 %v11428_v18, %v11042_v50  ;;  %v5317_v1 = vsub.f32 %v11428_v18, %v11056_v0  ;;  %v5318_v3 = vsub.f32 %v11428_v18, %v11063_v44 }
 0x69c   :  { %v5319_v46 = vsub.f32 %v11428_v18, %v11070_v57  ;;  %vm5216_vm0 = vcmp.eq.f32.partialorder %v11202_v30, 0.0  ;;  %vm5228_vm1 = vcmp.eq.f32.partialorder %v11216_v54, 0.0  ;;  %v5320_v35 = vsub.f32 %v11428_v18, %v11083_v52 }
 0x69d   :  { %v5321_v60 = vsub.f32 %v11428_v18, %v11087_v21  ;;  %v5322_v50 = vsub.f32 %v11428_v18, %v11099_v53  ;;  %v5323_v0 = vsub.f32 %v11428_v18, %v11101_v26  ;;  %vm5240_vm2 = vcmp.eq.f32.partialorder %v11218_v42, 0.0 }
 0x69e   :  { %vm5252_vm3 = vcmp.eq.f32.partialorder %v11223_v6, 0.0  ;;  %v5324_v44 = vsub.f32 %v11428_v18, %v11105_v25  ;;  %v5325_v57 = vsub.f32 %v11428_v18, %v11107_v32  ;;  %v5326_v52 = vsub.f32 %v11428_v18, %v11115_v51  ;;  %v13053_v32 = vld [vmem:[#allocation4_spill] sm:$0xff] }
 0x69f   :  { %v5327_v21 = vsub.f32 %v11428_v18, %v11120_v15  ;;  %v5237_v53 = vmul.f32 %v5236_v56, %v11218_v42  ;;  %v5260_v26 = vmul.f32 %v11306_v41, %v5259_v8  ;;  %vm5262_vm4 = vcmp.eq.f32.partialorder %v13052_v14, inf }
 0x6a0   :  { %v5328_v9 = vmul.f32 0.0078125, %v5312_v23  ;;  %v5249_v25 = vmul.f32 %v5248_v49, %v11223_v6  ;;  %v5272_v37 = vmul.f32 %v11321_v29, %v5271_v17  ;;  %vm5274_vm5 = vcmp.eq.f32.partialorder %v13053_v32, inf }
 0x6a1   :  { %v5329_v40 = vmul.f32 0.0078125, %v5313_v28  ;;  %v5203_v51 = vsel %vm5202_vm10, %v11199_v62, %v5201_v16  ;;  %v5283_v5 = vsub.f32 1.5, %v5282_v48  ;;  %v5330_v41 = vmul.f32 0.0078125, %v5314_v43 }
 0x6a2   :  { %v5215_v58 = vsel %vm5214_vm11, %v11202_v30, %v5213_v63  ;;  %v5227_v31 = vsel %vm5226_vm12, %v11216_v54, %v5225_v4  ;;  %v5331_v12 = vmul.f32 0.0078125, %v5315_v7  ;;  %v5239_v55 = vsel %vm5238_vm13, %v11218_v42, %v5237_v53 }
 0x6a3   :  { %v5261_v47 = vmul.f32 %v5260_v26, %v13052_v14  ;;  %v5332_v20 = vmul.f32 0.0078125, %v5316_v45  ;;  %v5344_v19 = vmul.f32 2.0, %v5328_v9  ;;  %v5251_v38 = vsel %vm5250_vm14, %v11223_v6, %v5249_v25 }
 0x6a4   :  { %v5273_v36 = vmul.f32 %v5272_v37, %v13053_v32  ;;  %v5333_v16 = vmul.f32 0.0078125, %v5317_v1  ;;  %v5345_v63 = vmul.f32 2.0, %v5329_v40  ;;  %v13054_v4 = vand.u32 2147483648, %v11199_v62 }
 0x6a5   :  { %v5284_v18 = vmul.f32 %v11350_v59, %v5283_v5  ;;  %v5334_v49 = vmul.f32 0.0078125, %v5318_v3  ;;  %v5346_v8 = vmul.f32 2.0, %v5330_v41  ;;  %v13056_v17 = vand.u32 2147483648, %v11202_v30 }
 0x6a6   :  { %v11500_v56 = vsel %vm5204_vm15, %v13054_v4, %v5203_v51  ;;  %v11513_v23 = vsel %vm5228_vm1, %v5229_v13, %v5227_v31  ;;  %v5335_v28 = vmul.f32 0.0078125, %v5319_v46  ;;  %v5347_v62 = vmul.f32 2.0, %v5331_v12 }
 0x6a7   :  { %13055 = vst [vmem:[#allocation7_spill] sm:$0xff] %v11500_v56  ;;  %v11507_v48 = vsel %vm5216_vm0, %v13056_v17, %v5215_v58  ;;  %v11519_v59 = vsel %vm5240_vm2, %v5241_v11, %v5239_v55  ;;  %v11525_v30 = vsel %vm5252_vm3, %v5253_v34, %v5251_v38  ;;  %v5348_v43 = vmul.f32 2.0, %v5332_v20 }
 0x6a8   :  { %13057 = vst [vmem:[#allocation4_spill] sm:$0xff] %v11507_v48  ;;  %v11527_v7 = vadd.f32 -1.0, %v5344_v19  ;;  %v11532_v54 = vsel %vm5262_vm4, %v13052_v14, %v5261_v47  ;;  %v11537_v42 = vsel %vm5274_vm5, %v13053_v32, %v5273_v36  ;;  %v5349_v13 = vmul.f32 2.0, %v5333_v16 }
 0x6a9   :  { %13058 = vst [vmem:[#allocation28_spill] sm:$0xff] %v11513_v23  ;;  %v11539_v11 = vadd.f32 -1.0, %v5345_v63  ;;  %v11542_v6 = vmul.f32 %v5284_v18, %v11239_v22  ;;  %v5336_v34 = vmul.f32 0.0078125, %v5320_v35  ;;  %v5350_v45 = vmul.f32 2.0, %v5334_v49 }
 0x6aa   :  { %13059 = vst [vmem:[#allocation29_spill] sm:$0xff] %v11519_v59  ;;  %v11544_v1 = vadd.f32 -1.0, %v5346_v8  ;;  %v5337_v3 = vmul.f32 0.0078125, %v5321_v60  ;;  %v5338_v46 = vmul.f32 0.0078125, %v5322_v50  ;;  %v5351_v53 = vmul.f32 2.0, %v5335_v28 }
 0x6ab   :  { %13060 = vst [vmem:[#allocation30_spill] sm:$0xff] %v11525_v30  ;;  %v11546_v26 = vadd.f32 -1.0, %v5347_v62  ;;  %v5339_v9 = vmul.f32 0.0078125, %v5323_v0  ;;  %v5340_v25 = vmul.f32 0.0078125, %v5324_v44  ;;  %v11548_v37 = vadd.f32 -1.0, %v5348_v43 }
 0x6ac   :  { %v11552_v40 = vmul.f32 %v11527_v7, %v11527_v7  ;;  %v5341_v51 = vmul.f32 0.0078125, %v5325_v57  ;;  %v5342_v5 = vmul.f32 0.0078125, %v5326_v52  ;;  %v11554_v41 = vadd.f32 -1.0, %v5349_v13 }
 0x6ad   :  { %v11558_v35 = vmul.f32 %v11539_v11, %v11539_v11  ;;  %v5343_v60 = vmul.f32 0.0078125, %v5327_v21  ;;  %v5352_v50 = vmul.f32 2.0, %v5336_v34  ;;  %v11560_v58 = vadd.f32 -1.0, %v5350_v45 }
 0x6ae   :  { %13061 = vst [vmem:[#allocation31_spill] sm:$0xff] %v11554_v41  ;;  %v11564_v0 = vmul.f32 %v11544_v1, %v11544_v1  ;;  %v5353_v44 = vmul.f32 2.0, %v5337_v3  ;;  %v5354_v31 = vmul.f32 2.0, %v5338_v46  ;;  %v11566_v12 = vadd.f32 -1.0, %v5351_v53 }
 0x6af   :  { %13062 = vst [vmem:[#allocation32_spill] sm:$0xff] %v11560_v58  ;;  %v11570_v57 = vmul.f32 %v11546_v26, %v11546_v26  ;;  %v5355_v52 = vmul.f32 2.0, %v5339_v9  ;;  %v5356_v55 = vmul.f32 2.0, %v5340_v25  ;;  %v11574_v21 = vmul.f32 %v11548_v37, %v11548_v37 }
 0x6b0   :  { %13063 = vst [vmem:[#allocation33_spill] sm:$0xff] %v11566_v12  ;;  %v5392_v47 = vsub.f32 1.0, %v11552_v40  ;;  %vm5286_vm6 = vcmp.eq.f32.partialorder %v11239_v22, inf  ;;  %v5357_v20 = vmul.f32 2.0, %v5341_v51  ;;  %v5358_v19 = vmul.f32 2.0, %v5342_v5 }
 0x6b1   :  { %v11580_v38 = vmul.f32 %v11554_v41, %v11554_v41  ;;  %v5393_v36 = vsub.f32 1.0, %v11558_v35  ;;  %v5359_v16 = vmul.f32 2.0, %v5343_v60  ;;  %v11583_v63 = vadd.f32 -1.0, %v5352_v50 }
 0x6b2   :  { %v11587_v4 = vmul.f32 %v11560_v58, %v11560_v58  ;;  %v5394_v18 = vsub.f32 1.0, %v11564_v0  ;;  %v11590_v49 = vadd.f32 -1.0, %v5353_v44  ;;  %v11592_v8 = vadd.f32 -1.0, %v5354_v31 }
 0x6b3   :  { %13064 = vst [vmem:[#allocation34_spill] sm:$0xff] %v11583_v63  ;;  %v11596_v17 = vmul.f32 %v11566_v12, %v11566_v12  ;;  %v5395_v28 = vsub.f32 1.0, %v11570_v57  ;;  %vm5264_vm7 = vcmp.eq.f32.partialorder %v13052_v14, 0.0  ;;  %v11600_v62 = vadd.f32 -1.0, %v5355_v52 }
 0x6b4   :  { %13065 = vst [vmem:[#allocation35_spill] sm:$0xff] %v11590_v49  ;;  %v11602_v43 = vadd.f32 -1.0, %v5356_v55  ;;  %v5396_v13 = vsub.f32 1.0, %v11574_v21  ;;  %v11605_v34 = vmax.f32 %v5392_v47, 0.0  ;;  %vm5276_vm9 = vcmp.eq.f32.partialorder %v13053_v32, 0.0 }
 0x6b5   :  { %13066 = vst [vmem:[#allocation36_spill] sm:$0xff] %v11592_v8  ;;  %vm5288_vm8 = vcmp.eq.f32.partialorder %v11239_v22, 0.0  ;;  %v11609_v45 = vadd.f32 -1.0, %v5357_v20  ;;  %v11611_v3 = vadd.f32 -1.0, %v5358_v19  ;;  %v5397_v46 = vsub.f32 1.0, %v11580_v38 }
 0x6b6   :  { %13067 = vst [vmem:[#allocation37_spill] sm:$0xff] %v11600_v62  ;;  %v11614_v53 = vmax.f32 %v5393_v36, 0.0  ;;  %v11616_v9 = vadd.f32 -1.0, %v5359_v16  ;;  %v11620_v25 = vmul.f32 %v11583_v63, %v11583_v63  ;;  %v5398_v51 = vsub.f32 1.0, %v11587_v4 }
 0x6b7   :  { %13068 = vst [vmem:[#allocation38_spill] sm:$0xff] %v11602_v43  ;;  %v11623_v5 = vmax.f32 %v5394_v18, 0.0  ;;  %v11627_v60 = vmul.f32 %v11590_v49, %v11590_v49  ;;  %v11631_v50 = vmul.f32 %v11592_v8, %v11592_v8  ;;  %v5399_v44 = vsub.f32 1.0, %v11596_v17 }
 0x6b8   :  { %13069 = vst [vmem:[#allocation39_spill] sm:$0xff] %v11609_v45  ;;  %v11634_v31 = vmax.f32 %v5395_v28, 0.0  ;;  %v11638_v52 = vmul.f32 %v11600_v62, %v11600_v62  ;;  %v11642_v55 = vmul.f32 %v11602_v43, %v11602_v43  ;;  %v11644_v47 = vmax.f32 %v5396_v13, 0.0 }
 0x6b9   :  { %13070 = vst [vmem:[#allocation40_spill] sm:$0xff] %v11611_v3  ;;  %6893 = vrsqrt.f32 %v11605_v34  ;;  %v11649_v20 = vmul.f32 %v11609_v45, %v11609_v45  ;;  %v11653_v19 = vmul.f32 %v11611_v3, %v11611_v3  ;;  %v11655_v36 = vmax.f32 %v5397_v46, 0.0 }
 0x6ba   :  { %13071 = vst [vmem:[#allocation41_spill] sm:$0xff] %v11616_v9  ;;  %6895 = vrsqrt.f32 %v11614_v53  ;;  %v5287_v16 = vsel %vm5286_vm6, %v11239_v22, %v11542_v6  ;;  %v11664_v18 = vmul.f32 %v11616_v9, %v11616_v9  ;;  %v11666_v28 = vmax.f32 %v5398_v51, 0.0 }
 0x6bb   :  { %6897 = vrsqrt.f32 %v11623_v5  ;;  %v5400_v13 = vsub.f32 1.0, %v11620_v25  ;;  %v5401_v46 = vsub.f32 1.0, %v11627_v60  ;;  %v11671_v29 = vmax.f32 %v5399_v44, 0.0 }
 0x6bc   :  { %6899 = vrsqrt.f32 %v11634_v31  ;;  %v5402_v15 = vsub.f32 1.0, %v11631_v50  ;;  %v5403_v6 = vsub.f32 1.0, %v11638_v52  ;;  %v5404_v61 = vsub.f32 1.0, %v11642_v55 }
 0x6bd   :  { %6901 = vrsqrt.f32 %v11644_v47  ;;  %v13072_v51 = vand.u32 2147483648, %v13052_v14  ;;  %v5405_v44 = vsub.f32 1.0, %v11649_v20  ;;  %v5406_v59 = vsub.f32 1.0, %v11653_v19 }
 0x6be   :  { %6903 = vrsqrt.f32 %v11655_v36  ;;  %v13074_v48 = vand.u32 2147483648, %v13053_v32  ;;  %v13076_v27 = vand.u32 2147483648, %v11239_v22  ;;  %v11705_v10 = vmax.f32 %v5401_v46, 0.0 }
 0x6bf   :  { %v11683_v30 = vsel %vm5264_vm7, %v13072_v51, %v11532_v54  ;;  %v6894_v23 = vpop.eup %6893  ;;  %v5407_v54 = vsub.f32 1.0, %v11664_v18  ;;  %6905 = vrsqrt.f32 %v11666_v28  ;;  %v11713_v22 = vmax.f32 %v5404_v61, 0.0 }
 0x6c0   :  { %13073 = vst [vmem:[#allocation42_spill] sm:$0xff] %v11683_v30  ;;  %v11693_v56 = vsel %vm5276_vm9, %v13074_v48, %v11537_v42  ;;  %v11699_v14 = vsel %vm5288_vm8, %v13076_v27, %v5287_v16  ;;  %v6896_v51 = vpop.eup %6895  ;;  %v11703_v30 = vmax.f32 %v5400_v13, 0.0  ;;  %v5425_v33 = vmul.f32 %v6894_v23, %v11605_v34 }
 0x6c1   :  { %13075 = vst [vmem:[#allocation43_spill] sm:$0xff] %v11693_v56  ;;  %6907 = vrsqrt.f32 %v11671_v29  ;;  %v6898_v32 = vpop.eup %6897  ;;  %v11709_v48 = vmax.f32 %v5402_v15, 0.0  ;;  %v11711_v42 = vmax.f32 %v5403_v6, 0.0  ;;  %v5437_v27 = vmul.f32 %v6896_v51, %v11614_v53 }
 0x6c2   :  { %13077 = vst [vmem:[#allocation44_spill] sm:$0xff] %v11699_v14  ;;  %v6900_v16 = vpop.eup %6899  ;;  %v11716_v14 = vmax.f32 %v5405_v44, 0.0  ;;  %v11718_v13 = vmax.f32 %v5406_v59, 0.0  ;;  %v5426_v46 = vmul.f32 %v6894_v23, %v5425_v33  ;;  %v5449_v56 = vmul.f32 %v6898_v32, %v11623_v5 }
 0x6c3   :  { %v6902_v39 = vpop.eup %6901  ;;  %v11721_v24 = vmax.f32 %v5407_v54, 0.0  ;;  %v5438_v2 = vmul.f32 %v6896_v51, %v5437_v27  ;;  %v5461_v6 = vmul.f32 %v6900_v16, %v11634_v31  ;;  %6909 = vrsqrt.f32 %v11703_v30 }
 0x6c4   :  { %v6904_v61 = vpop.eup %6903  ;;  %v5427_v9 = vmul.f32 0.5, %v5426_v46  ;;  %v5450_v45 = vmul.f32 %v6898_v32, %v5449_v56  ;;  %v5473_v44 = vmul.f32 %v6902_v39, %v11644_v47  ;;  %6911 = vrsqrt.f32 %v11705_v10 }
 0x6c5   :  { %v6906_v59 = vpop.eup %6905  ;;  %v5439_v43 = vmul.f32 0.5, %v5438_v2  ;;  %v5462_v33 = vmul.f32 %v6900_v16, %v5461_v6  ;;  %v5485_v62 = vmul.f32 %v6904_v61, %v11655_v36  ;;  %vm5431_vm10 = vcmp.eq.f32.partialorder %v11605_v34, inf }
 0x6c6   :  { %v5428_v8 = vsub.f32 1.5, %v5427_v9  ;;  %v5451_v15 = vmul.f32 0.5, %v5450_v45  ;;  %v5474_v27 = vmul.f32 %v6902_v39, %v5473_v44  ;;  %v5497_v49 = vmul.f32 %v6906_v59, %v11666_v28 }
 0x6c7   :  { %v6908_v54 = vpop.eup %6907  ;;  %v5440_v63 = vsub.f32 1.5, %v5439_v43  ;;  %v5463_v46 = vmul.f32 0.5, %v5462_v33  ;;  %v5486_v12 = vmul.f32 %v6904_v61, %v5485_v62  ;;  %vm5443_vm11 = vcmp.eq.f32.partialorder %v11614_v53, inf }
 0x6c8   :  { %v5509_v56 = vmul.f32 %v6908_v54, %v11671_v29  ;;  %v5452_v3 = vsub.f32 1.5, %v5451_v15  ;;  %v5475_v58 = vmul.f32 0.5, %v5474_v27  ;;  %v5498_v41 = vmul.f32 %v6906_v59, %v5497_v49 }
 0x6c9   :  { %v5464_v6 = vsub.f32 1.5, %v5463_v46  ;;  %v5487_v9 = vmul.f32 0.5, %v5486_v12  ;;  %v5429_v44 = vmul.f32 %v6894_v23, %v5428_v8  ;;  %vm5455_vm12 = vcmp.eq.f32.partialorder %v11623_v5, inf  ;;  %v11737_v33 = vpop.eup %6909 }
 0x6ca   :  { %v5510_v45 = vmul.f32 %v6908_v54, %v5509_v56  ;;  %v5470_v62 = vand.u32 2147483648, %v11634_v31  ;;  %v5476_v43 = vsub.f32 1.5, %v5475_v58  ;;  %v5499_v15 = vmul.f32 0.5, %v5498_v41 }
 0x6cb   :  { %v5441_v49 = vmul.f32 %v6896_v51, %v5440_v63  ;;  %v5453_v27 = vmul.f32 %v6898_v32, %v5452_v3  ;;  %vm5467_vm13 = vcmp.eq.f32.partialorder %v11634_v31, inf  ;;  %vm5479_vm14 = vcmp.eq.f32.partialorder %v11644_v47, inf  ;;  %v6912_v63 = vpop.eup %6911 }
 0x6cc   :  { %v5488_v46 = vsub.f32 1.5, %v5487_v9  ;;  %v5511_v12 = vmul.f32 0.5, %v5510_v45  ;;  %vm5433_vm15 = vcmp.eq.f32.partialorder %v11605_v34, 0.0  ;;  %v5465_v23 = vmul.f32 %v6900_v16, %v5464_v6 }
 0x6cd   :  { %v5477_v8 = vmul.f32 %v6902_v39, %v5476_v43  ;;  %v5482_v56 = vand.u32 2147483648, %v11644_v47  ;;  %v5500_v2 = vsub.f32 1.5, %v5499_v15  ;;  %vm5445_vm0 = vcmp.eq.f32.partialorder %v11614_v53, 0.0 }
 0x6ce   :  { %vm5457_vm1 = vcmp.eq.f32.partialorder %v11623_v5, 0.0  ;;  %v5489_v41 = vmul.f32 %v6904_v61, %v5488_v46  ;;  %vm5491_vm2 = vcmp.eq.f32.partialorder %v11655_v36, inf  ;;  %v5494_v58 = vand.u32 2147483648, %v11655_v36 }
 0x6cf   :  { %vm5503_vm3 = vcmp.eq.f32.partialorder %v11666_v28, inf  ;;  %v5430_v3 = vmul.f32 %v5429_v44, %v11605_v34  ;;  %vm5469_vm4 = vcmp.eq.f32.partialorder %v11634_v31, 0.0  ;;  %vm5481_vm5 = vcmp.eq.f32.partialorder %v11644_v47, 0.0 }
 0x6d0   :  { %v5501_v39 = vmul.f32 %v6906_v59, %v5500_v2  ;;  %v5506_v51 = vand.u32 2147483648, %v11666_v28  ;;  %vm5515_vm6 = vcmp.eq.f32.partialorder %v11671_v29, inf  ;;  %v5442_v32 = vmul.f32 %v5441_v49, %v11614_v53 }
 0x6d1   :  { %v5454_v16 = vmul.f32 %v5453_v27, %v11623_v5  ;;  %vm5493_vm7 = vcmp.eq.f32.partialorder %v11655_v36, 0.0  ;;  %vm5505_vm9 = vcmp.eq.f32.partialorder %v11666_v28, 0.0  ;;  %v5512_v61 = vsub.f32 1.5, %v5511_v12 }
 0x6d2   :  { %v5518_v6 = vand.u32 2147483648, %v11671_v29  ;;  %v5466_v9 = vmul.f32 %v5465_v23, %v11634_v31  ;;  %v5478_v45 = vmul.f32 %v5477_v8, %v11644_v47  ;;  %v5521_v59 = vmul.f32 %v11737_v33, %v11703_v30 }
 0x6d3   :  { %v5530_v2 = vand.u32 2147483648, %v11703_v30  ;;  %v5490_v44 = vmul.f32 %v5489_v41, %v11655_v36  ;;  %v5502_v43 = vmul.f32 %v5501_v39, %v11666_v28  ;;  %v5513_v15 = vmul.f32 %v6908_v54, %v5512_v61 }
 0x6d4   :  { %v5533_v49 = vmul.f32 %v6912_v63, %v11705_v10  ;;  %v5432_v27 = vsel %vm5431_vm10, %v11605_v34, %v5430_v3  ;;  %v5522_v46 = vmul.f32 %v11737_v33, %v5521_v59  ;;  %v5542_v12 = vand.u32 2147483648, %v11705_v10 }
 0x6d5   :  { %6913 = vrsqrt.f32 %v11709_v48  ;;  %v5444_v23 = vsel %vm5443_vm11, %v11614_v53, %v5442_v32  ;;  %v5456_v54 = vsel %vm5455_vm12, %v11623_v5, %v5454_v16  ;;  %v5514_v8 = vmul.f32 %v5513_v15, %v11671_v29 }
 0x6d6   :  { %vm5527_vm8 = vcmp.eq.f32.partialorder %v11703_v30, inf  ;;  %v5534_v41 = vmul.f32 %v6912_v63, %v5533_v49  ;;  %v5468_v3 = vsel %vm5467_vm13, %v11634_v31, %v5466_v9  ;;  %v5480_v39 = vsel %vm5479_vm14, %v11644_v47, %v5478_v45 }
 0x6d7   :  { %v5523_v61 = vmul.f32 0.5, %v5522_v46  ;;  %vm5529_vm10 = vcmp.eq.f32.partialorder %v11703_v30, 0.0  ;;  %vm5539_vm11 = vcmp.eq.f32.partialorder %v11705_v10, inf  ;;  %6915 = vrsqrt.f32 %v11711_v42 }
 0x6d8   :  { %v13078_v32 = vand.u32 2147483648, %v11605_v34  ;;  %v5492_v9 = vsel %vm5491_vm2, %v11655_v36, %v5490_v44  ;;  %v5504_v45 = vsel %vm5503_vm3, %v11666_v28, %v5502_v43  ;;  %v5535_v59 = vmul.f32 0.5, %v5534_v41 }
 0x6d9   :  { %vm5541_vm12 = vcmp.eq.f32.partialorder %v11705_v10, 0.0  ;;  %v13079_v15 = vand.u32 2147483648, %v11614_v53  ;;  %v13080_v34 = vand.u32 2147483648, %v11623_v5  ;;  %v5524_v44 = vsub.f32 1.5, %v5523_v61 }
 0x6da   :  { %v11794_v16 = vsel %vm5433_vm15, %v13078_v32, %v5432_v27  ;;  %6917 = vrsqrt.f32 %v11713_v22  ;;  %v11820_v43 = vsel %vm5469_vm4, %v5470_v62, %v5468_v3  ;;  %v11824_v53 = vsel %vm5481_vm5, %v5482_v56, %v5480_v39 }
 0x6db   :  { %v11807_v49 = vsel %vm5445_vm0, %v13079_v15, %v5444_v23  ;;  %v11813_v27 = vsel %vm5457_vm1, %v13080_v34, %v5456_v54  ;;  %v5516_v46 = vsel %vm5515_vm6, %v11671_v29, %v5514_v8  ;;  %v5536_v5 = vsub.f32 1.5, %v5535_v59  ;;  %v6914_v23 = vpop.eup %6913 }
 0x6dc   :  { %v11831_v54 = vsel %vm5493_vm7, %v5494_v58, %v5492_v9  ;;  %v11835_v41 = vsel %vm5505_vm9, %v5506_v51, %v5504_v45  ;;  %v5525_v31 = vmul.f32 %v11737_v33, %v5524_v44  ;;  %6919 = vrsqrt.f32 %v11716_v14 }
 0x6dd   :  { %v5537_v47 = vmul.f32 %v6912_v63, %v5536_v5  ;;  %v5545_v62 = vmul.f32 %v6914_v23, %v11709_v48  ;;  %v5554_v56 = vand.u32 2147483648, %v11709_v48  ;;  %6921 = vrsqrt.f32 %v11718_v13  ;;  %v6916_v8 = vpop.eup %6915 }
 0x6de   :  { %vm13081_vm13 = vcmp.eq.f32.partialorder %v11671_v29, 0.0  ;;  %v5526_v28 = vmul.f32 %v5525_v31, %v11703_v30  ;;  %v5557_v3 = vmul.f32 %v6916_v8, %v11711_v42  ;;  %6923 = vrsqrt.f32 %v11721_v24 }
 0x6df   :  { %v11844_v36 = vsel %vm13081_vm13, %v5518_v6, %v5516_v46  ;;  %v5538_v51 = vmul.f32 %v5537_v47, %v11705_v10  ;;  %v5546_v63 = vmul.f32 %v6914_v23, %v5545_v62  ;;  %vm5551_vm14 = vcmp.eq.f32.partialorder %v11709_v48, inf }
 0x6e0   :  { %v6918_v39 = vpop.eup %6917  ;;  %v5528_v29 = vsel %vm5527_vm8, %v11703_v30, %v5526_v28  ;;  %vm5553_vm15 = vcmp.eq.f32.partialorder %v11709_v48, 0.0  ;;  %v5558_v15 = vmul.f32 %v6916_v8, %v5557_v3  ;;  %vm5563_vm0 = vcmp.eq.f32.partialorder %v11711_v42, inf }
 0x6e1   :  { %v11861_v9 = vsel %vm5529_vm10, %v5530_v2, %v5528_v29  ;;  %v5540_v45 = vsel %vm5539_vm11, %v11705_v10, %v5538_v51  ;;  %v5547_v59 = vmul.f32 0.5, %v5546_v63  ;;  %v5569_v46 = vmul.f32 %v6918_v39, %v11713_v22 }
 0x6e2   :  { %13082 = vst [vmem:[#allocation45_spill] sm:$0xff] %v11861_v9  ;;  %v6920_v34 = vpop.eup %6919  ;;  %v11869_v44 = vsel %vm5541_vm12, %v5542_v12, %v5540_v45  ;;  %v5616_v30 = vmul.f32 %v11794_v16, %v11794_v16  ;;  %v5617_v2 = vmul.f32 %v11807_v49, %v11807_v49  ;;  %v5559_v47 = vmul.f32 0.5, %v5558_v15 }
 0x6e3   :  { %13083 = vst [vmem:[#allocation46_spill] sm:$0xff] %v11869_v44  ;;  %v6922_v5 = vpop.eup %6921  ;;  %v5548_v31 = vsub.f32 1.5, %v5547_v59  ;;  %vm5565_vm1 = vcmp.eq.f32.partialorder %v11711_v42, 0.0  ;;  %v5581_v62 = vmul.f32 %v6920_v34, %v11716_v14  ;;  %v5618_v10 = vmul.f32 %v11813_v27, %v11813_v27 }
 0x6e4   :  { %v5570_v12 = vmul.f32 %v6918_v39, %v5569_v46  ;;  %v5593_v28 = vmul.f32 %v6922_v5, %v11718_v13  ;;  %v5619_v51 = vmul.f32 %v11820_v43, %v11820_v43  ;;  %v5620_v63 = vmul.f32 %v11824_v53, %v11824_v53  ;;  %v6924_v3 = vpop.eup %6923 }
 0x6e5   :  { %v5549_v29 = vmul.f32 %v6914_v23, %v5548_v31  ;;  %v5560_v45 = vsub.f32 1.5, %v5559_v47  ;;  %vm5575_vm2 = vcmp.eq.f32.partialorder %v11713_v22, inf  ;;  %v5582_v59 = vmul.f32 %v6920_v34, %v5581_v62 }
 0x6e6   :  { %v5621_v15 = vmul.f32 %v11831_v54, %v11831_v54  ;;  %v5571_v32 = vmul.f32 0.5, %v5570_v12  ;;  %vm5577_vm3 = vcmp.eq.f32.partialorder %v11713_v22, 0.0  ;;  %vm5587_vm4 = vcmp.eq.f32.partialorder %v11716_v14, inf }
 0x6e7   :  { %v5594_v46 = vmul.f32 %v6922_v5, %v5593_v28  ;;  %v5605_v61 = vmul.f32 %v6924_v3, %v11721_v24  ;;  %v5622_v6 = vmul.f32 %v11835_v41, %v11835_v41  ;;  %v5550_v23 = vmul.f32 %v5549_v29, %v11709_v48 }
 0x6e8   :  { %v5561_v31 = vmul.f32 %v6916_v8, %v5560_v45  ;;  %v5583_v47 = vmul.f32 0.5, %v5582_v59  ;;  %vm5589_vm5 = vcmp.eq.f32.partialorder %v11716_v14, 0.0  ;;  %vm5599_vm6 = vcmp.eq.f32.partialorder %v11718_v13, inf }
 0x6e9   :  { %v5623_v62 = vmul.f32 %v11844_v36, %v11844_v36  ;;  %v5572_v12 = vsub.f32 1.5, %v5571_v32  ;;  %v5595_v33 = vmul.f32 0.5, %v5594_v46  ;;  %vm5601_vm7 = vcmp.eq.f32.partialorder %v11718_v13, 0.0 }
 0x6ea   :  { %v5606_v28 = vmul.f32 %v6924_v3, %v5605_v61  ;;  %v5624_v58 = vmul.f32 %v11861_v9, %v11861_v9  ;;  %v5552_v8 = vsel %vm5551_vm14, %v11709_v48, %v5550_v23  ;;  %v5562_v29 = vmul.f32 %v5561_v31, %v11711_v42 }
 0x6eb   :  { %v5584_v45 = vsub.f32 1.5, %v5583_v47  ;;  %vm5611_vm9 = vcmp.eq.f32.partialorder %v11721_v24, inf  ;;  %v5625_v59 = vmul.f32 %v11869_v44, %v11869_v44  ;;  %v11913_v61 = vsel %vm5553_vm15, %v5554_v56, %v5552_v8 }
 0x6ec   :  { %v5573_v32 = vmul.f32 %v6918_v39, %v5572_v12  ;;  %v5596_v46 = vsub.f32 1.5, %v5595_v33  ;;  %v5607_v9 = vmul.f32 0.5, %v5606_v28  ;;  %vm5613_vm8 = vcmp.eq.f32.partialorder %v11721_v24, 0.0 }
 0x6ed   :  { %v5564_v23 = vsel %vm5563_vm0, %v11711_v42, %v5562_v29  ;;  %v5585_v31 = vmul.f32 %v6920_v34, %v5584_v45  ;;  %v5626_v47 = vmul.f32 %v11913_v61, %v11913_v61  ;;  %v11922_v44 = vsub.f32 %v5616_v30, %v11552_v40 }
 0x6ee   :  { %v13085_v48 = vand.u32 2147483648, %v11711_v42  ;;  %v5574_v33 = vmul.f32 %v5573_v32, %v11713_v22  ;;  %v5597_v39 = vmul.f32 %v6922_v5, %v5596_v46  ;;  %v5608_v12 = vsub.f32 1.5, %v5607_v9 }
 0x6ef   :  { %13084 = vst [vmem:[#allocation47_spill] sm:$0xff] %v11922_v44  ;;  %v5586_v28 = vmul.f32 %v5585_v31, %v11716_v14  ;;  %v11935_v8 = vsub.f32 %v5617_v2, %v11558_v35  ;;  %v11938_v40 = vsub.f32 %v5618_v10, %v11564_v0  ;;  %v11945_v9 = vsub.f32 %v5619_v51, %v11570_v57 }
 0x6f0   :  { %v11928_v56 = vsel %vm5565_vm1, %v13085_v48, %v5564_v23  ;;  %v5576_v42 = vsel %vm5575_vm2, %v11713_v22, %v5574_v33  ;;  %v5598_v30 = vmul.f32 %v5597_v39, %v11718_v13  ;;  %v5609_v29 = vmul.f32 %v6924_v3, %v5608_v12  ;;  %v13107_v12 = vld [vmem:[#allocation33_spill] sm:$0xff] }
 0x6f1   :  { %v5627_v34 = vmul.f32 %v11928_v56, %v11928_v56  ;;  %13086 = vst [vmem:[#allocation48_spill] sm:$0xff] %v11935_v8  ;;  %v13089_v5 = vand.u32 2147483648, %v11713_v22  ;;  %v5588_v35 = vsel %vm5587_vm4, %v11716_v14, %v5586_v28  ;;  %v11955_v0 = vsub.f32 %v5620_v63, %v11574_v21  ;;  %v13108_v28 = vld [vmem:[#allocation34_spill] sm:$0xff] }
 0x6f2   :  { %13087 = vst [vmem:[#allocation49_spill] sm:$0xff] %v11938_v40  ;;  %v11958_v2 = vsub.f32 %v5621_v15, %v11580_v38  ;;  %v13092_v10 = vand.u32 2147483648, %v11716_v14  ;;  %v5600_v22 = vsel %vm5599_vm6, %v11718_v13, %v5598_v30  ;;  %v5610_v51 = vmul.f32 %v5609_v29, %v11721_v24 }
 0x6f3   :  { %13088 = vst [vmem:[#allocation50_spill] sm:$0xff] %v11945_v9  ;;  %v5579_v45 = vsel %vm5577_vm3, %v13089_v5, %v5576_v42  ;;  %v13093_v32 = vand.u32 2147483648, %v11718_v13  ;;  %v11973_v38 = vsub.f32 %v5622_v6, %v11587_v4  ;;  %v11976_v15 = vsub.f32 %v5623_v62, %v11596_v17 }
 0x6f4   :  { %13090 = vst [vmem:[#allocation51_spill] sm:$0xff] %v11955_v0  ;;  %v5591_v57 = vsel %vm5589_vm5, %v13092_v10, %v5588_v35  ;;  %v5628_v3 = vmul.f32 %v5579_v45, %v5579_v45  ;;  %v5612_v14 = vsel %vm5611_vm9, %v11721_v24, %v5610_v51  ;;  %v11982_v23 = vsub.f32 %v5624_v58, %v11620_v25 }
 0x6f5   :  { %13091 = vst [vmem:[#allocation52_spill] sm:$0xff] %v11958_v2  ;;  %v5603_v21 = vsel %vm5601_vm7, %v13093_v32, %v5600_v22  ;;  %v5629_v63 = vmul.f32 %v5591_v57, %v5591_v57  ;;  %v11985_v31 = vsub.f32 %v5625_v59, %v11627_v60  ;;  %v13098_v13 = vand.u32 2147483648, %v11721_v24  ;;  %v13115_v22 = vld [vmem:[#allocation41_spill] sm:$0xff] }
 0x6f6   :  { %13094 = vst [vmem:[#allocation53_spill] sm:$0xff] %v11973_v38  ;;  %v5630_v46 = vmul.f32 %v5603_v21, %v5603_v21  ;;  %v11992_v6 = vsub.f32 %v5626_v47, %v11631_v50  ;;  %v11995_v17 = vsub.f32 %v5627_v34, %v11638_v52  ;;  %v11998_v62 = vsub.f32 %v5628_v3, %v11642_v55  ;;  %v13105_v47 = vld [vmem:[#allocation31_spill] sm:$0xff] }
 0x6f7   :  { %13095 = vst [vmem:[#allocation54_spill] sm:$0xff] %v11976_v15  ;;  %v5615_v4 = vsel %vm5613_vm8, %v13098_v13, %v5612_v14  ;;  %v12001_v25 = vsub.f32 %v5629_v63, %v11649_v20  ;;  %v5648_v58 = vmul.f32 2.0, %v11527_v7  ;;  %v5649_v24 = vmul.f32 2.0, %v11539_v11  ;;  %v13106_v20 = vld [vmem:[#allocation32_spill] sm:$0xff]  ;;  %v13109_v7 = vld [vmem:[#allocation35_spill] sm:$0xff] }
 0x6f8   :  { %13096 = vst [vmem:[#allocation55_spill] sm:$0xff] %v11982_v23  ;;  %v5631_v48 = vmul.f32 %v5615_v4, %v5615_v4  ;;  %v12004_v60 = vsub.f32 %v5630_v46, %v11653_v19  ;;  %v5650_v50 = vmul.f32 2.0, %v11544_v1  ;;  %v5651_v59 = vmul.f32 2.0, %v11546_v26  ;;  %v13110_v11 = vld [vmem:[#allocation36_spill] sm:$0xff]  ;;  %v13111_v1 = vld [vmem:[#allocation37_spill] sm:$0xff]  ;;  %v13112_v26 = vld [vmem:[#allocation38_spill] sm:$0xff] }
 0x6f9   :  { %13097 = vst [vmem:[#allocation56_spill] sm:$0xff] %v11985_v31  ;;  %v5652_v52 = vmul.f32 2.0, %v11548_v37  ;;  %v5653_v33 = vmul.f32 2.0, %v13105_v47  ;;  %v5654_v39 = vmul.f32 2.0, %v13106_v20  ;;  %v5655_v19 = vmul.f32 2.0, %v13107_v12  ;;  %v13113_v37 = vld [vmem:[#allocation39_spill] sm:$0xff] }
 0x6fa   :  { %13099 = vst [vmem:[#allocation57_spill] sm:$0xff] %v11992_v6  ;;  %v12012_v55 = vsub.f32 %v5631_v48, %v11664_v18  ;;  %v5656_v34 = vmul.f32 2.0, %v13108_v28  ;;  %v5657_v42 = vmul.f32 2.0, %v13109_v7  ;;  %v5658_v30 = vmul.f32 2.0, %v13110_v11  ;;  %v13114_v18 = vld [vmem:[#allocation40_spill] sm:$0xff] }
 0x6fb   :  { %13100 = vst [vmem:[#allocation58_spill] sm:$0xff] %v11995_v17  ;;  %v5659_v29 = vmul.f32 2.0, %v13111_v1  ;;  %v5660_v5 = vmul.f32 2.0, %v13112_v26  ;;  %v5661_v35 = vmul.f32 2.0, %v13113_v37  ;;  %v5662_v10 = vmul.f32 2.0, %v13114_v18 }
 0x6fc   :  { %13101 = vst [vmem:[#allocation59_spill] sm:$0xff] %v11998_v62  ;;  %v5663_v51 = vmul.f32 2.0, %v13115_v22  ;;  %v12026_v3 = vmul.f32 %v5648_v58, %v11794_v16  ;;  %v12029_v32 = vmul.f32 %v5649_v24, %v11807_v49  ;;  %v12032_v63 = vmul.f32 %v5650_v50, %v11813_v27  ;;  %v13124_v49 = vld [vmem:[#allocation45_spill] sm:$0xff]  ;;  %v13126_v27 = vld [vmem:[#allocation46_spill] sm:$0xff] }
 0x6fd   :  { %13102 = vst [vmem:[#allocation60_spill] sm:$0xff] %v12001_v25  ;;  %v12035_v14 = vmul.f32 %v5651_v59, %v11820_v43  ;;  %v12038_v46 = vmul.f32 %v5652_v52, %v11824_v53  ;;  %v12041_v13 = vmul.f32 %v5653_v33, %v11831_v54  ;;  %v12044_v48 = vmul.f32 %v5654_v39, %v11835_v41 }
 0x6fe   :  { %13103 = vst [vmem:[#allocation61_spill] sm:$0xff] %v12004_v60  ;;  %v12047_v16 = vmul.f32 %v5655_v19, %v11844_v36  ;;  %v12050_v58 = vmul.f32 %v5656_v34, %v13124_v49  ;;  %v12053_v24 = vmul.f32 %v5657_v42, %v13126_v27  ;;  %v12056_v43 = vmul.f32 %v5658_v30, %v11913_v61 }
 0x6ff   :  { %13104 = vst [vmem:[#allocation62_spill] sm:$0xff] %v12012_v55  ;;  %v12059_v53 = vmul.f32 %v5659_v29, %v11928_v56  ;;  %v12061_v54 = vmul.f32 %v5660_v5, %v5579_v45  ;;  %v12063_v50 = vmul.f32 %v5661_v35, %v5591_v57  ;;  %v12065_v41 = vmul.f32 %v5662_v10, %v5603_v21 }
 0x700   :  { %13116 = vst [vmem:[#allocation31_spill] sm:$0xff] %v12026_v3  ;;  %v12067_v36 = vmul.f32 %v5663_v51, %v5615_v4  ;;  %v5680_v59 = vmul.f32 %v11922_v44, %v11922_v44  ;;  %v5681_v52 = vmul.f32 %v11935_v8, %v11935_v8  ;;  %v5682_v61 = vmul.f32 %v11938_v40, %v11938_v40 }
 0x701   :  { %13117 = vst [vmem:[#allocation32_spill] sm:$0xff] %v12029_v32  ;;  %v5683_v56 = vmul.f32 %v11945_v9, %v11945_v9  ;;  %v5684_v45 = vmul.f32 %v11955_v0, %v11955_v0  ;;  %v5685_v57 = vmul.f32 %v11958_v2, %v11958_v2  ;;  %v5686_v21 = vmul.f32 %v11973_v38, %v11973_v38 }
 0x702   :  { %13118 = vst [vmem:[#allocation33_spill] sm:$0xff] %v12032_v63  ;;  %v5687_v4 = vmul.f32 %v11976_v15, %v11976_v15  ;;  %v5688_v47 = vmul.f32 %v11982_v23, %v11982_v23  ;;  %v5689_v33 = vmul.f32 %v11985_v31, %v11985_v31  ;;  %v5690_v20 = vmul.f32 %v11992_v6, %v11992_v6 }
 0x703   :  { %13119 = vst [vmem:[#allocation34_spill] sm:$0xff] %v12035_v14  ;;  %v5691_v39 = vmul.f32 %v11995_v17, %v11995_v17  ;;  %v5692_v12 = vmul.f32 %v11998_v62, %v11998_v62  ;;  %v5693_v19 = vmul.f32 %v12001_v25, %v12001_v25  ;;  %v5694_v28 = vmul.f32 %v12004_v60, %v12004_v60 }
 0x704   :  { %13120 = vst [vmem:[#allocation35_spill] sm:$0xff] %v12038_v46  ;;  %v5695_v34 = vmul.f32 %v12012_v55, %v12012_v55  ;;  %v5696_v7 = vmul.f32 %v12026_v3, %v12026_v3  ;;  %v5697_v42 = vmul.f32 %v12029_v32, %v12029_v32  ;;  %v5698_v11 = vmul.f32 %v12032_v63, %v12032_v63 }
 0x705   :  { %13121 = vst [vmem:[#allocation36_spill] sm:$0xff] %v12041_v13  ;;  %v5699_v30 = vmul.f32 %v12035_v14, %v12035_v14  ;;  %v5700_v1 = vmul.f32 %v12038_v46, %v12038_v46  ;;  %v5701_v29 = vmul.f32 %v12041_v13, %v12041_v13  ;;  %v5702_v26 = vmul.f32 %v12044_v48, %v12044_v48 }
 0x706   :  { %13122 = vst [vmem:[#allocation37_spill] sm:$0xff] %v12044_v48  ;;  %v5703_v5 = vmul.f32 %v12047_v16, %v12047_v16  ;;  %v5704_v37 = vmul.f32 %v12050_v58, %v12050_v58  ;;  %v5705_v35 = vmul.f32 %v12053_v24, %v12053_v24  ;;  %v5706_v18 = vmul.f32 %v12056_v43, %v12056_v43 }
 0x707   :  { %13123 = vst [vmem:[#allocation38_spill] sm:$0xff] %v12047_v16  ;;  %v5707_v10 = vmul.f32 %v12059_v53, %v12059_v53  ;;  %v5708_v22 = vmul.f32 %v12061_v54, %v12061_v54  ;;  %v5709_v51 = vmul.f32 %v12063_v50, %v12063_v50  ;;  %v5710_v49 = vmul.f32 %v12065_v41, %v12065_v41 }
 0x708   :  { %13125 = vst [vmem:[#allocation39_spill] sm:$0xff] %v12050_v58  ;;  %v5711_v27 = vmul.f32 %v12067_v36, %v12067_v36  ;;  %v12133_v55 = vsub.f32 %v5680_v59, %v5696_v7  ;;  %v12135_v60 = vsub.f32 %v5681_v52, %v5697_v42  ;;  %v12137_v25 = vsub.f32 %v5682_v61, %v5698_v11 }
 0x709   :  { %13127 = vst [vmem:[#allocation40_spill] sm:$0xff] %v12053_v24  ;;  %v12139_v62 = vsub.f32 %v5683_v56, %v5699_v30  ;;  %v12141_v17 = vsub.f32 %v5684_v45, %v5700_v1  ;;  %v12143_v6 = vsub.f32 %v5685_v57, %v5701_v29  ;;  %v12145_v31 = vsub.f32 %v5686_v21, %v5702_v26 }
 0x70a   :  { %13128 = vst [vmem:[#allocation41_spill] sm:$0xff] %v12056_v43  ;;  %v12147_v23 = vsub.f32 %v5687_v4, %v5703_v5  ;;  %v12149_v15 = vsub.f32 %v5688_v47, %v5704_v37  ;;  %v12151_v38 = vsub.f32 %v5689_v33, %v5705_v35  ;;  %v12153_v59 = vsub.f32 %v5690_v20, %v5706_v18 }
 0x70b   :  { %13129 = vst [vmem:[#allocation45_spill] sm:$0xff] %v12059_v53  ;;  %v12155_v52 = vsub.f32 %v5691_v39, %v5707_v10  ;;  %v12157_v61 = vsub.f32 %v5692_v12, %v5708_v22  ;;  %v12159_v56 = vsub.f32 %v5693_v19, %v5709_v51  ;;  %v12161_v45 = vsub.f32 %v5694_v28, %v5710_v49  ;;  %v13144_v22 = vld [vmem:[#allocation53_spill] sm:$0xff]  ;;  %v13145_v49 = vld [vmem:[#allocation54_spill] sm:$0xff] }
 0x70c   :  { %13130 = vst [vmem:[#allocation46_spill] sm:$0xff] %v12061_v54  ;;  %v12163_v57 = vsub.f32 %v5695_v34, %v5711_v27  ;;  %v5728_v21 = vmul.f32 2.0, %v12026_v3  ;;  %v5729_v4 = vmul.f32 2.0, %v12029_v32  ;;  %v5730_v47 = vmul.f32 2.0, %v12032_v63 }
 0x70d   :  { %13131 = vst [vmem:[#allocation63_spill] sm:$0xff] %v12063_v50  ;;  %v5731_v33 = vmul.f32 2.0, %v12035_v14  ;;  %v5732_v20 = vmul.f32 2.0, %v12038_v46  ;;  %v5733_v39 = vmul.f32 2.0, %v12041_v13  ;;  %v5734_v12 = vmul.f32 2.0, %v12044_v48 }
 0x70e   :  { %13132 = vst [vmem:[#allocation64_spill] sm:$0xff] %v12065_v41  ;;  %v5735_v19 = vmul.f32 2.0, %v12047_v16  ;;  %v5736_v28 = vmul.f32 2.0, %v12050_v58  ;;  %v5737_v34 = vmul.f32 2.0, %v12053_v24  ;;  %v5738_v7 = vmul.f32 2.0, %v12056_v43 }
 0x70f   :  { %13133 = vst [vmem:[#allocation65_spill] sm:$0xff] %v12067_v36  ;;  %v5739_v42 = vmul.f32 2.0, %v12059_v53  ;;  %v5740_v11 = vmul.f32 2.0, %v12061_v54  ;;  %v5741_v30 = vmul.f32 2.0, %v12063_v50  ;;  %v5742_v1 = vmul.f32 2.0, %v12065_v41 }
 0x710   :  { %13134 = vst [vmem:[#allocation66_spill] sm:$0xff] %v12145_v31  ;;  %v5743_v29 = vmul.f32 2.0, %v12067_v36  ;;  %v12182_v26 = vmul.f32 %v5728_v21, %v11922_v44  ;;  %v12185_v5 = vmul.f32 %v5729_v4, %v11935_v8  ;;  %v12188_v37 = vmul.f32 %v5730_v47, %v11938_v40  ;;  %v13146_v21 = vld [vmem:[#allocation55_spill] sm:$0xff]  ;;  %v13147_v47 = vld [vmem:[#allocation56_spill] sm:$0xff] }
 0x711   :  { %13135 = vst [vmem:[#allocation67_spill] sm:$0xff] %v12147_v23  ;;  %v12191_v35 = vmul.f32 %v5731_v33, %v11945_v9  ;;  %v12194_v18 = vmul.f32 %v5732_v20, %v11955_v0  ;;  %v12197_v10 = vmul.f32 %v5733_v39, %v11958_v2  ;;  %v12200_v51 = vmul.f32 %v5734_v12, %v13144_v22  ;;  %v13148_v33 = vld [vmem:[#allocation57_spill] sm:$0xff]  ;;  %v13149_v20 = vld [vmem:[#allocation58_spill] sm:$0xff]  ;;  %v13150_v39 = vld [vmem:[#allocation59_spill] sm:$0xff] }
 0x712   :  { %13136 = vst [vmem:[#allocation68_spill] sm:$0xff] %v12149_v15  ;;  %v12203_v27 = vmul.f32 %v5735_v19, %v13145_v49  ;;  %v12206_v4 = vmul.f32 %v5736_v28, %v13146_v21  ;;  %v12209_v36 = vmul.f32 %v5737_v34, %v13147_v47  ;;  %v12212_v41 = vmul.f32 %v5738_v7, %v13148_v33  ;;  %v13151_v12 = vld [vmem:[#allocation60_spill] sm:$0xff]  ;;  %v13152_v19 = vld [vmem:[#allocation61_spill] sm:$0xff]  ;;  %v13153_v28 = vld [vmem:[#allocation62_spill] sm:$0xff] }
 0x713   :  { %13137 = vst [vmem:[#allocation69_spill] sm:$0xff] %v12151_v38  ;;  %v12215_v50 = vmul.f32 %v5739_v42, %v13149_v20  ;;  %v12218_v54 = vmul.f32 %v5740_v11, %v13150_v39  ;;  %v12221_v53 = vmul.f32 %v5741_v30, %v13151_v12  ;;  %v12224_v43 = vmul.f32 %v5742_v1, %v13152_v19 }
 0x714   :  { %13138 = vst [vmem:[#allocation70_spill] sm:$0xff] %v12153_v59  ;;  %v12227_v24 = vmul.f32 %v5743_v29, %v13153_v28  ;;  %v5760_v34 = vmul.f32 %v12133_v55, %v12133_v55  ;;  %v5761_v7 = vmul.f32 %v12135_v60, %v12135_v60  ;;  %v5762_v42 = vmul.f32 %v12137_v25, %v12137_v25 }
 0x715   :  { %13139 = vst [vmem:[#allocation71_spill] sm:$0xff] %v12155_v52  ;;  %v5763_v11 = vmul.f32 %v12139_v62, %v12139_v62  ;;  %v5764_v30 = vmul.f32 %v12141_v17, %v12141_v17  ;;  %v5765_v1 = vmul.f32 %v12143_v6, %v12143_v6  ;;  %v5766_v29 = vmul.f32 %v12145_v31, %v12145_v31 }
 0x716   :  { %13140 = vst [vmem:[#allocation72_spill] sm:$0xff] %v12157_v61  ;;  %v5767_v58 = vmul.f32 %v12147_v23, %v12147_v23  ;;  %v5768_v16 = vmul.f32 %v12149_v15, %v12149_v15  ;;  %v5769_v48 = vmul.f32 %v12151_v38, %v12151_v38  ;;  %v5770_v13 = vmul.f32 %v12153_v59, %v12153_v59 }
 0x717   :  { %13141 = vst [vmem:[#allocation73_spill] sm:$0xff] %v12159_v56  ;;  %v5771_v46 = vmul.f32 %v12155_v52, %v12155_v52  ;;  %v5772_v14 = vmul.f32 %v12157_v61, %v12157_v61  ;;  %v5773_v63 = vmul.f32 %v12159_v56, %v12159_v56  ;;  %v5774_v32 = vmul.f32 %v12161_v45, %v12161_v45 }
 0x718   :  { %13142 = vst [vmem:[#allocation74_spill] sm:$0xff] %v12161_v45  ;;  %v5775_v3 = vmul.f32 %v12163_v57, %v12163_v57  ;;  %v5776_v28 = vmul.f32 %v12182_v26, %v12182_v26  ;;  %v5777_v19 = vmul.f32 %v12185_v5, %v12185_v5  ;;  %v5778_v12 = vmul.f32 %v12188_v37, %v12188_v37 }
 0x719   :  { %13143 = vst [vmem:[#allocation75_spill] sm:$0xff] %v12163_v57  ;;  %v5779_v39 = vmul.f32 %v12191_v35, %v12191_v35  ;;  %v5780_v20 = vmul.f32 %v12194_v18, %v12194_v18  ;;  %v5781_v33 = vmul.f32 %v12197_v10, %v12197_v10  ;;  %v5782_v47 = vmul.f32 %v12200_v51, %v12200_v51 }
 0x71a   :  { %v5783_v21 = vmul.f32 %v12203_v27, %v12203_v27  ;;  %v5784_v49 = vmul.f32 %v12206_v4, %v12206_v4  ;;  %v5785_v22 = vmul.f32 %v12209_v36, %v12209_v36  ;;  %v5786_v2 = vmul.f32 %v12212_v41, %v12212_v41 }
 0x71b   :  { %v5787_v0 = vmul.f32 %v12215_v50, %v12215_v50  ;;  %v5788_v9 = vmul.f32 %v12218_v54, %v12218_v54  ;;  %v5789_v40 = vmul.f32 %v12221_v53, %v12221_v53  ;;  %v5790_v8 = vmul.f32 %v12224_v43, %v12224_v43 }
 0x71c   :  { %v5791_v44 = vmul.f32 %v12227_v24, %v12227_v24  ;;  %v12293_v57 = vsub.f32 %v5760_v34, %v5776_v28  ;;  %v12295_v45 = vsub.f32 %v5761_v7, %v5777_v19  ;;  %v12297_v56 = vsub.f32 %v5762_v42, %v5778_v12  ;;  %v13185_v7 = vld [vmem:[#allocation47_spill] sm:$0xff] }
 0x71d   :  { %v12299_v61 = vsub.f32 %v5763_v11, %v5779_v39  ;;  %v12301_v52 = vsub.f32 %v5764_v30, %v5780_v20  ;;  %v12303_v59 = vsub.f32 %v5765_v1, %v5781_v33  ;;  %v12305_v38 = vsub.f32 %v5766_v29, %v5782_v47  ;;  %v13186_v11 = vld [vmem:[#allocation48_spill] sm:$0xff]  ;;  %v13187_v1 = vld [vmem:[#allocation49_spill] sm:$0xff] }
 0x71e   :  { %v12307_v15 = vsub.f32 %v5767_v58, %v5783_v21  ;;  %v12309_v23 = vsub.f32 %v5768_v16, %v5784_v49  ;;  %v12311_v31 = vsub.f32 %v5769_v48, %v5785_v22  ;;  %v12313_v28 = vsub.f32 %v5770_v13, %v5786_v2 }
 0x71f   :  { %v12315_v19 = vsub.f32 %v5771_v46, %v5787_v0  ;;  %v12317_v12 = vsub.f32 %v5772_v14, %v5788_v9  ;;  %v12319_v39 = vsub.f32 %v5773_v63, %v5789_v40  ;;  %v12321_v20 = vsub.f32 %v5774_v32, %v5790_v8 }
 0x720   :  { %v12323_v33 = vsub.f32 %v5775_v3, %v5791_v44  ;;  %v5808_v47 = vmul.f32 2.0, %v12182_v26  ;;  %v5809_v58 = vmul.f32 2.0, %v12185_v5  ;;  %v5810_v16 = vmul.f32 2.0, %v12188_v37 }
 0x721   :  { %13154 = vst [vmem:[#allocation76_spill] sm:$0xff] %v12315_v19  ;;  %v5811_v48 = vmul.f32 2.0, %v12191_v35  ;;  %v5812_v2 = vmul.f32 2.0, %v12194_v18  ;;  %v5813_v0 = vmul.f32 2.0, %v12197_v10  ;;  %v5814_v9 = vmul.f32 2.0, %v12200_v51  ;;  %v13179_v51 = vld [vmem:[#allocation73_spill] sm:$0xff] }
 0x722   :  { %13155 = vst [vmem:[#allocation77_spill] sm:$0xff] %v12317_v12  ;;  %v5815_v40 = vmul.f32 2.0, %v12203_v27  ;;  %v5816_v8 = vmul.f32 2.0, %v12206_v4  ;;  %v5817_v44 = vmul.f32 2.0, %v12209_v36  ;;  %v5818_v3 = vmul.f32 2.0, %v12212_v41  ;;  %v13181_v27 = vld [vmem:[#allocation74_spill] sm:$0xff] }
 0x723   :  { %13156 = vst [vmem:[#allocation78_spill] sm:$0xff] %v12319_v39  ;;  %v5819_v32 = vmul.f32 2.0, %v12215_v50  ;;  %v5820_v63 = vmul.f32 2.0, %v12218_v54  ;;  %v5821_v14 = vmul.f32 2.0, %v12221_v53  ;;  %v5822_v46 = vmul.f32 2.0, %v12224_v43  ;;  %v13165_v43 = vld [vmem:[#allocation66_spill] sm:$0xff] }
 0x724   :  { %13157 = vst [vmem:[#allocation79_spill] sm:$0xff] %v12321_v20  ;;  %v5823_v13 = vmul.f32 2.0, %v12227_v24  ;;  %v12342_v26 = vmul.f32 %v5808_v47, %v12133_v55  ;;  %v12345_v5 = vmul.f32 %v5809_v58, %v12135_v60  ;;  %v12348_v36 = vmul.f32 %v5810_v16, %v12137_v25  ;;  %v13167_v55 = vld [vmem:[#allocation67_spill] sm:$0xff]  ;;  %v13169_v60 = vld [vmem:[#allocation68_spill] sm:$0xff]  ;;  %v13171_v25 = vld [vmem:[#allocation69_spill] sm:$0xff] }
 0x725   :  { %13158 = vst [vmem:[#allocation80_spill] sm:$0xff] %v12323_v33  ;;  %v12351_v41 = vmul.f32 %v5811_v48, %v12139_v62  ;;  %v12354_v54 = vmul.f32 %v5812_v2, %v12141_v17  ;;  %v12357_v53 = vmul.f32 %v5813_v0, %v12143_v6  ;;  %v12360_v24 = vmul.f32 %v5814_v9, %v13165_v43  ;;  %v13173_v62 = vld [vmem:[#allocation70_spill] sm:$0xff]  ;;  %v13175_v17 = vld [vmem:[#allocation71_spill] sm:$0xff]  ;;  %v13177_v6 = vld [vmem:[#allocation72_spill] sm:$0xff] }
 0x726   :  { %13159 = vst [vmem:[#allocation81_spill] sm:$0xff] %v12342_v26  ;;  %v12363_v50 = vmul.f32 %v5815_v40, %v13167_v55  ;;  %v12366_v37 = vmul.f32 %v5816_v8, %v13169_v60  ;;  %v12369_v35 = vmul.f32 %v5817_v44, %v13171_v25  ;;  %v12372_v18 = vmul.f32 %v5818_v3, %v13173_v62  ;;  %v13183_v4 = vld [vmem:[#allocation75_spill] sm:$0xff]  ;;  %v13188_v47 = vld [vmem:[#allocation50_spill] sm:$0xff]  ;;  %v13190_v2 = vld [vmem:[#allocation52_spill] sm:$0xff] }
 0x727   :  { %13160 = vst [vmem:[#allocation82_spill] sm:$0xff] %v12345_v5  ;;  %v12375_v10 = vmul.f32 %v5819_v32, %v13175_v17  ;;  %v12378_v22 = vmul.f32 %v5820_v63, %v13177_v6  ;;  %v12381_v49 = vmul.f32 %v5821_v14, %v13179_v51  ;;  %v12384_v21 = vmul.f32 %v5822_v46, %v13181_v27  ;;  %v13189_v16 = vld [vmem:[#allocation51_spill] sm:$0xff]  ;;  %v13191_v9 = vld [vmem:[#allocation53_spill] sm:$0xff]  ;;  %v13193_v8 = vld [vmem:[#allocation54_spill] sm:$0xff] }
 0x728   :  { %13161 = vst [vmem:[#allocation83_spill] sm:$0xff] %v12348_v36  ;;  %v12387_v34 = vmul.f32 %v5823_v13, %v13183_v4  ;;  %v12391_v42 = vmul.f32 %v12293_v57, %v13185_v7  ;;  %v12395_v30 = vmul.f32 %v12295_v45, %v13186_v11  ;;  %v12399_v29 = vmul.f32 %v12297_v56, %v13187_v1  ;;  %v13195_v3 = vld [vmem:[#allocation55_spill] sm:$0xff]  ;;  %v13197_v63 = vld [vmem:[#allocation56_spill] sm:$0xff]  ;;  %v13199_v46 = vld [vmem:[#allocation57_spill] sm:$0xff] }
 0x729   :  { %13162 = vst [vmem:[#allocation84_spill] sm:$0xff] %v12351_v41  ;;  %v12403_v58 = vmul.f32 %v12299_v61, %v13188_v47  ;;  %v12407_v48 = vmul.f32 %v12301_v52, %v13189_v16  ;;  %v12411_v0 = vmul.f32 %v12303_v59, %v13190_v2  ;;  %v12415_v40 = vmul.f32 %v12305_v38, %v13191_v9  ;;  %v13201_v43 = vld [vmem:[#allocation58_spill] sm:$0xff]  ;;  %v13203_v60 = vld [vmem:[#allocation59_spill] sm:$0xff]  ;;  %v13205_v62 = vld [vmem:[#allocation60_spill] sm:$0xff] }
 0x72a   :  { %13163 = vst [vmem:[#allocation85_spill] sm:$0xff] %v12354_v54  ;;  %v12419_v44 = vmul.f32 %v12307_v15, %v13193_v8  ;;  %v12423_v32 = vmul.f32 %v12309_v23, %v13195_v3  ;;  %v12427_v14 = vmul.f32 %v12311_v31, %v13197_v63  ;;  %v12431_v13 = vmul.f32 %v12313_v28, %v13199_v46  ;;  %v13207_v6 = vld [vmem:[#allocation61_spill] sm:$0xff]  ;;  %v13209_v27 = vld [vmem:[#allocation62_spill] sm:$0xff]  ;;  %v13211_v46 = vld [vmem:[#allocation31_spill] sm:$0xff] }
 0x72b   :  { %13164 = vst [vmem:[#allocation86_spill] sm:$0xff] %v12357_v53  ;;  %v12435_v55 = vmul.f32 %v12315_v19, %v13201_v43  ;;  %v12439_v25 = vmul.f32 %v12317_v12, %v13203_v60  ;;  %v12443_v17 = vmul.f32 %v12319_v39, %v13205_v62  ;;  %v12447_v51 = vmul.f32 %v12321_v20, %v13207_v6  ;;  %v13212_v63 = vld [vmem:[#allocation32_spill] sm:$0xff]  ;;  %v13213_v3 = vld [vmem:[#allocation33_spill] sm:$0xff]  ;;  %v13214_v8 = vld [vmem:[#allocation34_spill] sm:$0xff] }
 0x72c   :  { %13166 = vst [vmem:[#allocation66_spill] sm:$0xff] %v12360_v24  ;;  %v12451_v4 = vmul.f32 %v12323_v33, %v13209_v27  ;;  %v12455_v43 = vmul.f32 %v12342_v26, %v13211_v46  ;;  %v12459_v60 = vmul.f32 %v12345_v5, %v13212_v63  ;;  %v12463_v62 = vmul.f32 %v12348_v36, %v13213_v3  ;;  %v13215_v9 = vld [vmem:[#allocation35_spill] sm:$0xff]  ;;  %v13216_v2 = vld [vmem:[#allocation36_spill] sm:$0xff]  ;;  %v13217_v47 = vld [vmem:[#allocation37_spill] sm:$0xff] }
 0x72d   :  { %13168 = vst [vmem:[#allocation67_spill] sm:$0xff] %v12363_v50  ;;  %v12467_v6 = vmul.f32 %v12351_v41, %v13214_v8  ;;  %v12471_v27 = vmul.f32 %v12354_v54, %v13215_v9  ;;  %v12475_v16 = vmul.f32 %v12357_v53, %v13216_v2  ;;  %v12479_v1 = vmul.f32 %v12360_v24, %v13217_v47  ;;  %v13219_v5 = vld [vmem:[#allocation38_spill] sm:$0xff]  ;;  %v13221_v11 = vld [vmem:[#allocation39_spill] sm:$0xff]  ;;  %v13223_v26 = vld [vmem:[#allocation40_spill] sm:$0xff] }
 0x72e   :  { %13170 = vst [vmem:[#allocation68_spill] sm:$0xff] %v12366_v37  ;;  %v12483_v36 = vmul.f32 %v12363_v50, %v13219_v5  ;;  %v12487_v41 = vmul.f32 %v12366_v37, %v13221_v11  ;;  %v12491_v54 = vmul.f32 %v12369_v35, %v13223_v26  ;;  %v13225_v7 = vld [vmem:[#allocation41_spill] sm:$0xff]  ;;  %v13229_v20 = vld [vmem:[#allocation46_spill] sm:$0xff]  ;;  %v13231_v39 = vld [vmem:[#allocation63_spill] sm:$0xff] }
 0x72f   :  { %13172 = vst [vmem:[#allocation69_spill] sm:$0xff] %v12369_v35  ;;  %v12495_v53 = vmul.f32 %v12372_v18, %v13225_v7  ;;  %v13227_v33 = vld [vmem:[#allocation45_spill] sm:$0xff]  ;;  %v12503_v50 = vmul.f32 %v12378_v22, %v13229_v20  ;;  %v12507_v37 = vmul.f32 %v12381_v49, %v13231_v39  ;;  %v13233_v12 = vld [vmem:[#allocation64_spill] sm:$0xff] }
 0x730   :  { %13174 = vst [vmem:[#allocation70_spill] sm:$0xff] %v12372_v18  ;;  %v12499_v24 = vmul.f32 %v12375_v10, %v13227_v33  ;;  %v12511_v35 = vmul.f32 %v12384_v21, %v13233_v12  ;;  %v13235_v19 = vld [vmem:[#allocation65_spill] sm:$0xff]  ;;  %v5891_v12 = vmul.f32 %v12299_v61, %v13214_v8  ;;  %v5894_v33 = vmul.f32 %v12305_v38, %v13217_v47  ;;  %v13240_v38 = vld [vmem:[#allocation78_spill] sm:$0xff] }
 0x731   :  { %13176 = vst [vmem:[#allocation71_spill] sm:$0xff] %v12375_v10  ;;  %v12515_v18 = vmul.f32 %v12387_v34, %v13235_v19  ;;  %v5893_v10 = vmul.f32 %v12303_v59, %v13216_v2  ;;  %v5898_v61 = vmul.f32 %v12313_v28, %v13225_v7  ;;  %v13237_v8 = vld [vmem:[#allocation45_spill] sm:$0xff]  ;;  %v5901_v47 = vmul.f32 %v13240_v38, %v13231_v39  ;;  %v13247_v28 = vld [vmem:[#allocation82_spill] sm:$0xff] }
 0x732   :  { %13178 = vst [vmem:[#allocation72_spill] sm:$0xff] %v12378_v22  ;;  %v5888_v22 = vmul.f32 %v12293_v57, %v13211_v46  ;;  %v5895_v57 = vmul.f32 %v12307_v15, %v13219_v5  ;;  %v13239_v59 = vld [vmem:[#allocation77_spill] sm:$0xff]  ;;  %v13242_v15 = vld [vmem:[#allocation79_spill] sm:$0xff]  ;;  %v13246_v46 = vld [vmem:[#allocation48_spill] sm:$0xff] }
 0x733   :  { %13180 = vst [vmem:[#allocation73_spill] sm:$0xff] %v12381_v49  ;;  %v5889_v49 = vmul.f32 %v12295_v45, %v13212_v63  ;;  %v5896_v45 = vmul.f32 %v12309_v23, %v13221_v11  ;;  %v5900_v2 = vmul.f32 %v13239_v59, %v13229_v20  ;;  %v13243_v23 = vld [vmem:[#allocation80_spill] sm:$0xff]  ;;  %v13244_v63 = vld [vmem:[#allocation47_spill] sm:$0xff]  ;;  %v5905_v7 = vmul.f32 %v13247_v28, %v13246_v46  ;;  %v13253_v39 = vld [vmem:[#allocation85_spill] sm:$0xff] }
 0x734   :  { %13182 = vst [vmem:[#allocation74_spill] sm:$0xff] %v12384_v21  ;;  %v5890_v21 = vmul.f32 %v12297_v56, %v13213_v3  ;;  %v5897_v56 = vmul.f32 %v12311_v31, %v13223_v26  ;;  %v13241_v3 = vld [vmem:[#allocation64_spill] sm:$0xff]  ;;  %v5903_v11 = vmul.f32 %v13243_v23, %v13235_v19  ;;  %v13245_v31 = vld [vmem:[#allocation81_spill] sm:$0xff]  ;;  %v13257_v19 = vld [vmem:[#allocation66_spill] sm:$0xff] }
 0x735   :  { %13184 = vst [vmem:[#allocation75_spill] sm:$0xff] %v12387_v34  ;;  %v5892_v34 = vmul.f32 %v12301_v52, %v13215_v9  ;;  %v13238_v52 = vld [vmem:[#allocation76_spill] sm:$0xff]  ;;  %v5902_v5 = vmul.f32 %v13242_v15, %v13241_v3  ;;  %v5904_v26 = vmul.f32 %v13245_v31, %v13244_v63  ;;  %v13255_v3 = vld [vmem:[#allocation86_spill] sm:$0xff]  ;;  %v13259_v63 = vld [vmem:[#allocation67_spill] sm:$0xff] }
 0x736   :  { %13192 = vst [vmem:[#allocation87_spill] sm:$0xff] %v12415_v40  ;;  %v5899_v9 = vmul.f32 %v13238_v52, %v13237_v8  ;;  %v13249_v8 = vld [vmem:[#allocation83_spill] sm:$0xff]  ;;  %v13251_v20 = vld [vmem:[#allocation84_spill] sm:$0xff] }
 0x737   :  { %13194 = vst [vmem:[#allocation88_spill] sm:$0xff] %v12419_v44  ;;  %v13261_v46 = vld [vmem:[#allocation68_spill] sm:$0xff] }
 0x738   :  { %13196 = vst [vmem:[#allocation89_spill] sm:$0xff] %v12423_v32 }
 0x739   :  { %13198 = vst [vmem:[#allocation90_spill] sm:$0xff] %v12427_v14  ;;  %v13274_v14 = vld [vmem:[#allocation62_spill] sm:$0xff] }
 0x73a   :  { %13200 = vst [vmem:[#allocation91_spill] sm:$0xff] %v12431_v13  ;;  %v13270_v13 = vld [vmem:[#allocation60_spill] sm:$0xff] }
 0x73b   :  { %13202 = vst [vmem:[#allocation92_spill] sm:$0xff] %v12435_v55  ;;  %v13266_v55 = vld [vmem:[#allocation58_spill] sm:$0xff] }
 0x73c   :  { %13204 = vst [vmem:[#allocation93_spill] sm:$0xff] %v12439_v25  ;;  %v13262_v25 = vld [vmem:[#allocation56_spill] sm:$0xff] }
 0x73d   :  { %13206 = vst [vmem:[#allocation94_spill] sm:$0xff] %v12443_v17  ;;  %v13258_v17 = vld [vmem:[#allocation54_spill] sm:$0xff] }
 0x73e   :  { %13208 = vst [vmem:[#allocation95_spill] sm:$0xff] %v12447_v51  ;;  %v13254_v51 = vld [vmem:[#allocation52_spill] sm:$0xff]  ;;  %v5911_v31 = vmul.f32 %v13259_v63, %v13258_v17  ;;  %v13273_v17 = vld [vmem:[#allocation74_spill] sm:$0xff] }
 0x73f   :  { %13210 = vst [vmem:[#allocation96_spill] sm:$0xff] %v12451_v4  ;;  %v13250_v4 = vld [vmem:[#allocation50_spill] sm:$0xff]  ;;  %v5909_v15 = vmul.f32 %v13255_v3, %v13254_v51  ;;  %v13269_v51 = vld [vmem:[#allocation72_spill] sm:$0xff] }
 0x740   :  { %13218 = vst [vmem:[#allocation31_spill] sm:$0xff] %v12479_v1  ;;  %v5907_v59 = vmul.f32 %v13251_v20, %v13250_v4  ;;  %v13265_v4 = vld [vmem:[#allocation70_spill] sm:$0xff] }
 0x741   :  { %13220 = vst [vmem:[#allocation32_spill] sm:$0xff] %v12483_v36 }
 0x742   :  { %13222 = vst [vmem:[#allocation33_spill] sm:$0xff] %v12487_v41  ;;  %v5920_v41 = vadd.f32 %v5904_v26, %v5888_v22  ;;  %v5923_v32 = vadd.f32 %v5907_v59, %v5891_v12  ;;  %v13278_v12 = vsub.f32 %v12395_v30, %v12459_v60  ;;  %v13286_v30 = vsub.f32 %v12411_v0, %v12475_v16  ;;  %v13287_v60 = vld [vmem:[#allocation9_spill] sm:$0xff]  ;;  %v13303_v0 = vld [vmem:[#allocation3_spill] sm:$0xff] }
 0x743   :  { %13224 = vst [vmem:[#allocation34_spill] sm:$0xff] %v12491_v54  ;;  %v13272_v54 = vld [vmem:[#allocation61_spill] sm:$0xff] }
 0x744   :  { %13226 = vst [vmem:[#allocation35_spill] sm:$0xff] %v12495_v53  ;;  %v13268_v53 = vld [vmem:[#allocation59_spill] sm:$0xff]  ;;  %v5918_v63 = vmul.f32 %v13273_v17, %v13272_v54  ;;  %v13276_v54 = vsub.f32 %v12391_v42, %v12455_v43  ;;  %v13284_v42 = vsub.f32 %v12407_v48, %v12471_v27  ;;  %v13285_v43 = vld [vmem:[#allocation14_spill] sm:$0xff]  ;;  %v13299_v27 = vld [vmem:[#allocation16_spill] sm:$0xff] }
 0x745   :  { %13228 = vst [vmem:[#allocation36_spill] sm:$0xff] %v12499_v24  ;;  %v13264_v24 = vld [vmem:[#allocation57_spill] sm:$0xff]  ;;  %v5916_v3 = vmul.f32 %v13269_v51, %v13268_v53 }
 0x746   :  { %13230 = vst [vmem:[#allocation37_spill] sm:$0xff] %v12503_v50  ;;  %v13260_v50 = vld [vmem:[#allocation55_spill] sm:$0xff]  ;;  %v5914_v20 = vmul.f32 %v13265_v4, %v13264_v24  ;;  %v5925_v4 = vadd.f32 %v5909_v15, %v5893_v10  ;;  %v13300_v15 = vld [vmem:[#allocation90_spill] sm:$0xff] }
 0x747   :  { %13232 = vst [vmem:[#allocation38_spill] sm:$0xff] %v12507_v37  ;;  %v13256_v37 = vld [vmem:[#allocation53_spill] sm:$0xff]  ;;  %v5912_v28 = vmul.f32 %v13261_v46, %v13260_v50  ;;  %v13275_v50 = vld [vmem:[#allocation75_spill] sm:$0xff]  ;;  %v5932_v1 = vadd.f32 %v5916_v3, %v5900_v2 }
 0x748   :  { %13234 = vst [vmem:[#allocation39_spill] sm:$0xff] %v12511_v35  ;;  %v13252_v35 = vld [vmem:[#allocation51_spill] sm:$0xff]  ;;  %v5910_v23 = vmul.f32 %v13257_v19, %v13256_v37  ;;  %v13271_v37 = vld [vmem:[#allocation73_spill] sm:$0xff]  ;;  %v5919_v46 = vmul.f32 %v13275_v50, %v13274_v14  ;;  %v5930_v53 = vadd.f32 %v5914_v20, %v5898_v61  ;;  %v13277_v14 = vld [vmem:[#allocation10_spill] sm:$0xff]  ;;  %v5940_v61 = vmul.f32 %v13285_v43, %v13284_v42 }
 0x749   :  { %13236 = vst [vmem:[#allocation40_spill] sm:$0xff] %v12515_v18  ;;  %v13248_v18 = vld [vmem:[#allocation49_spill] sm:$0xff]  ;;  %v5908_v38 = vmul.f32 %v13253_v39, %v13252_v35  ;;  %v13267_v35 = vld [vmem:[#allocation71_spill] sm:$0xff]  ;;  %v5917_v19 = vmul.f32 %v13271_v37, %v13270_v13  ;;  %v5934_v37 = vadd.f32 %v5918_v63, %v5902_v5  ;;  %v5936_v22 = vmul.f32 %v13277_v14, %v13276_v54  ;;  %v13293_v26 = vld [vmem:[#allocation32_spill] sm:$0xff] }
 0x74a   :  { %v5906_v52 = vmul.f32 %v13249_v8, %v13248_v18  ;;  %v13263_v18 = vld [vmem:[#allocation69_spill] sm:$0xff]  ;;  %v5915_v39 = vmul.f32 %v13267_v35, %v13266_v55  ;;  %v5926_v36 = vadd.f32 %v5910_v23, %v5894_v33  ;;  %v5927_v55 = vadd.f32 %v5911_v31, %v5895_v57  ;;  %v13288_v2 = vld [vmem:[#allocation87_spill] sm:$0xff]  ;;  %v13301_v23 = vld [vmem:[#allocation34_spill] sm:$0xff] }
 0x74b   :  { %v5913_v8 = vmul.f32 %v13263_v18, %v13262_v25  ;;  %v5921_v25 = vadd.f32 %v5905_v7, %v5889_v49  ;;  %v5924_v24 = vadd.f32 %v5908_v38, %v5892_v34  ;;  %v5928_v35 = vadd.f32 %v5912_v28, %v5896_v45  ;;  %v13279_v49 = vld [vmem:[#allocation6_spill] sm:$0xff]  ;;  %v13283_v45 = vld [vmem:[#allocation5_spill] sm:$0xff]  ;;  %v13304_v28 = vld [vmem:[#allocation91_spill] sm:$0xff] }
 0x74c   :  { %v5922_v18 = vadd.f32 %v5906_v52, %v5890_v21  ;;  %v5931_v51 = vadd.f32 %v5915_v39, %v5899_v9  ;;  %v5933_v13 = vadd.f32 %v5917_v19, %v5901_v47  ;;  %v5935_v40 = vadd.f32 %v5919_v46, %v5903_v11  ;;  %v13281_v21 = vld [vmem:[#allocation11_spill] sm:$0xff]  ;;  %v13292_v11 = vld [vmem:[#allocation88_spill] sm:$0xff]  ;;  %v13296_v52 = vld [vmem:[#allocation89_spill] sm:$0xff] }
 0x74d   :  { %v5929_v44 = vadd.f32 %v5913_v8, %v5897_v56  ;;  %v5937_v10 = vmul.f32 %v13279_v49, %v13278_v12  ;;  %v13280_v33 = vsub.f32 %v12399_v29, %v12463_v62  ;;  %v13282_v57 = vsub.f32 %v12403_v58, %v12467_v6  ;;  %v13289_v47 = vld [vmem:[#allocation31_spill] sm:$0xff]  ;;  %v13291_v62 = vld [vmem:[#allocation12_spill] sm:$0xff]  ;;  %v13297_v59 = vld [vmem:[#allocation33_spill] sm:$0xff] }
 0x74e   :  { %v5941_v9 = vmul.f32 %v13287_v60, %v13286_v30  ;;  %v13290_v29 = vsub.f32 %v13288_v2, %v13289_v47  ;;  %v13294_v58 = vsub.f32 %v13292_v11, %v13293_v26  ;;  %v13295_v6 = vld [vmem:[#allocation8_spill] sm:$0xff]  ;;  %v13298_v48 = vsub.f32 %v13296_v52, %v13297_v59  ;;  %v13305_v8 = vld [vmem:[#allocation35_spill] sm:$0xff]  ;;  %v13307_v39 = vld [vmem:[#allocation18_spill] sm:$0xff] }
 0x74f   :  { %v5938_v34 = vmul.f32 %v13281_v21, %v13280_v33  ;;  %v5939_v56 = vmul.f32 %v13283_v45, %v13282_v57  ;;  %v13302_v16 = vsub.f32 %v13300_v15, %v13301_v23  ;;  %v13306_v20 = vsub.f32 %v13304_v28, %v13305_v8  ;;  %v13308_v19 = vld [vmem:[#allocation92_spill] sm:$0xff]  ;;  %v13311_v50 = vld [vmem:[#allocation13_spill] sm:$0xff]  ;;  %v13315_v49 = vld [vmem:[#allocation15_spill] sm:$0xff] }
 0x750   :  { %v5942_v5 = vmul.f32 %v13291_v62, %v13290_v29  ;;  %v5943_v7 = vmul.f32 %v13295_v6, %v13294_v58  ;;  %v5944_v38 = vmul.f32 %v13299_v27, %v13298_v48  ;;  %v13309_v17 = vld [vmem:[#allocation36_spill] sm:$0xff]  ;;  %v13312_v54 = vld [vmem:[#allocation93_spill] sm:$0xff]  ;;  %v13316_v21 = vld [vmem:[#allocation94_spill] sm:$0xff] }
 0x751   :  { %v5945_v31 = vmul.f32 %v13303_v0, %v13302_v16  ;;  %v5946_v3 = vmul.f32 %v13307_v39, %v13306_v20  ;;  %v13310_v63 = vsub.f32 %v13308_v19, %v13309_v17  ;;  %v13313_v14 = vld [vmem:[#allocation37_spill] sm:$0xff]  ;;  %v13317_v57 = vld [vmem:[#allocation38_spill] sm:$0xff]  ;;  %v13320_v30 = vld [vmem:[#allocation95_spill] sm:$0xff] }
 0x752   :  { %v13314_v12 = vsub.f32 %v13312_v54, %v13313_v14  ;;  %v13318_v45 = vsub.f32 %v13316_v21, %v13317_v57  ;;  %v13319_v42 = vld [vmem:[#allocation17_spill] sm:$0xff]  ;;  %v13321_v60 = vld [vmem:[#allocation39_spill] sm:$0xff]  ;;  %v13324_v62 = vld [vmem:[#allocation96_spill] sm:$0xff] }
 0x753   :  { %v5947_v46 = vmul.f32 %v13311_v50, %v13310_v63  ;;  %v13322_v2 = vsub.f32 %v13320_v30, %v13321_v60  ;;  %v13323_v47 = vld [vmem:[#allocation19_spill] sm:$0xff]  ;;  %v13325_v11 = vld [vmem:[#allocation40_spill] sm:$0xff]  ;;  %v13327_v58 = vld [vmem:[#allocation2_spill] sm:$0xff] }
 0x754   :  { %v5948_v33 = vmul.f32 %v13315_v49, %v13314_v12  ;;  %v12669_v43 = vmul.f32 %v13319_v42, %v13318_v45  ;;  %v13326_v26 = vsub.f32 %v13324_v62, %v13325_v11  ;;  %v13328_v52 = vld [vmem:[#allocation20_spill] sm:$0xff]  ;;  %v13329_v48 = vld [vmem:[#allocation21_spill] sm:$0xff]  ;;  %v13330_v15 = vld [vmem:[#allocation22_spill] sm:$0xff] }
 0x755   :  { %v12675_v29 = vmul.f32 %v13323_v47, %v13322_v2  ;;  %v5952_v59 = vmul.f32 %v5920_v41, %v13328_v52  ;;  %v5953_v27 = vmul.f32 %v5921_v25, %v13329_v48  ;;  %v5954_v23 = vmul.f32 %v5922_v18, %v13330_v15  ;;  %v13331_v16 = vld [vmem:[#allocation23_spill] sm:$0xff]  ;;  %v13332_v28 = vld [vmem:[#allocation24_spill] sm:$0xff]  ;;  %v13333_v20 = vld [vmem:[#allocation25_spill] sm:$0xff] }
 0x756   :  { %v12681_v6 = vmul.f32 %v13327_v58, %v13326_v26  ;;  %v5955_v0 = vmul.f32 %v5923_v32, %v13331_v16  ;;  %v5956_v8 = vmul.f32 %v5924_v24, %v13332_v28  ;;  %v5957_v39 = vmul.f32 %v5925_v4, %v13333_v20  ;;  %v13334_v19 = vld [vmem:[#allocation26_spill] sm:$0xff]  ;;  %v13335_v63 = vld [vmem:[#allocation27_spill] sm:$0xff]  ;;  %v13337_v12 = vld [vmem:[#allocation4_spill] sm:$0xff] }
 0x757   :  { %v5958_v17 = vmul.f32 %v5926_v36, %v13334_v19  ;;  %v5959_v50 = vmul.f32 %v5927_v55, %v13335_v63  ;;  %v13336_v54 = vld [vmem:[#allocation7_spill] sm:$0xff]  ;;  %v5961_v49 = vmul.f32 %v5929_v44, %v13337_v12  ;;  %v13338_v21 = vld [vmem:[#allocation28_spill] sm:$0xff]  ;;  %v13339_v57 = vld [vmem:[#allocation29_spill] sm:$0xff]  ;;  %v5968_v2 = vsub.f32 %v5936_v22, %v5952_v59 }
 0x758   :  { %v5960_v14 = vmul.f32 %v5928_v35, %v13336_v54  ;;  %v5962_v41 = vmul.f32 %v5930_v53, %v13338_v21  ;;  %v5963_v25 = vmul.f32 %v5931_v51, %v13339_v57  ;;  %v13340_v45 = vld [vmem:[#allocation30_spill] sm:$0xff]  ;;  %v13342_v30 = vld [vmem:[#allocation43_spill] sm:$0xff]  ;;  %v13343_v60 = vld [vmem:[#allocation44_spill] sm:$0xff]  ;;  %v5969_v36 = vsub.f32 %v5937_v10, %v5953_v27 }
 0x759   :  { %v5964_v18 = vmul.f32 %v5932_v1, %v13340_v45  ;;  %v13341_v42 = vld [vmem:[#allocation42_spill] sm:$0xff]  ;;  %v5966_v24 = vmul.f32 %v5934_v37, %v13342_v30  ;;  %v5967_v4 = vmul.f32 %v5935_v40, %v13343_v60  ;;  %v5970_v47 = vsub.f32 %v5938_v34, %v5954_v23 }
 0x75a   :  { %v5965_v32 = vmul.f32 %v5933_v13, %v13341_v42  ;;  %v5971_v55 = vsub.f32 %v5939_v56, %v5955_v0  ;;  %v5972_v62 = vsub.f32 %v5940_v61, %v5956_v8  ;;  %v5973_v35 = vsub.f32 %v5941_v9, %v5957_v39 }
 0x75b   :  { %v5974_v11 = vsub.f32 %v5942_v5, %v5958_v17  ;;  %v5975_v44 = vsub.f32 %v5943_v7, %v5959_v50  ;;  %v5976_v26 = vsub.f32 %v5944_v38, %v5960_v14  ;;  %v5977_v53 = vsub.f32 %v5945_v31, %v5961_v49 }
 0x75c   :  { %v5978_v58 = vsub.f32 %v5946_v3, %v5962_v41  ;;  %v5979_v51 = vsub.f32 %v5947_v46, %v5963_v25  ;;  %v5980_v52 = vsub.f32 %v5948_v33, %v5964_v18  ;;  %v5981_v1 = vsub.f32 %v12669_v43, %v5965_v32 }
 0x75d   :  { %v5982_v13 = vsub.f32 %v12675_v29, %v5966_v24  ;;  %v5983_v37 = vsub.f32 %v12681_v6, %v5967_v4  ;;  %v5984_v40 = vadd.f32 1.0, %v5968_v2  ;;  %v5985_v22 = vadd.f32 1.0, %v5969_v36 }
 0x75e   :  { %v5986_v10 = vadd.f32 1.0, %v5970_v47  ;;  %v5987_v34 = vadd.f32 1.0, %v5971_v55  ;;  %v5988_v56 = vadd.f32 1.0, %v5972_v62  ;;  %v5989_v61 = vadd.f32 1.0, %v5973_v35 }
 0x75f   :  { %v5990_v9 = vadd.f32 1.0, %v5974_v11  ;;  %v6000_v5 = vmul.f32 0.5, %v5984_v40  ;;  %v6001_v7 = vmul.f32 0.5, %v5985_v22  ;;  %v5991_v31 = vadd.f32 1.0, %v5975_v44 }
 0x760   :  { %v6002_v38 = vmul.f32 0.5, %v5986_v10  ;;  %v6003_v3 = vmul.f32 0.5, %v5987_v34  ;;  %v5992_v46 = vadd.f32 1.0, %v5976_v26  ;;  %v6004_v33 = vmul.f32 0.5, %v5988_v56 }
 0x761   :  { %6016 = vst [vmem:[%s12754_s4] sm:$0xff] %v6000_v5  ;;  %v5993_v43 = vadd.f32 1.0, %v5977_v53  ;;  %v6005_v29 = vmul.f32 0.5, %v5989_v61  ;;  %v5994_v6 = vadd.f32 1.0, %v5978_v58  ;;  %v6006_v59 = vmul.f32 0.5, %v5990_v9 }
 0x762   :  { %6017 = vst [vmem:[%s12754_s4 + $0x8] sm:$0xff] %v6001_v7  ;;  %v5995_v48 = vadd.f32 1.0, %v5979_v51  ;;  %v6007_v27 = vmul.f32 0.5, %v5991_v31  ;;  %v5996_v15 = vadd.f32 1.0, %v5980_v52  ;;  %v6008_v23 = vmul.f32 0.5, %v5992_v46 }
 0x763   :  { %6018 = vst [vmem:[%s12754_s4 + $0x10] sm:$0xff] %v6002_v38  ;;  %v5997_v16 = vadd.f32 1.0, %v5981_v1  ;;  %v6009_v0 = vmul.f32 0.5, %v5993_v43  ;;  %v5998_v28 = vadd.f32 1.0, %v5982_v13  ;;  %v6010_v8 = vmul.f32 0.5, %v5994_v6 }
 0x764   :  { %6019 = vst [vmem:[%s12754_s4 + $0x18] sm:$0xff] %v6003_v3  ;;  %v5999_v20 = vadd.f32 1.0, %v5983_v37  ;;  %v6011_v39 = vmul.f32 0.5, %v5995_v48  ;;  %v6012_v19 = vmul.f32 0.5, %v5996_v15 }
 0x765   :  { %6020 = vst [vmem:[%s12754_s4 + $0x20] sm:$0xff] %v6004_v33  ;;  %v6013_v17 = vmul.f32 0.5, %v5997_v16  ;;  %v6014_v63 = vmul.f32 0.5, %v5998_v28 }
 0x766   :  { %6021 = vst [vmem:[%s12754_s4 + $0x28] sm:$0xff] %v6005_v29  ;;  %v6015_v50 = vmul.f32 0.5, %v5999_v20 }
 0x767   :  { %6022 = vst [vmem:[%s12754_s4 + $0x30] sm:$0xff] %v6006_v59 }
 0x768   :  { %6023 = vst [vmem:[%s12754_s4 + $0x38] sm:$0xff] %v6007_v27 }
 0x769   :  { %6024 = vst [vmem:[%s12754_s4 + $0x40] sm:$0xff] %v6008_v23 }
 0x76a   :  { %6025 = vst [vmem:[%s12754_s4 + $0x48] sm:$0xff] %v6009_v0 }
 0x76b   :  { %6026 = vst [vmem:[%s12754_s4 + $0x50] sm:$0xff] %v6010_v8 }
 0x76c   :  { %6027 = vst [vmem:[%s12754_s4 + $0x58] sm:$0xff] %v6011_v39 }
 0x76d   :  { %6028 = vst [vmem:[%s12754_s4 + $0x60] sm:$0xff] %v6012_v19 }
 0x76e   :  { %6029 = vst [vmem:[%s12754_s4 + $0x68] sm:$0xff] %v6013_v17 }
 0x76f   :  { %6030 = vst [vmem:[%s12754_s4 + $0x70] sm:$0xff] %v6014_v63 }
 0x770   :  { %6031 = vst [vmem:[%s12754_s4 + $0x78] sm:$0xff] %v6015_v50 }

</bundles_post_ra>
